<compile_context>
chip_gen: v7x
topology: tpu7x:2x2x1
jax: 0.10.0
libtpu: 0.0.40
codegen_flags: <defaults>
</compile_context>

<pallas_src>
import math

import jax
import jax.numpy as jnp
from jax import lax
from jax.experimental import pallas as pl
from jax.experimental.pallas import tpu as pltpu


# f32 bit-field constants for exact round-to-nearest-power-of-two.
_MANT_MASK = 0x007FFFFF        # mantissa bits
_EXP_SIGN_MASK = -0x00800000   # int32 view of 0xFF800000 (sign + exponent bits)
_EXP_ONE = 0x00800000          # +1 in the exponent field
_SQRT2_MANT = 0x3504F4         # smallest f32 mantissa field whose value exceeds sqrt(2)


# ----------------------------------------------------------------------------
# Plain-JAX glue: one-time lazy init done by the module on its first forward.
# ----------------------------------------------------------------------------
def batch_mse(x, n_bits):
    """Per-channel MSE scale search (channel_wise + 'mse' branch).  x: (C, D)."""
    n_steps = 2 ** n_bits
    x_max = x.max(axis=-1)
    x_min = x.min(axis=-1)
    best_score = jnp.full((x.shape[0],), 1e10, jnp.float32)
    best_delta = jnp.ones((x.shape[0],), jnp.float32)
    best_zp = jnp.zeros((x.shape[0],), jnp.float32)
    for i in range(80):
        new_max = x_max * (1.0 - i * 0.01)
        new_min = x_min * (1.0 - i * 0.01)
        delta = (new_max - new_min) / (n_steps - 1)
        zp = jnp.round(-new_min / delta)
        xq = jnp.clip(jnp.round(x / delta[:, None]) + zp[:, None], 0, n_steps - 1)
        xfq = (xq - zp[:, None]) * delta[:, None]
        score = jnp.mean(jnp.abs(x - xfq) ** 2.4, axis=-1)
        better = score < best_score
        best_score = jnp.where(better, score, best_score)
        best_delta = jnp.where(better, delta, best_delta)
        best_zp = jnp.where(better, zp, best_zp)
    return best_delta[:, None], best_zp[:, None]


def lazy_init(ori_weight, aux_R, n_bits=8, alpha=1.5):
    """Mirrors the `if self.inited is False:` block of IntLoRA_SHIFT.forward."""
    n_levels = 2 ** n_bits
    aux_abs_max = jnp.minimum(jnp.abs(aux_R.max(axis=-1, keepdims=True)),
                              jnp.abs(aux_R.min(axis=-1, keepdims=True)))
    w_abs_max = jnp.maximum(jnp.abs(ori_weight.max(axis=-1, keepdims=True)),
                            jnp.abs(ori_weight.min(axis=-1, keepdims=True)))
    aux_R = (w_abs_max ** alpha) / ((aux_abs_max + 1e-8) ** alpha) * aux_R
    w_shifted = ori_weight - aux_R
    delta, zero_point = batch_mse(w_shifted, n_bits)          # (O,1), (O,1)
    wq_round = jnp.round(w_shifted / delta) + zero_point       # round_ste forward
    wq_round = jnp.clip(wq_round, 0, n_levels - 1)             # asymmetric clamp
    return aux_R, delta, zero_point, wq_round


# ----------------------------------------------------------------------------
# Pallas kernel: fused weight reconstruction + linear.
# ----------------------------------------------------------------------------
def _intlora_shift_kernel(x_ref, wq_ref, scale_ref, auxR_ref,
                          loraB_ref, loraA_ref, bias_ref, out_ref, acc_ref):
    k = pl.program_id(2)

    @pl.when(k == 0)
    def _():
        acc_ref[...] = jnp.zeros_like(acc_ref)

    # Per-output-channel quant params: [:, 0] = zero_point - 128 (int8 packing
    # offset folded in offline), [:, 1] = delta.
    scale = scale_ref[...]                                     # (to, 2) f32
    zp_off = scale[:, 0:1]
    delta = scale[:, 1:2]

    # int8 -> f32; zero_point is integer-valued, so w_int is exact.
    w_int = wq_ref[...].astype(jnp.int32).astype(jnp.float32) - zp_off

    # Low-rank update on the MXU (K = padded rank).  The main matmul leaves the
    # MXU >2x idle on v6e/v7x while the VALU is the binding slot, so this K=8
    # matmul is effectively free there.  (On v5e, if profiling shows the
    # 4x128x128 MXU saturated, a rank-1 VPU loop is the alternative.)
    lora = auxR_ref[...].astype(jnp.float32) + jnp.dot(
        loraB_ref[...], loraA_ref[...], preferred_element_type=jnp.float32)

    denom = jnp.where(w_int == 0.0, 1.0, w_int)
    # TODO(synk): `lora * pl.reciprocal(denom, approx=True)` would move the
    # divide onto the idle EUP slot but can flip the power-of-two rounding near
    # the sqrt(2) boundary; kept as an exact divide for bit-faithfulness.
    wu = delta + lora / denom

    # Round-to-nearest-power-of-two via f32 bit manipulation: |wu| rounds up to
    # the next exponent iff its mantissa >= sqrt(2).  Integer VPU ops replace
    # the single-slot EUP log2/exp2 pair; the sign bit rides along for free
    # (and +/-0 stays 0, matching sign(0) * 2^round(log2(eps)) * w_int == 0).
    bits = pltpu.bitcast(wu, jnp.int32)
    mant = bits & _MANT_MASK
    inc = jnp.where(mant >= _SQRT2_MANT, _EXP_ONE, 0)
    pow2 = pltpu.bitcast((bits & _EXP_SIGN_MASK) + inc, jnp.float32)

    # Weight is exactly (+/-)2^shift * (8-bit integer) -> lossless in bf16
    # (|w_int| <= 255 < 2^9).
    weight = (pow2 * w_int).astype(jnp.bfloat16)               # (to, ti)

    # Main matmul on the MXU: bf16 x bf16 -> f32 accumulate (x @ W^T).
    acc_ref[...] += lax.dot_general(
        x_ref[...], weight, (((1,), (1,)), ((), ())),
        preferred_element_type=jnp.float32)

    @pl.when(k == pl.num_programs(2) - 1)
    def _():
        out_ref[...] = (acc_ref[...] + bias_ref[...]).astype(out_ref.dtype)


def _round_up(a, b):
    return (a + b - 1) // b * b


def _pick_tile(dim, candidates):
    """Largest lane/MXU-aligned candidate dividing `dim`; else pad `dim`."""
    for t in candidates:
        if t <= dim and dim % t == 0:
            return t, dim
    t = candidates[-1]
    return t, _round_up(dim, t)


def intlora_shift_linear(x, wq_i8, zero_point, delta, aux_R, loraB, loraA, bias):
    """Fused IntLoRA_SHIFT forward: y = x @ W_reconstructed^T + bias.

    x: (M, I); wq_i8: (O, I) int8 (= rounded weight - 128); zero_point/delta:
    (O, 1); aux_R: (O, I); loraB: (O, r); loraA: (r, I); bias: (O,).
    """
    M, I = x.shape
    O = wq_i8.shape[0]
    r = loraA.shape[0]
    out_dtype = x.dtype

    # --- tile selection: MXU-sized, lane-aligned, no fixed-256 M padding -----
    ti, i_pad = _pick_tile(I, (1024, 768, 512, 384, 256))
    to, o_pad = _pick_tile(O, (512, 384, 256, 128))
    tm = min(512, _round_up(M, 8))
    m_pad = _round_up(M, tm)
    # v7x shards "parallel" grid axes over 2 TensorCores: keep >= 2 blocks on a
    # parallel axis when possible (harmless on single-TC v5e/v6e).
    if (m_pad // tm) * (o_pad // to) < 2:
        if to % 256 == 0:
            to //= 2
        elif tm % 16 == 0:
            tm //= 2
    r_pad = _round_up(max(r, 8), 8)

    # --- one-time wrapper-side casts / padding (HBM traffic reduction) -------
    # x and aux_R are streamed as bf16: they dominate per-step DMA bytes, x is
    # bf16-rounded for the MXU anyway, and aux_R only feeds the pow2 rounding.
    xb = x.astype(jnp.bfloat16)
    auxb = aux_R.astype(jnp.bfloat16)
    wq = wq_i8
    if m_pad != M or i_pad != I:
        xb = jnp.pad(xb, ((0, m_pad - M), (0, i_pad - I)))
    if o_pad != O or i_pad != I:
        wq = jnp.pad(wq, ((0, o_pad - O), (0, i_pad - I)))
        auxb = jnp.pad(auxb, ((0, o_pad - O), (0, i_pad - I)))
    scale = jnp.concatenate(
        [zero_point.reshape(-1, 1).astype(jnp.float32) - 128.0,   # fold packing offset
         delta.reshape(-1, 1).astype(jnp.float32)], axis=1)       # (O, 2)
    lB = loraB.astype(jnp.float32)
    lA = loraA.astype(jnp.float32)
    bias2 = bias.reshape(1, -1).astype(jnp.float32)
    if o_pad != O:
        scale = jnp.pad(scale, ((0, o_pad - O), (0, 0)))
        bias2 = jnp.pad(bias2, ((0, 0), (0, o_pad - O)))
    if o_pad != O or r_pad != r:
        lB = jnp.pad(lB, ((0, o_pad - O), (0, r_pad - r)))
    if r_pad != r or i_pad != I:
        lA = jnp.pad(lA, ((0, r_pad - r), (0, i_pad - I)))

    grid = (m_pad // tm, o_pad // to, i_pad // ti)
    # TODO(synk): for M/tm > 1 (long prefill / training), a reconstruct-once
    # path (VMEM bf16 weight cache per o-row, or a two-pass materialize-then-
    # matmul) would avoid repeating the ~20-op/element reconstruction and the
    # weight-side stream per m tile.

    out = pl.pallas_call(
        _intlora_shift_kernel,
        out_shape=jax.ShapeDtypeStruct((m_pad, o_pad), out_dtype),
        grid_spec=pltpu.PrefetchScalarGridSpec(
            num_scalar_prefetch=0,
            grid=grid,
            in_specs=[
                pl.BlockSpec((tm, ti), lambda m, o, k: (m, k)),      # x (bf16)
                pl.BlockSpec((to, ti), lambda m, o, k: (o, k)),      # wq (int8)
                pl.BlockSpec((to, 2), lambda m, o, k: (o, 0)),       # [zp-128, delta]
                pl.BlockSpec((to, ti), lambda m, o, k: (o, k)),      # aux_R (bf16)
                pl.BlockSpec((to, r_pad), lambda m, o, k: (o, 0)),   # loraB.weight
                pl.BlockSpec((r_pad, ti), lambda m, o, k: (0, k)),   # loraA.weight
                pl.BlockSpec((1, to), lambda m, o, k: (0, o)),       # bias
            ],
            out_specs=pl.BlockSpec((tm, to), lambda m, o, k: (m, o)),
            scratch_shapes=[pltpu.VMEM((tm, to), jnp.float32)],
        ),
        compiler_params=pltpu.CompilerParams(
            dimension_semantics=("parallel", "parallel", "arbitrary")),
    )(xb, wq, scale, auxb, lB, lA, bias2)
    return out[:M, :O]


# ----------------------------------------------------------------------------
# Pure-JAX references for the sanity check.
# ----------------------------------------------------------------------------
def _round_pow2_f32(wu):
    """Exact sign-preserving round of wu to the nearest power of two."""
    bits = lax.bitcast_convert_type(wu.astype(jnp.float32), jnp.int32)
    mant = bits & _MANT_MASK
    inc = jnp.where(mant >= _SQRT2_MANT, _EXP_ONE, 0)
    return lax.bitcast_convert_type((bits & _EXP_SIGN_MASK) + inc, jnp.float32)


def reference_forward_module(x, wq_round, zero_point, delta, aux_R_stored,
                             loraB, loraA, bias):
    """Module-faithful fp32 forward (log2/round/exp2, fp32 matmul), evaluated
    on the parameters exactly as the kernel stores them (aux_R held in bf16)."""
    w_int = wq_round - zero_point
    lora = aux_R_stored + jnp.matmul(loraB, loraA, precision=lax.Precision.HIGHEST)
    wu = delta + lora / jnp.where(w_int == 0, 1.0, w_int)
    weight = (jnp.sign(wu)
              * jnp.exp2(jnp.round(jnp.log2(jnp.abs(wu) + 1e-16)))
              * w_int)
    return jnp.dot(x, weight.T, precision=lax.Precision.HIGHEST) + bias


def reference_forward_kernel_math(x, wq_round, zero_point, delta, aux_R_stored,
                                  loraB, loraA, bias):
    """Plain-JAX replica of exactly what the Pallas kernel computes."""
    w_int = wq_round - zero_point
    lora = aux_R_stored + jnp.matmul(loraB, loraA, precision=lax.Precision.HIGHEST)
    wu = delta + lora / jnp.where(w_int == 0, 1.0, w_int)
    weight = (_round_pow2_f32(wu) * w_int).astype(jnp.bfloat16).astype(jnp.float32)
    xb = x.astype(jnp.bfloat16).astype(jnp.float32)
    return jnp.dot(xb, weight.T, precision=lax.Precision.HIGHEST) + bias


if __name__ == "__main__":
    key = jax.random.PRNGKey(0)
    batch, seq = 2, 192
    in_features, out_features, rank = 768, 512, 4
    n_bits, alpha = 8, 1.5

    k1, k2, k3, k4, k5 = jax.random.split(key, 5)
    bound = 1.0 / math.sqrt(in_features)
    # Deterministic synthetic parameters (shapes match the module's __init__).
    ori_weight = jax.random.uniform(k1, (out_features, in_features), jnp.float32,
                                    -bound, bound)
    ori_bias = jax.random.uniform(k2, (out_features,), jnp.float32, -bound, bound)
    loraA_w = jax.random.uniform(k3, (rank, in_features), jnp.float32, -bound, bound)
    loraB_w = jnp.zeros((out_features, rank), jnp.float32)    # nn.init.zeros_
    aux_R0 = 0.5 * jax.random.laplace(k4, (out_features, in_features), jnp.float32)
    x = jax.random.normal(k5, (batch, seq, in_features), jnp.float32)

    # One-time lazy init (plain-JAX parameter setup, as in the first forward).
    aux_R, delta, zero_point, wq_round = lazy_init(ori_weight, aux_R0,
                                                   n_bits=n_bits, alpha=alpha)
    # Storage formats: rounded [0,255] weight packed losslessly into int8;
    # aux_R stored in bf16 (it dominates weight-side HBM traffic and only
    # feeds the power-of-two rounding).  References use the same stored value.
    wq_i8 = (wq_round - 128.0).astype(jnp.int8)
    aux_R_stored = aux_R.astype(jnp.bfloat16).astype(jnp.float32)

    # TODO(synk): act_quantizer (UniformAffineQuantizer) path not implemented;
    #             the module default activation_params=None skips it.
    x2 = x.reshape(-1, in_features)
    out = intlora_shift_linear(x2, wq_i8, zero_point, delta, aux_R_stored,
                               loraB_w, loraA_w, ori_bias)
    out = out.reshape(batch, seq, out_features)
    jax.block_until_ready(out)

    assert bool(jnp.all(jnp.isfinite(out)))

    # (1) Tight check against a plain-JAX replica of the kernel math.
    ref_k = reference_forward_kernel_math(
        x2, wq_round, zero_point, delta, aux_R_stored, loraB_w, loraA_w, ori_bias
    ).reshape(batch, seq, out_features)
    assert bool(jnp.allclose(out, ref_k, rtol=1e-4, atol=1e-4)), \
        f"kernel-math max abs err {float(jnp.max(jnp.abs(out - ref_k)))}"

    # (2) Check against the module-faithful fp32 math (log2/round/exp2, fp32
    #     matmul) on the stored parameters.  Intended deviations: (a) bf16
    #     rounding of the activations fed to the MXU (the reconstructed-weight
    #     bf16 cast is lossless), and (b) weight elements whose log2 lies
    #     within ~1e-7 of a rounding boundary, where exact power-of-two
    #     rounding and fp32 log2+round may pick adjacent powers; such flips
    #     touch only isolated output columns, hence a mismatch-fraction guard.
    ref_m = reference_forward_module(
        x2, wq_round, zero_point, delta, aux_R_stored, loraB_w, loraA_w, ori_bias
    ).reshape(batch, seq, out_features)
    err = jnp.abs(out - ref_m)
    tol = 5e-3 * jnp.abs(ref_m) + 2e-2
    frac_bad = float(jnp.mean((err > tol).astype(jnp.float32)))
    assert frac_bad <= 2e-3, f"module-reference mismatch fraction {frac_bad}"

    print("KERNEL_OK")
</pallas_src>

<mosaic_0001>
module attributes {stable_mosaic.version = 11 : i64} {
  func.func @_intlora_shift_kernel(%arg0: i32, %arg1: i32, %arg2: i32, %arg3: memref<384x768xbf16, #tpu.memory_space<vmem>>, %arg4: memref<256x768xi8, #tpu.memory_space<vmem>>, %arg5: memref<256x2xf32, #tpu.memory_space<vmem>>, %arg6: memref<256x768xbf16, #tpu.memory_space<vmem>>, %arg7: memref<256x8xf32, #tpu.memory_space<vmem>>, %arg8: memref<8x768xf32, #tpu.memory_space<vmem>>, %arg9: memref<1x256xf32, #tpu.memory_space<vmem>>, %arg10: memref<384x256xf32, #tpu.memory_space<vmem>>, %arg11: memref<384x256xf32, #tpu.memory_space<vmem>>) attributes {dimension_semantics = [#tpu.dimension_semantics<parallel>, #tpu.dimension_semantics<parallel>, #tpu.dimension_semantics<arbitrary>], iteration_bounds = array<i64: 1, 2, 1>, scalar_prefetch = 0 : i64, scratch_operands = 1 : i64, tpu.core_type = #tpu.core_type<tc>, window_params = [{transform_indices = @transform_0, window_bounds = array<i64: 384, 768>}, {transform_indices = @transform_1, window_bounds = array<i64: 256, 768>}, {transform_indices = @transform_2, window_bounds = array<i64: 256, 2>}, {transform_indices = @transform_3, window_bounds = array<i64: 256, 768>}, {transform_indices = @transform_4, window_bounds = array<i64: 256, 8>}, {transform_indices = @transform_5, window_bounds = array<i64: 8, 768>}, {transform_indices = @transform_6, window_bounds = array<i64: 1, 256>}, {transform_indices = @transform_7, window_bounds = array<i64: 384, 256>}]} {
    %c0_i32 = arith.constant 0 : i32
    %0 = arith.cmpi eq, %arg2, %c0_i32 : i32
    %1 = arith.extui %0 : i1 to i32
    %c0_i32_0 = arith.constant 0 : i32
    %2 = arith.cmpi ne, %1, %c0_i32_0 : i32
    scf.if %2 {
      %cst_22 = arith.constant 0.000000e+00 : f32
      %46 = vector.broadcast %cst_22 : f32 to vector<384x256xf32>
      %c0_23 = arith.constant 0 : index
      %c0_24 = arith.constant 0 : index
      %47 = vector.load %arg11[%c0_23, %c0_24] : memref<384x256xf32, #tpu.memory_space<vmem>>, vector<384x256xf32>
      tpu.vector_store %arg11[%c0_23, %c0_24], %46 {strides = array<i32>} : memref<384x256xf32, #tpu.memory_space<vmem>>, vector<384x256xf32>,
    } else {
    }
    %c0 = arith.constant 0 : index
    %c0_1 = arith.constant 0 : index
    %3 = vector.load %arg5[%c0, %c0_1] : memref<256x2xf32, #tpu.memory_space<vmem>>, vector<256x2xf32>
    %4 = vector.extract_strided_slice %3 {offsets = [0, 0], sizes = [256, 1], strides = [1, 1]} : vector<256x2xf32> to vector<256x1xf32>
    %5 = vector.extract_strided_slice %3 {offsets = [0, 1], sizes = [256, 1], strides = [1, 1]} : vector<256x2xf32> to vector<256x1xf32>
    %c0_2 = arith.constant 0 : index
    %c0_3 = arith.constant 0 : index
    %6 = vector.load %arg4[%c0_2, %c0_3] : memref<256x768xi8, #tpu.memory_space<vmem>>, vector<256x768xi8>
    %7 = arith.extsi %6 : vector<256x768xi8> to vector<256x768xi32>
    %8 = arith.sitofp %7 : vector<256x768xi32> to vector<256x768xf32>
    %9 = vector.broadcast %4 : vector<256x1xf32> to vector<256x768xf32>
    %10 = arith.subf %8, %9 : vector<256x768xf32>
    %c0_4 = arith.constant 0 : index
    %c0_5 = arith.constant 0 : index
    %11 = vector.load %arg6[%c0_4, %c0_5] : memref<256x768xbf16, #tpu.memory_space<vmem>>, vector<256x768xbf16>
    %12 = arith.extf %11 : vector<256x768xbf16> to vector<256x768xf32>
    %c0_6 = arith.constant 0 : index
    %c0_7 = arith.constant 0 : index
    %13 = vector.load %arg7[%c0_6, %c0_7] : memref<256x8xf32, #tpu.memory_space<vmem>>, vector<256x8xf32>
    %c0_8 = arith.constant 0 : index
    %c0_9 = arith.constant 0 : index
    %14 = vector.load %arg8[%c0_8, %c0_9] : memref<8x768xf32, #tpu.memory_space<vmem>>, vector<8x768xf32>
    %cst = arith.constant dense<0.000000e+00> : vector<256x768xf32>
    %15 = tpu.matmul %13, %14, %cst {dimension_numbers = #tpu.dot_dimension_numbers<[1], [0], [0], [1], [0, 0, 1, 1], [], []>} : vector<256x8xf32>, vector<8x768xf32>, vector<256x768xf32> -> vector<256x768xf32>
    %16 = arith.addf %12, %15 : vector<256x768xf32>
    %cst_10 = arith.constant 0.000000e+00 : f32
    %17 = vector.broadcast %cst_10 : f32 to vector<256x768xf32>
    %18 = arith.cmpf oeq, %10, %17 : vector<256x768xf32>
    %cst_11 = arith.constant 1.000000e+00 : f32
    %19 = vector.broadcast %cst_11 : f32 to vector<256x768xf32>
    %20 = arith.select %18, %19, %10 : vector<256x768xi1>, vector<256x768xf32>
    %21 = arith.divf %16, %20 : vector<256x768xf32>
    %22 = vector.broadcast %5 : vector<256x1xf32> to vector<256x768xf32>
    %23 = arith.addf %22, %21 : vector<256x768xf32>
    %24 = tpu.bitcast %23 : vector<256x768xf32> -> vector<256x768xi32>
    %c8388607_i32 = arith.constant 8388607 : i32
    %25 = vector.broadcast %c8388607_i32 : i32 to vector<256x768xi32>
    %26 = arith.andi %24, %25 : vector<256x768xi32>
    %c3474676_i32 = arith.constant 3474676 : i32
    %27 = vector.broadcast %c3474676_i32 : i32 to vector<256x768xi32>
    %28 = arith.cmpi sge, %26, %27 : vector<256x768xi32>
    %c8388608_i32 = arith.constant 8388608 : i32
    %c0_i32_12 = arith.constant 0 : i32
    %29 = vector.broadcast %c8388608_i32 : i32 to vector<256x768xi32>
    %30 = vector.broadcast %c0_i32_12 : i32 to vector<256x768xi32>
    %31 = arith.select %28, %29, %30 : vector<256x768xi1>, vector<256x768xi32>
    %c-8388608_i32 = arith.constant -8388608 : i32
    %32 = vector.broadcast %c-8388608_i32 : i32 to vector<256x768xi32>
    %33 = arith.andi %24, %32 : vector<256x768xi32>
    %34 = arith.addi %33, %31 : vector<256x768xi32>
    %35 = tpu.bitcast %34 : vector<256x768xi32> -> vector<256x768xf32>
    %36 = arith.mulf %35, %10 : vector<256x768xf32>
    %37 = arith.truncf %36 : vector<256x768xf32> to vector<256x768xbf16>
    %c0_13 = arith.constant 0 : index
    %c0_14 = arith.constant 0 : index
    %38 = vector.load %arg11[%c0_13, %c0_14] : memref<384x256xf32, #tpu.memory_space<vmem>>, vector<384x256xf32>
    %c0_15 = arith.constant 0 : index
    %c0_16 = arith.constant 0 : index
    %39 = vector.load %arg3[%c0_15, %c0_16] : memref<384x768xbf16, #tpu.memory_space<vmem>>, vector<384x768xbf16>
    %cst_17 = arith.constant dense<0.000000e+00> : vector<384x256xf32>
    %40 = tpu.matmul %39, %37, %cst_17 {dimension_numbers = #tpu.dot_dimension_numbers<[1], [1], [0], [0], [0, 0, 1, 0], [], []>} : vector<384x768xbf16>, vector<256x768xbf16>, vector<384x256xf32> -> vector<384x256xf32>
    %41 = arith.addf %38, %40 : vector<384x256xf32>
    %c0_18 = arith.constant 0 : index
    %c0_19 = arith.constant 0 : index
    %42 = vector.load %arg11[%c0_18, %c0_19] : memref<384x256xf32, #tpu.memory_space<vmem>>, vector<384x256xf32>
    tpu.vector_store %arg11[%c0_18, %c0_19], %41 {strides = array<i32>} : memref<384x256xf32, #tpu.memory_space<vmem>>, vector<384x256xf32>,
    %c0_i32_20 = arith.constant 0 : i32
    %43 = arith.cmpi eq, %arg2, %c0_i32_20 : i32
    %44 = arith.extui %43 : i1 to i32
    %c0_i32_21 = arith.constant 0 : i32
    %45 = arith.cmpi ne, %44, %c0_i32_21 : i32
    scf.if %45 {
      %c0_22 = arith.constant 0 : index
      %c0_23 = arith.constant 0 : index
      %46 = vector.load %arg11[%c0_22, %c0_23] : memref<384x256xf32, #tpu.memory_space<vmem>>, vector<384x256xf32>
      %c0_24 = arith.constant 0 : index
      %c0_25 = arith.constant 0 : index
      %47 = vector.load %arg9[%c0_24, %c0_25] : memref<1x256xf32, #tpu.memory_space<vmem>>, vector<1x256xf32>
      %48 = vector.broadcast %47 : vector<1x256xf32> to vector<384x256xf32>
      %49 = arith.addf %46, %48 : vector<384x256xf32>
      %c0_26 = arith.constant 0 : index
      %c0_27 = arith.constant 0 : index
      %50 = vector.load %arg10[%c0_26, %c0_27] : memref<384x256xf32, #tpu.memory_space<vmem>>, vector<384x256xf32>
      tpu.vector_store %arg10[%c0_26, %c0_27], %49 {strides = array<i32>} : memref<384x256xf32, #tpu.memory_space<vmem>>, vector<384x256xf32>,
    } else {
    }
    return
  }
  func.func @transform_0(%arg0: i32, %arg1: i32, %arg2: i32) -> (i32, i32) {
    %c0_i32 = arith.constant 0 : i32
    return %arg0, %arg2 : i32, i32
  }
  func.func @transform_1(%arg0: i32, %arg1: i32, %arg2: i32) -> (i32, i32) {
    %c0_i32 = arith.constant 0 : i32
    return %arg1, %arg2 : i32, i32
  }
  func.func @transform_2(%arg0: i32, %arg1: i32, %arg2: i32) -> (i32, i32) {
    %c0_i32 = arith.constant 0 : i32
    %c0_i32_0 = arith.constant 0 : i32
    return %arg1, %c0_i32 : i32, i32
  }
  func.func @transform_3(%arg0: i32, %arg1: i32, %arg2: i32) -> (i32, i32) {
    %c0_i32 = arith.constant 0 : i32
    return %arg1, %arg2 : i32, i32
  }
  func.func @transform_4(%arg0: i32, %arg1: i32, %arg2: i32) -> (i32, i32) {
    %c0_i32 = arith.constant 0 : i32
    %c0_i32_0 = arith.constant 0 : i32
    return %arg1, %c0_i32 : i32, i32
  }
  func.func @transform_5(%arg0: i32, %arg1: i32, %arg2: i32) -> (i32, i32) {
    %c0_i32 = arith.constant 0 : i32
    %c0_i32_0 = arith.constant 0 : i32
    return %c0_i32, %arg2 : i32, i32
  }
  func.func @transform_6(%arg0: i32, %arg1: i32, %arg2: i32) -> (i32, i32) {
    %c0_i32 = arith.constant 0 : i32
    %c0_i32_0 = arith.constant 0 : i32
    return %c0_i32, %arg1 : i32, i32
  }
  func.func @transform_7(%arg0: i32, %arg1: i32, %arg2: i32) -> (i32, i32) {
    %c0_i32 = arith.constant 0 : i32
    return %arg0, %arg1 : i32, i32
  }
}

</mosaic_0001>

<bundles_post_ra>
// kernel: tpu_custom_call.1
= control target key start
LH: loop header
LB: loop body
LE: loop exit
PB: predicated region body
PF: predicated region fallthrough
CT: control target
= control target key end

     0   :  { %s15524_s0 = inlined_call_operand.hbm [shape: bf16[384,768], index: 0, kind: input, shape index: {}]   ;;  %s15525_s1 = inlined_call_operand.vmem [shape: s8[512,768], index: 1, kind: input, shape index: {}]   ;;  %s15526_s2 = inlined_call_operand.vmem [shape: f32[512,2], index: 2, kind: input, shape index: {}]   ;;  %s15527_s3 = inlined_call_operand.hbm [shape: bf16[512,768], index: 3, kind: input, shape index: {}]   ;;  %s15528_s4 = inlined_call_operand.vmem [shape: f32[512,8], index: 4, kind: input, shape index: {}]   ;;  %s15529_s5 = inlined_call_operand.vmem [shape: f32[8,768], index: 5, kind: input, shape index: {}]   ;;  %s15530_s6 = inlined_call_operand.vmem [shape: f32[1,512], index: 6, kind: input, shape index: {}]   ;;  %s15531_s7 = inlined_call_operand.hbm [shape: f32[384,512], index: 7, kind: output, shape index: {}]  }
   0x1   :  { %15943 = sst [smem:[#allocation204_spill]] %s15524_s0 }
   0x2   :  { %12 = vsyncpa [#allocation4], 0 }
   0x3   :  { %13 = vsyncpa [#allocation7], 0 }
   0x4   :  { %15 = vsyncpa [#allocation7 + $0x1], 0 }
   0x5   :  { %16 = vsyncpa [#allocation5], 0 }
   0x6   :  { %18 = vsyncpa [#allocation5 + $0x1], 0  ;;  %s9425_s24 = smov 0   ;;  %s9427_s25 = smov 0  }
   0x7   :  { %s9429_s26 = smov 0   ;;  %s9431_s27 = smov 0  }
   0x8   :  { %s9433_s28 = smov 0   ;;  %s9435_s29 = smov 0  }
   0x9 LB: > { %s7969_s30 = sadd.s32 4294967295, %s9372_s29   ;;  %s7970_s8 = sadd.s32 4294967294, %s9372_s29   ;;  %s9372_s29 = sphi %s9435_s29, %s24_s29   ;;  %s9368_s28 = sphi %s9433_s28, %s17494_s28   ;;  %s9364_s27 = sphi %s9431_s27, %s17493_s27   ;;  %s9360_s26 = sphi %s9429_s26, %s17492_s26   ;;  %s9356_s25 = sphi %s9427_s25, %s17491_s25   ;;  %s9352_s24 = sphi %s9425_s24, %s17490_s24  }
   0xa   : > { %p147_p0 = scmp.ne.s32.totalorder %s9356_s25, %s9352_s24  ;;  %p9459_p1 = scmp.eq.s32.totalorder %s7969_s30, 0 }
   0xb   : > { %p9463_p2 = scmp.eq.s32.totalorder %s7969_s30, 1  ;;  %p257_p3 = scmp.eq.s32.totalorder %s7970_s8, 1 }
   0xc   : > { %s15944_s9 = scalar_select %p9459_p1, 1, 0 }
   0xd   : > { %s15945_s10 = scalar_select %p9463_p2, 1, 0 }
   0xe   : > { %p9469_p4 = por %p9459_p1, %p147_p0  ;;  %p7971_p5 = scmp.ge.s32.totalorder %s9372_s29, 1 }
   0xf   : > { %p9474_p6 = por %p257_p3, %p147_p0  ;;  %p264_p7 = scmp.lt.s32.totalorder %s9372_s29, 3 }
  0x10   : > { %s15946_s11 = scalar_select %p9469_p4, 1, 0 }
  0x11   : > { %s15947_s12 = scalar_select %p9474_p6, 1, 0 }
  0x12   : > { %p9479_p8 = pnand %p7971_p5, %p264_p7  ;;  %s9374_s14 = smov [#allocation3]  }
  0x13   : > { %s282_s15 = sshll.u32 %s9374_s14, 4  ;;  %s39_s17 = sadd.s32 1, %s9368_s28  ;;  %s283_s15 = int_to_ptr.vmem [resolvable:$true] %s282_s15 }
  0x14   : > { %s15948_s13 = scalar_select %p9479_p8, 1, 0 }
  0x15   : > { %p8468_p9 = pneg %p9479_p8  ;;  %s15950_s0 = sld [smem:[#allocation204_spill]] }
  0x17   : > { %p9488_p11 = pnand %p8468_p9, %p9459_p1 }
  0x19   : > { %p9230_p13 = pneg %p9488_p11 }
  0x1b   : > { %s9228_s20 = scalar_lea.hbm %s15950_s0, 18432 }
  0x1c   : > { %p9229_p12 = scmp.ne.s32.totalorder %s15950_s0, %s9228_s20  ;;  %p9235_p5 = scmp.lt.u32.totalorder %s9228_s20, %s15950_s0 }
  0x1e   : > { %p9231_p0 = pnand %p9230_p13, %p9229_p12 }
  0x20   : > { %p9232_p3 = pneg %p9231_p0 }
  0x22   : > { %p9237_p7 = pnand %p9235_p5, %p9232_p3 }
  0x24   : > { %9240 = shalt.err (!%p9237_p7)
}
  0x25   : > { %s9241_s8 = scalar_lea.vmem %s283_s15, 18432  ;;  %p9249_p4 = scmp.lt.s32.totalorder %s283_s15, %s283_s15 }
  0x26   : > { %p9242_p9 = scmp.ne.s32.totalorder %s283_s15, %s9241_s8  ;;  %p9250_p1 = scmp.lt.s32.totalorder %s9241_s8, %s9241_s8 }
  0x28   : > { %p9244_p10 = pnand %p9242_p9, %p9230_p13  ;;  %p9251_p8 = por %p9250_p1, %p9249_p4 }
  0x2a   : > { %p9245_p6 = pneg %p9244_p10 }
  0x2c   : > { %p9252_p2 = pnand %p9251_p8, %p9245_p6 }
  0x2e   : > { %9255 = shalt.err (!%p9252_p2)
}
  0x2f   : > { %s15536_s14 = smov 384   ;;  %s15537_s18 = smov 24  }
  0x30   : > { %8471 = dma.hbm_to_vmem [thread:$0]  (!%p9488_p11), %s15950_s0, 18432, %s283_s15, [#allocation4], %s15536_s14, %s15536_s14, %s15537_s18  }
  0x31   : > { %p41_p1 = scmp.ge.s32.totalorder %s39_s17, 2  ;;  %s134_s21 = sadd.s32 1, %s9360_s26 }
  0x32   : > { %p141_p2 = scmp.ne.s32.totalorder %s9360_s26, %s9356_s25  ;;  %p142_p4 = scmp.eq.s32.totalorder %s9372_s29, 0 }
  0x33   : > { %s17496_s17 = smov (%p41_p1, %s39_s17), 0  ;;  %p15951_p8 = scmp.ne.s32.totalorder %s15945_s10, 0 }
  0x34   : > { %p143_p6 = por %p142_p4, %p141_p2  ;;  %s129_s16 = ssub.s32 %s9368_s28, %s17496_s17 }
  0x35   : > { %p9520_p10 = por %p15951_p8, %p141_p2  ;;  %p8481_p12 = scmp.lt.s32.totalorder %s9372_s29, 2 }
  0x36   : > { %p132_p13 = scmp.eq.s32.totalorder %s129_s16, 0  ;;  %s329_s23 = sand.u32 1, %s9360_s26  }
  0x37   : > { %s8456_s30 = smul.u32 768, %s329_s23  ;;  %p9532_p11 = pnand %p8481_p12, %p143_p6 }
  0x38   : > { %s9529_s8 = scalar_select %p132_p13, %s9360_s26, %s134_s21  }
  0x39   : > { %s8457_s15 = smul.u32 12288, %s9368_s28  ;;  %s333_s19 = scalar_lea.vmem [#allocation6], %s8456_s30 }
  0x3a   : > { %s343_s20 = sshll.u32 %s333_s19, 4  ;;  %s9543_s21 = scalar_lea.sflag [#allocation7], %s329_s23  ;;  %s9541_s20 = int_to_ptr.vmem [resolvable:$true] %s343_s20 }
  0x3b   : > { %s9539_s0 = scalar_lea.hbm %s15527_s3, %s8457_s15  ;;  %p9258_p3 = pneg %p9532_p11 }
  0x3c   : > { %s9256_s16 = scalar_lea.hbm %s9539_s0, 12288  ;;  %s9261_s15 = scalar_lea.hbm %s15527_s3, 24576 }
  0x3d   : > { %p9257_p0 = scmp.ne.s32.totalorder %s9539_s0, %s9256_s16  ;;  %p9262_p9 = scmp.lt.u32.totalorder %s9539_s0, %s15527_s3 }
  0x3e   : > { %p9263_p1 = scmp.lt.u32.totalorder %s9261_s15, %s9256_s16  ;;  %p9265_p4 = scmp.lt.u32.totalorder %s9256_s16, %s9539_s0 }
  0x3f   : > { %p9259_p5 = pnand %p9258_p3, %p9257_p0 }
  0x40   : > { %p9264_p2 = por %p9263_p1, %p9262_p9 }
  0x41   : > { %p9260_p7 = pneg %p9259_p5 }
  0x42   : > { %p9266_p6 = por %p9265_p4, %p9264_p2 }
  0x44   : > { %p9267_p8 = pnand %p9266_p6, %p9260_p7 }
  0x46   : > { %9270 = shalt.err (!%p9267_p8)
}
  0x47   : > { %s9271_s23 = scalar_lea.vmem %s9541_s20, 12288  ;;  %s9377_s18 = smov [#allocation6]  }
  0x48   : > { %p9272_p12 = scmp.ne.s32.totalorder %s9541_s20, %s9271_s23  ;;  %s9276_s30 = sshll.u32 %s9377_s18, 4  ;;  %s9277_s30 = int_to_ptr.vmem [resolvable:$false] %s9276_s30 }
  0x49   : > { %s9278_s19 = scalar_lea.vmem %s9277_s30, 24576  ;;  %p9279_p5 = scmp.lt.s32.totalorder %s9541_s20, %s9277_s30 }
  0x4a   : > { %p9274_p13 = pnand %p9272_p12, %p9258_p3  ;;  %p9280_p9 = scmp.lt.s32.totalorder %s9278_s19, %s9271_s23 }
  0x4c   : > { %p9275_p0 = pneg %p9274_p13  ;;  %p9281_p1 = por %p9280_p9, %p9279_p5 }
  0x4e   : > { %p9282_p2 = pnand %p9281_p1, %p9275_p0 }
  0x50   : > { %9285 = shalt.err (!%p9282_p2)
}
  0x51   : > { %s15954_s16 = smov 24   ;;  %s15955_s15 = smov 384  }
  0x52   : > { %8475 = dma.hbm_to_vmem [thread:$0]  (!%p9532_p11), %s9539_s0, 12288, %s9541_s20, %s9543_s21, %s15955_s15, %s15955_s15, %s15954_s16  }
  0x53   : > { %p15956_p3 = scmp.ne.s32.totalorder %s15948_s13, 0 }
  0x55   : > { %372 = sbr.rel (%p15956_p3) target bundleno = 1437 (0x59d), region = 48 }
  0x5c   : > { %p15957_p7 = scmp.ne.s32.totalorder %s15944_s9, 0 }
  0x5e   : > { %9339 = dma.done.wait (%p15957_p7), [#allocation4], 18432  }
  0x5f   : > { %9341 = vsyncadd (%p15957_p7), [#allocation4], 4294948864  ;;  %s9581_s10 = sand.u32 1, %s9356_s25   ;;  %p15958_p11 = scmp.ne.s32.totalorder %s15946_s11, 0 }
  0x60   : > { %s15538_s14 = smul.u32 768, %s9581_s10  ;;  %s379_s23 = scalar_lea.sflag [#allocation7], %s9581_s10 }
  0x62   : > { %s9587_s0 = scalar_lea.vmem [#allocation6], %s15538_s14 }
  0x63   : > { %9343 = dma.done.wait (%p15958_p11), %s379_s23, 12288  }
  0x64   : > { %9345 = vsyncadd (%p15958_p11), %s379_s23, 4294955008  ;;  %s7982_s9 = sshll.u32 %s9364_s27, 5  ;;  %v15544_v0 = vmov 0.0   ;;  %v15539_v1 = vmov 0   ;;  %v1720_v2 = vld [vmem:[%s15529_s5 + $0x8] sm:$0xff]  ;;  %v1722_v3 = vld [vmem:[%s15529_s5 + $0x18] sm:$0xff] }
  0x65   : > { %1886 = vmatprep.mubr.f32.mxu0 %v15544_v0  ;;  %2143 = vmatprep.mubr.f32.mxu1 %v15544_v0  ;;  %p457_p4 = scmp.lt.s32.totalorder %s7982_s9, 63  ;;  %v1719_v4 = vld [vmem:[%s15529_s5] sm:$0xff]  ;;  %vm1725_vm0 = vcmask 64512   ;;  %v1721_v5 = vld [vmem:[%s15529_s5 + $0x10] sm:$0xff]  ;;  %v1724_v9 = vld [vmem:[%s15529_s5 + $0x28] sm:$0xff]  ;;  %v15542_v18 = vmov 1  }
  0x66   : > { %8542 = vset.pattern.permute.xlu1 %v15539_v1  ;;  %8541 = vset.pattern.permute.xlu0 %v15539_v1  ;;  %v1723_v11 = vld [vmem:[%s15529_s5 + $0x20] sm:$0xff]  ;;  %s7980_s15 = sshll.u32 %s9364_s27, 3  ;;  %s17445_s14 = smul.u32 768, %s9581_s10 }
  0x67   : > { %s17498_s9 = smov (!%p457_p4, %s7982_s9), 63  ;;  %1822 = vmatprep.subr.mxu0 %v1720_v2  ;;  %2079 = vmatprep.subr.mxu1 %v1722_v3  ;;  %p446_p6 = scmp.lt.s32.totalorder %s7980_s15, 15 }
  0x68   : > { %s7983_s13 = sshll.u32 %s17498_s9, 3  ;;  %1823 = vmatpush1.msra.mxu0 %v1719_v4  ;;  %2080 = vmatpush1.msra.mxu1 %v1721_v5  ;;  %s15196_s18 = scalar_lea.vmem [#allocation8], %s17445_s14 }
  0x69   : > { %s9601_s11 = scalar_lea.vmem %s15528_s4, %s7983_s13  ;;  %s9606_s19 = scalar_lea.vmem %s15526_s2, %s7983_s13  ;;  %2336 = vmatprep.subr.mxu0 %v1724_v9 }
  0x6a   : > { %v1687_v6 = vld [vmem:[%s9601_s11] sm:$0xff]  ;;  %v585_v7 = vld [vmem:[%s9606_s19 + $0x10] sm:$0xff]  ;;  %v1688_v8 = vld [vmem:[%s9601_s11 + $0x8] sm:$0xff]  ;;  %s17500_s15 = smov (!%p446_p6, %s7980_s15), 15  ;;  %s8231_s30 = sshll.u32 %s9364_s27, 8 }
  0x6b   : > { %7987 = vmatmul.mubr.msk.f32.vlgmr.msra.gmra.mrb[0].mxu0 %vm1725_vm0, %v1687_v6  ;;  %8019 = vmatmul.mubr.msk.f32.vlgmr.msra.gmra.mrb[0].mxu1 %vm1725_vm0, %v1687_v6  ;;  %v586_v10 = vld [vmem:[%s9606_s19 + $0x18] sm:$0xff]  ;;  %v1689_v12 = vld [vmem:[%s9601_s11 + $0x10] sm:$0xff]  ;;  %v9640_v13 = vld [vmem:[%s9606_s19 + $0x28] sm:$0xff]  ;;  %s8459_s23 = smul.u32 48, %s17500_s15  ;;  %s7796_s16 = sshll.u32 %s15196_s18, 4  ;;  %s15471_s16 = int_to_ptr.vmem [resolvable:$true] %s7796_s16 }
  0x6c   : > { %1892 = vmatprep.mubr.f32.mxu0 %v15544_v0  ;;  %2149 = vmatprep.mubr.f32.mxu1 %v15544_v0  ;;  %v583_v14 = vld [vmem:[%s9606_s19] sm:$0xff]  ;;  %v1690_v15 = vld [vmem:[%s9601_s11 + $0x18] sm:$0xff]  ;;  %v584_v16 = vld [vmem:[%s9606_s19 + $0x8] sm:$0xff]  ;;  %s7780_s9 = scalar_lea.sflag [#allocation5], %s9581_s10  ;;  %s9286_s20 = scalar_lea.vmem %s15471_s16, 12288 }
  0x6d   : > { %1059 = vperm.xlu1 %8542, %v585_v7   ;;  %2337 = vmatpush1.msra.mxu0 %v1723_v11  ;;  %v1691_v17 = vld [vmem:[%s9601_s11 + $0x20] sm:$0xff]  ;;  %v1692_v19 = vld [vmem:[%s9601_s11 + $0x28] sm:$0xff]  ;;  %v9662_v20 = vld [vmem:[%s9606_s19 + $0x30] sm:$0xff]  ;;  %s9784_s13 = scalar_lea.vmem %s15525_s1, %s8459_s23  ;;  %p9287_p12 = scmp.ne.s32.totalorder %s15471_s16, %s9286_s20 }
  0x6e   : > { %1049 = vperm.xlu0 %8541, %v583_v14   ;;  %v1693_v21 = vld [vmem:[%s9601_s11 + $0x30] sm:$0xff]  ;;  %v587_v22 = vld [vmem:[%s9606_s19 + $0x20] sm:$0xff]  ;;  %v1694_v23 = vld [vmem:[%s9601_s11 + $0x38] sm:$0xff] }
  0x6f   : > { %7988 = vmatmul.mubr.msk.f32.gmra.mrb[2].mxu0 %vm1725_vm0, %v1688_v8  ;;  %8020 = vmatmul.mubr.msk.f32.gmra.mrb[2].mxu1 %vm1725_vm0, %v1688_v8  ;;  %v1695_v24 = vld [vmem:[%s9601_s11 + $0x40] sm:$0xff]  ;;  %v9682_v25 = vld [vmem:[%s9606_s19 + $0x38] sm:$0xff]  ;;  %v1696_v27 = vld [vmem:[%s9601_s11 + $0x48] sm:$0xff]  ;;  %p9288_p13 = pnand %p9287_p12, %p9520_p10 }
  0x70   : > { %1898 = vmatprep.mubr.f32.mxu0 %v15544_v0  ;;  %2155 = vmatprep.mubr.f32.mxu1 %v15544_v0  ;;  %v591_v26 = vld [vmem:[%s9606_s19 + $0x40] sm:$0xff]  ;;  %v9696_v28 = vld [vmem:[%s9606_s19 + $0x48] sm:$0xff]  ;;  %v1697_v29 = vld [vmem:[%s9601_s11 + $0x50] sm:$0xff] }
  0x71   : > { %1064 = vperm.xlu1 %8542, %v586_v10   ;;  %v1698_v30 = vld [vmem:[%s9601_s11 + $0x58] sm:$0xff]  ;;  %v1699_v31 = vld [vmem:[%s9601_s11 + $0x60] sm:$0xff]  ;;  %v9719_v32 = vld [vmem:[%s9606_s19 + $0x50] sm:$0xff]  ;;  %p9289_p0 = pneg %p9288_p13 }
  0x72   : > { %1054 = vperm.xlu0 %8541, %v584_v16   ;;  %v1700_v33 = vld [vmem:[%s9601_s11 + $0x68] sm:$0xff]  ;;  %v9724_v34 = vld [vmem:[%s9606_s19 + $0x58] sm:$0xff]  ;;  %v595_v35 = vld [vmem:[%s9606_s19 + $0x60] sm:$0xff] }
  0x73   : > { %7989 = vmatmul.mubr.msk.f32.gmra.mrb[4].mxu0 %vm1725_vm0, %v1689_v12  ;;  %8021 = vmatmul.mubr.msk.f32.gmra.mrb[4].mxu1 %vm1725_vm0, %v1689_v12  ;;  %v1701_v36 = vld [vmem:[%s9601_s11 + $0x70] sm:$0xff]  ;;  %v9740_v37 = vld [vmem:[%s9606_s19 + $0x78] sm:$0xff]  ;;  %v599_v39 = vld [vmem:[%s9606_s19 + $0x80] sm:$0xff] }
  0x74   : > { %1904 = vmatprep.mubr.f32.mxu0 %v15544_v0  ;;  %2161 = vmatprep.mubr.f32.mxu1 %v15544_v0  ;;  %v1702_v38 = vld [vmem:[%s9601_s11 + $0x78] sm:$0xff]  ;;  %v1703_v40 = vld [vmem:[%s9601_s11 + $0x80] sm:$0xff]  ;;  %v9759_v41 = vld [vmem:[%s9606_s19 + $0x68] sm:$0xff] }
  0x75   : > { %1074 = vperm.xlu1 %8542, %v9640_v13   ;;  %v1704_v42 = vld [vmem:[%s9601_s11 + $0x88] sm:$0xff]  ;;  %v1705_v43 = vld [vmem:[%s9601_s11 + $0x90] sm:$0xff]  ;;  %v1706_v44 = vld [vmem:[%s9601_s11 + $0x98] sm:$0xff] }
  0x76   : > { %8543 = vset.pattern.permute.xlu0 %v15542_v18  ;;  %v9788_v45 = vld [vmem:[%s9606_s19 + $0x70] sm:$0xff]  ;;  %v1707_v46 = vld [vmem:[%s9601_s11 + $0xa0] sm:$0xff]  ;;  %v9795_v47 = vld [vmem:[%s9606_s19 + $0x98] sm:$0xff] }
  0x77   : > { %7990 = vmatmul.mubr.msk.f32.gmra.mrb[6].mxu0 %vm1725_vm0, %v1690_v15  ;;  %8022 = vmatmul.mubr.msk.f32.gmra.mrb[6].mxu1 %vm1725_vm0, %v1690_v15  ;;  %v9800_v48 = vld [vmem:[%s9784_s13] sm:$0xff]  ;;  %v9803_v49 = vld [vmem:[%s9784_s13 + $0x8] sm:$0xff]  ;;  %v9806_v50 = vld [vmem:[%s9784_s13 + $0x10] sm:$0xff] }
  0x78   : > { %1910 = vmatprep.mubr.f32.mxu0 %v15544_v0  ;;  %2167 = vmatprep.mubr.f32.mxu1 %v15544_v0  ;;  %v9811_v51 = vld [vmem:[%s9606_s19 + $0xa0] sm:$0xff]  ;;  %v9814_v52 = vld [vmem:[%s9784_s13 + $0x18] sm:$0xff]  ;;  %v9820_v54 = vld [vmem:[%s9784_s13 + $0x28] sm:$0xff]  ;;  %v675_v55 = vunpack.c.2.s8 %v9800_v48  ;;  %v676_v56 = vunpack.c.2.s8 %v9803_v49  ;;  %v677_v57 = vunpack.c.2.s8 %v9806_v50  ;;  %v681_v62 = vunpack.c.3.s8 %v9800_v48 }
  0x79   : > { %8545 = vset.pattern.permute.xlu1 %v15542_v18  ;;  %3554 = vperm.xlu0 %8543, %v583_v14   ;;  %v9817_v53 = vld [vmem:[%s9784_s13 + $0x20] sm:$0xff]  ;;  %v1708_v58 = vld [vmem:[%s9601_s11 + $0xa8] sm:$0xff]  ;;  %v678_v59 = vunpack.c.2.s8 %v9814_v52  ;;  %v680_v61 = vunpack.c.2.s8 %v9820_v54  ;;  %v9838_v63 = vld [vmem:[%s9606_s19 + $0xb8] sm:$0xff]  ;;  %v682_v6 = vunpack.c.3.s8 %v9803_v49  ;;  %v683_v11 = vunpack.c.3.s8 %v9806_v50 }
  0x7a   : > { %3558 = vperm.xlu1 %8545, %v584_v16   ;;  %v679_v60 = vunpack.c.2.s8 %v9817_v53  ;;  %15959 = vst [vmem:[#allocation12_spill] sm:$0xff] %v9838_v63  ;;  %v9841_v2 = vld [vmem:[%s9784_s13 + $0x30] sm:$0xff]  ;;  %v9845_v3 = vcvt.s32.f32 %v675_v55  ;;  %v9847_v4 = vcvt.s32.f32 %v676_v56  ;;  %v9849_v5 = vcvt.s32.f32 %v677_v57  ;;  %v9856_v8 = vld [vmem:[%s9784_s13 + $0x40] sm:$0xff]  ;;  %v9859_v9 = vld [vmem:[%s9784_s13 + $0x48] sm:$0xff] }
  0x7b   : > { %7991 = vmatmul.mubr.msk.f32.gmra.mrb[8].mxu0 %vm1725_vm0, %v1691_v17  ;;  %8023 = vmatmul.mubr.msk.f32.gmra.mrb[8].mxu1 %vm1725_vm0, %v1691_v17  ;;  %v684_v12 = vunpack.c.3.s8 %v9814_v52  ;;  %v686_v14 = vunpack.c.3.s8 %v9820_v54  ;;  %v9869_v15 = vld [vmem:[%s9784_s13 + $0x50] sm:$0xff]  ;;  %v9872_v16 = vld [vmem:[%s9784_s13 + $0x58] sm:$0xff]  ;;  %v9874_v17 = vcvt.s32.f32 %v678_v59 }
  0x7c   : > { %1916 = vmatprep.mubr.f32.mxu0 %v15544_v0  ;;  %2173 = vmatprep.mubr.f32.mxu1 %v15544_v0 }
  0x7d   : > { %8544 = vset.pattern.permute.xlu0 %v15539_v1 }
  0x7e   : > { %8546 = vset.pattern.permute.xlu1 %v15539_v1  ;;  %1069 = vperm.xlu0 %8544, %v587_v22  }
  0x7f   : > { %7992 = vmatmul.mubr.msk.f32.gmra.mrb[10].mxu0 %vm1725_vm0, %v1692_v19  ;;  %8024 = vmatmul.mubr.msk.f32.gmra.mrb[10].mxu1 %vm1725_vm0, %v1692_v19  ;;  %v9876_v19 = vcvt.s32.f32 %v679_v60 }
  0x80   : > { %1922 = vmatprep.mubr.f32.mxu0 %v15544_v0  ;;  %2179 = vmatprep.mubr.f32.mxu1 %v15544_v0 }
  0x81   : > { %1079 = vperm.xlu1 %8546, %v9662_v20  }
  0x82   : > { %1084 = vperm.xlu0 %8544, %v9682_v25  }
  0x83   : > { %7993 = vmatmul.mubr.msk.f32.gmra.mrb[12].mxu0 %vm1725_vm0, %v1693_v21  ;;  %8025 = vmatmul.mubr.msk.f32.gmra.mrb[12].mxu1 %vm1725_vm0, %v1693_v21  ;;  %v9881_v21 = vcvt.s32.f32 %v681_v62 }
  0x84   : > { %1928 = vmatprep.mubr.f32.mxu0 %v15544_v0  ;;  %2185 = vmatprep.mubr.f32.mxu1 %v15544_v0 }
  0x85   : > { %8547 = vset.pattern.permute.xlu1 %v15542_v18 }
  0x86   : > { %3562 = vperm.xlu1 %8547, %v585_v7   ;;  %1089 = vperm.xlu0 %8544, %v591_v26   ;;  %v9853_v7 = vld [vmem:[%s9784_s13 + $0x38] sm:$0xff] }
  0x87   : > { %7994 = vmatmul.mubr.msk.f32.gmra.mrb[14].mxu0 %vm1725_vm0, %v1694_v23  ;;  %8026 = vmatmul.mubr.msk.f32.gmra.mrb[14].mxu1 %vm1725_vm0, %v1694_v23  ;;  %v694_v23 = vunpack.c.1.s8 %v9853_v7 }
  0x88   : > { %1934 = vmatprep.mubr.f32.mxu0 %v15544_v0  ;;  %2191 = vmatprep.mubr.f32.mxu1 %v15544_v0 }
  0x89   : > { %v9929_v56 = vcvt.s32.f32 %v694_v23 }
  0x8a   : > { %3566 = vperm.xlu1 %8547, %v586_v10   ;;  %8549 = vset.pattern.permute.xlu0 %v15542_v18  ;;  %v1709_v10 = vld [vmem:[%s9601_s11 + $0xb0] sm:$0xff] }
  0x8b   : > { %7995 = vmatmul.mubr.msk.f32.gmra.mrb[16].mxu0 %vm1725_vm0, %v1695_v24  ;;  %8027 = vmatmul.mubr.msk.f32.gmra.mrb[16].mxu1 %vm1725_vm0, %v1695_v24  ;;  %v695_v24 = vunpack.c.1.s8 %v9856_v8  ;;  %15961 = vst [vmem:[#allocation14_spill] sm:$0xff] %v9929_v56  ;;  %v687_v56 = vunpack.c.0.s8 %v9841_v2 }
  0x8c   : > { %1940 = vmatprep.mubr.f32.mxu0 %v15544_v0  ;;  %2197 = vmatprep.mubr.f32.mxu1 %v15544_v0 }
  0x8d   : > { %3570 = vperm.xlu0 %8549, %v587_v22   ;;  %v693_v22 = vunpack.c.1.s8 %v9841_v2  ;;  %v9931_v57 = vcvt.s32.f32 %v695_v24 }
  0x8e   : > { %8548 = vset.pattern.permute.xlu1 %v15539_v1 }
  0x8f   : > { %7996 = vmatmul.mubr.msk.f32.gmra.mrb[18].mxu0 %vm1725_vm0, %v1696_v27  ;;  %8028 = vmatmul.mubr.msk.f32.gmra.mrb[18].mxu1 %vm1725_vm0, %v1696_v27  ;;  %v697_v27 = vunpack.c.1.s8 %v9869_v15  ;;  %v9927_v55 = vcvt.s32.f32 %v693_v22  ;;  %15962 = vst [vmem:[#allocation15_spill] sm:$0xff] %v9931_v57 }
  0x90   : > { %1946 = vmatprep.mubr.f32.mxu0 %v15544_v0  ;;  %2203 = vmatprep.mubr.f32.mxu1 %v15544_v0 }
  0x91   : > { %1094 = vperm.xlu1 %8548, %v9696_v28   ;;  %3586 = vperm.xlu0 %8549, %v591_v26   ;;  %v9890_v26 = vcvt.s32.f32 %v682_v6  ;;  %15960 = vst [vmem:[#allocation13_spill] sm:$0xff] %v9927_v55  ;;  %v9938_v59 = vcvt.s32.f32 %v697_v27  ;;  %v9946_v6 = vld [vmem:[%s9784_s13 + $0x80] sm:$0xff]  ;;  %v15992_v55 = vmov 1  }
  0x92   : > { %v721_v27 = vunpack.c.1.s8 %v9946_v6 }
  0x93   : > { %7997 = vmatmul.mubr.msk.f32.gmra.mrb[20].mxu0 %vm1725_vm0, %v1697_v29  ;;  %8029 = vmatmul.mubr.msk.f32.gmra.mrb[20].mxu1 %vm1725_vm0, %v1697_v29  ;;  %v699_v29 = vunpack.c.2.s8 %v9841_v2  ;;  %15964 = vst [vmem:[#allocation17_spill] sm:$0xff] %v9938_v59 }
  0x94   : > { %1952 = vmatprep.mubr.f32.mxu0 %v15544_v0  ;;  %2209 = vmatprep.mubr.f32.mxu1 %v15544_v0 }
  0x95   : > { %8550 = vset.pattern.permute.xlu1 %v15542_v18  ;;  %8554 = vset.pattern.permute.xlu0 %v15539_v1  ;;  %v9943_v62 = vcvt.s32.f32 %v699_v29 }
  0x96   : > { %3574 = vperm.xlu1 %8550, %v9640_v13   ;;  %1104 = vperm.xlu0 %8554, %v9724_v34   ;;  %v685_v13 = vunpack.c.3.s8 %v9817_v53 }
  0x97   : > { %7998 = vmatmul.mubr.msk.f32.gmra.mrb[22].mxu0 %vm1725_vm0, %v1698_v30  ;;  %8030 = vmatmul.mubr.msk.f32.gmra.mrb[22].mxu1 %vm1725_vm0, %v1698_v30  ;;  %v1710_v30 = vld [vmem:[%s9601_s11 + $0xb8] sm:$0xff]  ;;  %15966 = vst [vmem:[#allocation19_spill] sm:$0xff] %v9943_v62  ;;  %v674_v62 = vunpack.c.1.s8 %v9820_v54 }
  0x98   : > { %1958 = vmatprep.mubr.f32.mxu0 %v15544_v0  ;;  %2215 = vmatprep.mubr.f32.mxu1 %v15544_v0 }
  0x9a   : > { %8551 = vset.pattern.permute.xlu1 %v15539_v1  ;;  %1109 = vperm.xlu0 %8554, %v595_v35  }
  0x9b   : > { %7999 = vmatmul.mubr.msk.f32.gmra.mrb[24].mxu0 %vm1725_vm0, %v1699_v31  ;;  %8031 = vmatmul.mubr.msk.f32.gmra.mrb[24].mxu1 %vm1725_vm0, %v1699_v31  ;;  %v9899_v31 = vld [vmem:[%s9606_s19 + $0x88] sm:$0xff] }
  0x9c   : > { %1964 = vmatprep.mubr.f32.mxu0 %v15544_v0  ;;  %2221 = vmatprep.mubr.f32.mxu1 %v15544_v0 }
  0x9d   : > { %1099 = vperm.xlu1 %8551, %v9719_v32  }
  0x9e   : > { %1124 = vperm.xlu0 %8554, %v9740_v37  }
  0x9f   : > { %8000 = vmatmul.mubr.msk.f32.gmra.mrb[26].mxu0 %vm1725_vm0, %v1700_v33  ;;  %8032 = vmatmul.mubr.msk.f32.gmra.mrb[26].mxu1 %vm1725_vm0, %v1700_v33  ;;  %v9903_v33 = vcvt.s32.f32 %v684_v12 }
  0xa0   : > { %1970 = vmatprep.mubr.f32.mxu0 %v15544_v0  ;;  %2227 = vmatprep.mubr.f32.mxu1 %v15544_v0 }
  0xa1   : > { %8552 = vset.pattern.permute.xlu1 %v15542_v18 }
  0xa2   : > { %3578 = vperm.xlu1 %8552, %v9662_v20   ;;  %1129 = vperm.xlu0 %8554, %v599_v39   ;;  %v9878_v20 = vcvt.s32.f32 %v680_v61  ;;  %v704_v61 = vunpack.c.2.s8 %v9872_v16 }
  0xa3   : > { %8001 = vmatmul.mubr.msk.f32.gmra.mrb[28].mxu0 %vm1725_vm0, %v1701_v36  ;;  %8033 = vmatmul.mubr.msk.f32.gmra.mrb[28].mxu1 %vm1725_vm0, %v1701_v36  ;;  %v9910_v36 = vld [vmem:[%s9784_s13 + $0x60] sm:$0xff] }
  0xa4   : > { %1976 = vmatprep.mubr.f32.mxu0 %v15544_v0  ;;  %2233 = vmatprep.mubr.f32.mxu1 %v15544_v0  ;;  %v723_v29 = vunpack.c.2.s8 %v9910_v36 }
  0xa6   : > { %3582 = vperm.xlu1 %8552, %v9682_v25   ;;  %8559 = vset.pattern.permute.xlu0 %v15542_v18  ;;  %v696_v25 = vunpack.c.1.s8 %v9859_v9 }
  0xa7   : > { %8002 = vmatmul.mubr.msk.f32.gmra.mrb[30].mxu0 %vm1725_vm0, %v1702_v38  ;;  %8034 = vmatmul.mubr.msk.f32.gmra.mrb[30].mxu1 %vm1725_vm0, %v1702_v38  ;;  %v700_v38 = vunpack.c.2.s8 %v9853_v7 }
  0xa8   : > { %1982 = vmatprep.mubr.f32.mxu0 %v15544_v0  ;;  %2239 = vmatprep.mubr.f32.mxu1 %v15544_v0 }
  0xa9   : > { %3602 = vperm.xlu0 %8559, %v595_v35   ;;  %v9907_v35 = vcvt.s32.f32 %v686_v14  ;;  %v9959_v22 = vcvt.s32.f32 %v700_v38  ;;  %v9975_v38 = vld [vmem:[%s9606_s19 + $0xc0] sm:$0xff] }
  0xaa   : > { %8553 = vset.pattern.permute.xlu1 %v15539_v1 }
  0xab   : > { %8003 = vmatmul.mubr.msk.f32.gmra.mrb[32].mxu0 %vm1725_vm0, %v1703_v40  ;;  %8035 = vmatmul.mubr.msk.f32.gmra.mrb[32].mxu1 %vm1725_vm0, %v1703_v40  ;;  %v702_v40 = vunpack.c.2.s8 %v9859_v9  ;;  %15967 = vst [vmem:[#allocation20_spill] sm:$0xff] %v9959_v22  ;;  %v673_v22 = vunpack.c.1.s8 %v9817_v53 }
  0xac   : > { %1988 = vmatprep.mubr.f32.mxu0 %v15544_v0  ;;  %2245 = vmatprep.mubr.f32.mxu1 %v15544_v0 }
  0xad   : > { %1114 = vperm.xlu1 %8553, %v9759_v41   ;;  %3618 = vperm.xlu0 %8559, %v599_v39   ;;  %v701_v39 = vunpack.c.2.s8 %v9856_v8  ;;  %v9963_v24 = vcvt.s32.f32 %v702_v40 }
  0xaf   : > { %8004 = vmatmul.mubr.msk.f32.gmra.mrb[34].mxu0 %vm1725_vm0, %v1704_v42  ;;  %8036 = vmatmul.mubr.msk.f32.gmra.mrb[34].mxu1 %vm1725_vm0, %v1704_v42  ;;  %v703_v42 = vunpack.c.2.s8 %v9869_v15  ;;  %v9961_v23 = vcvt.s32.f32 %v701_v39  ;;  %15969 = vst [vmem:[#allocation22_spill] sm:$0xff] %v9963_v24  ;;  %v9977_v39 = vcvt.s32.f32 %v704_v61 }
  0xb0   : > { %1994 = vmatprep.mubr.f32.mxu0 %v15544_v0  ;;  %2251 = vmatprep.mubr.f32.mxu1 %v15544_v0 }
  0xb1   : > { %8555 = vset.pattern.permute.xlu1 %v15542_v18  ;;  %8564 = vset.pattern.permute.xlu0 %v15539_v1  ;;  %15968 = vst [vmem:[#allocation21_spill] sm:$0xff] %v9961_v23  ;;  %15971 = vst [vmem:[#allocation24_spill] sm:$0xff] %v9977_v39  ;;  %v663_v39 = vunpack.c.0.s8 %v9800_v48  ;;  %v672_v23 = vunpack.c.1.s8 %v9814_v52 }
  0xb2   : > { %3590 = vperm.xlu1 %8555, %v9696_v28   ;;  %1144 = vperm.xlu0 %8564, %v9795_v47   ;;  %v698_v28 = vunpack.c.1.s8 %v9872_v16 }
  0xb3   : > { %8005 = vmatmul.mubr.msk.f32.gmra.mrb[36].mxu0 %vm1725_vm0, %v1705_v43  ;;  %8037 = vmatmul.mubr.msk.f32.gmra.mrb[36].mxu1 %vm1725_vm0, %v1705_v43  ;;  %v9918_v43 = vld [vmem:[%s9784_s13 + $0x68] sm:$0xff] }
  0xb4   : > { %2000 = vmatprep.mubr.f32.mxu0 %v15544_v0  ;;  %2257 = vmatprep.mubr.f32.mxu1 %v15544_v0  ;;  %v9940_v60 = vcvt.s32.f32 %v698_v28  ;;  %v718_v12 = vunpack.c.1.s8 %v9918_v43 }
  0xb6   : > { %8556 = vset.pattern.permute.xlu1 %v15539_v1  ;;  %1149 = vperm.xlu0 %8564, %v9811_v51   ;;  %15965 = vst [vmem:[#allocation18_spill] sm:$0xff] %v9940_v60  ;;  %v9987_v24 = vcvt.s32.f32 %v718_v12  ;;  %v665_v12 = vunpack.c.0.s8 %v9806_v50 }
  0xb7   : > { %8006 = vmatmul.mubr.msk.f32.gmra.mrb[38].mxu0 %vm1725_vm0, %v1706_v44  ;;  %8038 = vmatmul.mubr.msk.f32.gmra.mrb[38].mxu1 %vm1725_vm0, %v1706_v44  ;;  %v9921_v44 = vld [vmem:[%s9784_s13 + $0x70] sm:$0xff] }
  0xb8   : > { %2006 = vmatprep.mubr.f32.mxu0 %v15544_v0  ;;  %2263 = vmatprep.mubr.f32.mxu1 %v15544_v0  ;;  %v725_v40 = vunpack.c.2.s8 %v9921_v44  ;;  %15973 = vst [vmem:[#allocation26_spill] sm:$0xff] %v9987_v24  ;;  %v610_v24 = vld [vmem:[%s9606_s19 + $0xd8] sm:$0xff] }
  0xb9   : > { %1119 = vperm.xlu1 %8556, %v9788_v45  }
  0xba   : > { %1164 = vperm.xlu0 %8564, %v9838_v63   ;;  %v1712_v63 = vld [vmem:[%s9601_s11 + $0xc8] sm:$0xff] }
  0xbb   : > { %8007 = vmatmul.mubr.msk.f32.gmra.mrb[40].mxu0 %vm1725_vm0, %v1707_v46  ;;  %8039 = vmatmul.mubr.msk.f32.gmra.mrb[40].mxu1 %vm1725_vm0, %v1707_v46  ;;  %v9924_v46 = vld [vmem:[%s9784_s13 + $0x78] sm:$0xff] }
  0xbc   : > { %2012 = vmatprep.mubr.f32.mxu0 %v15544_v0  ;;  %2269 = vmatprep.mubr.f32.mxu1 %v15544_v0  ;;  %v720_v14 = vunpack.c.1.s8 %v9924_v46 }
  0xbd   : > { %8557 = vset.pattern.permute.xlu1 %v15542_v18 }
  0xbe   : > { %3594 = vperm.xlu1 %8557, %v9719_v32   ;;  %v9901_v32 = vcvt.s32.f32 %v683_v11  ;;  %8569 = vset.pattern.permute.xlu0 %v15542_v18  ;;  %v717_v11 = vunpack.c.1.s8 %v9910_v36  ;;  %v9991_v61 = vcvt.s32.f32 %v720_v14  ;;  %v10004_v14 = vcvt.s32.f32 %v723_v29 }
  0xbf   : > { %8008 = vmatmul.mubr.msk.f32.gmra.mrb[42].mxu0 %vm1725_vm0, %v1708_v58  ;;  %8040 = vmatmul.mubr.msk.f32.gmra.mrb[42].mxu1 %vm1725_vm0, %v1708_v58  ;;  %v9933_v58 = vcvt.s32.f32 %v696_v25  ;;  %v9965_v25 = vcvt.s32.f32 %v703_v42  ;;  %v726_v42 = vunpack.c.2.s8 %v9924_v46  ;;  %v666_v29 = vunpack.c.0.s8 %v9814_v52 }
  0xc0   : > { %2018 = vmatprep.mubr.f32.mxu0 %v15544_v0  ;;  %2275 = vmatprep.mubr.f32.mxu1 %v15544_v0  ;;  %15975 = vst [vmem:[#allocation28_spill] sm:$0xff] %v9991_v61  ;;  %15978 = vst [vmem:[#allocation31_spill] sm:$0xff] %v10004_v14  ;;  %v669_v14 = vunpack.c.1.s8 %v9800_v48  ;;  %v10044_v48 = vcvt.s32.f32 %v665_v12  ;;  %v1714_v12 = vld [vmem:[%s9601_s11 + $0xd8] sm:$0xff] }
  0xc1   : > { %15963 = vst [vmem:[#allocation16_spill] sm:$0xff] %v9933_v58  ;;  %3634 = vperm.xlu0 %8569, %v9811_v51   ;;  %v1711_v51 = vld [vmem:[%s9601_s11 + $0xc0] sm:$0xff]  ;;  %15970 = vst [vmem:[#allocation23_spill] sm:$0xff] %v9965_v25  ;;  %v9985_v25 = vcvt.s32.f32 %v717_v11  ;;  %v664_v11 = vunpack.c.0.s8 %v9803_v49 }
  0xc2   : > { %3598 = vperm.xlu1 %8557, %v9724_v34   ;;  %v9905_v34 = vcvt.s32.f32 %v685_v13  ;;  %v719_v13 = vunpack.c.1.s8 %v9921_v44 }
  0xc3   : > { %8009 = vmatmul.mubr.msk.f32.gmra.mrb[44].mxu0 %vm1725_vm0, %v1709_v10  ;;  %8041 = vmatmul.mubr.msk.f32.gmra.mrb[44].mxu1 %vm1725_vm0, %v1709_v10  ;;  %v9949_v10 = vld [vmem:[%s9784_s13 + $0x88] sm:$0xff]  ;;  %15972 = vst [vmem:[#allocation25_spill] sm:$0xff] %v9985_v25  ;;  %v10015_v25 = vcvt.s32.f32 %v725_v40  ;;  %v670_v40 = vunpack.c.1.s8 %v9803_v49  ;;  %v671_v49 = vunpack.c.1.s8 %v9806_v50  ;;  %v10065_v50 = vcvt.s32.f32 %v666_v29 }
  0xc4   : > { %2024 = vmatprep.mubr.f32.mxu0 %v15544_v0  ;;  %2281 = vmatprep.mubr.f32.mxu1 %v15544_v0  ;;  %v722_v28 = vunpack.c.1.s8 %v9949_v10 }
  0xc5   : > { %8570 = vset.pattern.permute.xlu0 %v15539_v1  ;;  %15980 = vst [vmem:[#allocation33_spill] sm:$0xff] %v10015_v25  ;;  %v10079_v59 = vcvt.s32.f32 %v670_v40  ;;  %v10093_v40 = vcvt.s32.f32 %v674_v62  ;;  %v689_v62 = vunpack.c.0.s8 %v9856_v8 }
  0xc6   : > { %8558 = vset.pattern.permute.xlu1 %v15539_v1  ;;  %v727_v1 = vunpack.c.2.s8 %v9946_v6  ;;  %1169 = vperm.xlu0 %8570, %v9975_v38  }
  0xc7   : > { %8010 = vmatmul.mubr.msk.f32.gmra.mrb[46].mxu0 %vm1725_vm0, %v1710_v30  ;;  %8042 = vmatmul.mubr.msk.f32.gmra.mrb[46].mxu1 %vm1725_vm0, %v1710_v30  ;;  %v724_v30 = vunpack.c.2.s8 %v9918_v43  ;;  %15991 = vst [vmem:[#allocation42_spill] sm:$0xff] %v10079_v59  ;;  %15996 = vst [vmem:[#allocation46_spill] sm:$0xff] %v10093_v40  ;;  %v705_v40 = vunpack.c.3.s8 %v9841_v2  ;;  %v709_v2 = vunpack.c.3.s8 %v9869_v15 }
  0xc8   : > { %1134 = vperm.xlu1 %8558, %v9899_v31   ;;  %2030 = vmatprep.mubr.f32.mxu0 %v15544_v0 }
  0xc9   : > { %2287 = vmatprep.mubr.f32.mxu1 %v15544_v0  ;;  %v10006_v61 = vcvt.s32.f32 %v724_v30  ;;  %v15983_v30 = vmov 0.0  }
  0xca   : > { %1184 = vperm.xlu0 %8570, %v610_v24   ;;  %v10063_v24 = vld [vmem:[%s9606_s19 + $0xe0] sm:$0xff] }
  0xcb   : > { %8011 = vmatmul.mubr.msk.f32.gmra.mrb[48].mxu0 %vm1725_vm0, %v1711_v51  ;;  %8043 = vmatmul.mubr.msk.f32.gmra.mrb[48].mxu1 %vm1725_vm0, %v1711_v51  ;;  %v9989_v51 = vcvt.s32.f32 %v719_v13  ;;  %v10000_v13 = vcvt.s32.f32 %v721_v27  ;;  %15979 = vst [vmem:[#allocation32_spill] sm:$0xff] %v10006_v61  ;;  %v10017_v27 = vcvt.s32.f32 %v726_v42  ;;  %v667_v61 = vunpack.c.0.s8 %v9817_v53  ;;  %v10029_v42 = vld [vmem:[%s9784_s13 + $0x90] sm:$0xff] }
  0xcc   : > { %8560 = vset.pattern.permute.xlu1 %v15542_v18  ;;  %2036 = vmatprep.mubr.f32.mxu0 %v15544_v0  ;;  %v728_v18 = vunpack.c.2.s8 %v9949_v10  ;;  %v741_v52 = vunpack.c.1.s8 %v10029_v42 }
  0xcd   : > { %15974 = vst [vmem:[#allocation27_spill] sm:$0xff] %v9989_v51  ;;  %2293 = vmatprep.mubr.f32.mxu1 %v15544_v0  ;;  %3606 = vperm.xlu1 %8560, %v9759_v41   ;;  %15976 = vst [vmem:[#allocation29_spill] sm:$0xff] %v10000_v13  ;;  %v10002_v51 = vcvt.s32.f32 %v722_v28  ;;  %v1713_v41 = vld [vmem:[%s9601_s11 + $0xd0] sm:$0xff]  ;;  %v10019_v28 = vcvt.s32.f32 %v727_v1  ;;  %v10032_v1 = vld [vmem:[%s9784_s13 + $0x98] sm:$0xff]  ;;  %v10042_v13 = vcvt.s32.f32 %v664_v11 }
  0xce   : > { %v10012_v0 = vld [vmem:[%s9606_s19 + $0x90] sm:$0xff]  ;;  %15981 = vst [vmem:[#allocation34_spill] sm:$0xff] %v10017_v27  ;;  %v15984_v27 = vmov 0   ;;  %v10038_v25 = vcvt.s32.f32 %v728_v18  ;;  %v10052_v18 = vld [vmem:[%s9784_s13 + $0xa8] sm:$0xff]  ;;  %v10058_v11 = vld [vmem:[%s9784_s13 + $0xb8] sm:$0xff]  ;;  %v742_v53 = vunpack.c.1.s8 %v10032_v1  ;;  %1189 = vperm.xlu0 %8570, %v10063_v24  }
  0xcf   : > { %15977 = vst [vmem:[#allocation30_spill] sm:$0xff] %v10002_v51  ;;  %8012 = vmatmul.mubr.msk.f32.gmra.mrb[50].mxu0 %vm1725_vm0, %v1712_v63  ;;  %8044 = vmatmul.mubr.msk.f32.gmra.mrb[50].mxu1 %vm1725_vm0, %v1712_v63  ;;  %15982 = vst [vmem:[#allocation35_spill] sm:$0xff] %v10019_v28  ;;  %v668_v63 = vunpack.c.0.s8 %v9820_v54  ;;  %v10035_v28 = vld [vmem:[%s9784_s13 + $0xa0] sm:$0xff]  ;;  %v10040_v51 = vcvt.s32.f32 %v663_v39  ;;  %v10055_v39 = vld [vmem:[%s9784_s13 + $0xb0] sm:$0xff]  ;;  %v744_v29 = vunpack.c.1.s8 %v10052_v18  ;;  %v746_v57 = vunpack.c.1.s8 %v10058_v11 }
  0xd0   : > { %2042 = vmatprep.mubr.f32.mxu0 %v15983_v30  ;;  %2299 = vmatprep.mubr.f32.mxu1 %v15983_v30  ;;  %15985 = vst [vmem:[#allocation36_spill] sm:$0xff] %v10038_v25  ;;  %15986 = vst [vmem:[#allocation37_spill] sm:$0xff] %v10055_v39  ;;  %v743_v54 = vunpack.c.1.s8 %v10035_v28  ;;  %v10073_v25 = vcvt.s32.f32 %v667_v61  ;;  %v745_v58 = vunpack.c.1.s8 %v10055_v39  ;;  %v10087_v61 = vcvt.s32.f32 %v671_v49 }
  0xd1   : > { %8561 = vset.pattern.permute.xlu1 %v15984_v27  ;;  %15987 = vst [vmem:[#allocation38_spill] sm:$0xff] %v10058_v11  ;;  %v10075_v60 = vcvt.s32.f32 %v668_v63  ;;  %v10089_v63 = vcvt.s32.f32 %v672_v23  ;;  %v688_v49 = vunpack.c.0.s8 %v9853_v7  ;;  %v690_v23 = vunpack.c.0.s8 %v9859_v9 }
  0xd2   : > { %1139 = vperm.xlu1 %8561, %v10012_v0   ;;  %15988 = vst [vmem:[#allocation39_spill] sm:$0xff] %v10073_v25  ;;  %15993 = vst [vmem:[#allocation43_spill] sm:$0xff] %v10087_v61  ;;  %v10099_v25 = vcvt.s32.f32 %v742_v53  ;;  %v10101_v59 = vcvt.s32.f32 %v743_v54  ;;  %v10112_v53 = vld [vmem:[%s9587_s0] sm:$0xff]  ;;  %v10115_v54 = vld [vmem:[%s9587_s0 + $0x8] sm:$0xff]  ;;  %8575 = vset.pattern.permute.xlu0 %v15992_v55  ;;  %v708_v61 = vunpack.c.3.s8 %v9859_v9 }
  0xd3   : > { %8013 = vmatmul.mubr.msk.f32.gmra.mrb[52].mxu0 %vm1725_vm0, %v1713_v41  ;;  %8045 = vmatmul.mubr.msk.f32.gmra.mrb[52].mxu1 %vm1725_vm0, %v1713_v41  ;;  %15989 = vst [vmem:[#allocation40_spill] sm:$0xff] %v10075_v60  ;;  %v10077_v41 = vcvt.s32.f32 %v669_v14  ;;  %15994 = vst [vmem:[#allocation44_spill] sm:$0xff] %v10089_v63  ;;  %v10091_v14 = vcvt.s32.f32 %v673_v22  ;;  %v10097_v60 = vcvt.s32.f32 %v741_v52  ;;  %v1715_v22 = vld [vmem:[%s9601_s11 + $0xe0] sm:$0xff]  ;;  %v692_v52 = vunpack.c.0.s8 %v9872_v16 }
  0xd4   : > { %2048 = vmatprep.mubr.f32.mxu0 %v15983_v30  ;;  %2305 = vmatprep.mubr.f32.mxu1 %v15983_v30  ;;  %15998 = vst [vmem:[#allocation48_spill] sm:$0xff] %v10099_v25  ;;  %15999 = vst [vmem:[#allocation49_spill] sm:$0xff] %v10101_v59  ;;  %v10118_v59 = vcvt.s32.f32 %v744_v29  ;;  %v10122_v25 = vcvt.s32.f32 %v746_v57  ;;  %v707_v63 = vunpack.c.3.s8 %v9856_v8  ;;  %v10136_v57 = vcvt.s32.f32 %v688_v49 }
  0xd5   : > { %15990 = vst [vmem:[#allocation41_spill] sm:$0xff] %v10077_v41  ;;  %15995 = vst [vmem:[#allocation45_spill] sm:$0xff] %v10091_v14  ;;  %v706_v14 = vunpack.c.3.s8 %v9853_v7  ;;  %v10132_v41 = vld [vmem:[%s9587_s0 + $0x18] sm:$0xff]  ;;  %v1716_v7 = vld [vmem:[%s9601_s11 + $0xe8] sm:$0xff]  ;;  %v10144_v8 = vcvt.s32.f32 %v689_v62  ;;  %v10146_v9 = vcvt.s32.f32 %v690_v23  ;;  %v10150_v49 = vcvt.s32.f32 %v692_v52  ;;  %3650 = vperm.xlu0 %8575, %v9975_v38  }
  0xd6   : > { %8562 = vset.pattern.permute.xlu1 %v15992_v55  ;;  %15997 = vst [vmem:[#allocation47_spill] sm:$0xff] %v10097_v60  ;;  %16000 = vst [vmem:[#allocation50_spill] sm:$0xff] %v10112_v53  ;;  %v10124_v60 = vcvt.s32.f32 %v687_v56  ;;  %v10159_v23 = vld [vmem:[%s9606_s19 + $0xa8] sm:$0xff]  ;;  %v10165_v52 = vcvt.s32.f32 %v707_v63  ;;  %v10167_v56 = vcvt.s32.f32 %v708_v61  ;;  %v10171_v38 = vcvt.s32.f32 %v709_v2  ;;  %v1717_v61 = vld [vmem:[%s9601_s11 + $0xf0] sm:$0xff] }
  0xd7   : > { %8014 = vmatmul.mubr.msk.f32.gmra.mrb[54].mxu0 %vm1725_vm0, %v1714_v12  ;;  %8046 = vmatmul.mubr.msk.f32.gmra.mrb[54].mxu1 %vm1725_vm0, %v1714_v12  ;;  %v691_v12 = vunpack.c.0.s8 %v9869_v15  ;;  %16001 = vst [vmem:[#allocation51_spill] sm:$0xff] %v10115_v54  ;;  %16002 = vst [vmem:[#allocation52_spill] sm:$0xff] %v10118_v59  ;;  %v747_v62 = vunpack.c.2.s8 %v10029_v42  ;;  %v750_v63 = vunpack.c.2.s8 %v10052_v18  ;;  %v752_v2 = vunpack.c.2.s8 %v10058_v11 }
  0xd8   : > { %3610 = vperm.xlu1 %8562, %v9788_v45   ;;  %2054 = vmatprep.mubr.f32.mxu0 %v15983_v30  ;;  %v10120_v45 = vcvt.s32.f32 %v745_v58  ;;  %16004 = vst [vmem:[#allocation54_spill] sm:$0xff] %v10122_v25  ;;  %16005 = vst [vmem:[#allocation55_spill] sm:$0xff] %v10132_v41  ;;  %v10163_v58 = vcvt.s32.f32 %v706_v14  ;;  %v749_v14 = vunpack.c.2.s8 %v10035_v28  ;;  %v712_v54 = vunpack.c.0.s8 %v9918_v43  ;;  %v10215_v41 = vld [vmem:[%s9587_s0 + $0x38] sm:$0xff] }
  0xd9   : > { %2311 = vmatprep.mubr.f32.mxu1 %v15983_v30  ;;  %v10148_v29 = vcvt.s32.f32 %v691_v12  ;;  %v10161_v12 = vcvt.s32.f32 %v705_v40  ;;  %16008 = vst [vmem:[#allocation58_spill] sm:$0xff] %v10165_v52  ;;  %16009 = vst [vmem:[#allocation59_spill] sm:$0xff] %v10167_v56  ;;  %v751_v40 = vunpack.c.2.s8 %v10055_v39  ;;  %v713_v53 = vunpack.c.0.s8 %v9921_v44  ;;  %8578 = vset.pattern.permute.xlu0 %v15984_v27  ;;  %v1718_v56 = vld [vmem:[%s9601_s11 + $0xf8] sm:$0xff]  ;;  %v10234_v52 = vld [vmem:[%s9784_s13 + $0xc0] sm:$0xff] }
  0xda   : > { %16003 = vst [vmem:[#allocation53_spill] sm:$0xff] %v10120_v45  ;;  %16007 = vst [vmem:[#allocation57_spill] sm:$0xff] %v10163_v58  ;;  %v714_v25 = vunpack.c.0.s8 %v9924_v46  ;;  %v10195_v45 = vld [vmem:[%s9606_s19 + $0xf8] sm:$0xff]  ;;  %v10208_v58 = vcvt.s32.f32 %v747_v62  ;;  %v10212_v11 = vcvt.s32.f32 %v749_v14  ;;  %v10219_v39 = vcvt.s32.f32 %v750_v63  ;;  %v10231_v14 = vld [vmem:[%s9587_s0 + $0x50] sm:$0xff] }
  0xdb   : > { %8015 = vmatmul.mubr.msk.f32.gmra.mrb[56].mxu0 %vm1725_vm0, %v1715_v22  ;;  %8047 = vmatmul.mubr.msk.f32.gmra.mrb[56].mxu1 %vm1725_vm0, %v1715_v22  ;;  %v710_v22 = vunpack.c.3.s8 %v9872_v16  ;;  %16006 = vst [vmem:[#allocation56_spill] sm:$0xff] %v10161_v12  ;;  %16010 = vst [vmem:[#allocation60_spill] sm:$0xff] %v10171_v38  ;;  %v10174_v16 = vld [vmem:[%s9587_s0 + $0x20] sm:$0xff]  ;;  %v715_v38 = vunpack.c.0.s8 %v9946_v6  ;;  %v10223_v12 = vcvt.s32.f32 %v752_v2  ;;  %v10238_v63 = vcvt.s32.f32 %v712_v54 }
  0xdc   : > { %3614 = vperm.xlu1 %8562, %v9740_v37   ;;  %2060 = vmatprep.mubr.f32.mxu0 %v15983_v30  ;;  %16011 = vst [vmem:[#allocation61_spill] sm:$0xff] %v10174_v16  ;;  %v748_v37 = vunpack.c.2.s8 %v10032_v1  ;;  %16014 = vst [vmem:[#allocation64_spill] sm:$0xff] %v10208_v58  ;;  %v10242_v2 = vcvt.s32.f32 %v714_v25  ;;  %v10246_v16 = vld [vmem:[%s9784_s13 + $0xc8] sm:$0xff]  ;;  %v10276_v25 = vld [vmem:[%s9784_s13 + $0xd8] sm:$0xff] }
  0xdd   : > { %2317 = vmatprep.mubr.f32.mxu1 %v15983_v30  ;;  %v10188_v15 = vcvt.s32.f32 %v710_v22  ;;  %v716_v22 = vunpack.c.0.s8 %v9949_v10  ;;  %16016 = vst [vmem:[#allocation66_spill] sm:$0xff] %v10212_v11  ;;  %16017 = vst [vmem:[#allocation67_spill] sm:$0xff] %v10215_v41  ;;  %1204 = vperm.xlu0 %8578, %v10195_v45   ;;  %v10270_v11 = vld [vmem:[%s9587_s0 + $0x78] sm:$0xff]  ;;  %v766_v41 = vunpack.c.1.s8 %v10246_v16 }
  0xde   : > { %v10210_v59 = vcvt.s32.f32 %v748_v37  ;;  %16018 = vst [vmem:[#allocation68_spill] sm:$0xff] %v10219_v39  ;;  %16020 = vst [vmem:[#allocation70_spill] sm:$0xff] %v10223_v12  ;;  %v10228_v37 = vld [vmem:[%s9587_s0 + $0x48] sm:$0xff]  ;;  %v10249_v12 = vld [vmem:[%s9784_s13 + $0xd0] sm:$0xff] }
  0xdf   : > { %8016 = vmatmul.mubr.msk.f32.gmra.mrb[58].mxu0 %vm1725_vm0, %v1716_v7  ;;  %8048 = vmatmul.mubr.msk.f32.gmra.mrb[58].mxu1 %vm1725_vm0, %v1716_v7  ;;  %v711_v7 = vunpack.c.0.s8 %v9910_v36  ;;  %16012 = vst [vmem:[#allocation62_spill] sm:$0xff] %v10188_v15  ;;  %v10202_v15 = vld [vmem:[%s9587_s0 + $0x30] sm:$0xff]  ;;  %16021 = vst [vmem:[#allocation71_spill] sm:$0xff] %v10228_v37  ;;  %v10254_v54 = vcvt.s32.f32 %v716_v22  ;;  %v10259_v39 = vld [vmem:[%s9587_s0 + $0x60] sm:$0xff]  ;;  %v767_v58 = vunpack.c.1.s8 %v10249_v12  ;;  %v729_v37 = vunpack.c.3.s8 %v9910_v36 }
  0xe0   : > { %8563 = vset.pattern.permute.xlu1 %v15984_v27  ;;  %2066 = vmatprep.mubr.f32.mxu0 %v15983_v30  ;;  %16013 = vst [vmem:[#allocation63_spill] sm:$0xff] %v10202_v15  ;;  %16015 = vst [vmem:[#allocation65_spill] sm:$0xff] %v10210_v59  ;;  %v765_v15 = vunpack.c.1.s8 %v10234_v52  ;;  %v10281_v59 = vld [vmem:[%s9606_s19 + $0xb0] sm:$0xff]  ;;  %v10289_v22 = vld [vmem:[%s9784_s13 + $0xe8] sm:$0xff]  ;;  %v731_v36 = vunpack.c.3.s8 %v9921_v44 }
  0xe1   : > { %1154 = vperm.xlu1 %8563, %v10159_v23   ;;  %2323 = vmatprep.mubr.f32.mxu1 %v15983_v30  ;;  %v10225_v62 = vcvt.s32.f32 %v711_v7  ;;  %16022 = vst [vmem:[#allocation72_spill] sm:$0xff] %v10231_v14  ;;  %16023 = vst [vmem:[#allocation73_spill] sm:$0xff] %v10234_v52  ;;  %v10262_v7 = vld [vmem:[%s9587_s0 + $0x68] sm:$0xff]  ;;  %v10315_v52 = vcvt.s32.f32 %v766_v41  ;;  %v733_v41 = vunpack.c.3.s8 %v9946_v6 }
  0xe2   : > { %16024 = vst [vmem:[#allocation74_spill] sm:$0xff] %v10246_v16  ;;  %16025 = vst [vmem:[#allocation75_spill] sm:$0xff] %v10249_v12  ;;  %8580 = vset.pattern.permute.xlu0 %v15992_v55  ;;  %v768_v12 = vunpack.c.1.s8 %v10276_v25  ;;  %v9181_v16 = vld [vmem:[%s9601_s11] sm:$0xff] }
  0xe3   : > { %8017 = vmatmul.mubr.msk.f32.gmra.mrb[60].mxu0 %vm1725_vm0, %v1717_v61  ;;  %8049 = vmatmul.mubr.msk.f32.gmra.mrb[60].mxu1 %vm1725_vm0, %v1717_v61  ;;  %v10221_v61 = vcvt.s32.f32 %v751_v40  ;;  %v10240_v40 = vcvt.s32.f32 %v713_v53  ;;  %16027 = vst [vmem:[#allocation77_spill] sm:$0xff] %v10254_v54  ;;  %16028 = vst [vmem:[#allocation78_spill] sm:$0xff] %v10259_v39  ;;  %v10273_v53 = vld [vmem:[%s9587_s0 + $0x80] sm:$0xff]  ;;  %v770_v54 = vunpack.c.1.s8 %v10289_v22 }
  0xe4   : > { %2072 = vmatprep.mubr.f32.mxu0 %v15983_v30  ;;  %2329 = vmatprep.mubr.f32.mxu1 %v15983_v30  ;;  %16029 = vst [vmem:[#allocation79_spill] sm:$0xff] %v10262_v7  ;;  %16030 = vst [vmem:[#allocation80_spill] sm:$0xff] %v10270_v11  ;;  %v16116_v7 = vld [vmem:[#allocation59_spill] sm:$0xff] }
  0xe5   : > { %16019 = vst [vmem:[#allocation69_spill] sm:$0xff] %v10221_v61  ;;  %8565 = vset.pattern.permute.xlu1 %v15992_v55  ;;  %v10252_v61 = vcvt.s32.f32 %v715_v38  ;;  %16031 = vst [vmem:[#allocation81_spill] sm:$0xff] %v10273_v53  ;;  %v10286_v38 = vld [vmem:[%s9784_s13 + $0xe0] sm:$0xff]  ;;  %3666 = vperm.xlu0 %8580, %v10063_v24   ;;  %v10310_v24 = vcvt.s32.f32 %v765_v15 }
  0xe6   : > { %3622 = vperm.xlu1 %8565, %v9899_v31   ;;  %v730_v31 = vunpack.c.3.s8 %v9918_v43  ;;  %16033 = vst [vmem:[#allocation83_spill] sm:$0xff] %v10315_v52  ;;  %v732_v43 = vunpack.c.3.s8 %v9924_v46  ;;  %v10350_v46 = vcvt.s32.f32 %v729_v37  ;;  %v10369_v37 = vcvt.s32.f32 %v733_v41 }
  0xe7   : > { %16026 = vst [vmem:[#allocation76_spill] sm:$0xff] %v10252_v61  ;;  %8018 = vmatmul.mubr.msk.f32.gmra.mrb[62].mxu0 %vm1725_vm0, %v1718_v56  ;;  %8050 = vmatmul.mubr.msk.f32.gmra.mrb[62].mxu1 %vm1725_vm0, %v1718_v56  ;;  %v769_v56 = vunpack.c.1.s8 %v10286_v38  ;;  %16032 = vst [vmem:[#allocation82_spill] sm:$0xff] %v10310_v24 }
  0xe8   : > { %2400 = vmatprep.mubr.f32.mxu0 %v15983_v30  ;;  %v10352_v6 = vcvt.s32.f32 %v730_v31  ;;  %v9183_v31 = vld [vmem:[%s9601_s11 + $0x10] sm:$0xff] }
  0xe9   : > { %3678 = vperm.xlu0 %8580, %v10195_v45  }
  0xea   : > { %8566 = vset.pattern.permute.xlu1 %v15984_v27 }
  0xeb   : > { %8051 = vmatmul.mubr.msk.f32.vlgmr.msra.gmra.mrb[64].mxu0 %vm1725_vm0, %v9181_v16  ;;  %1159 = vperm.xlu1 %8566, %v10281_v59   ;;  %v10317_v16 = vcvt.s32.f32 %v767_v58  ;;  %v10335_v58 = vcvt.s32.f32 %v768_v12 }
  0xec   : > { %2406 = vmatprep.mubr.f32.mxu0 %v15983_v30  ;;  %v1060_v14 = vpop.permute.xlu1 %1059 }
  0xed   : > { %16034 = vst [vmem:[#allocation84_spill] sm:$0xff] %v10317_v16  ;;  %v10320_v61 = vsub.f32 %v9845_v3, %v1060_v14  ;;  %v10323_v53 = vsub.f32 %v9847_v4, %v1060_v14  ;;  %v10326_v15 = vsub.f32 %v9849_v5, %v1060_v14  ;;  %v10329_v24 = vsub.f32 %v9874_v17, %v1060_v14  ;;  %v9182_v3 = vld [vmem:[%s9601_s11 + $0x8] sm:$0xff] }
  0xee   : > { %16039 = vst [vmem:[#allocation89_spill] sm:$0xff] %v10335_v58  ;;  %v734_v4 = vunpack.c.3.s8 %v9949_v10  ;;  %v10342_v5 = vcvt.s32.f32 %v769_v56  ;;  %v10344_v17 = vcvt.s32.f32 %v770_v54  ;;  %v10365_v54 = vcvt.s32.f32 %v731_v36 }
  0xef   : > { %16035 = vst [vmem:[#allocation85_spill] sm:$0xff] %v10320_v61  ;;  %16036 = vst [vmem:[#allocation86_spill] sm:$0xff] %v10323_v53  ;;  %8052 = vmatmul.mubr.msk.f32.gmra.mrb[66].mxu0 %vm1725_vm0, %v9182_v3  ;;  %8567 = vset.pattern.permute.xlu1 %v15992_v55  ;;  %vm2797_vm1 = vcmp.eq.f32.partialorder %v10320_v61, 0.0  ;;  %vm2799_vm2 = vcmp.eq.f32.partialorder %v10326_v15, 0.0  ;;  %vm2798_vm3 = vcmp.eq.f32.partialorder %v10323_v53, 0.0  ;;  %vm2800_vm4 = vcmp.eq.f32.partialorder %v10329_v24, 0.0 }
  0xf0   : > { %16037 = vst [vmem:[#allocation87_spill] sm:$0xff] %v10326_v15  ;;  %16038 = vst [vmem:[#allocation88_spill] sm:$0xff] %v10329_v24  ;;  %3626 = vperm.xlu1 %8567, %v10012_v0   ;;  %2412 = vmatprep.mubr.f32.mxu0 %v15983_v30  ;;  %v1065_v44 = vpop.permute.xlu1 %1064  ;;  %v2989_v0 = vsel %vm2797_vm1, 1.0, %v10320_v61  ;;  %v10367_v56 = vcvt.s32.f32 %v732_v43  ;;  %v10382_v36 = vcvt.s32.f32 %v734_v4 }
  0xf1   : > { %16040 = vst [vmem:[#allocation90_spill] sm:$0xff] %v10342_v5  ;;  %16041 = vst [vmem:[#allocation91_spill] sm:$0xff] %v10344_v17  ;;  %v10355_v10 = vsub.f32 %v9881_v21, %v1065_v44  ;;  %v10358_v45 = vsub.f32 %v9890_v26, %v1065_v44  ;;  %v10361_v12 = vsub.f32 %v9901_v32, %v1065_v44  ;;  %v2991_v32 = vsel %vm2799_vm2, 1.0, %v10326_v15 }
  0xf2   : > { %v10374_v21 = vsub.f32 %v9876_v19, %v1060_v14  ;;  %v10377_v26 = vsub.f32 %v9878_v20, %v1060_v14  ;;  %v10387_v43 = vsub.f32 %v9903_v33, %v1065_v44  ;;  %v10389_v19 = vpop.permute.xlu0 %1049  ;;  %v2990_v20 = vsel %vm2798_vm3, 1.0, %v10323_v53  ;;  %v10404_v33 = vld [vmem:[%s9606_s19 + $0xc8] sm:$0xff] }
  0xf3   : > { %16042 = vst [vmem:[#allocation92_spill] sm:$0xff] %v10355_v10  ;;  %16043 = vst [vmem:[#allocation93_spill] sm:$0xff] %v10358_v45  ;;  %8053 = vmatmul.mubr.msk.f32.gmra.mrb[68].mxu0 %vm1725_vm0, %v9183_v31  ;;  %v2992_v14 = vsel %vm2800_vm4, 1.0, %v10329_v24  ;;  %vm2803_vm5 = vcmp.eq.f32.partialorder %v10355_v10, 0.0  ;;  %8797 = vrcp.f32 %v2989_v0  ;;  %vm2805_vm6 = vcmp.eq.f32.partialorder %v10361_v12, 0.0  ;;  %v16065_v24 = vld [vmem:[#allocation42_spill] sm:$0xff] }
  0xf4   : > { %16044 = vst [vmem:[#allocation94_spill] sm:$0xff] %v10361_v12  ;;  %16045 = vst [vmem:[#allocation95_spill] sm:$0xff] %v10374_v21  ;;  %3630 = vperm.xlu1 %8567, %v9795_v47   ;;  %2418 = vmatprep.mubr.f32.mxu0 %v15983_v30  ;;  %v10399_v47 = vsub.f32 %v9905_v34, %v1065_v44  ;;  %v1075_v41 = vpop.permute.xlu1 %1074  ;;  %vm2804_vm7 = vcmp.eq.f32.partialorder %v10358_v45, 0.0  ;;  %v10407_v3 = vsub.f32 %v9907_v35, %v1065_v44  ;;  %v9184_v34 = vld [vmem:[%s9601_s11 + $0x18] sm:$0xff] }
  0xf5   : > { %16046 = vst [vmem:[#allocation96_spill] sm:$0xff] %v10377_v26  ;;  %16047 = vst [vmem:[#allocation97_spill] sm:$0xff] %v10387_v43  ;;  %v10411_v4 = vsub.f32 %v10040_v51, %v10389_v19  ;;  %v10415_v31 = vsub.f32 %v10042_v13, %v10389_v19  ;;  %8799 = vrcp.f32 %v2991_v32  ;;  %v10421_v0 = vsub.f32 %v10044_v48, %v10389_v19  ;;  %v16054_v13 = vld [vmem:[#allocation13_spill] sm:$0xff]  ;;  %v16062_v21 = vld [vmem:[#allocation15_spill] sm:$0xff] }
  0xf6   : > { %16048 = vst [vmem:[#allocation98_spill] sm:$0xff] %v10399_v47  ;;  %16049 = vst [vmem:[#allocation99_spill] sm:$0xff] %v10407_v3  ;;  %v10425_v35 = vsub.f32 %v10065_v50, %v10389_v19  ;;  %8801 = vrcp.f32 %v2990_v20  ;;  %v10430_v51 = vsel %vm2803_vm5, 1.0, %v10355_v10  ;;  %v10435_v44 = vsub.f32 %v16054_v13, %v1075_v41  ;;  %v1055_v48 = vpop.permute.xlu0 %1054  ;;  %v16056_v20 = vld [vmem:[#allocation14_spill] sm:$0xff]  ;;  %v16058_v13 = vld [vmem:[#allocation41_spill] sm:$0xff] }
  0xf7   : > { %16050 = vst [vmem:[#allocation100_spill] sm:$0xff] %v10411_v4  ;;  %16051 = vst [vmem:[#allocation101_spill] sm:$0xff] %v10415_v31  ;;  %8054 = vmatmul.mubr.msk.f32.gmra.mrb[70].mxu0 %vm1725_vm0, %v9184_v34  ;;  %vm2785_vm8 = vcmp.eq.f32.partialorder %v10411_v4, 0.0  ;;  %v10441_v50 = vsel %vm2805_vm6, 1.0, %v10361_v12  ;;  %v10446_v32 = vsel %vm2804_vm7, 1.0, %v10358_v45  ;;  %v10450_v34 = vsub.f32 %v16056_v20, %v1075_v41  ;;  %v16060_v47 = vld [vmem:[#allocation43_spill] sm:$0xff] }
  0xf8   : > { %16052 = vst [vmem:[#allocation102_spill] sm:$0xff] %v10421_v0  ;;  %16053 = vst [vmem:[#allocation103_spill] sm:$0xff] %v10425_v35  ;;  %8568 = vset.pattern.permute.xlu1 %v15984_v27  ;;  %2424 = vmatprep.mubr.f32.mxu0 %v15983_v30  ;;  %v10453_v3 = vsub.f32 %v16058_v13, %v1055_v48  ;;  %v10456_v26 = vsub.f32 %v16060_v47, %v1055_v48  ;;  %vm2786_vm9 = vcmp.eq.f32.partialorder %v10415_v31, 0.0  ;;  %v9185_v20 = vld [vmem:[%s9601_s11 + $0x20] sm:$0xff] }
  0xf9   : > { %16055 = vst [vmem:[#allocation13_spill] sm:$0xff] %v10435_v44  ;;  %1174 = vperm.xlu1 %8568, %v10404_v33   ;;  %16057 = vst [vmem:[#allocation14_spill] sm:$0xff] %v10450_v34  ;;  %v10460_v12 = vsub.f32 %v16062_v21, %v1075_v41  ;;  %v10462_v15 = vpop.permute.xlu1 %3558  ;;  %v10465_v45 = vsub.f32 %v16065_v24, %v1055_v48  ;;  %v2977_v53 = vsel %vm2785_vm8, 1.0, %v10411_v4  ;;  %vm2787_vm10 = vcmp.eq.f32.partialorder %v10421_v0, 0.0  ;;  %v16067_v13 = vld [vmem:[#allocation16_spill] sm:$0xff] }
  0xfa   : > { %16059 = vst [vmem:[#allocation41_spill] sm:$0xff] %v10453_v3  ;;  %16061 = vst [vmem:[#allocation43_spill] sm:$0xff] %v10456_v26  ;;  %v10472_v47 = vsub.f32 %v16067_v13, %v1075_v41  ;;  %v16069_v10 = vld [vmem:[#allocation44_spill] sm:$0xff]  ;;  %v2979_v21 = vsel %vm2787_vm10, 1.0, %v10421_v0  ;;  %vm2788_vm11 = vcmp.eq.f32.partialorder %v10425_v35, 0.0  ;;  %v2978_v24 = vsel %vm2786_vm9, 1.0, %v10415_v31  ;;  %v10492_v58 = vpop.permute.xlu0 %3554 }
  0xfb   : > { %16063 = vst [vmem:[#allocation15_spill] sm:$0xff] %v10460_v12  ;;  %16064 = vst [vmem:[#allocation104_spill] sm:$0xff] %v10462_v15  ;;  %8055 = vmatmul.mubr.msk.f32.gmra.mrb[72].mxu0 %vm1725_vm0, %v9185_v20  ;;  %v10475_v61 = vsub.f32 %v16069_v10, %v1055_v48  ;;  %vm2791_vm12 = vcmp.eq.f32.partialorder %v10453_v3, 0.0  ;;  %vm2793_vm13 = vcmp.eq.f32.partialorder %v10456_v26, 0.0  ;;  %8803 = vrcp.f32 %v2992_v14  ;;  %v16071_v20 = vld [vmem:[#allocation17_spill] sm:$0xff]  ;;  %v16073_v10 = vld [vmem:[#allocation18_spill] sm:$0xff] }
  0xfc   : > { %16066 = vst [vmem:[#allocation42_spill] sm:$0xff] %v10465_v45  ;;  %16068 = vst [vmem:[#allocation16_spill] sm:$0xff] %v10472_v47  ;;  %2430 = vmatprep.mubr.f32.mxu0 %v15983_v30  ;;  %v10485_v13 = vsub.f32 %v16071_v20, %v1075_v41  ;;  %v10488_v17 = vsub.f32 %v16073_v10, %v1075_v41  ;;  %8805 = vrcp.f32 %v2977_v53  ;;  %v2980_v5 = vsel %vm2788_vm11, 1.0, %v10425_v35  ;;  %v9186_v20 = vld [vmem:[%s9601_s11 + $0x28] sm:$0xff]  ;;  %v10510_v41 = vld [vmem:[%s9606_s19 + $0xd0] sm:$0xff] }
  0xfd   : > { %16070 = vst [vmem:[#allocation44_spill] sm:$0xff] %v10475_v61  ;;  %8571 = vset.pattern.permute.xlu1 %v15992_v55  ;;  %16075 = vst [vmem:[#allocation105_spill] sm:$0xff] %v10492_v58  ;;  %8807 = vrcp.f32 %v2979_v21  ;;  %v2983_v0 = vsel %vm2791_vm12, 1.0, %v10453_v3  ;;  %vm2792_vm14 = vcmp.eq.f32.partialorder %v10465_v45, 0.0  ;;  %vm2806_vm15 = vcmp.eq.f32.partialorder %v10387_v43, 0.0  ;;  %v10497_v14 = vpop.eup %8797  ;;  %v16078_v10 = vld [vmem:[#allocation39_spill] sm:$0xff] }
  0xfe   : > { %16072 = vst [vmem:[#allocation17_spill] sm:$0xff] %v10485_v13  ;;  %16074 = vst [vmem:[#allocation18_spill] sm:$0xff] %v10488_v17  ;;  %3638 = vperm.xlu1 %8571, %v10159_v23   ;;  %8809 = vrcp.f32 %v2978_v24  ;;  %v2985_v53 = vsel %vm2793_vm13, 1.0, %v10456_v26  ;;  %vm2794_vm1 = vcmp.eq.f32.partialorder %v10475_v61, 0.0  ;;  %vm2815_vm2 = vcmp.eq.f32.partialorder %v10435_v44, 0.0  ;;  %v16080_v24 = vld [vmem:[#allocation40_spill] sm:$0xff] }
  0xff   : > { %16076 = vst [vmem:[#allocation106_spill] sm:$0xff] %v10497_v14  ;;  %8056 = vmatmul.mubr.msk.f32.gmra.mrb[74].mxu0 %vm1725_vm0, %v9186_v20  ;;  %v10506_v23 = vpop.eup %8799  ;;  %v10514_v20 = vsub.f32 %v16078_v10, %v10389_v19  ;;  %v10518_v17 = vsub.f32 %v16080_v24, %v10389_v19  ;;  %8811 = vrcp.f32 %v2980_v5  ;;  %vm2817_vm3 = vcmp.eq.f32.partialorder %v10460_v12, 0.0  ;;  %v16083_v35 = vld [vmem:[#allocation45_spill] sm:$0xff]  ;;  %v16085_v31 = vld [vmem:[#allocation46_spill] sm:$0xff] }
 0x100   : > { %16077 = vst [vmem:[#allocation107_spill] sm:$0xff] %v10506_v23  ;;  %2436 = vmatprep.mubr.f32.mxu0 %v15983_v30  ;;  %v1080_v21 = vpop.permute.xlu1 %1079  ;;  %v10521_v13 = vpop.eup %8801  ;;  %v10524_v26 = vsub.f32 %v16083_v35, %v1055_v48  ;;  %v10527_v3 = vsub.f32 %v16085_v31, %v1055_v48  ;;  %8813 = vrcp.f32 %v2983_v0  ;;  %v2984_v10 = vsel %vm2792_vm14, 1.0, %v10465_v45  ;;  %v9187_v0 = vld [vmem:[%s9601_s11 + $0x30] sm:$0xff]  ;;  %v16087_v35 = vld [vmem:[#allocation19_spill] sm:$0xff] }
 0x101   : > { %16079 = vst [vmem:[#allocation39_spill] sm:$0xff] %v10514_v20  ;;  %16081 = vst [vmem:[#allocation40_spill] sm:$0xff] %v10518_v17  ;;  %8815 = vrcp.f32 %v2985_v53  ;;  %v2986_v5 = vsel %vm2794_vm1, 1.0, %v10475_v61  ;;  %v2998_v19 = vsel %vm2806_vm15, 1.0, %v10387_v43  ;;  %v10542_v31 = vsel %vm2815_vm2, 1.0, %v10435_v44  ;;  %v16089_v53 = vld [vmem:[#allocation20_spill] sm:$0xff] }
 0x102   : > { %16082 = vst [vmem:[#allocation108_spill] sm:$0xff] %v10521_v13  ;;  %16084 = vst [vmem:[#allocation45_spill] sm:$0xff] %v10524_v26  ;;  %8572 = vset.pattern.permute.xlu1 %v15984_v27  ;;  %v10548_v48 = vsub.f32 %v16087_v35, %v1080_v21  ;;  %v10551_v24 = vsub.f32 %v16089_v53, %v1080_v21  ;;  %vm2816_vm4 = vcmp.eq.f32.partialorder %v10450_v34, 0.0  ;;  %v16091_v26 = vld [vmem:[#allocation21_spill] sm:$0xff]  ;;  %v16095_v35 = vld [vmem:[#allocation23_spill] sm:$0xff]  ;;  %v1070_v53 = vpop.permute.xlu0 %1069  ;;  %8817 = vrcp.f32 %v2984_v10 }
 0x103   : > { %16086 = vst [vmem:[#allocation46_spill] sm:$0xff] %v10527_v3  ;;  %8057 = vmatmul.mubr.msk.f32.gmra.mrb[76].mxu0 %vm1725_vm0, %v9187_v0  ;;  %1179 = vperm.xlu1 %8572, %v10510_v41   ;;  %v10556_v3 = vsel %vm2817_vm3, 1.0, %v10460_v12  ;;  %v10561_v17 = vsub.f32 %v16091_v26, %v1080_v21  ;;  %v16093_v0 = vld [vmem:[#allocation22_spill] sm:$0xff]  ;;  %v10567_v44 = vsub.f32 %v16095_v35, %v1080_v21  ;;  %vm2818_vm5 = vcmp.eq.f32.partialorder %v10472_v47, 0.0 }
 0x104   : > { %16088 = vst [vmem:[#allocation19_spill] sm:$0xff] %v10548_v48  ;;  %16090 = vst [vmem:[#allocation20_spill] sm:$0xff] %v10551_v24  ;;  %2442 = vmatprep.mubr.f32.mxu0 %v15983_v30  ;;  %v10564_v20 = vsub.f32 %v16093_v0, %v1080_v21  ;;  %v10570_v43 = vsub.f32 %v10124_v60, %v1070_v53  ;;  %v10573_v12 = vsub.f32 %v10136_v57, %v1070_v53  ;;  %v16101_v0 = vld [vmem:[#allocation24_spill] sm:$0xff] }
 0x105   : > { %16092 = vst [vmem:[#allocation21_spill] sm:$0xff] %v10561_v17  ;;  %16096 = vst [vmem:[#allocation23_spill] sm:$0xff] %v10567_v44  ;;  %v10576_v61 = vsub.f32 %v10144_v8, %v1070_v53  ;;  %v10579_v26 = vpop.eup %8803  ;;  %v10582_v45 = vsub.f32 %v16101_v0, %v1080_v21  ;;  %v10584_v35 = vpop.permute.xlu1 %3562  ;;  %v10587_v10 = vsub.f32 %v10146_v9, %v1070_v53  ;;  %8819 = vrcp.f32 %v2986_v5  ;;  %v9188_v8 = vld [vmem:[%s9601_s11 + $0x38] sm:$0xff] }
 0x106   : > { %16094 = vst [vmem:[#allocation22_spill] sm:$0xff] %v10564_v20  ;;  %16097 = vst [vmem:[#allocation109_spill] sm:$0xff] %v10570_v43  ;;  %v10592_v60 = vsel %vm2816_vm4, 1.0, %v10450_v34  ;;  %v10594_v57 = vpop.eup %8805  ;;  %vm2809_vm6 = vcmp.eq.f32.partialorder %v10570_v43, 0.0  ;;  %v735_v9 = vunpack.c.0.s8 %v10029_v42  ;;  %v736_v21 = vunpack.c.0.s8 %v10032_v1  ;;  %v1085_v0 = vpop.permute.xlu0 %1084 }
 0x107   : > { %16098 = vst [vmem:[#allocation110_spill] sm:$0xff] %v10573_v12  ;;  %16099 = vst [vmem:[#allocation111_spill] sm:$0xff] %v10576_v61  ;;  %8058 = vmatmul.mubr.msk.f32.gmra.mrb[78].mxu0 %vm1725_vm0, %v9188_v8  ;;  %8573 = vset.pattern.permute.xlu1 %v15992_v55  ;;  %vm2811_vm7 = vcmp.eq.f32.partialorder %v10576_v61, 0.0  ;;  %v10603_v5 = vpop.eup %8807  ;;  %8821 = vrcp.f32 %v10430_v51  ;;  %vm2810_vm8 = vcmp.eq.f32.partialorder %v10573_v12, 0.0  ;;  %v10612_v8 = vsel %vm2818_vm5, 1.0, %v10472_v47 }
 0x108   : > { %16100 = vst [vmem:[#allocation112_spill] sm:$0xff] %v10579_v26  ;;  %16102 = vst [vmem:[#allocation24_spill] sm:$0xff] %v10582_v45  ;;  %3642 = vperm.xlu1 %8573, %v10281_v59   ;;  %2448 = vmatprep.mubr.f32.mxu0 %v15983_v30  ;;  %v737_v45 = vunpack.c.0.s8 %v10035_v28  ;;  %v10615_v44 = vpop.eup %8809  ;;  %v10618_v34 = vsub.f32 %v10148_v29, %v1070_v53  ;;  %8823 = vrcp.f32 %v10441_v50  ;;  %v3001_v59 = vsel %vm2809_vm6, 1.0, %v10570_v43  ;;  %v9189_v50 = vld [vmem:[%s9601_s11 + $0x40] sm:$0xff] }
 0x109   : > { %16103 = vst [vmem:[#allocation113_spill] sm:$0xff] %v10584_v35  ;;  %16104 = vst [vmem:[#allocation114_spill] sm:$0xff] %v10587_v10  ;;  %v738_v51 = vunpack.c.0.s8 %v10052_v18  ;;  %v10623_v4 = vpop.eup %8811  ;;  %v10626_v16 = vsub.f32 %v10150_v49, %v1070_v53  ;;  %8825 = vrcp.f32 %v10446_v32  ;;  %v3003_v47 = vsel %vm2811_vm7, 1.0, %v10576_v61  ;;  %v16109_v32 = vld [vmem:[#allocation37_spill] sm:$0xff]  ;;  %v16110_v61 = vld [vmem:[#allocation12_spill] sm:$0xff]  ;;  %v10648_v52 = vpop.permute.xlu1 %3566 }
 0x10a   : > { %16105 = vst [vmem:[#allocation115_spill] sm:$0xff] %v10618_v34  ;;  %vm2812_vm9 = vcmp.eq.f32.partialorder %v10587_v10, 0.0  ;;  %v10633_v29 = vpop.eup %8813  ;;  %v16107_v34 = vld [vmem:[#allocation56_spill] sm:$0xff]  ;;  %8827 = vrcp.f32 %v2998_v19  ;;  %v3002_v49 = vsel %vm2810_vm8, 1.0, %v10573_v12  ;;  %v739_v53 = vunpack.c.0.s8 %v16109_v32  ;;  %16111 = vst [vmem:[#allocation37_spill] sm:$0xff] %v10648_v52  ;;  %v16114_v19 = vld [vmem:[#allocation58_spill] sm:$0xff]  ;;  %v1090_v39 = vpop.permute.xlu0 %1089 }
 0x10b   : > { %16106 = vst [vmem:[#allocation116_spill] sm:$0xff] %v10626_v16  ;;  %8059 = vmatmul.mubr.msk.f32.gmra.mrb[80].mxu0 %vm1725_vm0, %v9189_v50  ;;  %v10638_v43 = vsub.f32 %v16107_v34, %v1085_v0  ;;  %v10644_v16 = vpop.eup %8815  ;;  %v16112_v50 = vld [vmem:[#allocation57_spill] sm:$0xff]  ;;  %v10654_v11 = vsub.f32 %v16114_v19, %v1085_v0  ;;  %v10657_v12 = vsub.f32 %v16116_v7, %v1085_v0  ;;  %8829 = vrcp.f32 %v3001_v59  ;;  %v16118_v35 = vld [vmem:[#allocation60_spill] sm:$0xff]  ;;  %v16123_v7 = vld [vmem:[#allocation38_spill] sm:$0xff] }
 0x10c   : > { %3646 = vperm.xlu1 %8573, %v16110_v61   ;;  %2454 = vmatprep.mubr.f32.mxu0 %v15983_v30  ;;  %v10651_v34 = vsub.f32 %v16112_v50, %v1085_v0  ;;  %v10660_v26 = vsub.f32 %v16118_v35, %v1085_v0  ;;  %v16120_v61 = vld [vmem:[#allocation62_spill] sm:$0xff]  ;;  %8831 = vrcp.f32 %v3003_v47  ;;  %v3004_v50 = vsel %vm2812_vm9, 1.0, %v10587_v10  ;;  %v10668_v52 = vpop.eup %8817  ;;  %v10671_v19 = vld [vmem:[%s9606_s19 + $0xe8] sm:$0xff] }
 0x10d   : > { %16108 = vst [vmem:[#allocation56_spill] sm:$0xff] %v10638_v43  ;;  %16115 = vst [vmem:[#allocation57_spill] sm:$0xff] %v10654_v11  ;;  %v10663_v13 = vsub.f32 %v16120_v61, %v1085_v0  ;;  %8833 = vrcp.f32 %v3002_v49  ;;  %v740_v23 = vunpack.c.0.s8 %v16123_v7  ;;  %v10674_v59 = vcvt.s32.f32 %v735_v9  ;;  %v10691_v49 = vld [vmem:[%s9587_s0 + $0x90] sm:$0xff]  ;;  %v16133_v10 = vld [vmem:[#allocation77_spill] sm:$0xff] }
 0x10e   : > { %16113 = vst [vmem:[#allocation12_spill] sm:$0xff] %v10651_v34  ;;  %16117 = vst [vmem:[#allocation58_spill] sm:$0xff] %v10657_v12  ;;  %v10676_v35 = vcvt.s32.f32 %v736_v21  ;;  %v10681_v47 = vsub.f32 %v10225_v62, %v1090_v39  ;;  %v10684_v0 = vsub.f32 %v10238_v63, %v1090_v39  ;;  %v10686_v61 = vcvt.s32.f32 %v737_v45  ;;  %v10705_v63 = vld [vmem:[%s9587_s0 + $0x98] sm:$0xff]  ;;  %v16131_v45 = vld [vmem:[#allocation76_spill] sm:$0xff] }
 0x10f   : > { %16119 = vst [vmem:[#allocation59_spill] sm:$0xff] %v10660_v26  ;;  %16121 = vst [vmem:[#allocation60_spill] sm:$0xff] %v10663_v13  ;;  %v9190_v26 = vld [vmem:[%s9601_s11 + $0x48] sm:$0xff]  ;;  %v10688_v13 = vcvt.s32.f32 %v738_v51  ;;  %v10693_v9 = vpop.eup %8819  ;;  %v10701_v62 = vsub.f32 %v10242_v2, %v1090_v39  ;;  %8835 = vrcp.f32 %v3004_v50  ;;  %vm2821_vm10 = vcmp.eq.f32.partialorder %v10548_v48, 0.0 }
 0x110   : > { %16122 = vst [vmem:[#allocation62_spill] sm:$0xff] %v10668_v52  ;;  %8060 = vmatmul.mubr.msk.f32.gmra.mrb[82].mxu0 %vm1725_vm0, %v9190_v26  ;;  %16124 = vst [vmem:[#allocation38_spill] sm:$0xff] %v10681_v47  ;;  %8574 = vset.pattern.permute.xlu1 %v15984_v27  ;;  %v1095_v21 = vpop.permute.xlu1 %1094  ;;  %v10698_v26 = vsub.f32 %v10240_v40, %v1090_v39  ;;  %v10709_v51 = vsub.f32 %v16131_v45, %v1090_v39  ;;  %8837 = vrcp.f32 %v10542_v31 }
 0x111   : > { %16125 = vst [vmem:[#allocation117_spill] sm:$0xff] %v10684_v0  ;;  %16126 = vst [vmem:[#allocation118_spill] sm:$0xff] %v10691_v49  ;;  %2460 = vmatprep.mubr.f32.mxu0 %v15983_v30  ;;  %1194 = vperm.xlu1 %8574, %v10671_v19   ;;  %v10712_v14 = vsub.f32 %v16133_v10, %v1090_v39  ;;  %v10717_v40 = vcvt.s32.f32 %v739_v53  ;;  %v10719_v2 = vpop.eup %8821  ;;  %8839 = vrcp.f32 %v10556_v3  ;;  %v10722_v50 = vcvt.s32.f32 %v740_v23  ;;  %v9191_v39 = vld [vmem:[%s9601_s11 + $0x50] sm:$0xff]  ;;  %v16138_v10 = vld [vmem:[#allocation25_spill] sm:$0xff] }
 0x112   : > { %16127 = vst [vmem:[#allocation119_spill] sm:$0xff] %v10693_v9  ;;  %16128 = vst [vmem:[#allocation120_spill] sm:$0xff] %v10698_v26  ;;  %v10714_v9 = vpop.permute.xlu0 %3570  ;;  %vm2823_vm11 = vcmp.eq.f32.partialorder %v10561_v17, 0.0  ;;  %v10726_v45 = vpop.eup %8823  ;;  %v3013_v31 = vsel %vm2821_vm10, 1.0, %v10548_v48  ;;  %vm2822_vm12 = vcmp.eq.f32.partialorder %v10551_v24, 0.0  ;;  %v16141_v53 = vld [vmem:[#allocation26_spill] sm:$0xff]  ;;  %8841 = vrcp.f32 %v10592_v60 }
 0x113   : > { %16129 = vst [vmem:[#allocation121_spill] sm:$0xff] %v10701_v62  ;;  %16130 = vst [vmem:[#allocation122_spill] sm:$0xff] %v10705_v63  ;;  %v10738_v23 = vpop.eup %8825  ;;  %v10742_v52 = vsub.f32 %v16141_v53, %v1095_v21  ;;  %vm2824_vm13 = vcmp.eq.f32.partialorder %v10564_v20, 0.0  ;;  %v16148_v3 = vld [vmem:[#allocation29_spill] sm:$0xff]  ;;  %8843 = vrcp.f32 %v10612_v8  ;;  %v754_v60 = vunpack.c.3.s8 %v10032_v1  ;;  %v10790_v1 = vld [vmem:[%s9606_s19 + $0xf0] sm:$0xff] }
 0x114   : > { %16132 = vst [vmem:[#allocation76_spill] sm:$0xff] %v10709_v51  ;;  %16134 = vst [vmem:[#allocation77_spill] sm:$0xff] %v10712_v14  ;;  %8061 = vmatmul.mubr.msk.f32.gmra.mrb[84].mxu0 %vm1725_vm0, %v9191_v39  ;;  %v10731_v14 = vsub.f32 %v16138_v10, %v1095_v21  ;;  %v16143_v51 = vld [vmem:[#allocation27_spill] sm:$0xff]  ;;  %v16145_v10 = vld [vmem:[#allocation28_spill] sm:$0xff]  ;;  %v10751_v48 = vpop.eup %8827  ;;  %8845 = vrcp.f32 %v3013_v31  ;;  %v3016_v8 = vsel %vm2824_vm13, 1.0, %v10564_v20  ;;  %v757_v31 = vunpack.c.3.s8 %v16109_v32 }
 0x115   : > { %16135 = vst [vmem:[#allocation123_spill] sm:$0xff] %v10714_v9  ;;  %16136 = vst [vmem:[#allocation124_spill] sm:$0xff] %v10719_v2  ;;  %2466 = vmatprep.mubr.f32.mxu0 %v15983_v30  ;;  %v10745_v39 = vsub.f32 %v16143_v51, %v1095_v21  ;;  %v10748_v9 = vsub.f32 %v16145_v10, %v1095_v21  ;;  %8576 = vset.pattern.permute.xlu1 %v15992_v55  ;;  %v3015_v51 = vsel %vm2823_vm11, 1.0, %v10561_v17  ;;  %v10764_v53 = vpop.eup %8829  ;;  %v9193_v20 = vld [vmem:[%s9601_s11 + $0x60] sm:$0xff] }
 0x116   : > { %16137 = vst [vmem:[#allocation125_spill] sm:$0xff] %v10726_v45  ;;  %16139 = vst [vmem:[#allocation25_spill] sm:$0xff] %v10731_v14  ;;  %v16150_v45 = vld [vmem:[#allocation30_spill] sm:$0xff]  ;;  %3654 = vperm.xlu1 %8576, %v10404_v33   ;;  %v10767_v10 = vpop.permute.xlu0 %3586  ;;  %v10779_v33 = vpop.permute.xlu1 %3574  ;;  %v755_v17 = vunpack.c.3.s8 %v10035_v28  ;;  %8847 = vrcp.f32 %v3015_v51  ;;  %vm2827_vm14 = vcmp.eq.f32.partialorder %v10638_v43, 0.0  ;;  %vm2829_vm15 = vcmp.eq.f32.partialorder %v10654_v11, 0.0 }
 0x117   : > { %16140 = vst [vmem:[#allocation126_spill] sm:$0xff] %v10738_v23  ;;  %16142 = vst [vmem:[#allocation26_spill] sm:$0xff] %v10742_v52  ;;  %v10755_v23 = vsub.f32 %v16148_v3, %v1095_v21  ;;  %v10758_v2 = vsub.f32 %v16150_v45, %v1095_v21  ;;  %v3014_v21 = vsel %vm2822_vm12, 1.0, %v10551_v24  ;;  %v753_v45 = vunpack.c.3.s8 %v10029_v42  ;;  %v10775_v3 = vpop.eup %8831  ;;  %v10797_v24 = vld [vmem:[%s9587_s0 + $0xa8] sm:$0xff] }
 0x118   : > { %16144 = vst [vmem:[#allocation27_spill] sm:$0xff] %v10745_v39  ;;  %16146 = vst [vmem:[#allocation28_spill] sm:$0xff] %v10748_v9  ;;  %v10786_v42 = vpop.eup %8833  ;;  %8849 = vrcp.f32 %v3014_v21  ;;  %v10806_v51 = vcvt.s32.f32 %v754_v60  ;;  %v3019_v32 = vsel %vm2827_vm14, 1.0, %v10638_v43  ;;  %v3021_v63 = vsel %vm2829_vm15, 1.0, %v10654_v11 }
 0x119   : > { %16147 = vst [vmem:[#allocation127_spill] sm:$0xff] %v10751_v48  ;;  %16149 = vst [vmem:[#allocation29_spill] sm:$0xff] %v10755_v23  ;;  %v758_v23 = vunpack.c.3.s8 %v16123_v7  ;;  %v10801_v28 = vpop.eup %8835  ;;  %8851 = vrcp.f32 %v3016_v8  ;;  %v10810_v7 = vld [vmem:[%s9587_s0 + $0xb0] sm:$0xff]  ;;  %vm2828_vm1 = vcmp.eq.f32.partialorder %v10651_v34, 0.0  ;;  %vm2830_vm2 = vcmp.eq.f32.partialorder %v10657_v12, 0.0 }
 0x11a   : > { %16151 = vst [vmem:[#allocation30_spill] sm:$0xff] %v10758_v2  ;;  %16152 = vst [vmem:[#allocation128_spill] sm:$0xff] %v10764_v53  ;;  %v9192_v2 = vld [vmem:[%s9601_s11 + $0x58] sm:$0xff]  ;;  %8577 = vset.pattern.permute.xlu1 %v15984_v27  ;;  %v10812_v21 = vpop.eup %8837  ;;  %v1105_v60 = vpop.permute.xlu0 %1104  ;;  %v10827_v43 = vcvt.s32.f32 %v757_v31  ;;  %8853 = vrcp.f32 %v3019_v32  ;;  %vm2833_vm3 = vcmp.eq.f32.partialorder %v10681_v47, 0.0  ;;  %vm2835_vm4 = vcmp.eq.f32.partialorder %v10698_v26, 0.0 }
 0x11b   : > { %16153 = vst [vmem:[#allocation129_spill] sm:$0xff] %v10767_v10  ;;  %16154 = vst [vmem:[#allocation130_spill] sm:$0xff] %v10775_v3  ;;  %8062 = vmatmul.mubr.msk.f32.gmra.mrb[86].mxu0 %vm1725_vm0, %v9192_v2  ;;  %v756_v2 = vunpack.c.3.s8 %v10052_v18  ;;  %v10804_v18 = vcvt.s32.f32 %v753_v45  ;;  %1199 = vperm.xlu1 %8577, %v10790_v1   ;;  %v10817_v10 = vcvt.s32.f32 %v755_v17  ;;  %v10822_v45 = vpop.eup %8839  ;;  %8855 = vrcp.f32 %v3021_v63  ;;  %v16164_v32 = vld [vmem:[#allocation31_spill] sm:$0xff]  ;;  %v16168_v63 = vld [vmem:[#allocation33_spill] sm:$0xff] }
 0x11c   : > { %16155 = vst [vmem:[#allocation131_spill] sm:$0xff] %v10779_v33  ;;  %16156 = vst [vmem:[#allocation132_spill] sm:$0xff] %v10786_v42  ;;  %2472 = vmatprep.mubr.f32.mxu0 %v15983_v30  ;;  %v1100_v49 = vpop.permute.xlu1 %1099  ;;  %v10838_v42 = vpop.eup %8841  ;;  %v16166_v33 = vld [vmem:[#allocation32_spill] sm:$0xff]  ;;  %v16178_v3 = vld [vmem:[#allocation75_spill] sm:$0xff]  ;;  %vm2834_vm5 = vcmp.eq.f32.partialorder %v10684_v0, 0.0  ;;  %vm2836_vm6 = vcmp.eq.f32.partialorder %v10701_v62, 0.0 }
 0x11d   : > { %16157 = vst [vmem:[#allocation133_spill] sm:$0xff] %v10797_v24  ;;  %16158 = vst [vmem:[#allocation134_spill] sm:$0xff] %v10801_v28  ;;  %v10825_v8 = vcvt.s32.f32 %v756_v2  ;;  %v3022_v2 = vsel %vm2830_vm2, 1.0, %v10657_v12  ;;  %v16162_v28 = vld [vmem:[#allocation73_spill] sm:$0xff]  ;;  %v10844_v11 = vsub.f32 %v16164_v32, %v1100_v49  ;;  %v10847_v17 = vsub.f32 %v16166_v33, %v1100_v49  ;;  %v16176_v33 = vld [vmem:[#allocation36_spill] sm:$0xff] }
 0x11e   : > { %16159 = vst [vmem:[#allocation135_spill] sm:$0xff] %v10810_v7  ;;  %16160 = vst [vmem:[#allocation136_spill] sm:$0xff] %v10812_v21  ;;  %v3020_v21 = vsel %vm2828_vm1, 1.0, %v10651_v34  ;;  %v771_v31 = vunpack.c.2.s8 %v16162_v28  ;;  %v16170_v34 = vld [vmem:[#allocation74_spill] sm:$0xff]  ;;  %v10853_v7 = vpop.eup %8843  ;;  %v773_v53 = vunpack.c.2.s8 %v16178_v3  ;;  %vm2839_vm7 = vcmp.eq.f32.partialorder %v10731_v14, 0.0 }
 0x11f   : > { %8063 = vmatmul.mubr.msk.f32.gmra.mrb[88].mxu0 %vm1725_vm0, %v9193_v20  ;;  %16161 = vst [vmem:[#allocation137_spill] sm:$0xff] %v10822_v45  ;;  %v10829_v20 = vcvt.s32.f32 %v758_v23  ;;  %16163 = vst [vmem:[#allocation73_spill] sm:$0xff] %v10838_v42  ;;  %v9194_v23 = vld [vmem:[%s9601_s11 + $0x68] sm:$0xff]  ;;  %8579 = vset.pattern.permute.xlu1 %v15992_v55  ;;  %v10850_v45 = vsub.f32 %v16168_v63, %v1100_v49  ;;  %v772_v12 = vunpack.c.2.s8 %v16170_v34  ;;  %v16174_v55 = vld [vmem:[#allocation35_spill] sm:$0xff]  ;;  %v1110_v63 = vpop.permute.xlu0 %1109  ;;  %v10867_v48 = vpop.eup %8845  ;;  %8857 = vrcp.f32 %v3020_v21 }
 0x120   : > { %2478 = vmatprep.mubr.f32.mxu0 %v15983_v30  ;;  %16165 = vst [vmem:[#allocation31_spill] sm:$0xff] %v10844_v11  ;;  %16167 = vst [vmem:[#allocation32_spill] sm:$0xff] %v10847_v17  ;;  %3658 = vperm.xlu1 %8579, %v10510_v41   ;;  %v10861_v32 = vsub.f32 %v16174_v55, %v1100_v49  ;;  %v10864_v42 = vsub.f32 %v16176_v33, %v1100_v49  ;;  %v10878_v55 = vpop.eup %8847  ;;  %8859 = vrcp.f32 %v3022_v2 }
 0x121   : > { %16169 = vst [vmem:[#allocation33_spill] sm:$0xff] %v10850_v45  ;;  %16171 = vst [vmem:[#allocation74_spill] sm:$0xff] %v10853_v7  ;;  %v10870_v7 = vsub.f32 %v10350_v46, %v1105_v60  ;;  %v10873_v41 = vsub.f32 %v10352_v6, %v1105_v60  ;;  %v10884_v33 = vsub.f32 %v10369_v37, %v1105_v60  ;;  %v9195_v6 = vld [vmem:[%s9601_s11 + $0x70] sm:$0xff]  ;;  %v774_v37 = vunpack.c.2.s8 %v10276_v25 }
 0x122   : > { %16175 = vst [vmem:[#allocation35_spill] sm:$0xff] %v10861_v32  ;;  %16177 = vst [vmem:[#allocation36_spill] sm:$0xff] %v10864_v42  ;;  %v10887_v42 = vsub.f32 %v10382_v36, %v1105_v60  ;;  %v10889_v46 = vpop.eup %8849  ;;  %v10896_v21 = vsub.f32 %v10674_v59, %v1110_v63  ;;  %v10908_v2 = vsub.f32 %v10686_v61, %v1110_v63  ;;  %v776_v59 = vunpack.c.2.s8 %v10289_v22 }
 0x123   : > { %8064 = vmatmul.mubr.msk.f32.gmra.mrb[90].mxu0 %vm1725_vm0, %v9194_v23  ;;  %v16172_v23 = vld [vmem:[#allocation34_spill] sm:$0xff]  ;;  %16179 = vst [vmem:[#allocation75_spill] sm:$0xff] %v10870_v7  ;;  %16180 = vst [vmem:[#allocation138_spill] sm:$0xff] %v10873_v41  ;;  %v10903_v36 = vpop.eup %8851  ;;  %v10914_v32 = vsub.f32 %v10688_v13, %v1110_v63  ;;  %v10923_v61 = vcvt.s32.f32 %v771_v31  ;;  %v9197_v13 = vld [vmem:[%s9601_s11 + $0x78] sm:$0xff]  ;;  %vm2841_vm8 = vcmp.eq.f32.partialorder %v10745_v39, 0.0  ;;  %vm2840_vm9 = vcmp.eq.f32.partialorder %v10742_v52, 0.0 }
 0x124   : > { %2484 = vmatprep.mubr.f32.mxu0 %v15983_v30  ;;  %v10858_v24 = vsub.f32 %v16172_v23, %v1100_v49  ;;  %v10876_v23 = vsub.f32 %v10365_v54, %v1105_v60  ;;  %v10881_v49 = vsub.f32 %v10367_v56, %v1105_v60  ;;  %16183 = vst [vmem:[#allocation141_spill] sm:$0xff] %v10884_v33  ;;  %16184 = vst [vmem:[#allocation142_spill] sm:$0xff] %v10887_v42  ;;  %v10893_v54 = vpop.permute.xlu1 %3578  ;;  %v9196_v60 = vld [vmem:[%s9606_s19 + $0xd8] sm:$0xff] }
 0x125   : > { %16185 = vst [vmem:[#allocation143_spill] sm:$0xff] %v10893_v54  ;;  %16186 = vst [vmem:[#allocation144_spill] sm:$0xff] %v10896_v21  ;;  %v10899_v56 = vsub.f32 %v10676_v35, %v1110_v63  ;;  %v775_v33 = vunpack.c.2.s8 %v10286_v38  ;;  %3662 = vperm.xlu1 %8579, %v9196_v60   ;;  %v759_v35 = vunpack.c.0.s8 %v16162_v28  ;;  %v760_v42 = vunpack.c.0.s8 %v16170_v34  ;;  %v10929_v34 = vpop.eup %8853 }
 0x126   : > { %16173 = vst [vmem:[#allocation34_spill] sm:$0xff] %v10858_v24  ;;  %16181 = vst [vmem:[#allocation139_spill] sm:$0xff] %v10876_v23  ;;  %v10920_v60 = vsub.f32 %v10722_v50, %v1110_v63  ;;  %v762_v54 = vunpack.c.0.s8 %v10276_v25  ;;  %v763_v28 = vunpack.c.0.s8 %v10286_v38  ;;  %v10944_v25 = vcvt.s32.f32 %v776_v59 }
 0x127   : > { %16182 = vst [vmem:[#allocation140_spill] sm:$0xff] %v10881_v49  ;;  %8065 = vmatmul.mubr.msk.f32.gmra.mrb[92].mxu0 %vm1725_vm0, %v9195_v6  ;;  %16187 = vst [vmem:[#allocation145_spill] sm:$0xff] %v10899_v56  ;;  %v1125_v6 = vpop.permute.xlu0 %1124  ;;  %v10917_v56 = vsub.f32 %v10717_v40, %v1110_v63  ;;  %v10933_v40 = vcvt.s32.f32 %v773_v53  ;;  %v10937_v50 = vcvt.s32.f32 %v775_v33  ;;  %v951_v38 = vcvt.s32.f32 %v759_v35 }
 0x128   : > { %16188 = vst [vmem:[#allocation146_spill] sm:$0xff] %v10903_v36  ;;  %2490 = vmatprep.mubr.f32.mxu0 %v15983_v30  ;;  %16189 = vst [vmem:[#allocation147_spill] sm:$0xff] %v10908_v2  ;;  %v761_v36 = vunpack.c.0.s8 %v16178_v3  ;;  %v10925_v2 = vcvt.s32.f32 %v772_v12  ;;  %v764_v3 = vunpack.c.0.s8 %v10289_v22  ;;  %v10940_v12 = vpop.eup %8855  ;;  %v952_v31 = vcvt.s32.f32 %v760_v42  ;;  %v10947_v53 = vpop.permute.xlu1 %3582 }
 0x129   : > { %16190 = vst [vmem:[#allocation148_spill] sm:$0xff] %v10914_v32  ;;  %16191 = vst [vmem:[#allocation149_spill] sm:$0xff] %v10917_v56  ;;  %v10935_v56 = vcvt.s32.f32 %v774_v37  ;;  %3670 = vperm.xlu1 %8579, %v10671_v19   ;;  %v10950_v63 = vsub.f32 %v10804_v18, %v1125_v6  ;;  %v954_v33 = vcvt.s32.f32 %v762_v54  ;;  %v955_v37 = vcvt.s32.f32 %v763_v28  ;;  %v10953_v19 = vld [vmem:[%s9587_s0 + $0xc0] sm:$0xff]  ;;  %v10964_v32 = vpop.eup %8857 }
 0x12a   : > { %16192 = vst [vmem:[#allocation150_spill] sm:$0xff] %v10920_v60  ;;  %16193 = vst [vmem:[#allocation151_spill] sm:$0xff] %v10923_v61  ;;  %v953_v22 = vcvt.s32.f32 %v761_v36  ;;  %v10956_v59 = vsub.f32 %v10806_v51, %v1125_v6  ;;  %v10959_v35 = vsub.f32 %v10817_v10, %v1125_v6  ;;  %v10962_v42 = vsub.f32 %v10825_v8, %v1125_v6  ;;  %v9198_v18 = vld [vmem:[%s9601_s11 + $0x80] sm:$0xff]  ;;  %v10978_v51 = vld [vmem:[%s9587_s0 + $0xc8] sm:$0xff]  ;;  %v10981_v8 = vpop.eup %8859 }
 0x12b   : > { %16194 = vst [vmem:[#allocation152_spill] sm:$0xff] %v10925_v2  ;;  %8066 = vmatmul.mubr.msk.f32.gmra.mrb[94].mxu0 %vm1725_vm0, %v9197_v13  ;;  %16195 = vst [vmem:[#allocation153_spill] sm:$0xff] %v10933_v40  ;;  %v1130_v13 = vpop.permute.xlu0 %1129  ;;  %v956_v60 = vcvt.s32.f32 %v764_v3  ;;  %v10969_v54 = vsub.f32 %v10827_v43, %v1125_v6  ;;  %v10972_v36 = vsub.f32 %v10829_v20, %v1125_v6  ;;  %v3025_v10 = vsel %vm2833_vm3, 1.0, %v10681_v47  ;;  %v9199_v20 = vld [vmem:[%s9601_s11 + $0x88] sm:$0xff]  ;;  %v16329_v40 = vld [vmem:[#allocation127_spill] sm:$0xff] }
 0x12c   : > { %16196 = vst [vmem:[#allocation154_spill] sm:$0xff] %v10935_v56  ;;  %16197 = vst [vmem:[#allocation155_spill] sm:$0xff] %v10937_v50  ;;  %2496 = vmatprep.mubr.f32.mxu0 %v15983_v30  ;;  %v10985_v43 = vsub.f32 %v951_v38, %v1130_v13  ;;  %v10987_v28 = vsub.f32 %v952_v31, %v1130_v13  ;;  %v1115_v6 = vpop.permute.xlu1 %1114  ;;  %v10991_v3 = vsub.f32 %v953_v22, %v1130_v13  ;;  %v16220_v22 = vld [vmem:[#allocation49_spill] sm:$0xff]  ;;  %v16318_v50 = vld [vmem:[#allocation72_spill] sm:$0xff] }
 0x12d   : > { %16198 = vst [vmem:[#allocation156_spill] sm:$0xff] %v10944_v25  ;;  %16199 = vst [vmem:[#allocation157_spill] sm:$0xff] %v10947_v53  ;;  %3674 = vperm.xlu1 %8579, %v10790_v1   ;;  %v10998_v1 = vsub.f32 %v956_v60, %v1130_v13  ;;  %8861 = vrcp.f32 %v3025_v10  ;;  %v3027_v31 = vsel %vm2835_vm4, 1.0, %v10698_v26  ;;  %v16216_v60 = vld [vmem:[#allocation47_spill] sm:$0xff]  ;;  %v16218_v10 = vld [vmem:[#allocation48_spill] sm:$0xff]  ;;  %vm2842_vm10 = vcmp.eq.f32.partialorder %v10748_v9, 0.0 }
 0x12e   : > { %16200 = vst [vmem:[#allocation158_spill] sm:$0xff] %v10950_v63  ;;  %16201 = vst [vmem:[#allocation159_spill] sm:$0xff] %v10953_v19  ;;  %v11015_v38 = vsub.f32 %v16218_v10, %v1115_v6  ;;  %8863 = vrcp.f32 %v3027_v31  ;;  %v3033_v10 = vsel %vm2841_vm8, 1.0, %v10745_v39  ;;  %v11038_v31 = vld [vmem:[%s9587_s0 + $0xe0] sm:$0xff]  ;;  %vm2845_vm11 = vcmp.eq.f32.partialorder %v10844_v11, 0.0  ;;  %v16247_v39 = vld [vmem:[#allocation69_spill] sm:$0xff] }
 0x12f   : > { %16202 = vst [vmem:[#allocation160_spill] sm:$0xff] %v10956_v59  ;;  %16203 = vst [vmem:[#allocation161_spill] sm:$0xff] %v10959_v35  ;;  %8067 = vmatmul.mubr.msk.f32.gmra.mrb[96].mxu0 %vm1725_vm0, %v9198_v18  ;;  %v10993_v18 = vsub.f32 %v954_v33, %v1130_v13  ;;  %v3026_v33 = vsel %vm2834_vm5, 1.0, %v10684_v0  ;;  %vm2847_vm12 = vcmp.eq.f32.partialorder %v10850_v45, 0.0  ;;  %vm2846_vm13 = vcmp.eq.f32.partialorder %v10847_v17, 0.0  ;;  %v16238_v59 = vld [vmem:[#allocation64_spill] sm:$0xff] }
 0x130   : > { %16204 = vst [vmem:[#allocation162_spill] sm:$0xff] %v10962_v42  ;;  %16205 = vst [vmem:[#allocation163_spill] sm:$0xff] %v10964_v32  ;;  %2502 = vmatprep.mubr.f32.mxu0 %v15983_v30  ;;  %8865 = vrcp.f32 %v3026_v33  ;;  %v16228_v33 = vld [vmem:[#allocation54_spill] sm:$0xff]  ;;  %vm2848_vm14 = vcmp.eq.f32.partialorder %v10858_v24, 0.0  ;;  %vm2851_vm15 = vcmp.eq.f32.partialorder %v10870_v7, 0.0  ;;  %vm2853_vm1 = vcmp.eq.f32.partialorder %v10876_v23, 0.0 }
 0x131   : > { %16206 = vst [vmem:[#allocation164_spill] sm:$0xff] %v10969_v54  ;;  %16207 = vst [vmem:[#allocation165_spill] sm:$0xff] %v10972_v36  ;;  %v10995_v36 = vsub.f32 %v955_v37, %v1130_v13  ;;  %v11012_v13 = vsub.f32 %v16216_v60, %v1115_v6  ;;  %v3031_v37 = vsel %vm2839_vm7, 1.0, %v10731_v14  ;;  %v11028_v60 = vld [vmem:[%s9587_s0 + $0xd8] sm:$0xff]  ;;  %vm2852_vm2 = vcmp.eq.f32.partialorder %v10873_v41, 0.0  ;;  %v16331_v61 = vld [vmem:[#allocation130_spill] sm:$0xff] }
 0x132   : > { %16208 = vst [vmem:[#allocation166_spill] sm:$0xff] %v10978_v51  ;;  %16209 = vst [vmem:[#allocation167_spill] sm:$0xff] %v10981_v8  ;;  %vm2854_vm3 = vcmp.eq.f32.partialorder %v10881_v49, 0.0  ;;  %v16327_v51 = vld [vmem:[#allocation126_spill] sm:$0xff] }
 0x133   : > { %16210 = vst [vmem:[#allocation168_spill] sm:$0xff] %v10985_v43  ;;  %16211 = vst [vmem:[#allocation169_spill] sm:$0xff] %v10987_v28  ;;  %8068 = vmatmul.mubr.msk.f32.gmra.mrb[98].mxu0 %vm1725_vm0, %v9199_v20  ;;  %v3028_v20 = vsel %vm2836_vm6, 1.0, %v10701_v62  ;;  %v16255_v62 = vld [vmem:[#allocation51_spill] sm:$0xff] }
 0x134   : > { %16212 = vst [vmem:[#allocation170_spill] sm:$0xff] %v10991_v3  ;;  %16213 = vst [vmem:[#allocation171_spill] sm:$0xff] %v10993_v18  ;;  %2508 = vmatprep.mubr.f32.mxu0 %v15983_v30  ;;  %v9200_v18 = vld [vmem:[%s9601_s11 + $0x90] sm:$0xff]  ;;  %8867 = vrcp.f32 %v3028_v20  ;;  %v11044_v3 = vsub.f32 %v16228_v33, %v1115_v6  ;;  %v11048_v20 = vpop.permute.xlu1 %3590  ;;  %v3039_v33 = vsel %vm2847_vm12, 1.0, %v10850_v45  ;;  %v3040_v45 = vsel %vm2848_vm14, 1.0, %v10858_v24  ;;  %v9202_v24 = vld [vmem:[%s9601_s11 + $0xa0] sm:$0xff] }
 0x135   : > { %16214 = vst [vmem:[#allocation172_spill] sm:$0xff] %v10995_v36  ;;  %16215 = vst [vmem:[#allocation173_spill] sm:$0xff] %v10998_v1  ;;  %v11020_v1 = vsub.f32 %v16220_v22, %v1115_v6  ;;  %v16222_v36 = vld [vmem:[#allocation52_spill] sm:$0xff]  ;;  %v16225_v22 = vld [vmem:[#allocation53_spill] sm:$0xff]  ;;  %8869 = vrcp.f32 %v3031_v37 }
 0x136   : > { %16217 = vst [vmem:[#allocation47_spill] sm:$0xff] %v11012_v13  ;;  %16219 = vst [vmem:[#allocation48_spill] sm:$0xff] %v11015_v38  ;;  %v11025_v54 = vsub.f32 %v16222_v36, %v1115_v6  ;;  %v11035_v28 = vsub.f32 %v16225_v22, %v1115_v6  ;;  %v3032_v36 = vsel %vm2840_vm9, 1.0, %v10742_v52  ;;  %8871 = vrcp.f32 %v3033_v10  ;;  %v11055_v6 = vld [vmem:[%s9587_s0 + $0xf0] sm:$0xff]  ;;  %v11058_v37 = vld [vmem:[%s9587_s0 + $0xf8] sm:$0xff] }
 0x137   : > { %16221 = vst [vmem:[#allocation49_spill] sm:$0xff] %v11020_v1  ;;  %16224 = vst [vmem:[#allocation174_spill] sm:$0xff] %v11028_v60  ;;  %8069 = vmatmul.mubr.msk.f32.gmra.mrb[100].mxu0 %vm1725_vm0, %v9200_v18  ;;  %v3034_v18 = vsel %vm2842_vm10, 1.0, %v10748_v9  ;;  %8873 = vrcp.f32 %v3032_v36  ;;  %v3038_v22 = vsel %vm2846_vm13, 1.0, %v10847_v17  ;;  %v11070_v36 = vpop.eup %8861  ;;  %v3045_v17 = vsel %vm2853_vm1, 1.0, %v10876_v23  ;;  %v16240_v10 = vld [vmem:[#allocation65_spill] sm:$0xff] }
 0x138   : > { %16223 = vst [vmem:[#allocation52_spill] sm:$0xff] %v11025_v54  ;;  %16226 = vst [vmem:[#allocation53_spill] sm:$0xff] %v11035_v28  ;;  %2514 = vmatprep.mubr.f32.mxu0 %v15983_v30  ;;  %v3037_v28 = vsel %vm2845_vm11, 1.0, %v10844_v11  ;;  %8875 = vrcp.f32 %v3034_v18  ;;  %v11067_v11 = vld [vmem:[%s9587_s0 + $0x108] sm:$0xff]  ;;  %v11085_v43 = vpop.eup %8863  ;;  %v1120_v35 = vpop.permute.xlu1 %1119  ;;  %v16245_v23 = vld [vmem:[#allocation68_spill] sm:$0xff]  ;;  %v16256_v52 = vunpack.c.l.bf16 %v16255_v62 }
 0x139   : > { %16227 = vst [vmem:[#allocation175_spill] sm:$0xff] %v11038_v31  ;;  %16229 = vst [vmem:[#allocation54_spill] sm:$0xff] %v11044_v3  ;;  %v9201_v3 = vld [vmem:[%s9601_s11 + $0x98] sm:$0xff]  ;;  %8877 = vrcp.f32 %v3037_v28  ;;  %v3043_v28 = vsel %vm2851_vm15, 1.0, %v10870_v7  ;;  %v11096_v42 = vsub.f32 %v16238_v59, %v1120_v35  ;;  %v11099_v18 = vsub.f32 %v16240_v10, %v1120_v35 }
 0x13a   : > { %16230 = vst [vmem:[#allocation176_spill] sm:$0xff] %v11048_v20  ;;  %16231 = vst [vmem:[#allocation177_spill] sm:$0xff] %v11055_v6  ;;  %8879 = vrcp.f32 %v3039_v33  ;;  %v11109_v63 = vsub.f32 %v16245_v23, %v1120_v35  ;;  %v11112_v26 = vsub.f32 %v16247_v39, %v1120_v35  ;;  %v3044_v59 = vsel %vm2852_vm2, 1.0, %v10873_v41  ;;  %v646_v10 = vld [vmem:[%s9784_s13 + $0xf8] sm:$0xff]  ;;  %v647_v39 = vld [vmem:[%s9784_s13 + $0x100] sm:$0xff] }
 0x13b   : > { %16232 = vst [vmem:[#allocation178_spill] sm:$0xff] %v11058_v37  ;;  %8070 = vmatmul.mubr.msk.f32.gmra.mrb[102].mxu0 %vm1725_vm0, %v9201_v3  ;;  %16233 = vst [vmem:[#allocation179_spill] sm:$0xff] %v11067_v11  ;;  %v11076_v3 = vld [vmem:[%s9587_s0 + $0x110] sm:$0xff]  ;;  %8881 = vrcp.f32 %v3038_v22  ;;  %v11092_v22 = vpop.eup %8865  ;;  %v650_v13 = vld [vmem:[%s9784_s13 + $0x118] sm:$0xff] }
 0x13c   : > { %16234 = vst [vmem:[#allocation180_spill] sm:$0xff] %v11070_v36  ;;  %2520 = vmatprep.mubr.f32.mxu0 %v15983_v30  ;;  %16235 = vst [vmem:[#allocation181_spill] sm:$0xff] %v11076_v3  ;;  %8883 = vrcp.f32 %v3040_v45  ;;  %v645_v45 = vld [vmem:[%s9784_s13 + $0xf0] sm:$0xff] }
 0x13d   : > { %16236 = vst [vmem:[#allocation182_spill] sm:$0xff] %v11085_v43  ;;  %16237 = vst [vmem:[#allocation183_spill] sm:$0xff] %v11092_v22  ;;  %8885 = vrcp.f32 %v3043_v28  ;;  %v16253_v41 = vld [vmem:[#allocation50_spill] sm:$0xff]  ;;  %v16326_v43 = vld [vmem:[#allocation125_spill] sm:$0xff] }
 0x13e   : > { %16239 = vst [vmem:[#allocation64_spill] sm:$0xff] %v11096_v42  ;;  %16241 = vst [vmem:[#allocation65_spill] sm:$0xff] %v11099_v18  ;;  %v11106_v33 = vpop.eup %8867  ;;  %v1888_v18 = vpop.f32.mrb[0].mxu0  ;;  %v16250_v42 = vld [vmem:[#allocation70_spill] sm:$0xff]  ;;  %8887 = vrcp.f32 %v3045_v17  ;;  %v16254_v47 = vunpack.c.l.bf16 %v16253_v41  ;;  %v3046_v17 = vsel %vm2854_vm3, 1.0, %v10881_v49 }
 0x13f   : > { %8071 = vmatmul.mubr.msk.f32.gmra.mrb[104].mxu0 %vm1725_vm0, %v9202_v24  ;;  %v16242_v24 = vld [vmem:[#allocation66_spill] sm:$0xff]  ;;  %16244 = vst [vmem:[#allocation184_spill] sm:$0xff] %v11106_v33  ;;  %16246 = vst [vmem:[#allocation68_spill] sm:$0xff] %v11109_v63  ;;  %v11119_v14 = vsub.f32 %v16250_v42, %v1120_v35  ;;  %v1890_v54 = vpop.f32.mrb[1].mxu0  ;;  %v789_v63 = vunpack.c.1.s8 %v645_v45  ;;  %8889 = vrcp.f32 %v3044_v59  ;;  %v791_v45 = vunpack.c.1.s8 %v647_v39 }
 0x140   : > { %2526 = vmatprep.mubr.f32.mxu0 %v15983_v30  ;;  %v11102_v7 = vsub.f32 %v16242_v24, %v1120_v35  ;;  %16248 = vst [vmem:[#allocation69_spill] sm:$0xff] %v11112_v26  ;;  %v11116_v24 = vpop.eup %8869  ;;  %v648_v26 = vld [vmem:[%s9784_s13 + $0x108] sm:$0xff]  ;;  %v2593_v9 = vadd.f32 %v1888_v18, %v16254_v47  ;;  %v649_v42 = vld [vmem:[%s9784_s13 + $0x110] sm:$0xff]  ;;  %v16259_v18 = vunpack.c.h.bf16 %v16255_v62  ;;  %8891 = vrcp.f32 %v3046_v17 }
 0x141   : > { %16249 = vst [vmem:[#allocation185_spill] sm:$0xff] %v11116_v24  ;;  %16251 = vst [vmem:[#allocation70_spill] sm:$0xff] %v11119_v14  ;;  %v11125_v28 = vpop.eup %8871  ;;  %v9203_v35 = vld [vmem:[%s9601_s11 + $0xa8] sm:$0xff]  ;;  %v16258_v14 = vunpack.c.h.bf16 %v16253_v41  ;;  %v792_v3 = vunpack.c.1.s8 %v648_v26  ;;  %v9208_v20 = vld [vmem:[%s9601_s11 + $0xd0] sm:$0xff] }
 0x142   : > { %16243 = vst [vmem:[#allocation66_spill] sm:$0xff] %v11102_v7  ;;  %v2145_v7 = vpop.f32.mrb[0].mxu1  ;;  %16252 = vst [vmem:[#allocation186_spill] sm:$0xff] %v11125_v28  ;;  %v11137_v23 = vpop.eup %8873  ;;  %v9209_v24 = vld [vmem:[%s9601_s11 + $0xd8] sm:$0xff] }
 0x143   : > { %v2595_v0 = vadd.f32 %v2145_v7, %v16256_v52  ;;  %v2147_v38 = vpop.f32.mrb[1].mxu1  ;;  %8072 = vmatmul.mubr.msk.f32.gmra.mrb[106].mxu0 %vm1725_vm0, %v9203_v35  ;;  %16257 = vst [vmem:[#allocation50_spill] sm:$0xff] %v11137_v23  ;;  %v2594_v47 = vadd.f32 %v1890_v54, %v16258_v14  ;;  %v790_v7 = vunpack.c.1.s8 %v646_v10  ;;  %v11144_v1 = vpop.eup %8875  ;;  %v3170_v35 = vmul.f32 %v10594_v57, %v2593_v9  ;;  %v16265_v10 = vld [vmem:[#allocation61_spill] sm:$0xff] }
 0x144   : > { %v2596_v52 = vadd.f32 %v2147_v38, %v16259_v18  ;;  %2532 = vmatprep.mubr.f32.mxu0 %v15983_v30  ;;  %16260 = vst [vmem:[#allocation51_spill] sm:$0xff] %v11144_v1  ;;  %v11149_v11 = vpop.eup %8877  ;;  %v1894_v41 = vpop.f32.mrb[2].mxu0  ;;  %v793_v38 = vunpack.c.1.s8 %v649_v42  ;;  %v16266_v39 = vunpack.c.l.bf16 %v16265_v10  ;;  %v9204_v18 = vld [vmem:[%s9601_s11 + $0xb0] sm:$0xff] }
 0x145   : > { %v3174_v49 = vmul.f32 %v10603_v5, %v2595_v0  ;;  %16261 = vst [vmem:[#allocation187_spill] sm:$0xff] %v11149_v11  ;;  %v3172_v14 = vmul.f32 %v10615_v44, %v2594_v47  ;;  %v2151_v54 = vpop.f32.mrb[2].mxu1  ;;  %v11153_v59 = vpop.eup %8879  ;;  %v11156_v57 = vadd.f32 %v10492_v58, %v3170_v35  ;;  %v16263_v0 = vld [vmem:[#allocation55_spill] sm:$0xff]  ;;  %v11176_v35 = vcvt.s32.f32 %v789_v63 }
 0x146   : > { %v3176_v62 = vmul.f32 %v10623_v4, %v2596_v52  ;;  %16262 = vst [vmem:[#allocation188_spill] sm:$0xff] %v11153_v59  ;;  %v16264_v9 = vunpack.c.l.bf16 %v16263_v0  ;;  %v2601_v44 = vadd.f32 %v2151_v54, %v16266_v39  ;;  %v1896_v47 = vpop.f32.mrb[3].mxu0  ;;  %v2153_v4 = vpop.f32.mrb[3].mxu1  ;;  %v11182_v39 = vcvt.s32.f32 %v790_v7 }
 0x147   : > { %v11159_v5 = vadd.f32 %v10492_v58, %v3174_v49  ;;  %8073 = vmatmul.mubr.msk.f32.gmra.mrb[108].mxu0 %vm1725_vm0, %v9204_v18  ;;  %v11167_v17 = vpop.eup %8881  ;;  %v11170_v42 = vadd.f32 %v10492_v58, %v3172_v14  ;;  %v794_v49 = vunpack.c.1.s8 %v650_v13  ;;  %16268 = vst [vmem:[#allocation61_spill] sm:$0xff] %v11176_v35  ;;  %v4065_v54 = vand.u32 8388607, %v11156_v57 }
 0x148   : > { %v2599_v26 = vadd.f32 %v1894_v41, %v16264_v9  ;;  %16267 = vst [vmem:[#allocation55_spill] sm:$0xff] %v11167_v17  ;;  %v11173_v52 = vadd.f32 %v10492_v58, %v3176_v62  ;;  %2538 = vmatprep.mubr.f32.mxu0 %v15983_v30  ;;  %v11178_v41 = vpop.eup %8883  ;;  %16270 = vst [vmem:[#allocation190_spill] sm:$0xff] %v11182_v39  ;;  %v11184_v18 = vcvt.s32.f32 %v791_v45  ;;  %v16272_v62 = vunpack.c.h.bf16 %v16263_v0  ;;  %v2157_v39 = vpop.f32.mrb[4].mxu1  ;;  %v9205_v17 = vld [vmem:[%s9601_s11 + $0xb8] sm:$0xff] }
 0x149   : > { %16269 = vst [vmem:[#allocation189_spill] sm:$0xff] %v11178_v41  ;;  %v4067_v9 = vand.u32 8388607, %v11159_v5  ;;  %v4066_v14 = vand.u32 8388607, %v11170_v42  ;;  %v16273_v13 = vunpack.c.h.bf16 %v16265_v10  ;;  %v11191_v35 = vcvt.s32.f32 %v792_v3  ;;  %v11193_v41 = vpop.eup %8885 }
 0x14a   : > { %16271 = vst [vmem:[#allocation191_spill] sm:$0xff] %v11184_v18  ;;  %v2600_v58 = vadd.f32 %v1896_v47, %v16272_v62  ;;  %16275 = vst [vmem:[#allocation193_spill] sm:$0xff] %v11193_v41  ;;  %vm4257_vm4 = vcmp.ge.s32.totalorder %v4065_v54, 3474676  ;;  %v3182_v7 = vmul.f32 %v10633_v29, %v2599_v26  ;;  %v3186_v45 = vmul.f32 %v10644_v16, %v2601_v44  ;;  %v1900_v18 = vpop.f32.mrb[4].mxu0  ;;  %v11199_v0 = vpop.eup %8887  ;;  %v11208_v29 = vld [vmem:[%s9587_s0 + $0x120] sm:$0xff] }
 0x14b   : > { %v2602_v63 = vadd.f32 %v2153_v4, %v16273_v13  ;;  %16274 = vst [vmem:[#allocation192_spill] sm:$0xff] %v11191_v35  ;;  %vm4259_vm5 = vcmp.ge.s32.totalorder %v4067_v9, 3474676  ;;  %8074 = vmatmul.mubr.msk.f32.gmra.mrb[110].mxu0 %vm1725_vm0, %v9205_v17  ;;  %16276 = vst [vmem:[#allocation194_spill] sm:$0xff] %v11199_v0  ;;  %v4641_v10 = vand.u32 4286578688, %v11156_v57  ;;  %v4643_v3 = vand.u32 4286578688, %v11159_v5  ;;  %v11218_v54 = vpop.eup %8889 }
 0x14c   : > { %v4068_v47 = vand.u32 8388607, %v11173_v52  ;;  %2544 = vmatprep.mubr.f32.mxu0 %v15983_v30  ;;  %v11205_v4 = vcvt.s32.f32 %v793_v38  ;;  %16278 = vst [vmem:[#allocation196_spill] sm:$0xff] %v11208_v29  ;;  %v4449_v16 = vsel %vm4257_vm4, 8388608, %v15984_v27  ;;  %v4451_v26 = vsel %vm4259_vm5, 8388608, %v15984_v27  ;;  %v1902_v17 = vpop.f32.mrb[5].mxu0 }
 0x14d   : > { %vm11212_vm6 = vcmp.ge.s32.totalorder %v4066_v14, 3474676  ;;  %v2159_v57 = vpop.f32.mrb[5].mxu1  ;;  %v11216_v5 = vcvt.s32.f32 %v794_v49  ;;  %16282 = vst [vmem:[#allocation198_spill] sm:$0xff] %v11218_v54  ;;  %v11221_v38 = vadd.f32 %v10462_v15, %v3182_v7  ;;  %v11224_v9 = vadd.f32 %v10462_v15, %v3186_v45  ;;  %v16283_v62 = vld [vmem:[#allocation62_spill] sm:$0xff]  ;;  %v16284_v14 = vld [vmem:[#allocation119_spill] sm:$0xff] }
 0x14e   : > { %16277 = vst [vmem:[#allocation195_spill] sm:$0xff] %v11205_v4  ;;  %v3184_v13 = vmul.f32 %v16283_v62, %v2600_v58  ;;  %v3188_v4 = vmul.f32 %v16284_v14, %v2602_v63  ;;  %v1906_v35 = vpop.f32.mrb[6].mxu0  ;;  %v11228_v0 = vpop.f32.mrb[6].mxu1  ;;  %v16285_v41 = vld [vmem:[#allocation63_spill] sm:$0xff]  ;;  %v9206_v63 = vld [vmem:[%s9601_s11 + $0xc0] sm:$0xff]  ;;  %v11245_v62 = vld [vmem:[%s9587_s0 + $0x128] sm:$0xff]  ;;  %v11273_v29 = vadd.s32 %v4641_v10, %v4449_v16 }
 0x14f   : > { %16281 = vst [vmem:[#allocation197_spill] sm:$0xff] %v11216_v5  ;;  %v16286_v59 = vunpack.c.l.bf16 %v16285_v41  ;;  %v16287_v5 = vld [vmem:[#allocation67_spill] sm:$0xff]  ;;  %v16289_v54 = vunpack.c.h.bf16 %v16285_v41  ;;  %v11238_v1 = vpop.f32.mrb[7].mxu0  ;;  %v11240_v58 = vpop.f32.mrb[7].mxu1  ;;  %8075 = vmatmul.mubr.msk.f32.gmra.mrb[112].mxu0 %vm1725_vm0, %v9206_v63  ;;  %16291 = vst [vmem:[#allocation62_spill] sm:$0xff] %v11245_v62  ;;  %v16312_v44 = vld [vmem:[#allocation124_spill] sm:$0xff] }
 0x150   : > { %v16288_v11 = vunpack.c.l.bf16 %v16287_v5  ;;  %v16290_v6 = vunpack.c.h.bf16 %v16287_v5  ;;  %v11247_v14 = vpop.eup %8891  ;;  %vm11249_vm7 = vcmp.ge.s32.totalorder %v4068_v47, 3474676  ;;  %v4073_v41 = vand.u32 8388607, %v11224_v9  ;;  %2550 = vmatprep.mubr.f32.mxu0 %v15983_v30  ;;  %v11268_v28 = vpop.f32.mrb[8].mxu0 }
 0x151   : > { %v2605_v49 = vadd.f32 %v1900_v18, %v16286_v59  ;;  %v2606_v7 = vadd.f32 %v1902_v17, %v16289_v54  ;;  %16292 = vst [vmem:[#allocation119_spill] sm:$0xff] %v11247_v14  ;;  %v11261_v18 = vadd.f32 %v10462_v15, %v3188_v4  ;;  %v16295_v17 = vld [vmem:[#allocation106_spill] sm:$0xff]  ;;  %v16297_v14 = vld [vmem:[#allocation108_spill] sm:$0xff]  ;;  %v11275_v4 = vadd.s32 %v4643_v3, %v4451_v26  ;;  %v9207_v54 = vld [vmem:[%s9601_s11 + $0xc8] sm:$0xff] }
 0x152   : > { %v2607_v37 = vadd.f32 %v2157_v39, %v16288_v11  ;;  %v2608_v45 = vadd.f32 %v2159_v57, %v16290_v6  ;;  %v4071_v11 = vand.u32 8388607, %v11221_v38  ;;  %v11258_v39 = vadd.f32 %v10462_v15, %v3184_v13  ;;  %v16296_v57 = vld [vmem:[#allocation107_spill] sm:$0xff]  ;;  %v11270_v6 = vpop.f32.mrb[8].mxu1 }
 0x153   : > { %v3194_v47 = vmul.f32 %v16295_v17, %v2605_v49  ;;  %v3196_v23 = vmul.f32 %v16297_v14, %v2606_v7  ;;  %v16298_v17 = vld [vmem:[#allocation112_spill] sm:$0xff]  ;;  %8076 = vmatmul.mubr.msk.f32.gmra.mrb[114].mxu0 %vm1725_vm0, %v9207_v54  ;;  %v11284_v7 = vsel %vm11212_vm6, 8388608, %v15984_v27  ;;  %v11289_v10 = vsel %vm11249_vm7, 8388608, %v15984_v27  ;;  %v2171_v26 = vpop.f32.mrb[9].mxu1  ;;  %v16303_v14 = vld [vmem:[#allocation113_spill] sm:$0xff] }
 0x154   : > { %v3198_v5 = vmul.f32 %v16296_v57, %v2607_v37  ;;  %v4072_v49 = vand.u32 8388607, %v11258_v39  ;;  %v3200_v37 = vmul.f32 %v16298_v17, %v2608_v45  ;;  %v1914_v57 = vpop.f32.mrb[9].mxu0  ;;  %v4647_v3 = vand.u32 4286578688, %v11221_v38  ;;  %2556 = vmatprep.mubr.f32.mxu0 %v15983_v30  ;;  %v16317_v38 = vld [vmem:[#allocation37_spill] sm:$0xff] }
 0x155   : > { %v4074_v16 = vand.u32 8388607, %v11261_v18  ;;  %vm11294_vm8 = vcmp.ge.s32.totalorder %v4071_v11, 3474676  ;;  %vm11298_vm9 = vcmp.ge.s32.totalorder %v4073_v41, 3474676  ;;  %v11303_v59 = vadd.f32 %v16303_v14, %v3194_v47 }
 0x156   : > { %v11306_v54 = vadd.f32 %v16303_v14, %v3198_v5  ;;  %vm11308_vm10 = vcmp.ge.s32.totalorder %v4072_v49, 3474676  ;;  %v11317_v11 = vadd.f32 %v16303_v14, %v3196_v23  ;;  %v16309_v41 = vld [vmem:[#allocation71_spill] sm:$0xff]  ;;  %v11321_v15 = vpop.f32.mrb[10].mxu0  ;;  %v11323_v47 = vpop.f32.mrb[10].mxu1  ;;  %v4649_v5 = vand.u32 4286578688, %v11224_v9 }
 0x157   : > { %vm11312_vm11 = vcmp.ge.s32.totalorder %v4074_v16, 3474676  ;;  %v16310_v13 = vunpack.c.l.bf16 %v16309_v41  ;;  %v4077_v49 = vand.u32 8388607, %v11303_v59  ;;  %v11329_v16 = vadd.f32 %v16303_v14, %v3200_v37  ;;  %8077 = vmatmul.mubr.msk.f32.gmra.mrb[116].mxu0 %vm1725_vm0, %v9208_v20  ;;  %v11354_v9 = vpop.f32.mrb[11].mxu0 }
 0x158   : > { %16308 = vst [vmem:[#allocation63_spill] sm:$0xff] %v11317_v11  ;;  %v4079_v62 = vand.u32 8388607, %v11306_v54  ;;  %v4455_v23 = vsel %vm11294_vm8, 8388608, %v15984_v27  ;;  %2562 = vmatprep.mubr.f32.mxu0 %v15983_v30  ;;  %v11345_v37 = vsel %vm11308_vm10, 8388608, %v15984_v27  ;;  %v11350_v20 = vsel %vm11312_vm11, 8388608, %v15984_v27 }
 0x159   : > { %v2611_v63 = vadd.f32 %v1906_v35, %v16310_v13  ;;  %16311 = vst [vmem:[#allocation67_spill] sm:$0xff] %v11329_v16  ;;  %v4457_v35 = vsel %vm11298_vm9, 8388608, %v15984_v27  ;;  %v4653_v45 = vand.u32 4286578688, %v11303_v59  ;;  %vm11356_vm12 = vcmp.ge.s32.totalorder %v4077_v49, 3474676  ;;  %v11372_v49 = vpop.f32.mrb[11].mxu1 }
 0x15a   : > { %v4078_v25 = vand.u32 8388607, %v11317_v11  ;;  %v11363_v56 = vadd.s32 %v4647_v3, %v4455_v23  ;;  %v11365_v17 = vadd.s32 %v4649_v5, %v4457_v35  ;;  %vm11367_vm13 = vcmp.ge.s32.totalorder %v4079_v62, 3474676  ;;  %v11388_v22 = vpop.f32.mrb[12].mxu1 }
 0x15b   : > { %v3206_v14 = vmul.f32 %v16312_v44, %v2611_v63  ;;  %v4080_v63 = vand.u32 8388607, %v11329_v16  ;;  %v11374_v44 = vpop.f32.mrb[12].mxu0  ;;  %8078 = vmatmul.mubr.msk.f32.gmra.mrb[118].mxu0 %vm1725_vm0, %v9209_v24  ;;  %v16319_v3 = vunpack.c.l.bf16 %v16318_v50  ;;  %v16320_v62 = vunpack.c.h.bf16 %v16309_v41 }
 0x15c   : > { %v16321_v35 = vunpack.c.h.bf16 %v16318_v50  ;;  %v11390_v60 = vpop.f32.mrb[13].mxu0  ;;  %2568 = vmatprep.mubr.f32.mxu0 %v15983_v30  ;;  %v4461_v24 = vsel %vm11356_vm12, 8388608, %v15984_v27  ;;  %v16324_v50 = vld [vmem:[#allocation79_spill] sm:$0xff]  ;;  %vm4270_vm14 = vcmp.ge.s32.totalorder %v4078_v25, 3474676  ;;  %vm2857_vm10 = vcmp.eq.f32.partialorder %v10896_v21, 0.0 }
 0x15d   : > { %v3699_v33 = vadd.f32 %v16317_v38, %v3206_v14  ;;  %v2613_v5 = vadd.f32 %v11228_v0, %v16319_v3  ;;  %v2612_v23 = vadd.f32 %v11238_v1, %v16320_v62  ;;  %v16322_v14 = vld [vmem:[#allocation78_spill] sm:$0xff]  ;;  %v16325_v3 = vunpack.c.l.bf16 %v16324_v50  ;;  %v11403_v62 = vpop.f32.mrb[13].mxu1  ;;  %v11409_v0 = vpop.f32.mrb[14].mxu0 }
 0x15e   : > { %v2614_v31 = vadd.f32 %v11240_v58, %v16321_v35  ;;  %v16323_v41 = vunpack.c.l.bf16 %v16322_v14  ;;  %v16328_v13 = vunpack.c.h.bf16 %v16322_v14  ;;  %v11411_v16 = vpop.f32.mrb[14].mxu1  ;;  %v11418_v32 = vpop.f32.mrb[15].mxu0  ;;  %vm4272_vm1 = vcmp.ge.s32.totalorder %v4080_v63, 3474676 }
 0x15f   : > { %v2619_v58 = vadd.f32 %v11270_v6, %v16325_v3  ;;  %v4083_v35 = vand.u32 8388607, %v3699_v33  ;;  %v3210_v36 = vmul.f32 %v16326_v43, %v2613_v5  ;;  %v3208_v19 = vmul.f32 %v16327_v51, %v2612_v23  ;;  %v11420_v43 = vpop.f32.mrb[15].mxu1  ;;  %v9210_v51 = vld [vmem:[%s9601_s11 + $0xe0] sm:$0xff]  ;;  %v11447_v14 = vpop.f32.mrb[16].mxu0 }
 0x160   : > { %v2617_v1 = vadd.f32 %v11268_v28, %v16323_v41  ;;  %v2618_v11 = vadd.f32 %v1914_v57, %v16328_v13  ;;  %v3212_v28 = vmul.f32 %v16329_v40, %v2614_v31  ;;  %v16330_v41 = vld [vmem:[#allocation128_spill] sm:$0xff]  ;;  %v16332_v3 = vunpack.c.h.bf16 %v16324_v50  ;;  %8079 = vmatmul.mubr.msk.f32.gmra.mrb[120].mxu0 %vm1725_vm0, %v9210_v51  ;;  %v11452_v63 = vpop.permute.xlu1 %3594 }
 0x161   : > { %v3222_v6 = vmul.f32 %v16331_v61, %v2619_v58  ;;  %vm4275_vm15 = vcmp.ge.s32.totalorder %v4083_v35, 3474676  ;;  %v11425_v57 = vadd.f32 %v16317_v38, %v3210_v36  ;;  %v11428_v40 = vadd.f32 %v16317_v38, %v3208_v19  ;;  %2574 = vmatprep.mubr.f32.mxu0 %v15983_v30  ;;  %16334 = vst [vmem:[#allocation106_spill] sm:$0xff] %v11452_v63  ;;  %v9211_v58 = vld [vmem:[%s9601_s11 + $0xe8] sm:$0xff] }
 0x162   : > { %v3218_v2 = vmul.f32 %v16330_v41, %v2617_v1  ;;  %v2620_v8 = vadd.f32 %v2171_v26, %v16332_v3  ;;  %v4463_v61 = vsel %vm11367_vm13, 8388608, %v15984_v27  ;;  %v11435_v31 = vadd.f32 %v16317_v38, %v3212_v28  ;;  %v16333_v26 = vld [vmem:[#allocation123_spill] sm:$0xff]  ;;  %v9212_v38 = vld [vmem:[%s9601_s11 + $0xf0] sm:$0xff] }
 0x163   : > { %v11440_v5 = vadd.s32 %v4653_v45, %v4461_v24  ;;  %v4085_v36 = vand.u32 8388607, %v11425_v57  ;;  %v4084_v19 = vand.u32 8388607, %v11428_v40  ;;  %v11445_v23 = vadd.f32 %v16333_v26, %v3222_v6  ;;  %v16336_v45 = vld [vmem:[#allocation134_spill] sm:$0xff] }
 0x164   : > { %v11438_v25 = vadd.f32 %v16333_v26, %v3218_v2  ;;  %v11450_v59 = vsel %vm4270_vm14, 8388608, %v15984_v27  ;;  %v4467_v1 = vsel %vm4275_vm15, 8388608, %v15984_v27  ;;  %v16335_v2 = vld [vmem:[#allocation132_spill] sm:$0xff]  ;;  %v3224_v24 = vmul.f32 %v16336_v45, %v2620_v8  ;;  %8080 = vmatmul.mubr.msk.f32.gmra.mrb[122].mxu0 %vm1725_vm0, %v9211_v58  ;;  %v11483_v45 = vpop.f32.mrb[16].mxu1  ;;  %v11485_v58 = vpop.f32.mrb[17].mxu0 }
 0x165   : > { %v3220_v50 = vmul.f32 %v16335_v2, %v2618_v11  ;;  %v11460_v35 = vsel %vm4272_vm1, 8388608, %v15984_v27  ;;  %v4659_v13 = vand.u32 4286578688, %v3699_v33  ;;  %v4661_v28 = vand.u32 4286578688, %v11425_v57  ;;  %2580 = vmatprep.mubr.f32.mxu0 %v15983_v30  ;;  %16342 = vst [vmem:[#allocation107_spill] sm:$0xff] %v11483_v45  ;;  %16343 = vst [vmem:[#allocation108_spill] sm:$0xff] %v11485_v58  ;;  %v16369_v2 = vld [vmem:[#allocation131_spill] sm:$0xff] }
 0x166   : > { %v4089_v41 = vand.u32 8388607, %v11438_v25  ;;  %vm11465_vm2 = vcmp.ge.s32.totalorder %v4085_v36, 3474676  ;;  %v4086_v11 = vand.u32 8388607, %v11435_v31 }
 0x167   : > { %v16339_v51 = vand.u32 4286578688, %v11306_v54  ;;  %v11476_v57 = vadd.s32 %v4659_v13, %v4467_v1  ;;  %vm11478_vm3 = vcmp.ge.s32.totalorder %v4084_v19, 3474676  ;;  %v4091_v36 = vand.u32 8388607, %v11445_v23  ;;  %v11497_v13 = vpop.f32.mrb[17].mxu1 }
 0x168   : > { %v4665_v8 = vand.u32 4286578688, %v11438_v25  ;;  %v11489_v3 = vadd.f32 %v16333_v26, %v3220_v50  ;;  %v11492_v54 = vadd.f32 %v16333_v26, %v3224_v24  ;;  %16347 = vst [vmem:[#allocation71_spill] sm:$0xff] %v11497_v13  ;;  %8081 = vmatmul.mubr.msk.f32.gmra.mrb[124].mxu0 %vm1725_vm0, %v9212_v38  ;;  %vm11503_vm4 = vcmp.ge.s32.totalorder %v4089_v41, 3474676  ;;  %v16351_v25 = vld [vmem:[#allocation81_spill] sm:$0xff]  ;;  %v11524_v41 = vpop.permute.xlu1 %3598 }
 0x169   : > { %v11474_v33 = vadd.s32 %v16339_v51, %v4463_v61  ;;  %v16345_v61 = vld [vmem:[#allocation80_spill] sm:$0xff]  ;;  %v11499_v51 = vpop.f32.mrb[18].mxu0  ;;  %v16352_v50 = vunpack.c.l.bf16 %v16351_v25  ;;  %2586 = vmatprep.mubr.f32.mxu0 %v15983_v30  ;;  %v4469_v38 = vsel %vm11465_vm2, 8388608, %v15984_v27  ;;  %16357 = vst [vmem:[#allocation79_spill] sm:$0xff] %v11524_v41  ;;  %vm11529_vm5 = vcmp.ge.s32.totalorder %v4086_v11, 3474676 }
 0x16a   : > { %16344 = vst [vmem:[#allocation112_spill] sm:$0xff] %v11492_v54  ;;  %v16346_v1 = vunpack.c.l.bf16 %v16345_v61  ;;  %16348 = vst [vmem:[#allocation124_spill] sm:$0xff] %v11499_v51  ;;  %v16353_v26 = vunpack.c.h.bf16 %v16345_v61  ;;  %v11516_v51 = vpop.f32.mrb[18].mxu1  ;;  %v11518_v13 = vpop.f32.mrb[19].mxu0  ;;  %vm11533_vm6 = vcmp.ge.s32.totalorder %v4091_v36, 3474676 }
 0x16b   : > { %v2625_v24 = vadd.f32 %v11323_v47, %v16352_v50  ;;  %16355 = vst [vmem:[#allocation72_spill] sm:$0xff] %v11516_v51  ;;  %16356 = vst [vmem:[#allocation78_spill] sm:$0xff] %v11518_v13  ;;  %v4667_v47 = vand.u32 4286578688, %v11445_v23  ;;  %v16362_v30 = vld [vmem:[#allocation136_spill] sm:$0xff]  ;;  %v11541_v41 = vpop.f32.mrb[20].mxu0  ;;  %v11546_v23 = vsel %vm11478_vm3, 8388608, %v15984_v27 }
 0x16c   : > { %v2623_v19 = vadd.f32 %v11321_v15, %v16346_v1  ;;  %v2624_v58 = vadd.f32 %v11354_v9, %v16353_v26  ;;  %v16354_v15 = vunpack.c.h.bf16 %v16351_v25  ;;  %v4090_v9 = vand.u32 8388607, %v11489_v3  ;;  %v16363_v25 = vld [vmem:[#allocation137_spill] sm:$0xff]  ;;  %16364 = vst [vmem:[#allocation125_spill] sm:$0xff] %v11541_v41  ;;  %v16366_v51 = vld [vmem:[#allocation74_spill] sm:$0xff] }
 0x16d   : > { %v4092_v26 = vand.u32 8388607, %v11492_v54  ;;  %v3234_v50 = vmul.f32 %v16363_v25, %v2625_v24  ;;  %v4473_v11 = vsel %vm11503_vm4, 8388608, %v15984_v27  ;;  %v16365_v36 = vld [vmem:[#allocation73_spill] sm:$0xff]  ;;  %v11555_v24 = vpop.f32.mrb[21].mxu0 }
 0x16e   : > { %v2626_v1 = vadd.f32 %v11372_v49, %v16354_v15  ;;  %v3230_v6 = vmul.f32 %v16362_v30, %v2623_v19  ;;  %v11539_v15 = vpop.f32.mrb[19].mxu1  ;;  %v3232_v13 = vmul.f32 %v16365_v36, %v2624_v58  ;;  %16368 = vst [vmem:[#allocation127_spill] sm:$0xff] %v11555_v24  ;;  %v9213_v30 = vld [vmem:[%s9601_s11 + $0xf8] sm:$0xff]  ;;  %vm4282_vm7 = vcmp.ge.s32.totalorder %v4090_v9, 3474676 }
 0x16f   : > { %v11553_v19 = vpop.f32.mrb[20].mxu1  ;;  %8082 = vmatmul.mubr.msk.f32.gmra.mrb[126].mxu0 %vm1725_vm0, %v9213_v30  ;;  %vm4284_vm8 = vcmp.ge.s32.totalorder %v4092_v26, 3474676  ;;  %v11563_v41 = vadd.f32 %v16369_v2, %v3234_v50  ;;  %v11567_v58 = vadd.s32 %v4661_v28, %v4469_v38  ;;  %v11580_v26 = vpop.permute.xlu1 %1134  ;;  %v11590_v49 = vsel %vm4282_vm7, 8388608, %v15984_v27 }
 0x170   : > { %v3236_v45 = vmul.f32 %v16366_v51, %v2626_v1  ;;  %16367 = vst [vmem:[#allocation126_spill] sm:$0xff] %v11553_v19  ;;  %v11560_v25 = vadd.f32 %v16369_v2, %v3230_v6  ;;  %v11565_v63 = vpop.f32.mrb[21].mxu1  ;;  %v11572_v51 = vsel %vm11529_vm5, 8388608, %v15984_v27  ;;  %v4475_v1 = vsel %vm11533_vm6, 8388608, %v15984_v27 }
 0x171   : > { %16370 = vst [vmem:[#allocation128_spill] sm:$0xff] %v11565_v63  ;;  %v11578_v9 = vadd.f32 %v16369_v2, %v3232_v13  ;;  %v11582_v6 = vadd.s32 %v4665_v8, %v4473_v11  ;;  %v4097_v28 = vand.u32 8388607, %v11563_v41  ;;  %v11594_v36 = vsel %vm4284_vm8, 8388608, %v15984_v27  ;;  %v16374_v8 = vld [vmem:[#allocation82_spill] sm:$0xff]  ;;  %v16378_v13 = vld [vmem:[#allocation83_spill] sm:$0xff] }
 0x172   : > { %v4095_v50 = vand.u32 8388607, %v11560_v25  ;;  %v11587_v38 = vadd.f32 %v16369_v2, %v3236_v45  ;;  %v11597_v30 = vadd.s32 %v4667_v47, %v4475_v1  ;;  %v11601_v11 = vsub.f32 %v16374_v8, %v11580_v26  ;;  %v11603_v45 = vpop.f32.mrb[22].mxu0  ;;  %v11605_v2 = vpop.f32.mrb[22].mxu1  ;;  %v16380_v8 = vld [vmem:[#allocation84_spill] sm:$0xff] }
 0x173   : > { %16371 = vst [vmem:[#allocation130_spill] sm:$0xff] %v11582_v6  ;;  %vm4289_vm9 = vcmp.ge.s32.totalorder %v4097_v28, 3474676  ;;  %16376 = vst [vmem:[#allocation81_spill] sm:$0xff] %v11603_v45  ;;  %v4096_v24 = vand.u32 8388607, %v11578_v9  ;;  %v11612_v47 = vsub.f32 %v16378_v13, %v11580_v26 }
 0x174   : > { %16372 = vst [vmem:[#allocation132_spill] sm:$0xff] %v11587_v38  ;;  %16373 = vst [vmem:[#allocation134_spill] sm:$0xff] %v11597_v30  ;;  %vm4287_vm0 = vcmp.ge.s32.totalorder %v4095_v50, 3474676  ;;  %v4098_v50 = vand.u32 8388607, %v11587_v38 }
 0x175   : > { %16375 = vst [vmem:[#allocation80_spill] sm:$0xff] %v11601_v11  ;;  %16377 = vst [vmem:[#allocation136_spill] sm:$0xff] %v11605_v2  ;;  %v11619_v11 = vsub.f32 %v16380_v8, %v11580_v26  ;;  %v11621_v2 = vpop.f32.mrb[23].mxu0  ;;  %v11623_v63 = vpop.f32.mrb[23].mxu1  ;;  %v4479_v61 = vsel %vm4287_vm0, 8388608, %v15984_v27  ;;  %v4481_v45 = vsel %vm4289_vm9, 8388608, %v15984_v27 }
 0x176   : > { %16379 = vst [vmem:[#allocation137_spill] sm:$0xff] %v11612_v47  ;;  %16382 = vst [vmem:[#allocation74_spill] sm:$0xff] %v11621_v2  ;;  %v16384_v13 = vand.u32 4286578688, %v11170_v42  ;;  %v16385_v47 = vand.u32 4286578688, %v11258_v39  ;;  %v11633_v19 = vpop.f32.mrb[24].mxu0  ;;  %v11635_v8 = vpop.f32.mrb[24].mxu1 }
 0x177   : > { %16381 = vst [vmem:[#allocation73_spill] sm:$0xff] %v11619_v11  ;;  %16383 = vst [vmem:[#allocation82_spill] sm:$0xff] %v11623_v63  ;;  %v16388_v11 = vand.u32 4286578688, %v11173_v52  ;;  %v16389_v2 = vand.u32 4286578688, %v11261_v18  ;;  %v16390_v6 = vld [vmem:[#allocation100_spill] sm:$0xff]  ;;  %v11648_v39 = vpop.f32.mrb[25].mxu0 }
 0x178   : > { %v4834_v1 = vadd.s32 %v16384_v13, %v11284_v7  ;;  %v4840_v28 = vadd.s32 %v16385_v47, %v11345_v37  ;;  %16386 = vst [vmem:[#allocation83_spill] sm:$0xff] %v11633_v19  ;;  %16387 = vst [vmem:[#allocation84_spill] sm:$0xff] %v11635_v8  ;;  %v5217_v42 = vmul.f32 %v11273_v29, %v16390_v6  ;;  %v16391_v7 = vld [vmem:[#allocation41_spill] sm:$0xff]  ;;  %v11650_v37 = vpop.f32.mrb[25].mxu1  ;;  %v16395_v52 = vld [vmem:[#allocation42_spill] sm:$0xff] }
 0x179   : > { %v4836_v63 = vadd.s32 %v16388_v11, %v11289_v10  ;;  %v4842_v30 = vadd.s32 %v16389_v2, %v11350_v20  ;;  %v5223_v13 = vmul.f32 %v11363_v56, %v16391_v7  ;;  %16392 = vst [vmem:[#allocation100_spill] sm:$0xff] %v11648_v39  ;;  %16393 = vst [vmem:[#allocation41_spill] sm:$0xff] %v11650_v37  ;;  %v16394_v47 = vld [vmem:[#allocation101_spill] sm:$0xff]  ;;  %v16396_v11 = vld [vmem:[#allocation102_spill] sm:$0xff]  ;;  %v11663_v37 = vpop.f32.mrb[26].mxu0 }
 0x17a   : > { %v5218_v8 = vmul.f32 %v4834_v1, %v16394_v47  ;;  %v5224_v10 = vmul.f32 %v4840_v28, %v16395_v52  ;;  %v5219_v18 = vmul.f32 %v11275_v4, %v16396_v11  ;;  %v16397_v20 = vld [vmem:[#allocation43_spill] sm:$0xff]  ;;  %v16399_v19 = vld [vmem:[#allocation44_spill] sm:$0xff]  ;;  %v16400_v38 = vld [vmem:[#allocation118_spill] sm:$0xff]  ;;  %v11665_v1 = vpop.f32.mrb[26].mxu1  ;;  %vm11688_vm11 = vcmp.ge.s32.totalorder %v4096_v24, 3474676 }
 0x17b   : > { %v5225_v2 = vmul.f32 %v11365_v17, %v16397_v20  ;;  %v16398_v29 = vld [vmem:[#allocation103_spill] sm:$0xff]  ;;  %v5226_v56 = vmul.f32 %v4842_v30, %v16399_v19  ;;  %v5409_v7 = vpack.c.bf16 %v5223_v13, %v5217_v42  ;;  %v16401_v54 = vunpack.c.l.bf16 %v16400_v38  ;;  %v16403_v4 = vld [vmem:[#allocation122_spill] sm:$0xff]  ;;  %v11675_v30 = vpop.f32.mrb[27].mxu0  ;;  %v11677_v42 = vpop.f32.mrb[27].mxu1 }
 0x17c   : > { %v5220_v6 = vmul.f32 %v4836_v63, %v16398_v29  ;;  %v5410_v28 = vpack.c.bf16 %v5224_v10, %v5218_v8  ;;  %v16404_v52 = vunpack.c.l.bf16 %v16403_v4  ;;  %v16405_v63 = vunpack.c.h.bf16 %v16400_v38  ;;  %v16408_v10 = vld [vmem:[#allocation133_spill] sm:$0xff]  ;;  %v16412_v20 = vld [vmem:[#allocation135_spill] sm:$0xff]  ;;  %v16417_v24 = vld [vmem:[#allocation146_spill] sm:$0xff] }
 0x17d   : > { %v2629_v39 = vadd.f32 %v11374_v44, %v16401_v54  ;;  %v11667_v47 = vpack.c.bf16 %v5225_v2, %v5219_v18  ;;  %v16407_v8 = vunpack.c.h.bf16 %v16403_v4  ;;  %v16409_v11 = vunpack.c.l.bf16 %v16408_v10 }
 0x17e   : > { %v2631_v17 = vadd.f32 %v11388_v22, %v16404_v52  ;;  %v2630_v19 = vadd.f32 %v11390_v60, %v16405_v63  ;;  %v11679_v44 = vpack.c.bf16 %v5226_v56, %v5220_v6  ;;  %6465 = vmatprep.subr.bf16.mxu0 %v5410_v28  ;;  %v16413_v2 = vunpack.c.l.bf16 %v16412_v20  ;;  %v16420_v63 = vld [vmem:[#allocation89_spill] sm:$0xff] }
 0x17f   : > { %16402 = vst [vmem:[#allocation101_spill] sm:$0xff] %v11667_v47  ;;  %v3242_v54 = vmul.f32 %v10867_v48, %v2629_v39  ;;  %v2632_v13 = vadd.f32 %v11403_v62, %v16407_v8  ;;  %v2635_v22 = vadd.f32 %v11409_v0, %v16409_v11  ;;  %vm11697_vm12 = vcmp.ge.s32.totalorder %v4098_v50, 3474676  ;;  %6466 = vmatpush1.bf16.xpose.msra.mxu0 %v5409_v7  ;;  %v16416_v0 = vld [vmem:[#allocation143_spill] sm:$0xff] }
 0x180   : > { %16406 = vst [vmem:[#allocation42_spill] sm:$0xff] %v11679_v44  ;;  %v3246_v60 = vmul.f32 %v10878_v55, %v2631_v17  ;;  %v3244_v18 = vmul.f32 %v10889_v46, %v2630_v19  ;;  %v2637_v48 = vadd.f32 %v11411_v16, %v16413_v2  ;;  %8232 = vmatprep.subr.bf16.mxu1 %v11679_v44  ;;  %v11705_v55 = vpop.f32.mrb[28].mxu0  ;;  %v11707_v46 = vpop.f32.mrb[28].mxu1  ;;  %v16418_v7 = vunpack.c.h.bf16 %v16408_v10 }
 0x181   : > { %v3717_v62 = vadd.f32 %v16416_v0, %v3242_v54  ;;  %v3248_v29 = vmul.f32 %v16417_v24, %v2632_v13  ;;  %v3254_v6 = vmul.f32 %v10929_v34, %v2635_v22  ;;  %8248 = vmatpush1.bf16.xpose.msra.mxu1 %v11667_v47  ;;  %v11718_v4 = vpop.f32.mrb[29].mxu0  ;;  %v11720_v34 = vpop.f32.mrb[29].mxu1  ;;  %v16419_v52 = vand.u32 4286578688, %v11560_v25 }
 0x182   : > { %v3719_v16 = vadd.f32 %v16416_v0, %v3246_v60  ;;  %v11712_v50 = vadd.f32 %v16416_v0, %v3244_v18  ;;  %v3258_v56 = vmul.f32 %v10940_v12, %v2637_v48  ;;  %v2636_v28 = vadd.f32 %v11418_v32, %v16418_v7  ;;  %v16424_v60 = vld [vmem:[#allocation163_spill] sm:$0xff]  ;;  %v11759_v2 = vpop.f32.mrb[30].mxu0  ;;  %v16425_v48 = vld [vmem:[#allocation90_spill] sm:$0xff] }
 0x183   : > { %v11724_v17 = vadd.s32 %v16419_v52, %v4479_v61  ;;  %v11728_v19 = vsub.f32 %v16420_v63, %v11580_v26  ;;  %v4101_v54 = vand.u32 8388607, %v3717_v62  ;;  %v11731_v8 = vadd.f32 %v16416_v0, %v3248_v29  ;;  %v11772_v7 = vpop.f32.mrb[31].mxu0 }
 0x184   : > { %v16422_v12 = vand.u32 4286578688, %v11563_v41  ;;  %v4103_v32 = vand.u32 8388607, %v3719_v16  ;;  %v4102_v10 = vand.u32 8388607, %v11712_v50  ;;  %v3723_v11 = vadd.f32 %v10947_v53, %v3254_v6  ;;  %16430 = vst [vmem:[#allocation118_spill] sm:$0xff] %v11772_v7 }
 0x185   : > { %16421 = vst [vmem:[#allocation102_spill] sm:$0xff] %v11728_v19  ;;  %v11742_v25 = vsel %vm11688_vm11, 8388608, %v15984_v27  ;;  %v11747_v61 = vsel %vm11697_vm12, 8388608, %v15984_v27  ;;  %vm4293_vm13 = vcmp.ge.s32.totalorder %v4101_v54, 3474676  ;;  %v3725_v22 = vadd.f32 %v10947_v53, %v3258_v56  ;;  %v11770_v56 = vpop.f32.mrb[30].mxu1 }
 0x186   : > { %v11735_v13 = vadd.s32 %v16422_v12, %v4481_v45  ;;  %v4104_v41 = vand.u32 8388607, %v11731_v8  ;;  %v11750_v45 = vpop.permute.xlu1 %3606  ;;  %vm4295_vm14 = vcmp.ge.s32.totalorder %v4103_v32, 3474676  ;;  %v3256_v18 = vmul.f32 %v16424_v60, %v2636_v28  ;;  %16429 = vst [vmem:[#allocation44_spill] sm:$0xff] %v11770_v56  ;;  %v16431_v28 = vld [vmem:[#allocation91_spill] sm:$0xff] }
 0x187   : > { %16423 = vst [vmem:[#allocation43_spill] sm:$0xff] %v11750_v45  ;;  %v11757_v38 = vsel %vm2857_vm10, 1.0, %v10896_v21  ;;  %v11763_v39 = vsub.f32 %v16425_v48, %v11580_v26  ;;  %v4485_v24 = vsel %vm4293_vm13, 8388608, %v15984_v27  ;;  %v4677_v29 = vand.u32 4286578688, %v3717_v62  ;;  %v11779_v32 = vpop.f32.mrb[31].mxu1 }
 0x188   : > { %vm11766_vm15 = vcmp.ge.s32.totalorder %v4102_v10, 3474676  ;;  %v11776_v52 = vsub.f32 %v16431_v28, %v11580_v26  ;;  %v4487_v63 = vsel %vm4295_vm14, 8388608, %v15984_v27  ;;  %v4107_v54 = vand.u32 8388607, %v3723_v11  ;;  %16433 = vst [vmem:[#allocation133_spill] sm:$0xff] %v11779_v32 }
 0x189   : > { %16426 = vst [vmem:[#allocation103_spill] sm:$0xff] %v11763_v39  ;;  %v4109_v12 = vand.u32 8388607, %v3725_v22  ;;  %v4679_v60 = vand.u32 4286578688, %v3719_v16  ;;  %vm4296_vm1 = vcmp.ge.s32.totalorder %v4104_v41, 3474676  ;;  %v16434_v10 = vunpack.c.h.bf16 %v16412_v20 }
 0x18a   : > { %16432 = vst [vmem:[#allocation122_spill] sm:$0xff] %v11776_v52  ;;  %v11785_v39 = vpop.f32.mrb[32].mxu0  ;;  %vm4299_vm2 = vcmp.ge.s32.totalorder %v4107_v54, 3474676  ;;  %v4683_v26 = vand.u32 4286578688, %v3723_v11  ;;  %v11789_v28 = vadd.f32 %v10947_v53, %v3256_v18  ;;  %v11791_v52 = vadd.s32 %v4677_v29, %v4485_v24  ;;  %v16436_v54 = vld [vmem:[#allocation167_spill] sm:$0xff] }
 0x18b   : > { %v2638_v48 = vadd.f32 %v11420_v43, %v16434_v10  ;;  %16435 = vst [vmem:[#allocation135_spill] sm:$0xff] %v11785_v39  ;;  %v11793_v47 = vadd.s32 %v4679_v60, %v4487_v63  ;;  %v11798_v16 = vsel %vm11766_vm15, 8388608, %v15984_v27  ;;  %vm4301_vm3 = vcmp.ge.s32.totalorder %v4109_v12, 3474676  ;;  %v1140_v43 = vpop.permute.xlu1 %1139  ;;  %v16437_v10 = vld [vmem:[#allocation151_spill] sm:$0xff]  ;;  %v16439_v29 = vld [vmem:[#allocation152_spill] sm:$0xff] }
 0x18c   : > { %v11801_v20 = vsel %vm4296_vm1, 8388608, %v15984_v27  ;;  %v4685_v41 = vand.u32 4286578688, %v3725_v22  ;;  %v11805_v18 = vsub.f32 %v16437_v10, %v1140_v43  ;;  %v4491_v24 = vsel %vm4299_vm2, 8388608, %v15984_v27  ;;  %v16441_v60 = vld [vmem:[#allocation153_spill] sm:$0xff]  ;;  %v16443_v12 = vld [vmem:[#allocation63_spill] sm:$0xff] }
 0x18d   : > { %v3260_v11 = vmul.f32 %v16436_v54, %v2638_v48  ;;  %v11809_v63 = vsub.f32 %v16439_v29, %v1140_v43  ;;  %v11812_v6 = vsub.f32 %v16441_v60, %v1140_v43  ;;  %v16444_v0 = vand.u32 4286578688, %v16443_v12  ;;  %v16446_v10 = vld [vmem:[#allocation67_spill] sm:$0xff] }
 0x18e   : > { %16438 = vst [vmem:[#allocation146_spill] sm:$0xff] %v11805_v18  ;;  %v4493_v44 = vsel %vm4301_vm3, 8388608, %v15984_v27  ;;  %v4108_v22 = vand.u32 8388607, %v11789_v28  ;;  %v16445_v48 = vand.u32 4286578688, %v11428_v40  ;;  %v16447_v18 = vand.u32 4286578688, %v16446_v10 }
 0x18f   : > { %16440 = vst [vmem:[#allocation89_spill] sm:$0xff] %v11809_v63  ;;  %16442 = vst [vmem:[#allocation163_spill] sm:$0xff] %v11812_v6  ;;  %v4846_v62 = vadd.s32 %v16444_v0, %v11450_v59  ;;  %v11826_v63 = vadd.f32 %v10947_v53, %v3260_v11  ;;  %v16448_v60 = vand.u32 4286578688, %v11435_v31  ;;  %v16449_v59 = vld [vmem:[#allocation85_spill] sm:$0xff]  ;;  %v16450_v6 = vld [vmem:[#allocation92_spill] sm:$0xff]  ;;  %v11835_v19 = vadd.s32 %v4683_v26, %v4491_v24 }
 0x190   : > { %v4852_v54 = vadd.s32 %v16445_v48, %v11546_v23  ;;  %v4848_v29 = vadd.s32 %v16447_v18, %v11460_v35  ;;  %v5229_v0 = vmul.f32 %v11440_v5, %v16449_v59  ;;  %v5235_v21 = vmul.f32 %v11476_v57, %v16450_v6  ;;  %v16451_v40 = vld [vmem:[#allocation86_spill] sm:$0xff]  ;;  %v16452_v48 = vld [vmem:[#allocation93_spill] sm:$0xff]  ;;  %v16453_v35 = vld [vmem:[#allocation88_spill] sm:$0xff] }
 0x191   : > { %v4854_v12 = vadd.s32 %v16448_v60, %v11572_v51  ;;  %v5230_v23 = vmul.f32 %v4846_v62, %v16451_v40  ;;  %v16454_v11 = vld [vmem:[#allocation97_spill] sm:$0xff]  ;;  %v16455_v32 = vld [vmem:[#allocation87_spill] sm:$0xff]  ;;  %v16456_v51 = vld [vmem:[#allocation94_spill] sm:$0xff]  ;;  %v11845_v60 = vadd.s32 %v4685_v41, %v4493_v44  ;;  %vm4300_vm4 = vcmp.ge.s32.totalorder %v4108_v22, 3474676 }
 0x192   : > { %v5236_v10 = vmul.f32 %v4852_v54, %v16452_v48  ;;  %v5232_v18 = vmul.f32 %v4848_v29, %v16453_v35  ;;  %v5415_v39 = vpack.c.bf16 %v5235_v21, %v5229_v0  ;;  %v5231_v31 = vmul.f32 %v11474_v33, %v16455_v32  ;;  %v16457_v26 = vld [vmem:[#allocation159_spill] sm:$0xff]  ;;  %v16459_v6 = vld [vmem:[#allocation166_spill] sm:$0xff]  ;;  %v16466_v32 = vld [vmem:[#allocation180_spill] sm:$0xff] }
 0x193   : > { %v5238_v53 = vmul.f32 %v4854_v12, %v16454_v11  ;;  %v5237_v5 = vmul.f32 %v11567_v58, %v16456_v51  ;;  %v16458_v24 = vunpack.c.l.bf16 %v16457_v26  ;;  %v16460_v54 = vunpack.c.l.bf16 %v16459_v6  ;;  %v16461_v59 = vld [vmem:[#allocation107_spill] sm:$0xff]  ;;  %v16465_v58 = vld [vmem:[#allocation108_spill] sm:$0xff]  ;;  %v16467_v40 = vld [vmem:[#allocation182_spill] sm:$0xff] }
 0x194   : > { %v5416_v57 = vpack.c.bf16 %v5236_v10, %v5230_v23  ;;  %v4110_v12 = vand.u32 8388607, %v11826_v63  ;;  %v16464_v33 = vunpack.c.h.bf16 %v16457_v26  ;;  %v16469_v48 = vld [vmem:[#allocation71_spill] sm:$0xff]  ;;  %v16470_v35 = vld [vmem:[#allocation174_spill] sm:$0xff]  ;;  %v16472_v51 = vld [vmem:[#allocation124_spill] sm:$0xff]  ;;  %8893 = vrcp.f32 %v11757_v38 }
 0x195   : > { %v2641_v62 = vadd.f32 %v11447_v14, %v16458_v24  ;;  %v2643_v29 = vadd.f32 %v16461_v59, %v16460_v54  ;;  %v11854_v21 = vpack.c.bf16 %v5238_v53, %v5232_v18  ;;  %v11856_v0 = vpack.c.bf16 %v5237_v5, %v5231_v31  ;;  %v16473_v31 = vld [vmem:[#allocation183_spill] sm:$0xff]  ;;  %v16476_v24 = vld [vmem:[#allocation72_spill] sm:$0xff] }
 0x196   : > { %v2642_v44 = vadd.f32 %v16465_v58, %v16464_v33  ;;  %6467 = vmatprep.subr.bf16.mxu0 %v5416_v57  ;;  %v16468_v14 = vunpack.c.h.bf16 %v16459_v6  ;;  %v16471_v11 = vunpack.c.l.bf16 %v16470_v35  ;;  %v16474_v57 = vld [vmem:[#allocation175_spill] sm:$0xff]  ;;  %v16477_v54 = vunpack.c.h.bf16 %v16470_v35  ;;  %v16478_v6 = vld [vmem:[#allocation78_spill] sm:$0xff] }
 0x197   : > { %16462 = vst [vmem:[#allocation90_spill] sm:$0xff] %v11854_v21  ;;  %16463 = vst [vmem:[#allocation91_spill] sm:$0xff] %v11856_v0  ;;  %v3266_v41 = vmul.f32 %v16466_v32, %v2641_v62  ;;  %v3270_v23 = vmul.f32 %v16467_v40, %v2643_v29  ;;  %8233 = vmatprep.subr.bf16.mxu1 %v11854_v21  ;;  %6468 = vmatpush1.bf16.xpose.msra.mxu0 %v5415_v39  ;;  %v16475_v26 = vunpack.c.l.bf16 %v16474_v57  ;;  %v16479_v29 = vld [vmem:[#allocation129_spill] sm:$0xff]  ;;  %v16480_v32 = vld [vmem:[#allocation184_spill] sm:$0xff] }
 0x198   : > { %v2644_v10 = vadd.f32 %v16469_v48, %v16468_v14  ;;  %v2647_v53 = vadd.f32 %v16472_v51, %v16471_v11  ;;  %v3268_v5 = vmul.f32 %v16473_v31, %v2642_v44  ;;  %v2648_v59 = vadd.f32 %v16478_v6, %v16477_v54  ;;  %8249 = vmatpush1.bf16.xpose.msra.mxu1 %v11856_v0  ;;  %v16481_v14 = vld [vmem:[#allocation185_spill] sm:$0xff]  ;;  %v11883_v48 = vpop.f32.mrb[32].mxu1  ;;  %v16483_v44 = vld [vmem:[#allocation154_spill] sm:$0xff]  ;;  %v16485_v51 = vld [vmem:[#allocation155_spill] sm:$0xff] }
 0x199   : > { %v2649_v62 = vadd.f32 %v16476_v24, %v16475_v26  ;;  %v3729_v33 = vadd.f32 %v16479_v29, %v3266_v41  ;;  %v3731_v58 = vadd.f32 %v16479_v29, %v3270_v23  ;;  %16482 = vst [vmem:[#allocation167_spill] sm:$0xff] %v11883_v48  ;;  %v11886_v11 = vsub.f32 %v16483_v44, %v1140_v43  ;;  %v16489_v23 = vld [vmem:[#allocation156_spill] sm:$0xff]  ;;  %v16498_v41 = vld [vmem:[#allocation51_spill] sm:$0xff]  ;;  %v16510_v0 = vld [vmem:[#allocation114_spill] sm:$0xff]  ;;  %v12017_v48 = vpop.permute.xlu1 %3610 }
 0x19a   : > { %v3272_v40 = vmul.f32 %v16480_v32, %v2644_v10  ;;  %v3278_v39 = vmul.f32 %v16481_v14, %v2647_v53  ;;  %v11889_v35 = vsub.f32 %v16485_v51, %v1140_v43  ;;  %v11892_v31 = vadd.f32 %v16479_v29, %v3268_v5  ;;  %v16491_v54 = vld [vmem:[#allocation176_spill] sm:$0xff]  ;;  %v16492_v32 = vld [vmem:[#allocation186_spill] sm:$0xff]  ;;  %v11909_v14 = vpop.f32.mrb[33].mxu0  ;;  %16535 = vst [vmem:[#allocation94_spill] sm:$0xff] %v12017_v48 }
 0x19b   : > { %16484 = vst [vmem:[#allocation151_spill] sm:$0xff] %v11886_v11  ;;  %vm11894_vm5 = vcmp.ge.s32.totalorder %v4110_v12, 3474676  ;;  %v11899_v10 = vsub.f32 %v16489_v23, %v1140_v43  ;;  %v4113_v53 = vand.u32 8388607, %v3729_v33  ;;  %v3282_v5 = vmul.f32 %v16492_v32, %v2649_v62  ;;  %16493 = vst [vmem:[#allocation63_spill] sm:$0xff] %v11909_v14 }
 0x19c   : > { %16486 = vst [vmem:[#allocation152_spill] sm:$0xff] %v11889_v35  ;;  %v4115_v26 = vand.u32 8388607, %v3731_v58  ;;  %v4114_v22 = vand.u32 8388607, %v11892_v31  ;;  %v11903_v24 = vadd.f32 %v16479_v29, %v3272_v40  ;;  %v11906_v6 = vadd.f32 %v16491_v54, %v3278_v39  ;;  %v11911_v12 = vpop.f32.mrb[33].mxu1 }
 0x19d   : > { %16490 = vst [vmem:[#allocation153_spill] sm:$0xff] %v11899_v10  ;;  %16494 = vst [vmem:[#allocation67_spill] sm:$0xff] %v11911_v12  ;;  %v11914_v44 = vsel %vm4300_vm4, 8388608, %v15984_v27  ;;  %vm4305_vm6 = vcmp.ge.s32.totalorder %v4113_v53, 3474676  ;;  %v16495_v51 = vld [vmem:[#allocation50_spill] sm:$0xff]  ;;  %v16496_v18 = vunpack.c.h.bf16 %v16474_v57  ;;  %v11934_v57 = vadd.f32 %v16491_v54, %v3282_v5 }
 0x19e   : > { %v3280_v23 = vmul.f32 %v16495_v51, %v2648_v59  ;;  %v4497_v40 = vsel %vm4305_vm6, 8388608, %v15984_v27  ;;  %vm4307_vm7 = vcmp.ge.s32.totalorder %v4115_v26, 3474676  ;;  %v4116_v39 = vand.u32 8388607, %v11903_v24  ;;  %v11929_v53 = vpop.f32.mrb[34].mxu0 }
 0x19f   : > { %v2650_v62 = vadd.f32 %v11539_v15, %v16496_v18  ;;  %v11926_v32 = vsel %vm11894_vm5, 8388608, %v15984_v27  ;;  %v4689_v10 = vand.u32 4286578688, %v3729_v33  ;;  %vm4306_vm8 = vcmp.ge.s32.totalorder %v4114_v22, 3474676  ;;  %16497 = vst [vmem:[#allocation85_spill] sm:$0xff] %v11929_v53  ;;  %v16502_v43 = vld [vmem:[#allocation112_spill] sm:$0xff] }
 0x1a0   : > { %v4691_v59 = vand.u32 4286578688, %v3731_v58  ;;  %v4119_v51 = vand.u32 8388607, %v11906_v6  ;;  %v4499_v18 = vsel %vm4307_vm7, 8388608, %v15984_v27  ;;  %vm4308_vm0 = vcmp.ge.s32.totalorder %v4116_v39, 3474676 }
 0x1a1   : > { %v11936_v15 = vadd.s32 %v4689_v10, %v4497_v40  ;;  %v11940_v33 = vadd.f32 %v16491_v54, %v3280_v23  ;;  %v11943_v38 = vsel %vm4306_vm8, 8388608, %v15984_v27  ;;  %v3284_v58 = vmul.f32 %v16498_v41, %v2650_v62  ;;  %v11952_v40 = vpop.f32.mrb[34].mxu1  ;;  %v16518_v39 = vld [vmem:[#allocation15_spill] sm:$0xff] }
 0x1a2   : > { %v16499_v22 = vand.u32 4286578688, %v11489_v3  ;;  %v16500_v5 = vand.u32 4286578688, %v11578_v9  ;;  %16501 = vst [vmem:[#allocation92_spill] sm:$0xff] %v11952_v40  ;;  %vm4311_vm9 = vcmp.ge.s32.totalorder %v4119_v51, 3474676  ;;  %v4695_v23 = vand.u32 4286578688, %v11906_v6 }
 0x1a3   : > { %v16503_v35 = vand.u32 4286578688, %v16502_v43  ;;  %v11959_v62 = vadd.s32 %v4691_v59, %v4499_v18  ;;  %v11962_v3 = vsel %vm4308_vm0, 8388608, %v15984_v27  ;;  %v4697_v9 = vand.u32 4286578688, %v11934_v57  ;;  %v11968_v41 = vpop.f32.mrb[35].mxu1  ;;  %v16506_v6 = vld [vmem:[#allocation110_spill] sm:$0xff]  ;;  %v16515_v40 = vld [vmem:[#allocation13_spill] sm:$0xff] }
 0x1a4   : > { %v4858_v26 = vadd.s32 %v16499_v22, %v11590_v49  ;;  %v4864_v10 = vadd.s32 %v16500_v5, %v11742_v25  ;;  %v4121_v49 = vand.u32 8388607, %v11934_v57  ;;  %v11966_v25 = vpop.f32.mrb[35].mxu0  ;;  %16505 = vst [vmem:[#allocation93_spill] sm:$0xff] %v11968_v41  ;;  %v4120_v51 = vand.u32 8388607, %v11940_v33 }
 0x1a5   : > { %v4860_v29 = vadd.s32 %v16503_v35, %v11594_v36  ;;  %16504 = vst [vmem:[#allocation86_spill] sm:$0xff] %v11966_v25  ;;  %v16507_v5 = vld [vmem:[#allocation14_spill] sm:$0xff]  ;;  %v16508_v36 = vld [vmem:[#allocation132_spill] sm:$0xff]  ;;  %v4503_v18 = vsel %vm4311_vm9, 8388608, %v15984_v27  ;;  %v11979_v57 = vadd.f32 %v16491_v54, %v3284_v58  ;;  %v11982_v11 = vpop.f32.mrb[36].mxu0  ;;  %v5249_v58 = vmul.f32 %v11735_v13, %v16518_v39  ;;  %v16519_v54 = vld [vmem:[#allocation177_spill] sm:$0xff] }
 0x1a6   : > { %v5242_v22 = vmul.f32 %v4858_v26, %v16506_v6  ;;  %v5248_v43 = vmul.f32 %v4864_v10, %v16507_v5  ;;  %v16509_v35 = vand.u32 4286578688, %v16508_v36  ;;  %16511 = vst [vmem:[#allocation88_spill] sm:$0xff] %v11982_v11  ;;  %v16512_v25 = vld [vmem:[#allocation16_spill] sm:$0xff]  ;;  %v16513_v6 = vld [vmem:[#allocation109_spill] sm:$0xff]  ;;  %v16514_v10 = vld [vmem:[#allocation130_spill] sm:$0xff]  ;;  %v16520_v12 = vunpack.c.l.bf16 %v16519_v54 }
 0x1a7   : > { %v5244_v21 = vmul.f32 %v4860_v29, %v16510_v0  ;;  %v5241_v5 = vmul.f32 %v16514_v10, %v16513_v6  ;;  %v16516_v36 = vld [vmem:[#allocation111_spill] sm:$0xff]  ;;  %v16521_v0 = vld [vmem:[#allocation125_spill] sm:$0xff]  ;;  %v16522_v11 = vld [vmem:[#allocation178_spill] sm:$0xff]  ;;  %vm12001_vm10 = vcmp.ge.s32.totalorder %v4121_v49, 3474676  ;;  %v16528_v13 = vunpack.c.h.bf16 %v16519_v54 }
 0x1a8   : > { %v4866_v59 = vadd.s32 %v16509_v35, %v11747_v61  ;;  %v5422_v41 = vpack.c.bf16 %v5248_v43, %v5242_v22  ;;  %v5247_v61 = vmul.f32 %v11724_v17, %v16515_v40  ;;  %v16517_v35 = vld [vmem:[#allocation134_spill] sm:$0xff]  ;;  %v2653_v29 = vadd.f32 %v16521_v0, %v16520_v12  ;;  %v16529_v39 = vld [vmem:[#allocation127_spill] sm:$0xff]  ;;  %v16532_v0 = vld [vmem:[#allocation188_spill] sm:$0xff] }
 0x1a9   : > { %v5243_v53 = vmul.f32 %v16517_v35, %v16516_v36  ;;  %v16523_v22 = vunpack.c.l.bf16 %v16522_v11  ;;  %v16524_v43 = vld [vmem:[#allocation126_spill] sm:$0xff]  ;;  %v2654_v10 = vadd.f32 %v16529_v39, %v16528_v13  ;;  %v16531_v12 = vld [vmem:[#allocation187_spill] sm:$0xff]  ;;  %v16534_v49 = vld [vmem:[#allocation128_spill] sm:$0xff]  ;;  %vm12028_vm11 = vcmp.ge.s32.totalorder %v4120_v51, 3474676 }
 0x1aa   : > { %v5250_v26 = vmul.f32 %v4866_v59, %v16512_v25  ;;  %v11999_v59 = vpop.eup %8893  ;;  %6469 = vmatprep.subr.bf16.mxu0 %v5422_v41  ;;  %v5421_v40 = vpack.c.bf16 %v5247_v61, %v5241_v5  ;;  %v3290_v35 = vmul.f32 %v16531_v12, %v2653_v29  ;;  %v16536_v54 = vld [vmem:[#allocation55_spill] sm:$0xff]  ;;  %v16539_v5 = vld [vmem:[#allocation81_spill] sm:$0xff]  ;;  %v16545_v39 = vld [vmem:[#allocation106_spill] sm:$0xff] }
 0x1ab   : > { %v2655_v25 = vadd.f32 %v16524_v43, %v16523_v22  ;;  %v12010_v36 = vpack.c.bf16 %v5249_v58, %v5243_v53  ;;  %v16533_v43 = vunpack.c.h.bf16 %v16522_v11  ;;  %v3292_v41 = vmul.f32 %v16536_v54, %v2654_v10  ;;  %v16540_v58 = vld [vmem:[#allocation181_spill] sm:$0xff] }
 0x1ac   : > { %v12005_v17 = vpack.c.bf16 %v5250_v26, %v5244_v21  ;;  %v4122_v21 = vand.u32 8388607, %v11979_v57  ;;  %6470 = vmatpush1.bf16.xpose.msra.mxu0 %v5421_v40  ;;  %v16537_v26 = vld [vmem:[#allocation179_spill] sm:$0xff]  ;;  %v16541_v29 = vunpack.c.l.bf16 %v16540_v58  ;;  %v3741_v12 = vadd.f32 %v16545_v39, %v3290_v35 }
 0x1ad   : > { %16530 = vst [vmem:[#allocation87_spill] sm:$0xff] %v12010_v36  ;;  %v3294_v22 = vmul.f32 %v16532_v0, %v2655_v25  ;;  %v2656_v14 = vadd.f32 %v16534_v49, %v16533_v43  ;;  %v16538_v53 = vunpack.c.l.bf16 %v16537_v26  ;;  %v16542_v25 = vld [vmem:[#allocation136_spill] sm:$0xff]  ;;  %v16546_v0 = vld [vmem:[#allocation189_spill] sm:$0xff]  ;;  %v12037_v43 = vadd.f32 %v16545_v39, %v3292_v41 }
 0x1ae   : > { %16527 = vst [vmem:[#allocation97_spill] sm:$0xff] %v12005_v17  ;;  %8234 = vmatprep.subr.bf16.mxu1 %v12005_v17  ;;  %v2661_v13 = vadd.f32 %v16542_v25, %v16541_v29  ;;  %v16547_v49 = vld [vmem:[#allocation193_spill] sm:$0xff]  ;;  %v16549_v51 = vunpack.c.h.bf16 %v16537_v26  ;;  %v16550_v29 = vld [vmem:[#allocation74_spill] sm:$0xff]  ;;  %v12044_v17 = vadd.s32 %v4695_v23, %v4503_v18  ;;  %v4505_v35 = vsel %vm12001_vm10, 8388608, %v15984_v27 }
 0x1af   : > { %v2659_v61 = vadd.f32 %v16539_v5, %v16538_v53  ;;  %8250 = vmatpush1.bf16.xpose.msra.mxu1 %v12010_v36  ;;  %v3743_v40 = vadd.f32 %v16545_v39, %v3294_v22  ;;  %v3296_v10 = vmul.f32 %v16546_v0, %v2656_v14  ;;  %v16548_v53 = vld [vmem:[#allocation194_spill] sm:$0xff]  ;;  %v4125_v22 = vand.u32 8388607, %v3741_v12 }
 0x1b0   : > { %v3306_v5 = vmul.f32 %v16548_v53, %v2661_v13  ;;  %v2660_v25 = vadd.f32 %v16550_v29, %v16549_v51  ;;  %vm4314_vm12 = vcmp.ge.s32.totalorder %v4122_v21, 3474676  ;;  %v4126_v14 = vand.u32 8388607, %v12037_v43  ;;  %v16554_v18 = vld [vmem:[#allocation82_spill] sm:$0xff] }
 0x1b1   : > { %v3302_v54 = vmul.f32 %v16547_v49, %v2659_v61  ;;  %v4127_v36 = vand.u32 8388607, %v3743_v40  ;;  %v12051_v41 = vadd.f32 %v16545_v39, %v3296_v10  ;;  %v16552_v61 = vld [vmem:[#allocation79_spill] sm:$0xff]  ;;  %vm4317_vm13 = vcmp.ge.s32.totalorder %v4125_v22, 3474676  ;;  %v12065_v49 = vpop.permute.xlu1 %3614 }
 0x1b2   : > { %v3749_v26 = vadd.f32 %v16552_v61, %v3306_v5  ;;  %v16553_v23 = vunpack.c.h.bf16 %v16540_v58  ;;  %v12058_v6 = vadd.s32 %v4697_v9, %v4505_v35  ;;  %v12063_v21 = vsel %vm12028_vm11, 8388608, %v15984_v27  ;;  %16555 = vst [vmem:[#allocation166_spill] sm:$0xff] %v12065_v49  ;;  %v16557_v35 = vld [vmem:[#allocation147_spill] sm:$0xff] }
 0x1b3   : > { %16551 = vst [vmem:[#allocation159_spill] sm:$0xff] %v12051_v41  ;;  %v3747_v13 = vadd.f32 %v16552_v61, %v3302_v54  ;;  %vm4319_vm14 = vcmp.ge.s32.totalorder %v4127_v36, 3474676  ;;  %v4128_v10 = vand.u32 8388607, %v12051_v41  ;;  %v16556_v54 = vld [vmem:[#allocation198_spill] sm:$0xff] }
 0x1b4   : > { %v2662_v0 = vadd.f32 %v16554_v18, %v16553_v23  ;;  %v3304_v53 = vmul.f32 %v16556_v54, %v2660_v25  ;;  %v12070_v36 = vsel %vm4314_vm12, 8388608, %v15984_v27  ;;  %v4509_v5 = vsel %vm4317_vm13, 8388608, %v15984_v27  ;;  %v16558_v25 = vld [vmem:[#allocation119_spill] sm:$0xff] }
 0x1b5   : > { %v4511_v9 = vsel %vm4319_vm14, 8388608, %v15984_v27  ;;  %v4701_v51 = vand.u32 4286578688, %v3741_v12  ;;  %v4703_v29 = vand.u32 4286578688, %v3743_v40  ;;  %vm4318_vm15 = vcmp.ge.s32.totalorder %v4126_v14, 3474676  ;;  %v1155_v12 = vpop.permute.xlu1 %1154  ;;  %v16568_v14 = vld [vmem:[#allocation191_spill] sm:$0xff] }
 0x1b6   : > { %v4131_v11 = vand.u32 8388607, %v3747_v13  ;;  %vm2859_vm1 = vcmp.eq.f32.partialorder %v16557_v35, 0.0  ;;  %vm4320_vm2 = vcmp.ge.s32.totalorder %v4128_v10, 3474676  ;;  %v3308_v18 = vmul.f32 %v16558_v25, %v2662_v0 }
 0x1b7   : > { %v4133_v23 = vand.u32 8388607, %v3749_v26  ;;  %v12078_v54 = vadd.s32 %v4701_v51, %v4509_v5  ;;  %v12080_v39 = vadd.s32 %v4703_v29, %v4511_v9  ;;  %v12083_v58 = vadd.f32 %v16552_v61, %v3304_v53  ;;  %v16564_v51 = vld [vmem:[#allocation61_spill] sm:$0xff] }
 0x1b8   : > { %vm4323_vm3 = vcmp.ge.s32.totalorder %v4131_v11, 3474676  ;;  %v12086_v40 = vsel %vm4318_vm15, 8388608, %v15984_v27  ;;  %v12091_v10 = vsel %vm4320_vm2, 8388608, %v15984_v27  ;;  %v4707_v0 = vand.u32 4286578688, %v3747_v13  ;;  %v16566_v11 = vld [vmem:[#allocation190_spill] sm:$0xff] }
 0x1b9   : > { %16559 = vst [vmem:[#allocation107_spill] sm:$0xff] %v12078_v54  ;;  %16560 = vst [vmem:[#allocation108_spill] sm:$0xff] %v12080_v39  ;;  %v4515_v22 = vsel %vm4323_vm3, 8388608, %v15984_v27  ;;  %vm4325_vm4 = vcmp.ge.s32.totalorder %v4133_v23, 3474676  ;;  %v4709_v5 = vand.u32 4286578688, %v3749_v26  ;;  %v12094_v9 = vadd.f32 %v16552_v61, %v3308_v18 }
 0x1ba   : > { %16561 = vst [vmem:[#allocation180_spill] sm:$0xff] %v12083_v58  ;;  %16562 = vst [vmem:[#allocation182_spill] sm:$0xff] %v12091_v10  ;;  %v4517_v53 = vsel %vm4325_vm4, 8388608, %v15984_v27  ;;  %v12098_v29 = vsub.f32 %v16564_v51, %v1155_v12  ;;  %v12101_v25 = vsub.f32 %v16566_v11, %v1155_v12  ;;  %v12104_v39 = vsub.f32 %v16568_v14, %v1155_v12  ;;  %v12106_v23 = vpop.f32.mrb[36].mxu1  ;;  %v16573_v51 = vld [vmem:[#allocation192_spill] sm:$0xff]  ;;  %v12127_v26 = vpop.f32.mrb[37].mxu0 }
 0x1bb   : > { %16563 = vst [vmem:[#allocation71_spill] sm:$0xff] %v12094_v9  ;;  %16570 = vst [vmem:[#allocation175_spill] sm:$0xff] %v12106_v23  ;;  %v12108_v54 = vadd.s32 %v4707_v0, %v4515_v22  ;;  %v4132_v13 = vand.u32 8388607, %v12083_v58  ;;  %v16572_v18 = vand.u32 4286578688, %v11712_v50  ;;  %v16575_v11 = vand.u32 4286578688, %v11789_v28 }
 0x1bc   : > { %16565 = vst [vmem:[#allocation174_spill] sm:$0xff] %v12098_v29  ;;  %16567 = vst [vmem:[#allocation124_spill] sm:$0xff] %v12101_v25  ;;  %v12116_v29 = vsub.f32 %v16573_v51, %v1155_v12  ;;  %v16576_v25 = vand.u32 4286578688, %v11731_v8  ;;  %v16577_v0 = vand.u32 4286578688, %v11826_v63  ;;  %v12129_v23 = vpop.f32.mrb[37].mxu1  ;;  %v12131_v50 = vadd.s32 %v4709_v5, %v4517_v53  ;;  %v16583_v8 = vld [vmem:[#allocation20_spill] sm:$0xff] }
 0x1bd   : > { %16569 = vst [vmem:[#allocation183_spill] sm:$0xff] %v12104_v39  ;;  %16571 = vst [vmem:[#allocation72_spill] sm:$0xff] %v12108_v54  ;;  %v4870_v61 = vadd.s32 %v16572_v18, %v11798_v16  ;;  %v4876_v14 = vadd.s32 %v16575_v11, %v11914_v44  ;;  %v4134_v16 = vand.u32 8388607, %v12094_v9  ;;  %v16581_v18 = vld [vmem:[#allocation19_spill] sm:$0xff]  ;;  %v16582_v44 = vld [vmem:[#allocation56_spill] sm:$0xff] }
 0x1be   : > { %16574 = vst [vmem:[#allocation78_spill] sm:$0xff] %v12116_v29  ;;  %v4872_v22 = vadd.s32 %v16576_v25, %v11801_v20  ;;  %v4878_v39 = vadd.s32 %v16577_v0, %v11926_v32  ;;  %16578 = vst [vmem:[#allocation184_spill] sm:$0xff] %v12127_v26  ;;  %v5253_v28 = vmul.f32 %v11791_v52, %v16581_v18  ;;  %v16584_v25 = vld [vmem:[#allocation12_spill] sm:$0xff]  ;;  %v16585_v63 = vld [vmem:[#allocation22_spill] sm:$0xff]  ;;  %vm12151_vm5 = vcmp.ge.s32.totalorder %v4132_v13, 3474676 }
 0x1bf   : > { %16579 = vst [vmem:[#allocation185_spill] sm:$0xff] %v12129_v23  ;;  %16580 = vst [vmem:[#allocation154_spill] sm:$0xff] %v12131_v50  ;;  %v5259_v51 = vmul.f32 %v11835_v19, %v16582_v44  ;;  %v5254_v20 = vmul.f32 %v4870_v61, %v16583_v8  ;;  %v5260_v11 = vmul.f32 %v4876_v14, %v16584_v25  ;;  %v16586_v0 = vld [vmem:[#allocation58_spill] sm:$0xff]  ;;  %v16587_v23 = vld [vmem:[#allocation21_spill] sm:$0xff]  ;;  %v12149_v19 = vpop.f32.mrb[38].mxu0 }
 0x1c0   : > { %v5256_v32 = vmul.f32 %v4872_v22, %v16585_v63  ;;  %v5262_v29 = vmul.f32 %v4878_v39, %v16586_v0  ;;  %v5255_v5 = vmul.f32 %v11793_v47, %v16587_v23  ;;  %v16588_v53 = vld [vmem:[#allocation57_spill] sm:$0xff]  ;;  %v16589_v54 = vld [vmem:[#allocation196_spill] sm:$0xff]  ;;  %v16591_v18 = vld [vmem:[#allocation83_spill] sm:$0xff]  ;;  %16592 = vst [vmem:[#allocation155_spill] sm:$0xff] %v12149_v19  ;;  %v3051_v47 = vsel %vm2859_vm1, 1.0, %v16557_v35 }
 0x1c1   : > { %v5427_v26 = vpack.c.bf16 %v5259_v51, %v5253_v28  ;;  %v5261_v50 = vmul.f32 %v11845_v60, %v16588_v53  ;;  %v16590_v52 = vunpack.c.l.bf16 %v16589_v54  ;;  %v5428_v14 = vpack.c.bf16 %v5260_v11, %v5254_v20  ;;  %v16597_v54 = vld [vmem:[#allocation145_spill] sm:$0xff]  ;;  %v16600_v13 = vld [vmem:[#allocation195_spill] sm:$0xff]  ;;  %v12172_v28 = vpop.permute.xlu0 %3602 }
 0x1c2   : > { %v12155_v22 = vpack.c.bf16 %v5262_v29, %v5256_v32  ;;  %8895 = vrcp.f32 %v3051_v47  ;;  %vm2858_vm6 = vcmp.eq.f32.partialorder %v16597_v54, 0.0  ;;  %vm12164_vm7 = vcmp.ge.s32.totalorder %v4134_v16, 3474676  ;;  %16602 = vst [vmem:[#allocation51_spill] sm:$0xff] %v12172_v28  ;;  %v9214_v16 = vld [vmem:[%s9587_s0 + $0x120] sm:$0xff]  ;;  %v16604_v8 = vld [vmem:[#allocation197_spill] sm:$0xff] }
 0x1c3   : > { %v2665_v49 = vadd.f32 %v16591_v18, %v16590_v52  ;;  %v12160_v39 = vpack.c.bf16 %v5261_v50, %v5255_v5  ;;  %v12169_v29 = vsub.f32 %v16600_v13, %v1155_v12  ;;  %6471 = vmatprep.subr.bf16.mxu0 %v5428_v14  ;;  %v3050_v50 = vsel %vm2858_vm6, 1.0, %v16597_v54  ;;  %v9215_v25 = vld [vmem:[%s9587_s0 + $0x128] sm:$0xff]  ;;  %v1438_v63 = vld [vmem:[%s9587_s0 + $0x138] sm:$0xff]  ;;  %v1439_v52 = vld [vmem:[%s9587_s0 + $0x140] sm:$0xff] }
 0x1c4   : > { %16595 = vst [vmem:[#allocation156_spill] sm:$0xff] %v12155_v22  ;;  %8235 = vmatprep.subr.bf16.mxu1 %v12155_v22  ;;  %6472 = vmatpush1.bf16.xpose.msra.mxu0 %v5427_v26  ;;  %v1568_v44 = vunpack.c.h.bf16 %v9214_v16  ;;  %8897 = vrcp.f32 %v3050_v50  ;;  %v12183_v20 = vsub.f32 %v16604_v8, %v1155_v12  ;;  %v1570_v11 = vunpack.c.h.bf16 %v9215_v25  ;;  %v16606_v32 = vld [vmem:[#allocation47_spill] sm:$0xff]  ;;  %v12188_v26 = vpop.f32.mrb[38].mxu1  ;;  %v16610_v14 = vld [vmem:[#allocation62_spill] sm:$0xff]  ;;  %v16613_v61 = vld [vmem:[#allocation49_spill] sm:$0xff]  ;;  %v12208_v50 = vpop.f32.mrb[39].mxu0 }
 0x1c5   : > { %16596 = vst [vmem:[#allocation186_spill] sm:$0xff] %v12160_v39  ;;  %v3314_v60 = vmul.f32 %v11999_v59, %v2665_v49  ;;  %16601 = vst [vmem:[#allocation50_spill] sm:$0xff] %v12169_v29  ;;  %v16603_v59 = vld [vmem:[#allocation148_spill] sm:$0xff]  ;;  %8251 = vmatpush1.bf16.xpose.msra.mxu1 %v12160_v39  ;;  %vm2863_vm0 = vcmp.eq.f32.partialorder %v16606_v32, 0.0  ;;  %v12193_v0 = vsel %vm12151_vm5, 8388608, %v15984_v27  ;;  %v12202_v18 = vsel %vm12164_vm7, 8388608, %v15984_v27  ;;  %v12223_v29 = vpop.permute.xlu1 %3622 }
 0x1c6   : > { %vm2860_vm8 = vcmp.eq.f32.partialorder %v16603_v59, 0.0  ;;  %16605 = vst [vmem:[#allocation112_spill] sm:$0xff] %v12183_v20  ;;  %16607 = vst [vmem:[#allocation110_spill] sm:$0xff] %v12188_v26  ;;  %v3055_v12 = vsel %vm2863_vm0, 1.0, %v16606_v32  ;;  %v16611_v47 = vunpack.c.l.bf16 %v16610_v14  ;;  %vm2865_vm9 = vcmp.eq.f32.partialorder %v16613_v61, 0.0  ;;  %v12210_v16 = vpop.f32.mrb[39].mxu1 }
 0x1c7   : > { %v12178_v49 = vadd.f32 %v12172_v28, %v3314_v60  ;;  %v3052_v51 = vsel %vm2860_vm8, 1.0, %v16603_v59  ;;  %16608 = vst [vmem:[#allocation14_spill] sm:$0xff] %v12193_v0  ;;  %16609 = vst [vmem:[#allocation132_spill] sm:$0xff] %v12202_v18  ;;  %v16612_v60 = vld [vmem:[#allocation84_spill] sm:$0xff]  ;;  %v1573_v25 = vunpack.c.l.bf16 %v1438_v63  ;;  %v3057_v23 = vsel %vm2865_vm9, 1.0, %v16613_v61  ;;  %v16618_v14 = vld [vmem:[#allocation41_spill] sm:$0xff] }
 0x1c8   : > { %8899 = vrcp.f32 %v3052_v51  ;;  %v2667_v13 = vadd.f32 %v16612_v60, %v16611_v47  ;;  %16614 = vst [vmem:[#allocation114_spill] sm:$0xff] %v12208_v50  ;;  %16615 = vst [vmem:[#allocation16_spill] sm:$0xff] %v12210_v16  ;;  %v16616_v51 = vld [vmem:[#allocation100_spill] sm:$0xff]  ;;  %v2668_v20 = vadd.f32 %v16618_v14, %v1570_v11  ;;  %v1575_v47 = vunpack.c.l.bf16 %v1439_v52  ;;  %v12227_v11 = vld [vmem:[%s9784_s13 + $0xf0] sm:$0xff] }
 0x1c9   : > { %v4137_v53 = vand.u32 8388607, %v12178_v49  ;;  %8901 = vrcp.f32 %v3055_v12  ;;  %v2666_v8 = vadd.f32 %v16616_v51, %v1568_v44  ;;  %v16617_v5 = vld [vmem:[#allocation48_spill] sm:$0xff]  ;;  %v4713_v44 = vand.u32 4286578688, %v12178_v49  ;;  %16622 = vst [vmem:[#allocation109_spill] sm:$0xff] %v12223_v29  ;;  %v12241_v26 = vld [vmem:[%s9784_s13 + $0x108] sm:$0xff] }
 0x1ca   : > { %vm2864_vm10 = vcmp.eq.f32.partialorder %v16617_v5, 0.0  ;;  %8903 = vrcp.f32 %v3057_v23  ;;  %v16621_v51 = vld [vmem:[#allocation52_spill] sm:$0xff]  ;;  %v795_v23 = vunpack.c.2.s8 %v12227_v11  ;;  %v1574_v50 = vunpack.c.h.bf16 %v1438_v63  ;;  %v12245_v61 = vld [vmem:[%s9784_s13 + $0x110] sm:$0xff]  ;;  %v12252_v59 = vld [vmem:[%s9784_s13 + $0x118] sm:$0xff] }
 0x1cb   : > { %v3056_v12 = vsel %vm2864_vm10, 1.0, %v16617_v5  ;;  %vm12217_vm11 = vcmp.ge.s32.totalorder %v4137_v53, 3474676  ;;  %vm2866_vm12 = vcmp.eq.f32.partialorder %v16621_v51, 0.0  ;;  %v12231_v53 = vld [vmem:[%s9784_s13 + $0xf8] sm:$0xff]  ;;  %v12235_v22 = vld [vmem:[%s9784_s13 + $0x100] sm:$0xff]  ;;  %v798_v19 = vunpack.c.2.s8 %v12241_v26 }
 0x1cc   : > { %8905 = vrcp.f32 %v3056_v12  ;;  %v3058_v39 = vsel %vm2866_vm12, 1.0, %v16621_v51  ;;  %v796_v14 = vunpack.c.2.s8 %v12231_v53  ;;  %v797_v49 = vunpack.c.2.s8 %v12235_v22  ;;  %v12238_v12 = vpop.f32.mrb[40].mxu0  ;;  %v8896_v16 = vpop.eup %8895 }
 0x1cd   : > { %16623 = vst [vmem:[#allocation130_spill] sm:$0xff] %v12238_v12  ;;  %8907 = vrcp.f32 %v3058_v39  ;;  %v799_v35 = vunpack.c.2.s8 %v12245_v61  ;;  %v4521_v32 = vsel %vm12217_vm11, 8388608, %v15984_v27  ;;  %v3318_v29 = vmul.f32 %v8896_v16, %v2667_v13 }
 0x1ce   : > { %v1576_v51 = vunpack.c.h.bf16 %v1439_v52  ;;  %v800_v12 = vunpack.c.2.s8 %v12252_v59  ;;  %v8898_v63 = vpop.eup %8897  ;;  %v2671_v39 = vadd.f32 %v11663_v37, %v1573_v25  ;;  %v2673_v5 = vadd.f32 %v11665_v1, %v1575_v47  ;;  %v1160_v47 = vpop.permute.xlu1 %1159 }
 0x1cf   : > { %v987_v54 = vcvt.s32.f32 %v795_v23  ;;  %v988_v7 = vcvt.s32.f32 %v796_v14  ;;  %v3755_v18 = vadd.f32 %v12172_v28, %v3318_v29  ;;  %v3316_v41 = vmul.f32 %v8898_v63, %v2666_v8 }
 0x1d0   : > { %v989_v10 = vcvt.s32.f32 %v797_v49  ;;  %v990_v60 = vcvt.s32.f32 %v798_v19  ;;  %v12258_v56 = vadd.s32 %v4713_v44, %v4521_v32  ;;  %v2672_v13 = vadd.f32 %v11675_v30, %v1574_v50 }
 0x1d1   : > { %v991_v16 = vcvt.s32.f32 %v799_v35  ;;  %v4139_v0 = vand.u32 8388607, %v3755_v18  ;;  %v12262_v37 = vadd.f32 %v12172_v28, %v3316_v41  ;;  %v2674_v1 = vadd.f32 %v11677_v42, %v1576_v51 }
 0x1d2   : > { %v8900_v9 = vpop.eup %8899  ;;  %v992_v25 = vcvt.s32.f32 %v800_v12  ;;  %v12268_v19 = vsub.f32 %v987_v54, %v1160_v47  ;;  %v12274_v32 = vsub.f32 %v988_v7, %v1160_v47  ;;  %v12276_v41 = vsub.f32 %v989_v10, %v1160_v47  ;;  %v16631_v12 = vld [vmem:[#allocation117_spill] sm:$0xff] }
 0x1d3   : > { %v3320_v52 = vmul.f32 %v8900_v9, %v2668_v20  ;;  %v8902_v58 = vpop.eup %8901  ;;  %v16625_v9 = vand.u32 4286578688, %v11892_v31  ;;  %v4138_v20 = vand.u32 8388607, %v12262_v37  ;;  %v12278_v42 = vsub.f32 %v990_v60, %v1160_v47 }
 0x1d4   : > { %v3326_v8 = vmul.f32 %v8902_v58, %v2671_v39  ;;  %16624 = vst [vmem:[#allocation13_spill] sm:$0xff] %v12268_v19  ;;  %v8904_v35 = vpop.eup %8903  ;;  %16626 = vst [vmem:[#allocation111_spill] sm:$0xff] %v12274_v32  ;;  %v12284_v54 = vsub.f32 %v991_v16, %v1160_v47  ;;  %v16630_v31 = vand.u32 4286578688, %v11940_v33  ;;  %vm4331_vm13 = vcmp.ge.s32.totalorder %v4139_v0, 3474676 }
 0x1d5   : > { %v12266_v29 = vadd.f32 %v12172_v28, %v3320_v52  ;;  %v4882_v30 = vadd.s32 %v16625_v9, %v11943_v38  ;;  %16627 = vst [vmem:[#allocation134_spill] sm:$0xff] %v12276_v41  ;;  %16628 = vst [vmem:[#allocation15_spill] sm:$0xff] %v12278_v42  ;;  %v4715_v51 = vand.u32 4286578688, %v3755_v18  ;;  %v3330_v7 = vmul.f32 %v8904_v35, %v2673_v5  ;;  %v16633_v5 = vld [vmem:[#allocation26_spill] sm:$0xff] }
 0x1d6   : > { %v8906_v50 = vpop.eup %8905  ;;  %v12282_v58 = vadd.f32 %v11750_v45, %v3326_v8  ;;  %16629 = vst [vmem:[#allocation177_spill] sm:$0xff] %v12284_v54  ;;  %v4888_v38 = vadd.s32 %v16630_v31, %v12063_v21  ;;  %v16632_v39 = vand.u32 4286578688, %v11903_v24  ;;  %vm4330_vm14 = vcmp.ge.s32.totalorder %v4138_v20, 3474676  ;;  %v12317_v20 = vpop.f32.mrb[40].mxu1  ;;  %v16661_v42 = vld [vmem:[#allocation158_spill] sm:$0xff] }
 0x1d7   : > { %v4140_v44 = vand.u32 8388607, %v12266_v29  ;;  %v3328_v23 = vmul.f32 %v8906_v50, %v2672_v13  ;;  %v8908_v10 = vpop.eup %8907  ;;  %v5266_v63 = vmul.f32 %v4882_v30, %v16631_v12  ;;  %v12296_v52 = vadd.f32 %v11750_v45, %v3330_v7  ;;  %16636 = vst [vmem:[#allocation178_spill] sm:$0xff] %v12317_v20  ;;  %v16637_v50 = vld [vmem:[#allocation121_spill] sm:$0xff]  ;;  %v12325_v31 = vpop.f32.mrb[41].mxu0  ;;  %v16644_v12 = vld [vmem:[#allocation38_spill] sm:$0xff] }
 0x1d8   : > { %v4143_v49 = vand.u32 8388607, %v12282_v58  ;;  %v4884_v60 = vadd.s32 %v16632_v39, %v11962_v3  ;;  %v3332_v21 = vmul.f32 %v8908_v10, %v2674_v1  ;;  %v4523_v0 = vsel %vm4331_vm13, 8388608, %v15984_v27  ;;  %16639 = vst [vmem:[#allocation126_spill] sm:$0xff] %v12325_v31  ;;  %v12331_v10 = vpop.f32.mrb[41].mxu1  ;;  %v16674_v31 = vld [vmem:[#allocation180_spill] sm:$0xff] }
 0x1d9   : > { %v12299_v33 = vadd.f32 %v11750_v45, %v3328_v23  ;;  %vm4332_vm15 = vcmp.ge.s32.totalorder %v4140_v44, 3474676  ;;  %v5272_v18 = vmul.f32 %v4888_v38, %v16633_v5  ;;  %v16634_v13 = vand.u32 4286578688, %v11979_v57  ;;  %16640 = vst [vmem:[#allocation127_spill] sm:$0xff] %v12331_v10  ;;  %v16648_v5 = vld [vmem:[#allocation27_spill] sm:$0xff]  ;;  %v12406_v28 = vpop.f32.mrb[42].mxu1 }
 0x1da   : > { %vm4335_vm1 = vcmp.ge.s32.totalorder %v4143_v49, 3474676  ;;  %v4145_v24 = vand.u32 8388607, %v12296_v52  ;;  %v12308_v8 = vsub.f32 %v992_v25, %v1160_v47  ;;  %v12311_v9 = vsel %vm4330_vm14, 8388608, %v15984_v27  ;;  %v16638_v25 = vld [vmem:[#allocation28_spill] sm:$0xff] }
 0x1db   : > { %v4890_v16 = vadd.s32 %v16634_v13, %v12070_v36  ;;  %v4144_v3 = vand.u32 8388607, %v12299_v33  ;;  %v12315_v30 = vadd.f32 %v11750_v45, %v3332_v21  ;;  %v5434_v35 = vpack.c.bf16 %v5272_v18, %v5266_v63  ;;  %v16645_v63 = vld [vmem:[#allocation25_spill] sm:$0xff]  ;;  %v16647_v21 = vld [vmem:[#allocation120_spill] sm:$0xff]  ;;  %16659 = vst [vmem:[#allocation181_spill] sm:$0xff] %v12406_v28  ;;  %v12418_v41 = vpop.f32.mrb[43].mxu1 }
 0x1dc   : > { %16635 = vst [vmem:[#allocation125_spill] sm:$0xff] %v12308_v8  ;;  %v12320_v57 = vsel %vm4332_vm15, 8388608, %v15984_v27  ;;  %v4719_v36 = vand.u32 4286578688, %v12282_v58  ;;  %v5268_v44 = vmul.f32 %v4884_v60, %v16637_v50  ;;  %v12327_v38 = vadd.s32 %v4715_v51, %v4523_v0  ;;  %v12343_v60 = vpop.permute.xlu0 %3618  ;;  %v9222_v13 = vld [vmem:[%s9784_s13 + $0xc0] sm:$0xff]  ;;  %v12404_v45 = vld [vmem:[%s9587_s0 + $0x168] sm:$0xff]  ;;  %16663 = vst [vmem:[#allocation193_spill] sm:$0xff] %v12418_v41 }
 0x1dd   : > { %v5274_v47 = vmul.f32 %v4890_v16, %v16638_v25  ;;  %v4527_v7 = vsel %vm4335_vm1, 8388608, %v15984_v27  ;;  %vm4337_vm2 = vcmp.ge.s32.totalorder %v4145_v24, 3474676  ;;  %v4146_v23 = vand.u32 8388607, %v12315_v30  ;;  %6473 = vmatprep.subr.bf16.mxu0 %v5434_v35  ;;  %16646 = vst [vmem:[#allocation188_spill] sm:$0xff] %v12343_v60 }
 0x1de   : > { %vm12333_vm3 = vcmp.ge.s32.totalorder %v4144_v3, 3474676  ;;  %v5265_v51 = vmul.f32 %v11936_v15, %v16644_v12  ;;  %v5271_v39 = vmul.f32 %v12044_v17, %v16645_v63  ;;  %v5267_v0 = vmul.f32 %v11959_v62, %v16647_v21  ;;  %v9223_v24 = vld [vmem:[%s9784_s13 + $0xc8] sm:$0xff]  ;;  %v9224_v17 = vld [vmem:[%s9784_s13 + $0xd0] sm:$0xff] }
 0x1df   : > { %v12337_v49 = vpack.c.bf16 %v5274_v47, %v5268_v44  ;;  %v5273_v18 = vmul.f32 %v12058_v6, %v16648_v5  ;;  %v777_v16 = vunpack.c.3.s8 %v9222_v13  ;;  %v778_v3 = vunpack.c.3.s8 %v9223_v24  ;;  %v9225_v44 = vld [vmem:[%s9784_s13 + $0xd8] sm:$0xff]  ;;  %v9226_v47 = vld [vmem:[%s9784_s13 + $0xe0] sm:$0xff]  ;;  %v9227_v63 = vld [vmem:[%s9784_s13 + $0xe8] sm:$0xff] }
 0x1e0   : > { %v4529_v35 = vsel %vm4337_vm2, 8388608, %v15984_v27  ;;  %v5433_v15 = vpack.c.bf16 %v5271_v39, %v5265_v51  ;;  %v779_v50 = vunpack.c.3.s8 %v9224_v17  ;;  %v780_v25 = vunpack.c.3.s8 %v9225_v44  ;;  %v1441_v24 = vld [vmem:[%s9587_s0 + $0x150] sm:$0xff]  ;;  %v16665_v41 = vld [vmem:[#allocation161_spill] sm:$0xff] }
 0x1e1   : > { %16643 = vst [vmem:[#allocation187_spill] sm:$0xff] %v12337_v49  ;;  %8236 = vmatprep.subr.bf16.mxu1 %v12337_v49  ;;  %vm12355_vm4 = vcmp.ge.s32.totalorder %v4146_v23, 3474676  ;;  %v12359_v6 = vpack.c.bf16 %v5273_v18, %v5267_v0  ;;  %v781_v12 = vunpack.c.3.s8 %v9226_v47  ;;  %v782_v21 = vunpack.c.3.s8 %v9227_v63  ;;  %v12368_v23 = vpop.f32.mrb[42].mxu0  ;;  %v1145_v47 = vpop.permute.xlu0 %1144 }
 0x1e2   : > { %v12363_v5 = vadd.s32 %v4719_v36, %v4527_v7  ;;  %v4721_v13 = vand.u32 4286578688, %v12296_v52  ;;  %6474 = vmatpush1.bf16.xpose.msra.mxu0 %v5433_v15  ;;  %v969_v39 = vcvt.s32.f32 %v777_v16  ;;  %16652 = vst [vmem:[#allocation55_spill] sm:$0xff] %v12368_v23  ;;  %v12373_v0 = vsel %vm12333_vm3, 8388608, %v15984_v27  ;;  %v16653_v7 = vld [vmem:[#allocation64_spill] sm:$0xff]  ;;  %v12416_v32 = vpop.f32.mrb[43].mxu0 }
 0x1e3   : > { %16651 = vst [vmem:[#allocation128_spill] sm:$0xff] %v12359_v6  ;;  %8252 = vmatpush1.bf16.xpose.msra.mxu1 %v12359_v6  ;;  %v970_v18 = vcvt.s32.f32 %v778_v3  ;;  %v971_v36 = vcvt.s32.f32 %v779_v50  ;;  %vm2869_vm5 = vcmp.eq.f32.partialorder %v16653_v7, 0.0  ;;  %v12382_v16 = vsel %vm12355_vm4, 8388608, %v15984_v27  ;;  %v1442_v3 = vld [vmem:[%s9587_s0 + $0x158] sm:$0xff]  ;;  %v16658_v15 = vld [vmem:[#allocation68_spill] sm:$0xff]  ;;  %16662 = vst [vmem:[#allocation189_spill] sm:$0xff] %v12416_v32 }
 0x1e4   : > { %v12377_v52 = vadd.s32 %v4721_v13, %v4529_v35  ;;  %v972_v17 = vcvt.s32.f32 %v780_v25  ;;  %v973_v44 = vcvt.s32.f32 %v781_v12  ;;  %v974_v58 = vcvt.s32.f32 %v782_v21  ;;  %v16655_v35 = vld [vmem:[#allocation66_spill] sm:$0xff]  ;;  %v16656_v13 = vld [vmem:[#allocation65_spill] sm:$0xff] }
 0x1e5   : > { %v1579_v63 = vunpack.c.l.bf16 %v1441_v24  ;;  %v3061_v1 = vsel %vm2869_vm5, 1.0, %v16653_v7  ;;  %v12387_v50 = vsub.f32 %v969_v39, %v1145_v47  ;;  %vm2871_vm6 = vcmp.eq.f32.partialorder %v16655_v35, 0.0  ;;  %v1150_v10 = vpop.permute.xlu0 %1149  ;;  %v1445_v32 = vld [vmem:[%s9587_s0 + $0x170] sm:$0xff] }
 0x1e6   : > { %8909 = vrcp.f32 %v3061_v1  ;;  %vm2870_vm7 = vcmp.eq.f32.partialorder %v16656_v13, 0.0  ;;  %v12391_v62 = vsub.f32 %v970_v18, %v1145_v47  ;;  %v12393_v51 = vsub.f32 %v971_v36, %v1145_v47 }
 0x1e7   : > { %16654 = vst [vmem:[#allocation179_spill] sm:$0xff] %v12387_v50  ;;  %v3063_v25 = vsel %vm2871_vm6, 1.0, %v16655_v35  ;;  %v3062_v12 = vsel %vm2870_vm7, 1.0, %v16656_v13  ;;  %v1581_v21 = vunpack.c.l.bf16 %v1442_v3  ;;  %vm2872_vm8 = vcmp.eq.f32.partialorder %v16658_v15, 0.0 }
 0x1e8   : > { %16657 = vst [vmem:[#allocation81_spill] sm:$0xff] %v12393_v51  ;;  %8911 = vrcp.f32 %v3063_v25  ;;  %v783_v39 = vunpack.c.0.s8 %v12227_v11  ;;  %v1580_v1 = vunpack.c.h.bf16 %v1441_v24  ;;  %v3064_v14 = vsel %vm2872_vm8, 1.0, %v16658_v15 }
 0x1e9   : > { %8913 = vrcp.f32 %v3062_v12  ;;  %v784_v18 = vunpack.c.0.s8 %v12231_v53  ;;  %v1582_v8 = vunpack.c.h.bf16 %v1442_v3  ;;  %v785_v36 = vunpack.c.0.s8 %v12235_v22 }
 0x1ea   : > { %8915 = vrcp.f32 %v3064_v14  ;;  %v786_v54 = vunpack.c.0.s8 %v12241_v26  ;;  %v12408_v25 = vsub.f32 %v972_v17, %v1145_v47  ;;  %v2677_v6 = vadd.f32 %v11705_v55, %v1579_v63 }
 0x1eb   : > { %v787_v24 = vunpack.c.0.s8 %v12245_v61  ;;  %v788_v12 = vunpack.c.0.s8 %v12252_v59  ;;  %v12413_v49 = vsub.f32 %v973_v44, %v1145_v47  ;;  %v975_v3 = vcvt.s32.f32 %v783_v39 }
 0x1ec   : > { %v976_v14 = vcvt.s32.f32 %v784_v18  ;;  %vm2875_vm0 = vcmp.eq.f32.partialorder %v16661_v42, 0.0  ;;  %v12420_v19 = vsub.f32 %v974_v58, %v1145_v47  ;;  %v2679_v17 = vadd.f32 %v11707_v46, %v1581_v21  ;;  %v16668_v21 = vld [vmem:[#allocation160_spill] sm:$0xff] }
 0x1ed   : > { %16660 = vst [vmem:[#allocation136_spill] sm:$0xff] %v12413_v49  ;;  %v2678_v55 = vadd.f32 %v11718_v4, %v1580_v1  ;;  %v1585_v63 = vunpack.c.l.bf16 %v12404_v45  ;;  %v2680_v44 = vadd.f32 %v11720_v34, %v1582_v8  ;;  %v977_v49 = vcvt.s32.f32 %v785_v36 }
 0x1ee   : > { %16664 = vst [vmem:[#allocation194_spill] sm:$0xff] %v12420_v19  ;;  %v978_v39 = vcvt.s32.f32 %v786_v54  ;;  %v3067_v18 = vsel %vm2875_vm0, 1.0, %v16661_v42  ;;  %v979_v28 = vcvt.s32.f32 %v787_v24  ;;  %v980_v23 = vcvt.s32.f32 %v788_v12  ;;  %v16670_v12 = vld [vmem:[#allocation162_spill] sm:$0xff]  ;;  %v16732_v42 = vld [vmem:[#allocation167_spill] sm:$0xff] }
 0x1ef   : > { %8917 = vrcp.f32 %v3067_v18  ;;  %vm2877_vm9 = vcmp.eq.f32.partialorder %v16665_v41, 0.0  ;;  %v12429_v47 = vsub.f32 %v975_v3, %v1150_v10  ;;  %v12431_v46 = vsub.f32 %v976_v14, %v1150_v10 }
 0x1f0   : > { %v8910_v58 = vpop.eup %8909  ;;  %v3069_v4 = vsel %vm2877_vm9, 1.0, %v16665_v41  ;;  %vm2876_vm10 = vcmp.eq.f32.partialorder %v16668_v21, 0.0  ;;  %v2683_v54 = vadd.f32 %v11759_v2, %v1585_v63  ;;  %v12437_v36 = vsub.f32 %v977_v49, %v1150_v10  ;;  %v16673_v49 = vld [vmem:[#allocation14_spill] sm:$0xff] }
 0x1f1   : > { %16666 = vst [vmem:[#allocation74_spill] sm:$0xff] %v12429_v47  ;;  %16667 = vst [vmem:[#allocation82_spill] sm:$0xff] %v12431_v46  ;;  %v3338_v34 = vmul.f32 %v8910_v58, %v2677_v6  ;;  %8919 = vrcp.f32 %v3069_v4  ;;  %v3068_v8 = vsel %vm2876_vm10, 1.0, %v16668_v21  ;;  %v1587_v24 = vunpack.c.l.bf16 %v1445_v32 }
 0x1f2   : > { %v8912_v1 = vpop.eup %8911  ;;  %16669 = vst [vmem:[#allocation198_spill] sm:$0xff] %v12437_v36  ;;  %8921 = vrcp.f32 %v3068_v8  ;;  %vm2878_vm11 = vcmp.eq.f32.partialorder %v16670_v12, 0.0  ;;  %v16671_v6 = vand.u32 4286578688, %v12037_v43  ;;  %v12445_v4 = vsub.f32 %v978_v39, %v1150_v10 }
 0x1f3   : > { %v8914_v3 = vpop.eup %8913  ;;  %v3765_v14 = vadd.f32 %v12017_v48, %v3338_v34  ;;  %v3342_v18 = vmul.f32 %v8912_v1, %v2679_v17  ;;  %v3070_v19 = vsel %vm2878_vm11, 1.0, %v16670_v12  ;;  %v16675_v8 = vand.u32 4286578688, %v16674_v31  ;;  %v12452_v1 = vpop.f32.mrb[44].mxu0 }
 0x1f4   : > { %v4894_v2 = vadd.s32 %v16671_v6, %v12086_v40  ;;  %v8916_v63 = vpop.eup %8915  ;;  %v3340_v58 = vmul.f32 %v8914_v3, %v2678_v55  ;;  %16672 = vst [vmem:[#allocation119_spill] sm:$0xff] %v12445_v4  ;;  %8923 = vrcp.f32 %v3070_v19  ;;  %v1586_v17 = vunpack.c.h.bf16 %v12404_v45  ;;  %16676 = vst [vmem:[#allocation61_spill] sm:$0xff] %v12452_v1  ;;  %v16677_v55 = vld [vmem:[#allocation32_spill] sm:$0xff]  ;;  %v16678_v3 = vld [vmem:[#allocation138_spill] sm:$0xff] }
 0x1f5   : > { %v4900_v20 = vadd.s32 %v16675_v8, %v16673_v49  ;;  %v4149_v46 = vand.u32 8388607, %v3765_v14  ;;  %v3767_v36 = vadd.f32 %v12017_v48, %v3342_v18  ;;  %v3344_v34 = vmul.f32 %v8916_v63, %v2680_v44  ;;  %v16679_v6 = vld [vmem:[#allocation44_spill] sm:$0xff]  ;;  %v16680_v49 = vld [vmem:[#allocation182_spill] sm:$0xff]  ;;  %v16681_v8 = vld [vmem:[#allocation159_spill] sm:$0xff] }
 0x1f6   : > { %v12455_v43 = vadd.f32 %v12017_v48, %v3340_v58  ;;  %v1588_v40 = vunpack.c.h.bf16 %v1445_v32  ;;  %v5278_v39 = vmul.f32 %v4894_v2, %v16677_v55  ;;  %v2685_v31 = vadd.f32 %v16679_v6, %v1587_v24  ;;  %v16683_v44 = vld [vmem:[#allocation132_spill] sm:$0xff]  ;;  %v16684_v63 = vld [vmem:[#allocation71_spill] sm:$0xff] }
 0x1f7   : > { %v5284_v19 = vmul.f32 %v4900_v20, %v16678_v3  ;;  %vm4341_vm12 = vcmp.ge.s32.totalorder %v4149_v46, 3474676  ;;  %v16682_v4 = vand.u32 4286578688, %v16681_v8  ;;  %v16685_v45 = vand.u32 4286578688, %v16684_v63  ;;  %v16688_v3 = vld [vmem:[#allocation118_spill] sm:$0xff] }
 0x1f8   : > { %v4533_v1 = vsel %vm4341_vm12, 8388608, %v15984_v27  ;;  %v4151_v58 = vand.u32 8388607, %v3767_v36  ;;  %v12468_v32 = vadd.f32 %v12017_v48, %v3344_v34  ;;  %v4725_v20 = vand.u32 4286578688, %v3765_v14  ;;  %v16702_v48 = vld [vmem:[#allocation154_spill] sm:$0xff] }
 0x1f9   : > { %v4896_v18 = vadd.s32 %v16682_v4, %v16680_v49  ;;  %v4902_v47 = vadd.s32 %v16685_v45, %v16683_v44  ;;  %v5440_v2 = vpack.c.bf16 %v5284_v19, %v5278_v39  ;;  %v8918_v55 = vpop.eup %8917  ;;  %v12470_v46 = vsub.f32 %v979_v28, %v1150_v10  ;;  %v16689_v44 = vld [vmem:[#allocation133_spill] sm:$0xff]  ;;  %v16691_v39 = vld [vmem:[#allocation34_spill] sm:$0xff]  ;;  %v16692_v28 = vld [vmem:[#allocation140_spill] sm:$0xff] }
 0x1fa   : > { %v12472_v24 = vsub.f32 %v980_v23, %v1150_v10  ;;  %v2684_v6 = vadd.f32 %v16688_v3, %v1586_v17  ;;  %v4727_v4 = vand.u32 4286578688, %v3767_v36  ;;  %v4150_v49 = vand.u32 8388607, %v12455_v43  ;;  %v16693_v36 = vld [vmem:[#allocation166_spill] sm:$0xff] }
 0x1fb   : > { %16686 = vst [vmem:[#allocation190_spill] sm:$0xff] %v12470_v46  ;;  %v3350_v8 = vmul.f32 %v8918_v55, %v2683_v54  ;;  %v2686_v63 = vadd.f32 %v16689_v44, %v1588_v40  ;;  %6475 = vmatprep.subr.bf16.mxu0 %v5440_v2  ;;  %v8920_v45 = vpop.eup %8919  ;;  %v12477_v41 = vadd.s32 %v4725_v20, %v4533_v1  ;;  %vm4343_vm13 = vcmp.ge.s32.totalorder %v4151_v58, 3474676  ;;  %v16695_v40 = vld [vmem:[#allocation31_spill] sm:$0xff]  ;;  %v16698_v44 = vld [vmem:[#allocation72_spill] sm:$0xff] }
 0x1fc   : > { %16687 = vst [vmem:[#allocation191_spill] sm:$0xff] %v12472_v24  ;;  %v5280_v14 = vmul.f32 %v4896_v18, %v16691_v39  ;;  %v5286_v19 = vmul.f32 %v4902_v47, %v16692_v28  ;;  %v8922_v10 = vpop.eup %8921  ;;  %v4152_v23 = vand.u32 8388607, %v12468_v32  ;;  %v3354_v3 = vmul.f32 %v8920_v45, %v2685_v31  ;;  %v16696_v2 = vld [vmem:[#allocation107_spill] sm:$0xff]  ;;  %v16699_v39 = vld [vmem:[#allocation33_spill] sm:$0xff]  ;;  %v16700_v58 = vld [vmem:[#allocation108_spill] sm:$0xff] }
 0x1fd   : > { %16690 = vst [vmem:[#allocation192_spill] sm:$0xff] %v12477_v41  ;;  %v3771_v17 = vadd.f32 %v16693_v36, %v3350_v8  ;;  %v3352_v54 = vmul.f32 %v8922_v10, %v2684_v6  ;;  %v5277_v1 = vmul.f32 %v16696_v2, %v16695_v40  ;;  %v16697_v20 = vld [vmem:[#allocation75_spill] sm:$0xff]  ;;  %v5279_v28 = vmul.f32 %v16700_v58, %v16699_v39  ;;  %v12541_v39 = vpop.permute.xlu1 %3626  ;;  %v1165_v58 = vpop.permute.xlu0 %1164  ;;  %v12580_v10 = vld [vmem:[%s9784_s13 + $0x130] sm:$0xff] }
 0x1fe   : > { %v12484_v55 = vpack.c.bf16 %v5286_v19, %v5280_v14  ;;  %v5283_v34 = vmul.f32 %v16698_v44, %v16697_v20  ;;  %v8924_v24 = vpop.eup %8923  ;;  %v3773_v47 = vadd.f32 %v16693_v36, %v3354_v3  ;;  %v16701_v46 = vld [vmem:[#allocation139_spill] sm:$0xff]  ;;  %v4535_v31 = vsel %vm4343_vm13, 8388608, %v15984_v27  ;;  %16711 = vst [vmem:[#allocation12_spill] sm:$0xff] %v12541_v39 }
 0x1ff   : > { %v4155_v18 = vand.u32 8388607, %v3771_v17  ;;  %v5285_v8 = vmul.f32 %v16702_v48, %v16701_v46  ;;  %v12497_v6 = vadd.f32 %v16693_v36, %v3352_v54  ;;  %v3356_v45 = vmul.f32 %v8924_v24, %v2686_v63 }
 0x200   : > { %16694 = vst [vmem:[#allocation19_spill] sm:$0xff] %v12484_v55  ;;  %8237 = vmatprep.subr.bf16.mxu1 %v12484_v55  ;;  %v5439_v14 = vpack.c.bf16 %v5283_v34, %v5277_v1  ;;  %vm12500_vm14 = vcmp.ge.s32.totalorder %v4150_v49, 3474676  ;;  %v4157_v3 = vand.u32 8388607, %v3773_v47  ;;  %v801_v24 = vunpack.c.3.s8 %v12227_v11  ;;  %v12593_v55 = vld [vmem:[%s9784_s13 + $0x140] sm:$0xff] }
 0x201   : > { %v12505_v40 = vpack.c.bf16 %v5285_v8, %v5279_v28  ;;  %vm4347_vm15 = vcmp.ge.s32.totalorder %v4155_v18, 3474676  ;;  %v4156_v48 = vand.u32 8388607, %v12497_v6  ;;  %v12509_v46 = vadd.f32 %v16693_v36, %v3356_v45  ;;  %v12589_v36 = vpop.permute.xlu1 %3630 }
 0x202   : > { %6476 = vmatpush1.bf16.xpose.msra.mxu0 %v5439_v14  ;;  %v12512_v63 = vadd.s32 %v4727_v4, %v4535_v31  ;;  %vm12514_vm1 = vcmp.ge.s32.totalorder %v4152_v23, 3474676  ;;  %vm4349_vm2 = vcmp.ge.s32.totalorder %v4157_v3, 3474676  ;;  %v802_v34 = vunpack.c.3.s8 %v12231_v53  ;;  %v1447_v3 = vld [vmem:[%s9587_s0 + $0x180] sm:$0xff]  ;;  %v16719_v4 = vld [vmem:[#allocation169_spill] sm:$0xff] }
 0x203   : > { %16705 = vst [vmem:[#allocation56_spill] sm:$0xff] %v12505_v40  ;;  %8253 = vmatpush1.bf16.xpose.msra.mxu1 %v12505_v40  ;;  %v4731_v54 = vand.u32 4286578688, %v3771_v17  ;;  %v4733_v2 = vand.u32 4286578688, %v3773_v47  ;;  %v4158_v1 = vand.u32 8388607, %v12509_v46  ;;  %v803_v20 = vunpack.c.3.s8 %v12235_v22  ;;  %16723 = vst [vmem:[#allocation62_spill] sm:$0xff] %v12589_v36 }
 0x204   : > { %16706 = vst [vmem:[#allocation20_spill] sm:$0xff] %v12512_v63  ;;  %v4539_v44 = vsel %vm4347_vm15, 8388608, %v15984_v27  ;;  %v4541_v11 = vsel %vm4349_vm2, 8388608, %v15984_v27  ;;  %vm12524_vm3 = vcmp.ge.s32.totalorder %v4156_v48, 3474676  ;;  %v804_v23 = vunpack.c.3.s8 %v12241_v26  ;;  %v16714_v48 = vld [vmem:[#allocation168_spill] sm:$0xff] }
 0x205   : > { %vm4350_vm4 = vcmp.ge.s32.totalorder %v4158_v1, 3474676  ;;  %v805_v18 = vunpack.c.3.s8 %v12245_v61  ;;  %v806_v53 = vunpack.c.3.s8 %v12252_v59  ;;  %v993_v17 = vcvt.s32.f32 %v801_v24  ;;  %v12564_v1 = vld [vmem:[%s9784_s13 + $0x120] sm:$0xff]  ;;  %v16731_v36 = vld [vmem:[#allocation135_spill] sm:$0xff]  ;;  %v1175_v15 = vpop.permute.xlu1 %1174 }
 0x206   : > { %v12534_v22 = vsel %vm12500_vm14, 8388608, %v15984_v27  ;;  %v12539_v47 = vsel %vm12514_vm1, 8388608, %v15984_v27  ;;  %v994_v61 = vcvt.s32.f32 %v802_v34  ;;  %v12544_v59 = vadd.s32 %v4731_v54, %v4539_v44 }
 0x207   : > { %v12546_v28 = vadd.s32 %v4733_v2, %v4541_v11  ;;  %v995_v31 = vcvt.s32.f32 %v803_v20  ;;  %v12552_v45 = vsel %vm12524_vm3, 8388608, %v15984_v27  ;;  %v12555_v14 = vsel %vm4350_vm4, 8388608, %v15984_v27  ;;  %v1448_v2 = vld [vmem:[%s9587_s0 + $0x188] sm:$0xff]  ;;  %v12566_v20 = vpop.f32.mrb[44].mxu1  ;;  %v16718_v11 = vld [vmem:[#allocation170_spill] sm:$0xff] }
 0x208   : > { %16712 = vst [vmem:[#allocation22_spill] sm:$0xff] %v12544_v59  ;;  %v996_v19 = vcvt.s32.f32 %v804_v23  ;;  %vm2881_vm5 = vcmp.eq.f32.partialorder %v16714_v48, 0.0  ;;  %v997_v24 = vcvt.s32.f32 %v805_v18  ;;  %v998_v49 = vcvt.s32.f32 %v806_v53  ;;  %16716 = vst [vmem:[#allocation57_spill] sm:$0xff] %v12566_v20  ;;  %v12573_v23 = vld [vmem:[%s9784_s13 + $0x128] sm:$0xff]  ;;  %v12587_v26 = vpop.f32.mrb[45].mxu1 }
 0x209   : > { %16713 = vst [vmem:[#allocation58_spill] sm:$0xff] %v12546_v28  ;;  %v12559_v34 = vsub.f32 %v993_v17, %v1165_v58  ;;  %v3073_v54 = vsel %vm2881_vm5, 1.0, %v16714_v48  ;;  %v12568_v44 = vsub.f32 %v994_v61, %v1165_v58  ;;  %vm2883_vm6 = vcmp.eq.f32.partialorder %v16718_v11, 0.0  ;;  %v12583_v61 = vld [vmem:[%s9784_s13 + $0x138] sm:$0xff]  ;;  %16722 = vst [vmem:[#allocation197_spill] sm:$0xff] %v12587_v26  ;;  %v12596_v20 = vld [vmem:[%s9784_s13 + $0x148] sm:$0xff] }
 0x20a   : > { %8925 = vrcp.f32 %v3073_v54  ;;  %vm2882_vm7 = vcmp.eq.f32.partialorder %v16719_v4, 0.0  ;;  %v12575_v18 = vsub.f32 %v995_v31, %v1165_v58  ;;  %v1591_v53 = vunpack.c.l.bf16 %v1447_v3  ;;  %v12585_v54 = vpop.f32.mrb[45].mxu0  ;;  %v16724_v31 = vld [vmem:[#allocation171_spill] sm:$0xff]  ;;  %v12608_v28 = vpop.f32.mrb[46].mxu1 }
 0x20b   : > { %16715 = vst [vmem:[#allocation21_spill] sm:$0xff] %v12559_v34  ;;  %16717 = vst [vmem:[#allocation196_spill] sm:$0xff] %v12568_v44  ;;  %v3075_v17 = vsel %vm2883_vm6, 1.0, %v16718_v11  ;;  %v3074_v8 = vsel %vm2882_vm7, 1.0, %v16719_v4  ;;  %v1593_v40 = vunpack.c.l.bf16 %v1448_v2  ;;  %vm2884_vm8 = vcmp.eq.f32.partialorder %v16724_v31, 0.0  ;;  %v12606_v4 = vld [vmem:[%s9587_s0 + $0x198] sm:$0xff] }
 0x20c   : > { %16720 = vst [vmem:[#allocation83_spill] sm:$0xff] %v12575_v18  ;;  %16721 = vst [vmem:[#allocation195_spill] sm:$0xff] %v12585_v54  ;;  %8927 = vrcp.f32 %v3075_v17  ;;  %v813_v44 = vunpack.c.1.s8 %v12564_v1  ;;  %v12599_v18 = vpop.f32.mrb[46].mxu0  ;;  %v1592_v34 = vunpack.c.h.bf16 %v1447_v3  ;;  %v3076_v54 = vsel %vm2884_vm8, 1.0, %v16724_v31  ;;  %v16730_v31 = vld [vmem:[#allocation80_spill] sm:$0xff] }
 0x20d   : > { %16725 = vst [vmem:[#allocation84_spill] sm:$0xff] %v12599_v18  ;;  %8929 = vrcp.f32 %v3074_v8  ;;  %v814_v26 = vunpack.c.1.s8 %v12573_v23  ;;  %v1594_v11 = vunpack.c.h.bf16 %v1448_v2  ;;  %v815_v17 = vunpack.c.1.s8 %v12580_v10  ;;  %16726 = vst [vmem:[#allocation100_spill] sm:$0xff] %v12608_v28  ;;  %v16733_v28 = vld [vmem:[#allocation63_spill] sm:$0xff] }
 0x20e   : > { %8931 = vrcp.f32 %v3076_v54  ;;  %v816_v48 = vunpack.c.1.s8 %v12583_v61  ;;  %v12610_v63 = vsub.f32 %v996_v19, %v1165_v58  ;;  %v12612_v35 = vsub.f32 %v997_v24, %v1165_v58 }
 0x20f   : > { %v817_v8 = vunpack.c.1.s8 %v12593_v55  ;;  %v818_v3 = vunpack.c.1.s8 %v12596_v20  ;;  %v12616_v18 = vsub.f32 %v998_v49, %v1165_v58  ;;  %v1005_v2 = vcvt.s32.f32 %v813_v44 }
 0x210   : > { %16727 = vst [vmem:[#allocation41_spill] sm:$0xff] %v12610_v63  ;;  %16728 = vst [vmem:[#allocation117_spill] sm:$0xff] %v12612_v35  ;;  %v1006_v54 = vcvt.s32.f32 %v814_v26  ;;  %vm2887_vm0 = vcmp.eq.f32.partialorder %v16730_v31, 0.0  ;;  %v2689_v59 = vadd.f32 %v16731_v36, %v1591_v53  ;;  %v2691_v41 = vadd.f32 %v16732_v42, %v1593_v40  ;;  %v16734_v35 = vld [vmem:[#allocation67_spill] sm:$0xff]  ;;  %v1451_v26 = vld [vmem:[%s9587_s0 + $0x1a0] sm:$0xff]  ;;  %v12627_v36 = vpop.f32.mrb[47].mxu0 }
 0x211   : > { %16729 = vst [vmem:[#allocation26_spill] sm:$0xff] %v12616_v18  ;;  %v2690_v19 = vadd.f32 %v16733_v28, %v1592_v34  ;;  %v1597_v24 = vunpack.c.l.bf16 %v12606_v4  ;;  %v2692_v63 = vadd.f32 %v16734_v35, %v1594_v11  ;;  %v1007_v7 = vcvt.s32.f32 %v815_v17  ;;  %v16735_v18 = vld [vmem:[#allocation73_spill] sm:$0xff]  ;;  %16736 = vst [vmem:[#allocation121_spill] sm:$0xff] %v12627_v36  ;;  %v12629_v42 = vpop.f32.mrb[47].mxu1 }
 0x212   : > { %v1008_v12 = vcvt.s32.f32 %v816_v48  ;;  %v3079_v58 = vsel %vm2887_vm0, 1.0, %v16730_v31  ;;  %v1009_v49 = vcvt.s32.f32 %v817_v8  ;;  %v1010_v44 = vcvt.s32.f32 %v818_v3  ;;  %16737 = vst [vmem:[#allocation28_spill] sm:$0xff] %v12629_v42  ;;  %v16740_v48 = vld [vmem:[#allocation137_spill] sm:$0xff]  ;;  %v16743_v42 = vld [vmem:[#allocation102_spill] sm:$0xff] }
 0x213   : > { %8933 = vrcp.f32 %v3079_v58  ;;  %vm2889_vm9 = vcmp.eq.f32.partialorder %v16735_v18, 0.0  ;;  %v12631_v28 = vsub.f32 %v1005_v2, %v1175_v15  ;;  %v12633_v34 = vsub.f32 %v1006_v54, %v1175_v15  ;;  %v16741_v53 = vld [vmem:[#allocation85_spill] sm:$0xff]  ;;  %v12642_v2 = vpop.f32.mrb[48].mxu0 }
 0x214   : > { %v8926_v40 = vpop.eup %8925  ;;  %v3081_v35 = vsel %vm2889_vm9, 1.0, %v16735_v18  ;;  %vm2888_vm10 = vcmp.eq.f32.partialorder %v16740_v48, 0.0  ;;  %v2695_v17 = vadd.f32 %v16741_v53, %v1597_v24  ;;  %v12639_v58 = vsub.f32 %v1007_v7, %v1175_v15  ;;  %16744 = vst [vmem:[#allocation27_spill] sm:$0xff] %v12642_v2  ;;  %v16748_v18 = vld [vmem:[#allocation145_spill] sm:$0xff] }
 0x215   : > { %16738 = vst [vmem:[#allocation38_spill] sm:$0xff] %v12631_v28  ;;  %16739 = vst [vmem:[#allocation25_spill] sm:$0xff] %v12633_v34  ;;  %v3362_v11 = vmul.f32 %v8926_v40, %v2689_v59  ;;  %8935 = vrcp.f32 %v3081_v35  ;;  %v3080_v8 = vsel %vm2888_vm10, 1.0, %v16740_v48  ;;  %v1599_v36 = vunpack.c.l.bf16 %v1451_v26 }
 0x216   : > { %v8928_v3 = vpop.eup %8927  ;;  %16742 = vst [vmem:[#allocation120_spill] sm:$0xff] %v12639_v58  ;;  %8937 = vrcp.f32 %v3080_v8  ;;  %vm2890_vm11 = vcmp.eq.f32.partialorder %v16743_v42, 0.0  ;;  %v16745_v24 = vand.u32 4286578688, %v12262_v37  ;;  %v1598_v53 = vunpack.c.h.bf16 %v12606_v4 }
 0x217   : > { %v8930_v54 = vpop.eup %8929  ;;  %v12645_v34 = vadd.f32 %v12343_v60, %v3362_v11  ;;  %v3366_v28 = vmul.f32 %v8928_v3, %v2691_v41  ;;  %v3082_v59 = vsel %vm2890_vm11, 1.0, %v16743_v42  ;;  %v16746_v8 = vand.u32 4286578688, %v12299_v33 }
 0x218   : > { %v4906_v40 = vadd.s32 %v16745_v24, %v12311_v9  ;;  %v8932_v35 = vpop.eup %8931  ;;  %v3364_v7 = vmul.f32 %v8930_v54, %v2690_v19  ;;  %8939 = vrcp.f32 %v3082_v59  ;;  %v1600_v3 = vunpack.c.h.bf16 %v1451_v26  ;;  %v16749_v9 = vld [vmem:[#allocation48_spill] sm:$0xff] }
 0x219   : > { %v4912_v58 = vadd.s32 %v16746_v8, %v12373_v0  ;;  %v4161_v2 = vand.u32 8388607, %v12645_v34  ;;  %v3779_v11 = vadd.f32 %v12343_v60, %v3366_v28  ;;  %v3368_v41 = vmul.f32 %v8932_v35, %v2692_v63  ;;  %v16758_v35 = vld [vmem:[#allocation93_spill] sm:$0xff] }
 0x21a   : > { %v12657_v42 = vsub.f32 %v1008_v12, %v1175_v15  ;;  %v5290_v37 = vmul.f32 %v4906_v40, %v16748_v18  ;;  %v16750_v4 = vand.u32 4286578688, %v12266_v29  ;;  %v12665_v33 = vadd.f32 %v12343_v60, %v3364_v7  ;;  %v16753_v18 = vld [vmem:[#allocation92_spill] sm:$0xff] }
 0x21b   : > { %v5296_v24 = vmul.f32 %v4912_v58, %v16749_v9  ;;  %vm4353_vm12 = vcmp.ge.s32.totalorder %v4161_v2, 3474676  ;;  %v4163_v54 = vand.u32 8388607, %v3779_v11  ;;  %v16751_v0 = vand.u32 4286578688, %v12315_v30  ;;  %v16757_v2 = vld [vmem:[#allocation86_spill] sm:$0xff] }
 0x21c   : > { %16747 = vst [vmem:[#allocation65_spill] sm:$0xff] %v12657_v42  ;;  %v4908_v19 = vadd.s32 %v16750_v4, %v12320_v57  ;;  %v12671_v12 = vadd.f32 %v12343_v60, %v3368_v41  ;;  %v12673_v26 = vsub.f32 %v1009_v49, %v1175_v15  ;;  %v2697_v28 = vadd.f32 %v16753_v18, %v1599_v36  ;;  %v12686_v36 = vpop.f32.mrb[48].mxu1  ;;  %v16768_v9 = vld [vmem:[#allocation147_spill] sm:$0xff]  ;;  %v1456_v42 = vld [vmem:[%s9587_s0 + $0x1c8] sm:$0xff] }
 0x21d   : > { %v4914_v63 = vadd.s32 %v16751_v0, %v12382_v16  ;;  %v5446_v58 = vpack.c.bf16 %v5296_v24, %v5290_v37  ;;  %v8934_v59 = vpop.eup %8933  ;;  %vm12676_vm13 = vcmp.ge.s32.totalorder %v4163_v54, 3474676  ;;  %v12680_v57 = vsub.f32 %v1010_v44, %v1175_v15  ;;  %16759 = vst [vmem:[#allocation180_spill] sm:$0xff] %v12686_v36  ;;  %v16760_v15 = vld [vmem:[#allocation148_spill] sm:$0xff]  ;;  %v12697_v0 = vpop.f32.mrb[49].mxu0 }
 0x21e   : > { %16752 = vst [vmem:[#allocation160_spill] sm:$0xff] %v12673_v26  ;;  %v2696_v40 = vadd.f32 %v16757_v2, %v1598_v53  ;;  %v2698_v30 = vadd.f32 %v16758_v35, %v1600_v3  ;;  %v4545_v16 = vsel %vm4353_vm12, 8388608, %v15984_v27  ;;  %v4737_v7 = vand.u32 4286578688, %v12645_v34  ;;  %v16761_v24 = vld [vmem:[#allocation52_spill] sm:$0xff]  ;;  %16763 = vst [vmem:[#allocation32_spill] sm:$0xff] %v12697_v0  ;;  %v12699_v18 = vpop.f32.mrb[49].mxu1 }
 0x21f   : > { %16756 = vst [vmem:[#allocation14_spill] sm:$0xff] %v12680_v57  ;;  %v4739_v49 = vand.u32 4286578688, %v3779_v11  ;;  %v3374_v8 = vmul.f32 %v8934_v59, %v2695_v17  ;;  %6477 = vmatprep.subr.bf16.mxu0 %v5446_v58  ;;  %v8936_v41 = vpop.eup %8935  ;;  %v4162_v37 = vand.u32 8388607, %v12665_v33  ;;  %v5292_v44 = vmul.f32 %v4908_v19, %v16760_v15  ;;  %v16762_v17 = vld [vmem:[#allocation109_spill] sm:$0xff]  ;;  %16764 = vst [vmem:[#allocation138_spill] sm:$0xff] %v12699_v18 }
 0x220   : > { %v5298_v53 = vmul.f32 %v4914_v63, %v16761_v24  ;;  %v8938_v4 = vpop.eup %8937  ;;  %v4547_v3 = vsel %vm12676_vm13, 8388608, %v15984_v27  ;;  %v4164_v34 = vand.u32 8388607, %v12671_v12  ;;  %v3378_v54 = vmul.f32 %v8936_v41, %v2697_v28  ;;  %v16766_v19 = vld [vmem:[#allocation144_spill] sm:$0xff]  ;;  %v16767_v2 = vld [vmem:[#allocation47_spill] sm:$0xff]  ;;  %v12781_v60 = vpop.f32.mrb[50].mxu1 }
 0x221   : > { %v3783_v11 = vadd.f32 %v16762_v17, %v3374_v8  ;;  %v3376_v58 = vmul.f32 %v8938_v4, %v2696_v40  ;;  %v5289_v63 = vmul.f32 %v12258_v56, %v16766_v19  ;;  %v5295_v35 = vmul.f32 %v12363_v5, %v16767_v2  ;;  %v16769_v8 = vld [vmem:[#allocation49_spill] sm:$0xff]  ;;  %v1454_v2 = vld [vmem:[%s9587_s0 + $0x1b8] sm:$0xff]  ;;  %16786 = vst [vmem:[#allocation71_spill] sm:$0xff] %v12781_v60 }
 0x222   : > { %v12701_v59 = vpack.c.bf16 %v5298_v53, %v5292_v44  ;;  %v8940_v29 = vpop.eup %8939  ;;  %v3785_v24 = vadd.f32 %v16762_v17, %v3378_v54  ;;  %v5291_v28 = vmul.f32 %v12327_v38, %v16768_v9  ;;  %v5297_v41 = vmul.f32 %v12377_v52, %v16769_v8  ;;  %v1453_v54 = vld [vmem:[%s9587_s0 + $0x1b0] sm:$0xff]  ;;  %v16777_v40 = vld [vmem:[#allocation163_spill] sm:$0xff]  ;;  %v16791_v0 = vld [vmem:[#allocation185_spill] sm:$0xff] }
 0x223   : > { %v4167_v15 = vand.u32 8388607, %v3783_v11  ;;  %vm12712_vm14 = vcmp.ge.s32.totalorder %v4162_v37, 3474676  ;;  %v12717_v56 = vadd.f32 %v16762_v17, %v3376_v58  ;;  %v3380_v44 = vmul.f32 %v8940_v29, %v2698_v30 }
 0x224   : > { %16765 = vst [vmem:[#allocation44_spill] sm:$0xff] %v12701_v59  ;;  %8238 = vmatprep.subr.bf16.mxu1 %v12701_v59  ;;  %v5445_v5 = vpack.c.bf16 %v5295_v35, %v5289_v63  ;;  %vm12720_vm15 = vcmp.ge.s32.totalorder %v4164_v34, 3474676  ;;  %v4169_v38 = vand.u32 8388607, %v3785_v24  ;;  %v12724_v9 = vpack.c.bf16 %v5297_v41, %v5291_v28  ;;  %v12735_v34 = vpop.f32.mrb[50].mxu0 }
 0x225   : > { %vm4359_vm1 = vcmp.ge.s32.totalorder %v4167_v15, 3474676  ;;  %v12726_v52 = vadd.s32 %v4737_v7, %v4545_v16  ;;  %v12728_v37 = vadd.s32 %v4739_v49, %v4547_v3  ;;  %v12732_v30 = vadd.f32 %v16762_v17, %v3380_v44  ;;  %16775 = vst [vmem:[#allocation159_spill] sm:$0xff] %v12735_v34  ;;  %v16776_v16 = vld [vmem:[#allocation146_spill] sm:$0xff]  ;;  %v12792_v34 = vpop.f32.mrb[51].mxu0  ;;  %v16790_v44 = vld [vmem:[#allocation184_spill] sm:$0xff] }
 0x226   : > { %16774 = vst [vmem:[#allocation182_spill] sm:$0xff] %v12724_v9  ;;  %6478 = vmatpush1.bf16.xpose.msra.mxu0 %v5445_v5  ;;  %v4551_v58 = vsel %vm4359_vm1, 8388608, %v15984_v27  ;;  %vm4361_vm2 = vcmp.ge.s32.totalorder %v4169_v38, 3474676  ;;  %v4168_v19 = vand.u32 8388607, %v12717_v56  ;;  %8254 = vmatpush1.bf16.xpose.msra.mxu1 %v12724_v9  ;;  %v1603_v15 = vunpack.c.l.bf16 %v1453_v54 }
 0x227   : > { %vm2893_vm3 = vcmp.eq.f32.partialorder %v16776_v16, 0.0  ;;  %v12744_v7 = vsel %vm12712_vm14, 8388608, %v15984_v27  ;;  %v12749_v49 = vsel %vm12720_vm15, 8388608, %v15984_v27  ;;  %v4743_v3 = vand.u32 4286578688, %v3783_v11  ;;  %16787 = vst [vmem:[#allocation118_spill] sm:$0xff] %v12792_v34  ;;  %v12805_v34 = vpop.f32.mrb[52].mxu0 }
 0x228   : > { %v4170_v63 = vand.u32 8388607, %v12732_v30  ;;  %v4745_v35 = vand.u32 4286578688, %v3785_v24  ;;  %v3085_v28 = vsel %vm2893_vm3, 1.0, %v16776_v16  ;;  %v4553_v41 = vsel %vm4361_vm2, 8388608, %v15984_v27  ;;  %v16780_v24 = vld [vmem:[#allocation89_spill] sm:$0xff] }
 0x229   : > { %v12755_v8 = vadd.s32 %v4743_v3, %v4551_v58  ;;  %8941 = vrcp.f32 %v3085_v28  ;;  %vm2895_vm4 = vcmp.eq.f32.partialorder %v16777_v40, 0.0  ;;  %vm12759_vm5 = vcmp.ge.s32.totalorder %v4168_v19, 3474676  ;;  %v12770_v3 = vpop.permute.xlu1 %3638  ;;  %v16784_v19 = vld [vmem:[#allocation151_spill] sm:$0xff]  ;;  %16792 = vst [vmem:[#allocation34_spill] sm:$0xff] %v12805_v34 }
 0x22a   : > { %v1605_v11 = vunpack.c.l.bf16 %v1454_v2  ;;  %v3087_v5 = vsel %vm2895_vm4, 1.0, %v16777_v40  ;;  %vm2894_vm6 = vcmp.eq.f32.partialorder %v16780_v24, 0.0  ;;  %vm12765_vm7 = vcmp.ge.s32.totalorder %v4170_v63, 3474676  ;;  %16783 = vst [vmem:[#allocation132_spill] sm:$0xff] %v12770_v3 }
 0x22b   : > { %8943 = vrcp.f32 %v3087_v5  ;;  %v1604_v38 = vunpack.c.h.bf16 %v1453_v54  ;;  %v3086_v58 = vsel %vm2894_vm6, 1.0, %v16780_v24  ;;  %vm2896_vm8 = vcmp.eq.f32.partialorder %v16784_v19, 0.0  ;;  %v16785_v54 = vld [vmem:[#allocation88_spill] sm:$0xff] }
 0x22c   : > { %8945 = vrcp.f32 %v3086_v58  ;;  %v819_v28 = vunpack.c.2.s8 %v12564_v1  ;;  %v820_v4 = vunpack.c.2.s8 %v12573_v23  ;;  %v1606_v29 = vunpack.c.h.bf16 %v1454_v2 }
 0x22d   : > { %v3088_v63 = vsel %vm2896_vm8, 1.0, %v16784_v19  ;;  %v821_v57 = vunpack.c.2.s8 %v12580_v10  ;;  %v822_v5 = vunpack.c.2.s8 %v12583_v61  ;;  %v2701_v26 = vadd.f32 %v16785_v54, %v1603_v15  ;;  %v1180_v16 = vpop.permute.xlu1 %1179 }
 0x22e   : > { %8947 = vrcp.f32 %v3088_v63  ;;  %v823_v17 = vunpack.c.2.s8 %v12593_v55  ;;  %v824_v58 = vunpack.c.2.s8 %v12596_v20  ;;  %v12783_v9 = vadd.s32 %v4745_v35, %v4553_v41  ;;  %v16788_v63 = vld [vmem:[#allocation175_spill] sm:$0xff]  ;;  %v12801_v41 = vpop.f32.mrb[51].mxu1 }
 0x22f   : > { %v12788_v2 = vsel %vm12759_vm5, 8388608, %v15984_v27  ;;  %v1011_v18 = vcvt.s32.f32 %v819_v28  ;;  %v12797_v15 = vsel %vm12765_vm7, 8388608, %v15984_v27  ;;  %v2703_v54 = vadd.f32 %v16788_v63, %v1605_v11  ;;  %16789 = vst [vmem:[#allocation133_spill] sm:$0xff] %v12801_v41 }
 0x230   : > { %v1012_v35 = vcvt.s32.f32 %v820_v4  ;;  %vm2899_vm0 = vcmp.eq.f32.partialorder %v12387_v50, 0.0  ;;  %v2702_v60 = vadd.f32 %v16790_v44, %v1604_v38  ;;  %v2704_v59 = vadd.f32 %v16791_v0, %v1606_v29 }
 0x231   : > { %v1013_v28 = vcvt.s32.f32 %v821_v57  ;;  %v1014_v36 = vcvt.s32.f32 %v822_v5  ;;  %v1015_v40 = vcvt.s32.f32 %v823_v17  ;;  %v1016_v53 = vcvt.s32.f32 %v824_v58  ;;  %v1457_v57 = vld [vmem:[%s9587_s0 + $0x1d0] sm:$0xff] }
 0x232   : > { %v1609_v19 = vunpack.c.l.bf16 %v1456_v42  ;;  %v3091_v11 = vsel %vm2899_vm0, 1.0, %v12387_v50  ;;  %v12808_v63 = vsub.f32 %v1011_v18, %v1180_v16  ;;  %vm2901_vm9 = vcmp.eq.f32.partialorder %v12393_v51, 0.0 }
 0x233   : > { %v8942_v4 = vpop.eup %8941  ;;  %8949 = vrcp.f32 %v3091_v11  ;;  %vm2900_vm10 = vcmp.eq.f32.partialorder %v12391_v62, 0.0  ;;  %v12812_v29 = vsub.f32 %v1012_v35, %v1180_v16  ;;  %v3093_v38 = vsel %vm2901_vm9, 1.0, %v12393_v51 }
 0x234   : > { %16793 = vst [vmem:[#allocation140_spill] sm:$0xff] %v12808_v63  ;;  %v3386_v0 = vmul.f32 %v8942_v4, %v2701_v26  ;;  %v3092_v17 = vsel %vm2900_vm10, 1.0, %v12391_v62  ;;  %v12817_v58 = vsub.f32 %v1013_v28, %v1180_v16  ;;  %v12819_v44 = vsub.f32 %v1014_v36, %v1180_v16 }
 0x235   : > { %16794 = vst [vmem:[#allocation31_spill] sm:$0xff] %v12812_v29  ;;  %v8944_v5 = vpop.eup %8943  ;;  %8951 = vrcp.f32 %v3093_v38  ;;  %vm2902_vm11 = vcmp.eq.f32.partialorder %v12408_v25, 0.0  ;;  %v1611_v29 = vunpack.c.l.bf16 %v1457_v57  ;;  %v16797_v28 = vand.u32 4286578688, %v12455_v43 }
 0x236   : > { %16795 = vst [vmem:[#allocation107_spill] sm:$0xff] %v12817_v58  ;;  %16796 = vst [vmem:[#allocation75_spill] sm:$0xff] %v12819_v44  ;;  %v8946_v18 = vpop.eup %8945  ;;  %v12823_v11 = vadd.f32 %v12541_v39, %v3386_v0  ;;  %v3390_v26 = vmul.f32 %v8944_v5, %v2703_v54  ;;  %8953 = vrcp.f32 %v3092_v17  ;;  %v3094_v35 = vsel %vm2902_vm11, 1.0, %v12408_v25  ;;  %v12836_v17 = vpop.f32.mrb[52].mxu1 }
 0x237   : > { %v3388_v4 = vmul.f32 %v8946_v18, %v2702_v60  ;;  %8955 = vrcp.f32 %v3094_v35  ;;  %v4918_v34 = vadd.s32 %v16797_v28, %v12534_v22  ;;  %v1610_v41 = vunpack.c.h.bf16 %v1456_v42  ;;  %16799 = vst [vmem:[#allocation72_spill] sm:$0xff] %v12836_v17  ;;  %v16800_v18 = vld [vmem:[#allocation155_spill] sm:$0xff] }
 0x238   : > { %v8948_v36 = vpop.eup %8947  ;;  %v4173_v38 = vand.u32 8388607, %v12823_v11  ;;  %v12831_v44 = vadd.f32 %v12541_v39, %v3390_v26  ;;  %v16798_v54 = vand.u32 4286578688, %v12497_v6  ;;  %v2707_v43 = vadd.f32 %v16800_v18, %v1609_v19  ;;  %v12847_v6 = vpop.f32.mrb[53].mxu0 }
 0x239   : > { %v12839_v60 = vadd.f32 %v12541_v39, %v3388_v4  ;;  %v3392_v5 = vmul.f32 %v8948_v36, %v2704_v59  ;;  %v1612_v22 = vunpack.c.h.bf16 %v1457_v57  ;;  %v5302_v35 = vmul.f32 %v4918_v34, %v16656_v13  ;;  %16802 = vst [vmem:[#allocation33_spill] sm:$0xff] %v12847_v6  ;;  %v16805_v59 = vld [vmem:[#allocation110_spill] sm:$0xff] }
 0x23a   : > { %v4924_v0 = vadd.s32 %v16798_v54, %v12552_v45  ;;  %vm4365_vm12 = vcmp.ge.s32.totalorder %v4173_v38, 3474676  ;;  %v16801_v42 = vand.u32 4286578688, %v12468_v32  ;;  %v4175_v45 = vand.u32 8388607, %v12831_v44  ;;  %v16806_v13 = vld [vmem:[#allocation114_spill] sm:$0xff] }
 0x23b   : > { %v12850_v54 = vsub.f32 %v1015_v40, %v1180_v16  ;;  %v12852_v4 = vsub.f32 %v1016_v53, %v1180_v16  ;;  %v2709_v19 = vadd.f32 %v16805_v59, %v1611_v29  ;;  %v12856_v57 = vadd.f32 %v12541_v39, %v3392_v5  ;;  %v16808_v53 = vld [vmem:[#allocation16_spill] sm:$0xff]  ;;  %v16816_v5 = vld [vmem:[#allocation62_spill] sm:$0xff] }
 0x23c   : > { %v5308_v26 = vmul.f32 %v4924_v0, %v16668_v21  ;;  %v4920_v28 = vadd.s32 %v16801_v42, %v12539_v47  ;;  %v2708_v34 = vadd.f32 %v16806_v13, %v1610_v41  ;;  %v16807_v32 = vand.u32 4286578688, %v12509_v46  ;;  %v16809_v41 = vld [vmem:[#allocation68_spill] sm:$0xff] }
 0x23d   : > { %16803 = vst [vmem:[#allocation108_spill] sm:$0xff] %v12850_v54  ;;  %16804 = vst [vmem:[#allocation139_spill] sm:$0xff] %v12852_v4  ;;  %v8950_v36 = vpop.eup %8949  ;;  %v4557_v38 = vsel %vm4365_vm12, 8388608, %v15984_v27  ;;  %v4749_v40 = vand.u32 4286578688, %v12823_v11  ;;  %v4751_v16 = vand.u32 4286578688, %v12831_v44  ;;  %v2710_v0 = vadd.f32 %v16808_v53, %v1612_v22  ;;  %v16812_v59 = vld [vmem:[#allocation64_spill] sm:$0xff] }
 0x23e   : > { %v5452_v21 = vpack.c.bf16 %v5308_v26, %v5302_v35  ;;  %v4926_v47 = vadd.s32 %v16807_v32, %v12555_v14  ;;  %v4174_v29 = vand.u32 8388607, %v12839_v60  ;;  %v3398_v18 = vmul.f32 %v8950_v36, %v2707_v43  ;;  %v12869_v26 = vpop.f32.mrb[53].mxu1  ;;  %v16811_v14 = vld [vmem:[#allocation162_spill] sm:$0xff]  ;;  %v16813_v11 = vld [vmem:[#allocation192_spill] sm:$0xff] }
 0x23f   : > { %v5304_v35 = vmul.f32 %v4920_v28, %v16809_v41  ;;  %16810 = vst [vmem:[#allocation154_spill] sm:$0xff] %v12869_v26  ;;  %v8952_v46 = vpop.eup %8951  ;;  %vm4367_vm13 = vcmp.ge.s32.totalorder %v4175_v45, 3474676  ;;  %v5301_v13 = vmul.f32 %v16813_v11, %v16812_v59  ;;  %v16814_v44 = vld [vmem:[#allocation158_spill] sm:$0xff]  ;;  %v4176_v4 = vand.u32 8388607, %v12856_v57 }
 0x240   : > { %6479 = vmatprep.subr.bf16.mxu0 %v5452_v21  ;;  %v5310_v42 = vmul.f32 %v4926_v47, %v16811_v14  ;;  %v16815_v32 = vld [vmem:[#allocation22_spill] sm:$0xff]  ;;  %v8954_v53 = vpop.eup %8953  ;;  %v3795_v43 = vadd.f32 %v16816_v5, %v3398_v18  ;;  %v3402_v21 = vmul.f32 %v8952_v46, %v2709_v19  ;;  %v16818_v28 = vld [vmem:[#allocation20_spill] sm:$0xff]  ;;  %v16820_v14 = vld [vmem:[#allocation161_spill] sm:$0xff]  ;;  %v12884_v11 = vpop.f32.mrb[54].mxu0  ;;  %v12888_v19 = vadd.s32 %v4749_v40, %v4557_v38 }
 0x241   : > { %v5307_v22 = vmul.f32 %v16815_v32, %v16814_v44  ;;  %v16817_v36 = vld [vmem:[#allocation66_spill] sm:$0xff]  ;;  %v8956_v54 = vpop.eup %8955  ;;  %v3400_v39 = vmul.f32 %v8954_v53, %v2708_v34  ;;  %16822 = vst [vmem:[#allocation135_spill] sm:$0xff] %v12884_v11  ;;  %v4559_v44 = vsel %vm4367_vm13, 8388608, %v15984_v27  ;;  %vm12890_vm14 = vcmp.ge.s32.totalorder %v4174_v29, 3474676  ;;  %v12913_v29 = vpop.f32.mrb[54].mxu1 }
 0x242   : > { %v5303_v41 = vmul.f32 %v16818_v28, %v16817_v36  ;;  %v12880_v45 = vpack.c.bf16 %v5310_v42, %v5304_v35  ;;  %v16821_v26 = vld [vmem:[#allocation58_spill] sm:$0xff]  ;;  %v4179_v32 = vand.u32 8388607, %v3795_v43  ;;  %v3797_v6 = vadd.f32 %v16816_v5, %v3402_v21  ;;  %16823 = vst [vmem:[#allocation167_spill] sm:$0xff] %v12888_v19  ;;  %16830 = vst [vmem:[#allocation137_spill] sm:$0xff] %v12913_v29 }
 0x243   : > { %v5451_v47 = vpack.c.bf16 %v5307_v22, %v5301_v13  ;;  %v5309_v59 = vmul.f32 %v16821_v26, %v16820_v14  ;;  %v3404_v18 = vmul.f32 %v8956_v54, %v2710_v0  ;;  %v12895_v34 = vadd.f32 %v16816_v5, %v3400_v39  ;;  %v12915_v13 = vpop.permute.xlu0 %3634  ;;  %v16845_v11 = vld [vmem:[#allocation82_spill] sm:$0xff] }
 0x244   : > { %16819 = vst [vmem:[#allocation80_spill] sm:$0xff] %v12880_v45  ;;  %8239 = vmatprep.subr.bf16.mxu1 %v12880_v45  ;;  %vm4371_vm15 = vcmp.ge.s32.totalorder %v4179_v32, 3474676  ;;  %v4181_v42 = vand.u32 8388607, %v3797_v6  ;;  %v12904_v38 = vadd.s32 %v4751_v16, %v4559_v44  ;;  %v807_v0 = vunpack.c.0.s8 %v12564_v1  ;;  %16831 = vst [vmem:[#allocation85_spill] sm:$0xff] %v12915_v13 }
 0x245   : > { %6480 = vmatpush1.bf16.xpose.msra.mxu0 %v5451_v47  ;;  %v12898_v35 = vpack.c.bf16 %v5309_v59, %v5303_v41  ;;  %v12902_v54 = vadd.f32 %v16816_v5, %v3404_v18  ;;  %vm12906_vm1 = vcmp.ge.s32.totalorder %v4176_v4, 3474676  ;;  %v4180_v39 = vand.u32 8388607, %v12895_v34  ;;  %v12919_v4 = vpop.f32.mrb[55].mxu0  ;;  %v12928_v47 = vpop.f32.mrb[55].mxu1 }
 0x246   : > { %16827 = vst [vmem:[#allocation67_spill] sm:$0xff] %v12904_v38  ;;  %v4755_v22 = vand.u32 4286578688, %v3795_v43  ;;  %vm4373_vm2 = vcmp.ge.s32.totalorder %v4181_v42, 3474676  ;;  %v808_v16 = vunpack.c.0.s8 %v12573_v23  ;;  %16832 = vst [vmem:[#allocation145_spill] sm:$0xff] %v12919_v4  ;;  %v4563_v21 = vsel %vm4371_vm15, 8388608, %v15984_v27 }
 0x247   : > { %16826 = vst [vmem:[#allocation63_spill] sm:$0xff] %v12898_v35  ;;  %8255 = vmatpush1.bf16.xpose.msra.mxu1 %v12898_v35  ;;  %v4182_v53 = vand.u32 8388607, %v12902_v54  ;;  %v4565_v36 = vsel %vm4373_vm2, 8388608, %v15984_v27  ;;  %vm12923_vm3 = vcmp.ge.s32.totalorder %v4180_v39, 3474676  ;;  %v809_v41 = vunpack.c.0.s8 %v12580_v10  ;;  %v1170_v26 = vpop.permute.xlu0 %1169 }
 0x248   : > { %16835 = vst [vmem:[#allocation48_spill] sm:$0xff] %v12928_v47  ;;  %v810_v14 = vunpack.c.0.s8 %v12583_v61  ;;  %v811_v59 = vunpack.c.0.s8 %v12593_v55  ;;  %v812_v44 = vunpack.c.0.s8 %v12596_v20  ;;  %v12940_v32 = vsel %vm12890_vm14, 8388608, %v15984_v27  ;;  %v1459_v45 = vld [vmem:[%s9587_s0 + $0x1e0] sm:$0xff]  ;;  %v12952_v47 = vpop.f32.mrb[56].mxu0  ;;  %v16843_v4 = vld [vmem:[#allocation198_spill] sm:$0xff] }
 0x249   : > { %vm12930_vm4 = vcmp.ge.s32.totalorder %v4182_v53, 3474676  ;;  %v12945_v18 = vsel %vm12906_vm1, 8388608, %v15984_v27  ;;  %v4757_v42 = vand.u32 4286578688, %v3797_v6  ;;  %v999_v39 = vcvt.s32.f32 %v807_v0  ;;  %16839 = vst [vmem:[#allocation86_spill] sm:$0xff] %v12952_v47  ;;  %v16841_v0 = vld [vmem:[#allocation74_spill] sm:$0xff] }
 0x24a   : > { %v12947_v53 = vadd.s32 %v4755_v22, %v4563_v21  ;;  %v1000_v35 = vcvt.s32.f32 %v808_v16  ;;  %v12959_v40 = vsel %vm12923_vm3, 8388608, %v15984_v27  ;;  %v12964_v6 = vsel %vm12930_vm4, 8388608, %v15984_v27  ;;  %v1460_v47 = vld [vmem:[%s9587_s0 + $0x1e8] sm:$0xff] }
 0x24b   : > { %v12954_v46 = vadd.s32 %v4757_v42, %v4565_v36  ;;  %vm2905_vm5 = vcmp.eq.f32.partialorder %v16841_v0, 0.0  ;;  %v1001_v22 = vcvt.s32.f32 %v809_v41  ;;  %v1002_v21 = vcvt.s32.f32 %v810_v14 }
 0x24c   : > { %16838 = vst [vmem:[#allocation92_spill] sm:$0xff] %v12947_v53  ;;  %v1003_v16 = vcvt.s32.f32 %v811_v59  ;;  %v1004_v5 = vcvt.s32.f32 %v812_v44  ;;  %v12968_v36 = vsub.f32 %v999_v39, %v1170_v26  ;;  %v1615_v42 = vunpack.c.l.bf16 %v1459_v45  ;;  %v16846_v39 = vld [vmem:[#allocation119_spill] sm:$0xff] }
 0x24d   : > { %16840 = vst [vmem:[#allocation93_spill] sm:$0xff] %v12954_v46  ;;  %v3097_v28 = vsel %vm2905_vm5, 1.0, %v16841_v0  ;;  %vm2907_vm6 = vcmp.eq.f32.partialorder %v16843_v4, 0.0  ;;  %v12972_v29 = vsub.f32 %v1000_v35, %v1170_v26  ;;  %vm2906_vm7 = vcmp.eq.f32.partialorder %v16845_v11, 0.0  ;;  %v16851_v0 = vld [vmem:[#allocation130_spill] sm:$0xff] }
 0x24e   : > { %16842 = vst [vmem:[#allocation148_spill] sm:$0xff] %v12968_v36  ;;  %8957 = vrcp.f32 %v3097_v28  ;;  %v3099_v43 = vsel %vm2907_vm6, 1.0, %v16843_v4  ;;  %v1617_v41 = vunpack.c.l.bf16 %v1460_v47  ;;  %v1616_v14 = vunpack.c.h.bf16 %v1459_v45 }
 0x24f   : > { %16844 = vst [vmem:[#allocation52_spill] sm:$0xff] %v12972_v29  ;;  %8959 = vrcp.f32 %v3099_v43  ;;  %v3098_v59 = vsel %vm2906_vm7, 1.0, %v16845_v11  ;;  %v1618_v44 = vunpack.c.h.bf16 %v1460_v47  ;;  %vm2908_vm8 = vcmp.eq.f32.partialorder %v16846_v39, 0.0 }
 0x250   : > { %8961 = vrcp.f32 %v3098_v59  ;;  %v825_v17 = vunpack.c.3.s8 %v12564_v1  ;;  %v3100_v35 = vsel %vm2908_vm8, 1.0, %v16846_v39  ;;  %v826_v28 = vunpack.c.3.s8 %v12573_v23  ;;  %v1462_v23 = vld [vmem:[%s9587_s0 + $0x1f8] sm:$0xff] }
 0x251   : > { %v827_v58 = vunpack.c.3.s8 %v12580_v10  ;;  %v828_v63 = vunpack.c.3.s8 %v12583_v61  ;;  %v12983_v4 = vsub.f32 %v1001_v22, %v1170_v26  ;;  %8963 = vrcp.f32 %v3100_v35  ;;  %v16852_v22 = vld [vmem:[#allocation174_spill] sm:$0xff] }
 0x252   : > { %v829_v45 = vunpack.c.3.s8 %v12593_v55  ;;  %v830_v43 = vunpack.c.3.s8 %v12596_v20  ;;  %v12987_v47 = vsub.f32 %v1002_v21, %v1170_v26  ;;  %v12989_v59 = vsub.f32 %v1003_v16, %v1170_v26  ;;  %v16853_v35 = vld [vmem:[#allocation178_spill] sm:$0xff]  ;;  %v16855_v20 = vld [vmem:[#allocation127_spill] sm:$0xff] }
 0x253   : > { %16847 = vst [vmem:[#allocation144_spill] sm:$0xff] %v12983_v4  ;;  %v12991_v1 = vsub.f32 %v1004_v5, %v1170_v26  ;;  %v1017_v39 = vcvt.s32.f32 %v825_v17  ;;  %v2713_v10 = vadd.f32 %v16851_v0, %v1615_v42  ;;  %v1018_v11 = vcvt.s32.f32 %v826_v28  ;;  %v16854_v55 = vld [vmem:[#allocation126_spill] sm:$0xff]  ;;  %v1185_v5 = vpop.permute.xlu0 %1184  ;;  %v16858_v0 = vld [vmem:[#allocation124_spill] sm:$0xff]  ;;  %v13011_v28 = vpop.f32.mrb[56].mxu1 }
 0x254   : > { %16848 = vst [vmem:[#allocation47_spill] sm:$0xff] %v12987_v47  ;;  %16849 = vst [vmem:[#allocation147_spill] sm:$0xff] %v12989_v59  ;;  %v1019_v61 = vcvt.s32.f32 %v827_v58  ;;  %vm2911_vm0 = vcmp.eq.f32.partialorder %v16852_v22, 0.0  ;;  %v2715_v29 = vadd.f32 %v16853_v35, %v1617_v41  ;;  %v2714_v4 = vadd.f32 %v16854_v55, %v1616_v14  ;;  %v16857_v58 = vld [vmem:[#allocation183_spill] sm:$0xff]  ;;  %v16862_v35 = vld [vmem:[#allocation78_spill] sm:$0xff]  ;;  %v13014_v55 = vpop.f32.mrb[57].mxu0 }
 0x255   : > { %16850 = vst [vmem:[#allocation49_spill] sm:$0xff] %v12991_v1  ;;  %v2716_v21 = vadd.f32 %v16855_v20, %v1618_v44  ;;  %v1020_v47 = vcvt.s32.f32 %v828_v63  ;;  %v1021_v16 = vcvt.s32.f32 %v829_v45  ;;  %v1022_v59 = vcvt.s32.f32 %v830_v43  ;;  %v1463_v1 = vld [vmem:[%s9587_s0 + $0x200] sm:$0xff]  ;;  %16861 = vst [vmem:[#allocation184_spill] sm:$0xff] %v13011_v28 }
 0x256   : > { %v1621_v26 = vunpack.c.l.bf16 %v1462_v23  ;;  %v3103_v17 = vsel %vm2911_vm0, 1.0, %v16852_v22  ;;  %v13001_v36 = vsub.f32 %v1017_v39, %v1185_v5  ;;  %vm2913_vm9 = vcmp.eq.f32.partialorder %v16857_v58, 0.0  ;;  %16863 = vst [vmem:[#allocation185_spill] sm:$0xff] %v13014_v55 }
 0x257   : > { %8965 = vrcp.f32 %v3103_v17  ;;  %vm2912_vm10 = vcmp.eq.f32.partialorder %v16858_v0, 0.0  ;;  %v13005_v41 = vsub.f32 %v1018_v11, %v1185_v5  ;;  %v13007_v14 = vsub.f32 %v1019_v61, %v1185_v5  ;;  %v13016_v17 = vpop.permute.xlu1 %3642 }
 0x258   : > { %16856 = vst [vmem:[#allocation89_spill] sm:$0xff] %v13001_v36  ;;  %v8958_v42 = vpop.eup %8957  ;;  %v3105_v63 = vsel %vm2913_vm9, 1.0, %v16857_v58  ;;  %v3104_v44 = vsel %vm2912_vm10, 1.0, %v16858_v0  ;;  %v1623_v39 = vunpack.c.l.bf16 %v1463_v1  ;;  %vm2914_vm11 = vcmp.eq.f32.partialorder %v16862_v35, 0.0  ;;  %16864 = vst [vmem:[#allocation155_spill] sm:$0xff] %v13016_v17  ;;  %v13064_v58 = vld [vmem:[%s9784_s13 + $0x170] sm:$0xff] }
 0x259   : > { %16859 = vst [vmem:[#allocation88_spill] sm:$0xff] %v13005_v41  ;;  %16860 = vst [vmem:[#allocation175_spill] sm:$0xff] %v13007_v14  ;;  %v8960_v45 = vpop.eup %8959  ;;  %v3410_v43 = vmul.f32 %v8958_v42, %v2713_v10  ;;  %8967 = vrcp.f32 %v3105_v63  ;;  %v1622_v61 = vunpack.c.h.bf16 %v1462_v23  ;;  %v3106_v41 = vsel %vm2914_vm11, 1.0, %v16862_v35  ;;  %v13019_v14 = vpop.f32.mrb[57].mxu1  ;;  %v16869_v23 = vld [vmem:[#allocation55_spill] sm:$0xff] }
 0x25a   : > { %v8962_v20 = vpop.eup %8961  ;;  %v3414_v11 = vmul.f32 %v8960_v45, %v2715_v29  ;;  %8969 = vrcp.f32 %v3104_v44  ;;  %16865 = vst [vmem:[#allocation110_spill] sm:$0xff] %v13019_v14  ;;  %v13022_v42 = vsub.f32 %v1020_v47, %v1185_v5  ;;  %v13024_v63 = vpop.f32.mrb[58].mxu0  ;;  %v13027_v29 = vsub.f32 %v1021_v16, %v1185_v5  ;;  %16879 = vst [vmem:[#allocation20_spill] sm:$0xff] %v13064_v58 }
 0x25b   : > { %v3801_v28 = vadd.f32 %v12915_v13, %v3410_v43  ;;  %v3412_v10 = vmul.f32 %v8962_v20, %v2714_v4  ;;  %8971 = vrcp.f32 %v3106_v41  ;;  %16867 = vst [vmem:[#allocation16_spill] sm:$0xff] %v13024_v63  ;;  %v8964_v55 = vpop.eup %8963  ;;  %v2719_v44 = vadd.f32 %v16869_v23, %v1621_v26  ;;  %v13036_v41 = vld [vmem:[%s9784_s13 + $0x150] sm:$0xff]  ;;  %v16872_v63 = vld [vmem:[#allocation181_spill] sm:$0xff] }
 0x25c   : > { %16866 = vst [vmem:[#allocation114_spill] sm:$0xff] %v13022_v42  ;;  %v3803_v36 = vadd.f32 %v12915_v13, %v3414_v11  ;;  %16868 = vst [vmem:[#allocation68_spill] sm:$0xff] %v13027_v29  ;;  %v1624_v45 = vunpack.c.h.bf16 %v1463_v1  ;;  %v3416_v4 = vmul.f32 %v8964_v55, %v2716_v21  ;;  %v13033_v47 = vsub.f32 %v1022_v59, %v1185_v5  ;;  %v16873_v11 = vld [vmem:[#allocation189_spill] sm:$0xff]  ;;  %v13041_v29 = vld [vmem:[%s9784_s13 + $0x158] sm:$0xff] }
 0x25d   : > { %v4185_v14 = vand.u32 8388607, %v3801_v28  ;;  %v13031_v43 = vadd.f32 %v12915_v13, %v3412_v10  ;;  %16871 = vst [vmem:[#allocation64_spill] sm:$0xff] %v13036_v41  ;;  %v2721_v42 = vadd.f32 %v16872_v63, %v1623_v39  ;;  %v2720_v16 = vadd.f32 %v16873_v11, %v1622_v61  ;;  %16874 = vst [vmem:[#allocation192_spill] sm:$0xff] %v13041_v29  ;;  %v13049_v59 = vld [vmem:[%s9784_s13 + $0x160] sm:$0xff]  ;;  %v13052_v21 = vld [vmem:[%s9784_s13 + $0x168] sm:$0xff]  ;;  %v13055_v39 = vpop.permute.xlu1 %3646 }
 0x25e   : > { %16870 = vst [vmem:[#allocation162_spill] sm:$0xff] %v13033_v47  ;;  %v4187_v20 = vand.u32 8388607, %v3803_v36  ;;  %v837_v26 = vunpack.c.1.s8 %v13036_v41  ;;  %v13046_v10 = vadd.f32 %v12915_v13, %v3416_v4  ;;  %16875 = vst [vmem:[#allocation158_spill] sm:$0xff] %v13049_v59  ;;  %v838_v5 = vunpack.c.1.s8 %v13041_v29  ;;  %v16878_v55 = vld [vmem:[#allocation193_spill] sm:$0xff] }
 0x25f   : > { %vm4377_vm12 = vcmp.ge.s32.totalorder %v4185_v14, 3474676  ;;  %v4186_v1 = vand.u32 8388607, %v13031_v43  ;;  %16876 = vst [vmem:[#allocation22_spill] sm:$0xff] %v13052_v21  ;;  %16877 = vst [vmem:[#allocation66_spill] sm:$0xff] %v13055_v39  ;;  %v2722_v61 = vadd.f32 %v16878_v55, %v1624_v45  ;;  %v839_v14 = vunpack.c.1.s8 %v13049_v59 }
 0x260   : > { %vm4379_vm13 = vcmp.ge.s32.totalorder %v4187_v20, 3474676  ;;  %v840_v63 = vunpack.c.1.s8 %v13052_v21  ;;  %v4569_v4 = vsel %vm4377_vm12, 8388608, %v15984_v27  ;;  %v4761_v11 = vand.u32 4286578688, %v3801_v28  ;;  %v13071_v55 = vld [vmem:[%s9784_s13 + $0x178] sm:$0xff]  ;;  %s9381_s13 = smov [#allocation8]  }
 0x261   : > { %v8966_v23 = vpop.eup %8965  ;;  %v4571_v47 = vsel %vm4379_vm13, 8388608, %v15984_v27  ;;  %v4188_v13 = vand.u32 8388607, %v13046_v10  ;;  %v4763_v22 = vand.u32 4286578688, %v3803_v36  ;;  %vm13066_vm14 = vcmp.ge.s32.totalorder %v4186_v1, 3474676 }
 0x262   : > { %v3422_v45 = vmul.f32 %v8966_v23, %v2719_v44  ;;  %v841_v35 = vunpack.c.1.s8 %v13064_v58  ;;  %v842_v28 = vunpack.c.1.s8 %v13071_v55  ;;  %v1029_v51 = vcvt.s32.f32 %v837_v26  ;;  %v13083_v23 = vpop.f32.mrb[58].mxu1 }
 0x263   : > { %v8968_v0 = vpop.eup %8967  ;;  %v1030_v38 = vcvt.s32.f32 %v838_v5  ;;  %v13076_v50 = vadd.s32 %v4761_v11, %v4569_v4  ;;  %v13078_v36 = vadd.s32 %v4763_v22, %v4571_v47  ;;  %16883 = vst [vmem:[#allocation58_spill] sm:$0xff] %v13083_v23  ;;  %v13088_v46 = vsel %vm13066_vm14, 8388608, %v15984_v27 }
 0x264   : > { %v8970_v53 = vpop.eup %8969  ;;  %v13081_v1 = vadd.f32 %v12770_v3, %v3422_v45  ;;  %v3426_v44 = vmul.f32 %v8968_v0, %v2721_v42  ;;  %vm4380_vm15 = vcmp.ge.s32.totalorder %v4188_v13, 3474676  ;;  %v1031_v5 = vcvt.s32.f32 %v839_v14  ;;  %v1195_v45 = vpop.permute.xlu1 %1194 }
 0x265   : > { %16882 = vst [vmem:[#allocation161_spill] sm:$0xff] %v13078_v36  ;;  %v8972_v19 = vpop.eup %8971  ;;  %v3424_v26 = vmul.f32 %v8970_v53, %v2720_v16  ;;  %v1032_v11 = vcvt.s32.f32 %v840_v63  ;;  %v13094_v0 = vpop.f32.mrb[59].mxu0  ;;  %v1033_v20 = vcvt.s32.f32 %v841_v35  ;;  %v1034_v36 = vcvt.s32.f32 %v842_v28 }
 0x266   : > { %v4191_v4 = vand.u32 8388607, %v13081_v1  ;;  %v13092_v22 = vadd.f32 %v12770_v3, %v3426_v44  ;;  %v3428_v47 = vmul.f32 %v8972_v19, %v2722_v61  ;;  %16884 = vst [vmem:[#allocation130_spill] sm:$0xff] %v13094_v0  ;;  %v13100_v13 = vpop.f32.mrb[59].mxu1  ;;  %v13102_v53 = vpop.f32.mrb[60].mxu0  ;;  %v13105_v16 = vsel %vm4380_vm15, 8388608, %v15984_v27 }
 0x267   : > { %v13098_v23 = vadd.f32 %v12770_v3, %v3424_v26  ;;  %16885 = vst [vmem:[#allocation178_spill] sm:$0xff] %v13100_v13  ;;  %16886 = vst [vmem:[#allocation126_spill] sm:$0xff] %v13102_v53  ;;  %v13111_v14 = vsub.f32 %v1029_v51, %v1195_v45  ;;  %v13114_v44 = vsub.f32 %v1030_v38, %v1195_v45  ;;  %v16889_v35 = vand.u32 4286578688, %v12665_v33 }
 0x268   : > { %v4193_v19 = vand.u32 8388607, %v13092_v22  ;;  %v13109_v61 = vadd.f32 %v12770_v3, %v3428_v47  ;;  %vm4383_vm1 = vcmp.ge.s32.totalorder %v4191_v4, 3474676  ;;  %v4767_v26 = vand.u32 4286578688, %v13081_v1  ;;  %v16895_v3 = vld [vmem:[#allocation169_spill] sm:$0xff] }
 0x269   : > { %16887 = vst [vmem:[#allocation127_spill] sm:$0xff] %v13111_v14  ;;  %v4192_v63 = vand.u32 8388607, %v13098_v23  ;;  %16888 = vst [vmem:[#allocation55_spill] sm:$0xff] %v13114_v44  ;;  %v4930_v28 = vadd.s32 %v16889_v35, %v12744_v7  ;;  %v13120_v42 = vsub.f32 %v1031_v5, %v1195_v45  ;;  %v13122_v53 = vsub.f32 %v1032_v11, %v1195_v45 }
 0x26a   : > { %vm4385_vm2 = vcmp.ge.s32.totalorder %v4193_v19, 3474676  ;;  %v13124_v47 = vsub.f32 %v1033_v20, %v1195_v45  ;;  %v13126_v51 = vsub.f32 %v1034_v36, %v1195_v45  ;;  %v16894_v4 = vand.u32 4286578688, %v12717_v56  ;;  %v16901_v19 = vld [vmem:[#allocation171_spill] sm:$0xff]  ;;  %v16912_v20 = vld [vmem:[#allocation134_spill] sm:$0xff] }
 0x26b   : > { %16890 = vst [vmem:[#allocation181_spill] sm:$0xff] %v13120_v42  ;;  %16891 = vst [vmem:[#allocation189_spill] sm:$0xff] %v13122_v53  ;;  %v5314_v13 = vmul.f32 %v4930_v28, %v16895_v3  ;;  %v4575_v33 = vsel %vm4383_vm1, 8388608, %v15984_v27  ;;  %v4577_v7 = vsel %vm4385_vm2, 8388608, %v15984_v27  ;;  %v4194_v1 = vand.u32 8388607, %v13109_v61 }
 0x26c   : > { %16892 = vst [vmem:[#allocation193_spill] sm:$0xff] %v13124_v47  ;;  %16893 = vst [vmem:[#allocation199_spill] sm:$0xff] %v13126_v51  ;;  %v4936_v38 = vadd.s32 %v16894_v4, %v12788_v2  ;;  %v16896_v5 = vand.u32 4286578688, %v12671_v12  ;;  %vm13138_vm3 = vcmp.ge.s32.totalorder %v4192_v63, 3474676  ;;  %v16899_v56 = vand.u32 4286578688, %v12732_v30 }
 0x26d   : > { %v16900_v2 = vld [vmem:[#allocation168_spill] sm:$0xff]  ;;  %v5319_v28 = vmul.f32 %v12755_v8, %v16730_v31  ;;  %v16902_v12 = vld [vmem:[#allocation170_spill] sm:$0xff]  ;;  %v16903_v63 = vld [vmem:[#allocation73_spill] sm:$0xff]  ;;  %v831_v30 = vunpack.c.0.s8 %v13036_v41  ;;  %v834_v31 = vunpack.c.0.s8 %v13052_v21  ;;  %vm13162_vm4 = vcmp.ge.s32.totalorder %v4194_v1, 3474676 }
 0x26e   : > { %v4932_v11 = vadd.s32 %v16896_v5, %v12749_v49  ;;  %v5320_v36 = vmul.f32 %v4936_v38, %v16740_v48  ;;  %v4938_v3 = vadd.s32 %v16899_v56, %v12797_v15  ;;  %v5313_v45 = vmul.f32 %v12726_v52, %v16900_v2  ;;  %v16904_v48 = vld [vmem:[#allocation102_spill] sm:$0xff]  ;;  %v16921_v47 = vld [vmem:[#allocation61_spill] sm:$0xff] }
 0x26f   : > { %v5315_v49 = vmul.f32 %v12728_v37, %v16902_v12  ;;  %v5321_v4 = vmul.f32 %v12783_v9, %v16903_v63  ;;  %v832_v15 = vunpack.c.0.s8 %v13041_v29  ;;  %v835_v8 = vunpack.c.0.s8 %v13064_v58  ;;  %v16910_v63 = vld [vmem:[#allocation13_spill] sm:$0xff] }
 0x270   : > { %v5316_v35 = vmul.f32 %v4932_v11, %v16901_v19  ;;  %v5458_v5 = vpack.c.bf16 %v5320_v36, %v5314_v13  ;;  %v5322_v38 = vmul.f32 %v4938_v3, %v16904_v48  ;;  %v5457_v52 = vpack.c.bf16 %v5319_v28, %v5313_v45  ;;  %v13170_v36 = vpop.f32.mrb[60].mxu1  ;;  %v1465_v19 = vld [vmem:[%s9587_s0 + $0x210] sm:$0xff]  ;;  %v16918_v28 = vld [vmem:[#allocation15_spill] sm:$0xff]  ;;  %v1468_v45 = vld [vmem:[%s9587_s0 + $0x228] sm:$0xff] }
 0x271   : > { %v13158_v56 = vpack.c.bf16 %v5321_v4, %v5315_v49  ;;  %v833_v11 = vunpack.c.0.s8 %v13049_v59  ;;  %v836_v13 = vunpack.c.0.s8 %v13071_v55  ;;  %16909 = vst [vmem:[#allocation171_spill] sm:$0xff] %v13170_v36  ;;  %v13172_v3 = vadd.s32 %v4767_v26, %v4575_v33  ;;  %v1190_v49 = vpop.permute.xlu0 %1189 }
 0x272   : > { %6481 = vmatprep.subr.bf16.mxu0 %v5458_v5  ;;  %v13166_v9 = vpack.c.bf16 %v5322_v38, %v5316_v35  ;;  %v4769_v2 = vand.u32 4286578688, %v13092_v22  ;;  %v1023_v1 = vcvt.s32.f32 %v831_v30  ;;  %v1024_v35 = vcvt.s32.f32 %v832_v15 }
 0x273   : > { %16905 = vst [vmem:[#allocation169_spill] sm:$0xff] %v13158_v56  ;;  %6482 = vmatpush1.bf16.xpose.msra.mxu0 %v5457_v52  ;;  %v1025_v12 = vcvt.s32.f32 %v833_v11  ;;  %vm2917_vm5 = vcmp.eq.f32.partialorder %v16910_v63, 0.0  ;;  %v13185_v22 = vsel %vm13138_vm3, 8388608, %v15984_v27  ;;  %v13190_v26 = vsel %vm13162_vm4, 8388608, %v15984_v27  ;;  %v16913_v52 = vld [vmem:[#allocation111_spill] sm:$0xff]  ;;  %v13199_v11 = vpop.f32.mrb[61].mxu0 }
 0x274   : > { %16908 = vst [vmem:[#allocation168_spill] sm:$0xff] %v13166_v9  ;;  %8240 = vmatprep.subr.bf16.mxu1 %v13166_v9  ;;  %v13180_v4 = vadd.s32 %v4769_v2, %v4577_v7  ;;  %v1026_v33 = vcvt.s32.f32 %v834_v31  ;;  %v1027_v5 = vcvt.s32.f32 %v835_v8  ;;  %v1028_v48 = vcvt.s32.f32 %v836_v13  ;;  %v1466_v7 = vld [vmem:[%s9587_s0 + $0x218] sm:$0xff]  ;;  %16914 = vst [vmem:[#allocation73_spill] sm:$0xff] %v13199_v11  ;;  %v13207_v13 = vpop.f32.mrb[61].mxu1 }
 0x275   : > { %8256 = vmatpush1.bf16.xpose.msra.mxu1 %v13158_v56  ;;  %v1627_v38 = vunpack.c.l.bf16 %v1465_v19  ;;  %v3109_v30 = vsel %vm2917_vm5, 1.0, %v16910_v63  ;;  %v13195_v15 = vsub.f32 %v1023_v1, %v1190_v49  ;;  %vm2919_vm6 = vcmp.eq.f32.partialorder %v16912_v20, 0.0  ;;  %16917 = vst [vmem:[#allocation111_spill] sm:$0xff] %v13207_v13  ;;  %v1469_v13 = vld [vmem:[%s9587_s0 + $0x230] sm:$0xff] }
 0x276   : > { %8973 = vrcp.f32 %v3109_v30  ;;  %vm2918_vm7 = vcmp.eq.f32.partialorder %v16913_v52, 0.0  ;;  %v13201_v37 = vsub.f32 %v1024_v35, %v1190_v49  ;;  %v13203_v2 = vsub.f32 %v1025_v12, %v1190_v49  ;;  %v16920_v12 = vld [vmem:[#allocation21_spill] sm:$0xff] }
 0x277   : > { %16911 = vst [vmem:[#allocation170_spill] sm:$0xff] %v13195_v15  ;;  %v3111_v31 = vsel %vm2919_vm6, 1.0, %v16912_v20  ;;  %v3110_v8 = vsel %vm2918_vm7, 1.0, %v16913_v52  ;;  %v1629_v1 = vunpack.c.l.bf16 %v1466_v7  ;;  %v1628_v30 = vunpack.c.h.bf16 %v1465_v19  ;;  %v16922_v19 = vld [vmem:[#allocation83_spill] sm:$0xff]  ;;  %v16939_v15 = vld [vmem:[#allocation121_spill] sm:$0xff] }
 0x278   : > { %16915 = vst [vmem:[#allocation102_spill] sm:$0xff] %v13201_v37  ;;  %16916 = vst [vmem:[#allocation13_spill] sm:$0xff] %v13203_v2  ;;  %8975 = vrcp.f32 %v3111_v31  ;;  %vm2920_vm8 = vcmp.eq.f32.partialorder %v16918_v28, 0.0  ;;  %v13211_v51 = vsub.f32 %v1026_v33, %v1190_v49  ;;  %vm2923_vm0 = vcmp.eq.f32.partialorder %v16920_v12, 0.0  ;;  %v16923_v31 = vld [vmem:[#allocation196_spill] sm:$0xff]  ;;  %v13220_v33 = vpop.f32.mrb[62].mxu0 }
 0x279   : > { %8977 = vrcp.f32 %v3110_v8  ;;  %v3112_v35 = vsel %vm2920_vm8, 1.0, %v16918_v28  ;;  %v2725_v56 = vadd.f32 %v16921_v47, %v1627_v38  ;;  %v1630_v9 = vunpack.c.h.bf16 %v1466_v7  ;;  %16924 = vst [vmem:[#allocation21_spill] sm:$0xff] %v13220_v33  ;;  %v13222_v8 = vpop.f32.mrb[62].mxu1  ;;  %v16928_v47 = vld [vmem:[#allocation57_spill] sm:$0xff]  ;;  %v16929_v7 = vld [vmem:[#allocation195_spill] sm:$0xff]  ;;  %v13230_v44 = vpop.f32.mrb[63].mxu0 }
 0x27a   : > { %16919 = vst [vmem:[#allocation15_spill] sm:$0xff] %v13211_v51  ;;  %8979 = vrcp.f32 %v3112_v35  ;;  %v3115_v11 = vsel %vm2923_vm0, 1.0, %v16920_v12  ;;  %v1633_v36 = vunpack.c.l.bf16 %v1468_v45  ;;  %vm2925_vm9 = vcmp.eq.f32.partialorder %v16922_v19, 0.0  ;;  %16925 = vst [vmem:[#allocation61_spill] sm:$0xff] %v13222_v8  ;;  %v13232_v42 = vpop.f32.mrb[63].mxu1  ;;  %v16932_v37 = vld [vmem:[#allocation41_spill] sm:$0xff] }
 0x27b   : > { %8981 = vrcp.f32 %v3115_v11  ;;  %vm2924_vm10 = vcmp.eq.f32.partialorder %v16923_v31, 0.0  ;;  %v13224_v0 = vsub.f32 %v1027_v5, %v1190_v49  ;;  %v13226_v53 = vsub.f32 %v1028_v48, %v1190_v49  ;;  %16930 = vst [vmem:[#allocation57_spill] sm:$0xff] %v13230_v44  ;;  %16931 = vst [vmem:[#allocation195_spill] sm:$0xff] %v13232_v42  ;;  %v16933_v33 = vld [vmem:[#allocation197_spill] sm:$0xff] }
 0x27c   : > { %v2727_v38 = vadd.f32 %v16928_v47, %v1629_v1  ;;  %v2726_v35 = vadd.f32 %v16929_v7, %v1628_v30  ;;  %v1635_v11 = vunpack.c.l.bf16 %v1469_v13  ;;  %v3117_v14 = vsel %vm2925_vm9, 1.0, %v16922_v19  ;;  %v13239_v1 = vpop.permute.xlu1 %3654  ;;  %v16935_v30 = vld [vmem:[#allocation84_spill] sm:$0xff] }
 0x27d   : > { %16926 = vst [vmem:[#allocation196_spill] sm:$0xff] %v13224_v0  ;;  %16927 = vst [vmem:[#allocation200_spill] sm:$0xff] %v13226_v53  ;;  %v1634_v51 = vunpack.c.h.bf16 %v1468_v45  ;;  %vm2926_vm11 = vcmp.eq.f32.partialorder %v16932_v37, 0.0  ;;  %v2728_v8 = vadd.f32 %v16933_v33, %v1630_v9  ;;  %v3116_v5 = vsel %vm2924_vm10, 1.0, %v16923_v31  ;;  %v13245_v45 = vpop.f32.mrb[64].mxu0 }
 0x27e   : > { %v1636_v49 = vunpack.c.h.bf16 %v1469_v13  ;;  %v843_v48 = vunpack.c.2.s8 %v13036_v41  ;;  %16934 = vst [vmem:[#allocation197_spill] sm:$0xff] %v13239_v1  ;;  %v2731_v47 = vadd.f32 %v16935_v30, %v1633_v36  ;;  %v3118_v7 = vsel %vm2926_vm11, 1.0, %v16932_v37  ;;  %16936 = vst [vmem:[#allocation84_spill] sm:$0xff] %v13245_v45  ;;  %v16938_v36 = vld [vmem:[#allocation100_spill] sm:$0xff] }
 0x27f   : > { %v844_v53 = vunpack.c.2.s8 %v13041_v29  ;;  %v845_v0 = vunpack.c.2.s8 %v13049_v59  ;;  %8983 = vrcp.f32 %v3117_v14  ;;  %v846_v9 = vunpack.c.2.s8 %v13052_v21  ;;  %v16940_v59 = vld [vmem:[#allocation28_spill] sm:$0xff] }
 0x280   : > { %v8974_v42 = vpop.eup %8973  ;;  %v847_v13 = vunpack.c.2.s8 %v13064_v58  ;;  %v16937_v33 = vand.u32 4286578688, %v12839_v60  ;;  %v2733_v30 = vadd.f32 %v16938_v36, %v1635_v11  ;;  %v2732_v41 = vadd.f32 %v16939_v15, %v1634_v51 }
 0x281   : > { %v3434_v2 = vmul.f32 %v8974_v42, %v2725_v56  ;;  %8985 = vrcp.f32 %v3116_v5  ;;  %v2734_v19 = vadd.f32 %v16940_v59, %v1636_v49  ;;  %v848_v14 = vunpack.c.2.s8 %v13071_v55 }
 0x282   : > { %v4942_v44 = vadd.s32 %v16937_v33, %v12940_v32  ;;  %v8976_v29 = vpop.eup %8975  ;;  %8987 = vrcp.f32 %v3118_v7  ;;  %v1035_v45 = vcvt.s32.f32 %v843_v48  ;;  %v1036_v37 = vcvt.s32.f32 %v844_v53  ;;  %v1200_v7 = vpop.permute.xlu1 %1199 }
 0x283   : > { %v8978_v21 = vpop.eup %8977  ;;  %v3813_v58 = vadd.f32 %v13016_v17, %v3434_v2  ;;  %v3438_v20 = vmul.f32 %v8976_v29, %v2727_v38  ;;  %v1037_v60 = vcvt.s32.f32 %v845_v0  ;;  %v1038_v56 = vcvt.s32.f32 %v846_v9 }
 0x284   : > { %v8980_v32 = vpop.eup %8979  ;;  %v3436_v42 = vmul.f32 %v8978_v21, %v2726_v35  ;;  %v1039_v11 = vcvt.s32.f32 %v847_v13  ;;  %v5326_v51 = vmul.f32 %v4942_v44, %v16780_v24  ;;  %v16941_v48 = vand.u32 4286578688, %v12895_v34 }
 0x285   : > { %v8982_v15 = vpop.eup %8981  ;;  %v4197_v5 = vand.u32 8388607, %v3813_v58  ;;  %v3815_v59 = vadd.f32 %v13016_v17, %v3438_v20  ;;  %v3440_v49 = vmul.f32 %v8980_v32, %v2728_v8  ;;  %v1040_v53 = vcvt.s32.f32 %v848_v14 }
 0x286   : > { %v4948_v33 = vadd.s32 %v16941_v48, %v12959_v40  ;;  %v13263_v29 = vadd.f32 %v13016_v17, %v3436_v42  ;;  %v3446_v0 = vmul.f32 %v8982_v15, %v2731_v47  ;;  %v13265_v21 = vsub.f32 %v1035_v45, %v1200_v7 }
 0x287   : > { %vm4389_vm12 = vcmp.ge.s32.totalorder %v4197_v5, 3474676  ;;  %v4199_v2 = vand.u32 8388607, %v3815_v59  ;;  %v13268_v24 = vadd.f32 %v13016_v17, %v3440_v49  ;;  %v13270_v44 = vsub.f32 %v1036_v37, %v1200_v7  ;;  %v13293_v5 = vpop.f32.mrb[65].mxu0  ;;  %v16980_v17 = vld [vmem:[#allocation120_spill] sm:$0xff] }
 0x288   : > { %v3819_v20 = vadd.f32 %v13055_v39, %v3446_v0  ;;  %v13273_v8 = vsub.f32 %v1037_v60, %v1200_v7  ;;  %v13275_v34 = vsub.f32 %v1038_v56, %v1200_v7  ;;  %v13277_v40 = vsub.f32 %v1039_v11, %v1200_v7  ;;  %16950 = vst [vmem:[#allocation203_spill] sm:$0xff] %v13293_v5 }
 0x289   : > { %16942 = vst [vmem:[#allocation100_spill] sm:$0xff] %v13270_v44  ;;  %v4581_v38 = vsel %vm4389_vm12, 8388608, %v15984_v27  ;;  %vm13280_vm13 = vcmp.ge.s32.totalorder %v4199_v2, 3474676  ;;  %v4198_v47 = vand.u32 8388607, %v13263_v29  ;;  %v5332_v45 = vmul.f32 %v4948_v33, %v12391_v62  ;;  %v8984_v37 = vpop.eup %8983 }
 0x28a   : > { %16943 = vst [vmem:[#allocation121_spill] sm:$0xff] %v13273_v8  ;;  %16944 = vst [vmem:[#allocation28_spill] sm:$0xff] %v13275_v34  ;;  %v4773_v9 = vand.u32 4286578688, %v3813_v58  ;;  %v4200_v13 = vand.u32 8388607, %v13268_v24  ;;  %v16948_v14 = vand.u32 4286578688, %v12856_v57  ;;  %v3450_v11 = vmul.f32 %v8984_v37, %v2733_v30 }
 0x28b   : > { %16945 = vst [vmem:[#allocation201_spill] sm:$0xff] %v13277_v40  ;;  %v4203_v36 = vand.u32 8388607, %v3819_v20  ;;  %v8986_v32 = vpop.eup %8985  ;;  %v4775_v42 = vand.u32 4286578688, %v3815_v59  ;;  %v13291_v15 = vsub.f32 %v1040_v53, %v1200_v7  ;;  %v4583_v58 = vsel %vm13280_vm13, 8388608, %v15984_v27  ;;  %v16954_v53 = vld [vmem:[#allocation151_spill] sm:$0xff] }
 0x28c   : > { %v4944_v60 = vadd.s32 %v16948_v14, %v12945_v18  ;;  %v8988_v49 = vpop.eup %8987  ;;  %v13295_v62 = vadd.s32 %v4773_v9, %v4581_v38  ;;  %v3448_v48 = vmul.f32 %v8986_v32, %v2732_v41  ;;  %vm4390_vm15 = vcmp.ge.s32.totalorder %v4198_v47, 3474676  ;;  %v16961_v32 = vld [vmem:[#allocation67_spill] sm:$0xff]  ;;  %v16992_v34 = vld [vmem:[#allocation78_spill] sm:$0xff] }
 0x28d   : > { %16949 = vst [vmem:[#allocation202_spill] sm:$0xff] %v13291_v15  ;;  %vm4395_vm14 = vcmp.ge.s32.totalorder %v4203_v36, 3474676  ;;  %v3821_v57 = vadd.f32 %v13055_v39, %v3450_v11  ;;  %v5464_v18 = vpack.c.bf16 %v5332_v45, %v5326_v51  ;;  %v16951_v30 = vand.u32 4286578688, %v12902_v54  ;;  %v16955_v54 = vld [vmem:[#allocation146_spill] sm:$0xff]  ;;  %v16959_v36 = vld [vmem:[#allocation92_spill] sm:$0xff] }
 0x28e   : > { %vm13304_vm1 = vcmp.ge.s32.totalorder %v4200_v13, 3474676  ;;  %v4587_v33 = vsel %vm4395_vm14, 8388608, %v15984_v27  ;;  %v3452_v0 = vmul.f32 %v8988_v49, %v2734_v19  ;;  %v5328_v2 = vmul.f32 %v4944_v60, %v16954_v53  ;;  %v16958_v13 = vld [vmem:[#allocation179_spill] sm:$0xff]  ;;  %v1471_v11 = vld [vmem:[%s9587_s0 + $0x240] sm:$0xff] }
 0x28f   : > { %v4950_v59 = vadd.s32 %v16951_v30, %v12964_v6  ;;  %v4205_v38 = vand.u32 8388607, %v3821_v57  ;;  %v13311_v41 = vadd.f32 %v13055_v39, %v3448_v48  ;;  %6483 = vmatprep.subr.bf16.mxu0 %v5464_v18  ;;  %v16956_v6 = vld [vmem:[#allocation167_spill] sm:$0xff]  ;;  %v13316_v47 = vadd.s32 %v4775_v42, %v4583_v58  ;;  %v16963_v48 = vld [vmem:[#allocation93_spill] sm:$0xff]  ;;  %v13375_v19 = vld [vmem:[%s9587_s0 + $0x260] sm:$0xff] }
 0x290   : > { %v5325_v35 = vmul.f32 %v16956_v6, %v16955_v54  ;;  %v13319_v45 = vsel %vm4390_vm15, 8388608, %v15984_v27  ;;  %v4779_v37 = vand.u32 4286578688, %v3819_v20  ;;  %v5331_v14 = vmul.f32 %v16959_v36, %v16958_v13  ;;  %v16960_v60 = vld [vmem:[#allocation163_spill] sm:$0xff]  ;;  %v16962_v20 = vld [vmem:[#allocation81_spill] sm:$0xff]  ;;  %v16979_v15 = vld [vmem:[#allocation32_spill] sm:$0xff] }
 0x291   : > { %v5334_v51 = vmul.f32 %v4950_v59, %v12408_v25  ;;  %vm4397_vm2 = vcmp.ge.s32.totalorder %v4205_v38, 3474676  ;;  %v5327_v25 = vmul.f32 %v16961_v32, %v16960_v60  ;;  %v13332_v42 = vsel %vm13304_vm1, 8388608, %v15984_v27  ;;  %v13342_v30 = vld [vmem:[%s9587_s0 + $0x248] sm:$0xff]  ;;  %v13356_v13 = vld [vmem:[%s9587_s0 + $0x258] sm:$0xff] }
 0x292   : > { %v13334_v49 = vadd.s32 %v4779_v37, %v4587_v33  ;;  %v13337_v58 = vadd.f32 %v13055_v39, %v3452_v0  ;;  %v5333_v18 = vmul.f32 %v16963_v48, %v16962_v20  ;;  %v4781_v59 = vand.u32 4286578688, %v3821_v57  ;;  %v16966_v57 = vld [vmem:[#allocation144_spill] sm:$0xff]  ;;  %v17004_v48 = vld [vmem:[#allocation107_spill] sm:$0xff] }
 0x293   : > { %v13322_v9 = vpack.c.bf16 %v5334_v51, %v5328_v2  ;;  %v4204_v53 = vand.u32 8388607, %v13311_v41  ;;  %v5463_v7 = vpack.c.bf16 %v5331_v14, %v5325_v35  ;;  %v4589_v33 = vsel %vm4397_vm2, 8388608, %v15984_v27  ;;  %v16965_v51 = vld [vmem:[#allocation148_spill] sm:$0xff]  ;;  %v13358_v35 = vpop.f32.mrb[66].mxu0 }
 0x294   : > { %v13348_v38 = vpack.c.bf16 %v5333_v18, %v5327_v25  ;;  %v1639_v0 = vunpack.c.l.bf16 %v1471_v11  ;;  %vm2929_vm3 = vcmp.eq.f32.partialorder %v16965_v51, 0.0  ;;  %v1641_v6 = vunpack.c.l.bf16 %v13342_v30  ;;  %v16967_v37 = vld [vmem:[#allocation52_spill] sm:$0xff]  ;;  %16968 = vst [vmem:[#allocation167_spill] sm:$0xff] %v13358_v35  ;;  %v16971_v18 = vld [vmem:[#allocation47_spill] sm:$0xff] }
 0x295   : > { %16957 = vst [vmem:[#allocation151_spill] sm:$0xff] %v13322_v9  ;;  %8241 = vmatprep.subr.bf16.mxu1 %v13322_v9  ;;  %6484 = vmatpush1.bf16.xpose.msra.mxu0 %v5463_v7  ;;  %v3121_v54 = vsel %vm2929_vm3, 1.0, %v16965_v51  ;;  %vm2931_vm4 = vcmp.eq.f32.partialorder %v16966_v57, 0.0  ;;  %vm2930_vm5 = vcmp.eq.f32.partialorder %v16967_v37, 0.0  ;;  %v4206_v36 = vand.u32 8388607, %v13337_v58 }
 0x296   : > { %16964 = vst [vmem:[#allocation146_spill] sm:$0xff] %v13348_v38  ;;  %8257 = vmatpush1.bf16.xpose.msra.mxu1 %v13348_v38  ;;  %8989 = vrcp.f32 %v3121_v54  ;;  %v3123_v14 = vsel %vm2931_vm4, 1.0, %v16966_v57  ;;  %v1640_v60 = vunpack.c.h.bf16 %v1471_v11  ;;  %v13363_v32 = vadd.s32 %v4781_v59, %v4589_v33  ;;  %v16972_v54 = vld [vmem:[#allocation38_spill] sm:$0xff]  ;;  %v13377_v11 = vpop.f32.mrb[67].mxu0  ;;  %v16974_v59 = vld [vmem:[#allocation27_spill] sm:$0xff] }
 0x297   : > { %8991 = vrcp.f32 %v3123_v14  ;;  %v3122_v20 = vsel %vm2930_vm5, 1.0, %v16967_v37  ;;  %vm13367_vm6 = vcmp.ge.s32.totalorder %v4204_v53, 3474676  ;;  %vm2932_vm7 = vcmp.eq.f32.partialorder %v16971_v18, 0.0  ;;  %16973 = vst [vmem:[#allocation179_spill] sm:$0xff] %v13377_v11  ;;  %v16975_v14 = vld [vmem:[#allocation180_spill] sm:$0xff] }
 0x298   : > { %8993 = vrcp.f32 %v3122_v20  ;;  %v1645_v7 = vunpack.c.l.bf16 %v13356_v13  ;;  %vm2935_vm8 = vcmp.eq.f32.partialorder %v16972_v54, 0.0  ;;  %v2737_v33 = vadd.f32 %v16974_v59, %v1639_v0  ;;  %v13383_v56 = vpop.f32.mrb[68].mxu0  ;;  %v16981_v59 = vld [vmem:[#allocation25_spill] sm:$0xff]  ;;  %v13414_v11 = vld [vmem:[%s9587_s0 + $0x270] sm:$0xff]  ;;  %v16991_v35 = vld [vmem:[#allocation119_spill] sm:$0xff] }
 0x299   : > { %v2739_v25 = vadd.f32 %v16975_v14, %v1641_v6  ;;  %v3124_v53 = vsel %vm2932_vm7, 1.0, %v16971_v18  ;;  %v3127_v2 = vsel %vm2935_vm8, 1.0, %v16972_v54  ;;  %16976 = vst [vmem:[#allocation92_spill] sm:$0xff] %v13383_v56  ;;  %vm13385_vm0 = vcmp.ge.s32.totalorder %v4206_v36, 3474676  ;;  %v16982_v14 = vld [vmem:[#allocation159_spill] sm:$0xff] }
 0x29a   : > { %v2738_v40 = vadd.f32 %v16979_v15, %v1640_v60  ;;  %v1642_v39 = vunpack.c.h.bf16 %v13342_v30  ;;  %8995 = vrcp.f32 %v3124_v53  ;;  %vm2937_vm9 = vcmp.eq.f32.partialorder %v16980_v17, 0.0  ;;  %v16983_v30 = vld [vmem:[#allocation65_spill] sm:$0xff] }
 0x29b   : > { %8997 = vrcp.f32 %v3127_v2  ;;  %v1647_v0 = vunpack.c.l.bf16 %v13375_v19  ;;  %v3129_v6 = vsel %vm2937_vm9, 1.0, %v16980_v17  ;;  %vm2936_vm10 = vcmp.eq.f32.partialorder %v16981_v59, 0.0 }
 0x29c   : > { %v2743_v36 = vadd.f32 %v16982_v14, %v1645_v7  ;;  %8999 = vrcp.f32 %v3129_v6  ;;  %v1646_v38 = vunpack.c.h.bf16 %v13356_v13  ;;  %v3128_v15 = vsel %vm2936_vm10, 1.0, %v16981_v59 }
 0x29d   : > { %9001 = vrcp.f32 %v3128_v15  ;;  %vm2938_vm11 = vcmp.eq.f32.partialorder %v16983_v30, 0.0  ;;  %v16984_v2 = vand.u32 4286578688, %v13031_v43  ;;  %v16985_v53 = vand.u32 4286578688, %v13098_v23 }
 0x29e   : > { %v1648_v56 = vunpack.c.h.bf16 %v13375_v19  ;;  %v3130_v7 = vsel %vm2938_vm11, 1.0, %v16983_v30  ;;  %v16986_v13 = vand.u32 4286578688, %v13046_v10  ;;  %v16987_v14 = vand.u32 4286578688, %v13109_v61  ;;  %v16994_v61 = vld [vmem:[#allocation198_spill] sm:$0xff] }
 0x29f   : > { %v4954_v60 = vadd.s32 %v16984_v2, %v13088_v46  ;;  %v4960_v9 = vadd.s32 %v16985_v53, %v13185_v22  ;;  %9003 = vrcp.f32 %v3130_v7  ;;  %v16988_v46 = vld [vmem:[#allocation82_spill] sm:$0xff]  ;;  %v16989_v2 = vld [vmem:[#allocation124_spill] sm:$0xff]  ;;  %vm2943_vm13 = vcmp.eq.f32.partialorder %v17004_v48, 0.0 }
 0x2a0   : > { %v4956_v6 = vadd.s32 %v16986_v13, %v13105_v16  ;;  %v4962_v15 = vadd.s32 %v16987_v14, %v13190_v26  ;;  %v16990_v22 = vld [vmem:[#allocation74_spill] sm:$0xff]  ;;  %v8990_v53 = vpop.eup %8989  ;;  %v16995_v26 = vld [vmem:[#allocation161_spill] sm:$0xff] }
 0x2a1   : > { %v5338_v43 = vmul.f32 %v4954_v60, %v16988_v46  ;;  %v5344_v23 = vmul.f32 %v4960_v9, %v16989_v2  ;;  %v5337_v19 = vmul.f32 %v13076_v50, %v16990_v22  ;;  %v16993_v16 = vld [vmem:[#allocation174_spill] sm:$0xff]  ;;  %v5339_v14 = vmul.f32 %v16995_v26, %v16994_v61  ;;  %v8992_v44 = vpop.eup %8991  ;;  %v16996_v60 = vld [vmem:[#allocation183_spill] sm:$0xff] }
 0x2a2   : > { %v5340_v5 = vmul.f32 %v4956_v6, %v16991_v35  ;;  %v5346_v10 = vmul.f32 %v4962_v15, %v16992_v34  ;;  %v5343_v13 = vmul.f32 %v13172_v3, %v16993_v16  ;;  %v3458_v7 = vmul.f32 %v8990_v53, %v2737_v33  ;;  %v8994_v50 = vpop.eup %8993  ;;  %v13429_v35 = vpop.permute.xlu0 %3650  ;;  %v16999_v3 = vld [vmem:[#allocation140_spill] sm:$0xff]  ;;  %v17000_v15 = vld [vmem:[#allocation138_spill] sm:$0xff] }
 0x2a3   : > { %v5470_v8 = vpack.c.bf16 %v5344_v23, %v5338_v43  ;;  %v5345_v9 = vmul.f32 %v13180_v4, %v16996_v60  ;;  %v1651_v46 = vunpack.c.l.bf16 %v13414_v11  ;;  %v3462_v2 = vmul.f32 %v8992_v44, %v2739_v25  ;;  %16997 = vst [vmem:[#allocation163_spill] sm:$0xff] %v13429_v35  ;;  %v17001_v4 = vld [vmem:[#allocation71_spill] sm:$0xff]  ;;  %v17003_v53 = vld [vmem:[#allocation118_spill] sm:$0xff]  ;;  %v13448_v16 = vpop.f32.mrb[69].mxu0 }
 0x2a4   : > { %v13431_v34 = vpack.c.bf16 %v5346_v10, %v5340_v5  ;;  %v5469_v6 = vpack.c.bf16 %v5343_v13, %v5337_v19  ;;  %vm2941_vm12 = vcmp.eq.f32.partialorder %v16999_v3, 0.0  ;;  %v13437_v33 = vsel %vm13367_vm6, 8388608, %v15984_v27  ;;  %v8996_v44 = vpop.eup %8995  ;;  %v1478_v10 = vld [vmem:[%s9587_s0 + $0x278] sm:$0xff]  ;;  %17005 = vst [vmem:[#allocation93_spill] sm:$0xff] %v13448_v16 }
 0x2a5   : > { %v2740_v43 = vadd.f32 %v17000_v15, %v1642_v39  ;;  %v2745_v23 = vadd.f32 %v17001_v4, %v1647_v0  ;;  %6485 = vmatprep.subr.bf16.mxu0 %v5470_v8  ;;  %v13441_v22 = vpack.c.bf16 %v5345_v9, %v5339_v14  ;;  %v3460_v25 = vmul.f32 %v8994_v50, %v2738_v40  ;;  %v8998_v39 = vpop.eup %8997  ;;  %v17007_v14 = vld [vmem:[#allocation34_spill] sm:$0xff] }
 0x2a6   : > { %16998 = vst [vmem:[#allocation67_spill] sm:$0xff] %v13431_v34  ;;  %v2744_v5 = vadd.f32 %v17003_v53, %v1646_v38  ;;  %8242 = vmatprep.subr.bf16.mxu1 %v13431_v34  ;;  %6486 = vmatpush1.bf16.xpose.msra.mxu0 %v5469_v6  ;;  %v3133_v19 = vsel %vm2941_vm12, 1.0, %v16999_v3  ;;  %v13453_v8 = vsel %vm13385_vm0, 8388608, %v15984_v27  ;;  %v13456_v40 = vadd.f32 %v13429_v35, %v3458_v7  ;;  %v17006_v38 = vld [vmem:[#allocation133_spill] sm:$0xff]  ;;  %v9000_v13 = vpop.eup %8999  ;;  %v13465_v7 = vpop.f32.mrb[70].mxu0  ;;  %v17009_v53 = vld [vmem:[#allocation31_spill] sm:$0xff] }
 0x2a7   : > { %17002 = vst [vmem:[#allocation81_spill] sm:$0xff] %v13441_v22  ;;  %v2746_v0 = vadd.f32 %v17006_v38, %v1648_v56  ;;  %8258 = vmatpush1.bf16.xpose.msra.mxu1 %v13441_v22  ;;  %9005 = vrcp.f32 %v3133_v19  ;;  %v3470_v61 = vmul.f32 %v8998_v39, %v2743_v36  ;;  %v13461_v26 = vadd.f32 %v13429_v35, %v3462_v2  ;;  %v9002_v20 = vpop.eup %9001 }
 0x2a8   : > { %v2749_v60 = vadd.f32 %v17007_v14, %v1651_v46  ;;  %v3135_v9 = vsel %vm2943_vm13, 1.0, %v17004_v48  ;;  %v3464_v50 = vmul.f32 %v8996_v44, %v2740_v43  ;;  %v3474_v6 = vmul.f32 %v9000_v13, %v2745_v23  ;;  %17008 = vst [vmem:[#allocation148_spill] sm:$0xff] %v13465_v7  ;;  %v13476_v44 = vpop.f32.mrb[71].mxu0  ;;  %v1481_v7 = vld [vmem:[%s9587_s0 + $0x290] sm:$0xff] }
 0x2a9   : > { %v1653_v15 = vunpack.c.l.bf16 %v1478_v10  ;;  %9007 = vrcp.f32 %v3135_v9  ;;  %v3831_v56 = vadd.f32 %v13239_v1, %v3470_v61  ;;  %v13469_v4 = vadd.f32 %v13429_v35, %v3460_v25  ;;  %v9004_v2 = vpop.eup %9003  ;;  %17010 = vst [vmem:[#allocation144_spill] sm:$0xff] %v13476_v44  ;;  %v13483_v9 = vpop.f32.mrb[72].mxu0 }
 0x2aa   : > { %v3472_v36 = vmul.f32 %v9002_v20, %v2744_v5  ;;  %vm2942_vm14 = vcmp.eq.f32.partialorder %v17009_v53, 0.0  ;;  %v3833_v46 = vadd.f32 %v13239_v1, %v3474_v6  ;;  %v1652_v43 = vunpack.c.h.bf16 %v13414_v11  ;;  %v17011_v5 = vld [vmem:[#allocation75_spill] sm:$0xff]  ;;  %17012 = vst [vmem:[#allocation52_spill] sm:$0xff] %v13483_v9  ;;  %v17013_v6 = vld [vmem:[#allocation72_spill] sm:$0xff]  ;;  %v13506_v9 = vpop.permute.xlu1 %3658 }
 0x2ab   : > { %v3134_v23 = vsel %vm2942_vm14, 1.0, %v17009_v53  ;;  %v4215_v39 = vand.u32 8388607, %v3831_v56  ;;  %v3476_v25 = vmul.f32 %v9004_v2, %v2746_v0  ;;  %vm2944_vm15 = vcmp.eq.f32.partialorder %v17011_v5, 0.0  ;;  %v17014_v2 = vld [vmem:[#allocation33_spill] sm:$0xff]  ;;  %17019 = vst [vmem:[#allocation47_spill] sm:$0xff] %v13506_v9 }
 0x2ac   : > { %v13479_v38 = vadd.f32 %v13239_v1, %v3472_v36  ;;  %v4217_v13 = vand.u32 8388607, %v3833_v46  ;;  %9009 = vrcp.f32 %v3134_v23  ;;  %v1654_v14 = vunpack.c.h.bf16 %v1478_v10  ;;  %v1480_v23 = vld [vmem:[%s9587_s0 + $0x288] sm:$0xff] }
 0x2ad   : > { %vm4407_vm1 = vcmp.ge.s32.totalorder %v4215_v39, 3474676  ;;  %v13487_v20 = vadd.f32 %v13239_v1, %v3476_v25  ;;  %v2751_v36 = vadd.f32 %v17013_v6, %v1653_v15  ;;  %v13491_v0 = vadd.f32 %v13429_v35, %v3464_v50  ;;  %v17018_v35 = vld [vmem:[#allocation89_spill] sm:$0xff] }
 0x2ae   : > { %v4216_v11 = vand.u32 8388607, %v13479_v38  ;;  %vm4409_vm2 = vcmp.ge.s32.totalorder %v4217_v13, 3474676  ;;  %v2750_v19 = vadd.f32 %v17014_v2, %v1652_v43  ;;  %v3136_v61 = vsel %vm2944_vm15, 1.0, %v17011_v5  ;;  %v17015_v13 = vld [vmem:[#allocation154_spill] sm:$0xff] }
 0x2af   : > { %v4599_v10 = vsel %vm4407_vm1, 8388608, %v15984_v27  ;;  %v4791_v22 = vand.u32 4286578688, %v3831_v56  ;;  %v4601_v39 = vsel %vm4409_vm2, 8388608, %v15984_v27  ;;  %v4793_v34 = vand.u32 4286578688, %v3833_v46 }
 0x2b0   : > { %v4218_v15 = vand.u32 8388607, %v13487_v20  ;;  %v2752_v50 = vadd.f32 %v17015_v13, %v1654_v14  ;;  %9011 = vrcp.f32 %v3136_v61  ;;  %vm13501_vm3 = vcmp.ge.s32.totalorder %v4216_v11, 3474676  ;;  %v17020_v14 = vld [vmem:[#allocation175_spill] sm:$0xff] }
 0x2b1   : > { %v9006_v25 = vpop.eup %9005  ;;  %v1657_v2 = vunpack.c.l.bf16 %v1480_v23  ;;  %vm2947_vm4 = vcmp.eq.f32.partialorder %v17018_v35, 0.0  ;;  %v13508_v46 = vadd.s32 %v4791_v22, %v4599_v10  ;;  %v13510_v44 = vadd.s32 %v4793_v34, %v4601_v39  ;;  %v17024_v10 = vld [vmem:[#allocation88_spill] sm:$0xff] }
 0x2b2   : > { %v3482_v6 = vmul.f32 %v9006_v25, %v2749_v60  ;;  %v3139_v1 = vsel %vm2947_vm4, 1.0, %v17018_v35  ;;  %vm2949_vm5 = vcmp.eq.f32.partialorder %v17020_v14, 0.0  ;;  %v13517_v25 = vpop.f32.mrb[73].mxu0  ;;  %v13522_v22 = vsel %vm13501_vm3, 8388608, %v15984_v27  ;;  %v8583_v34 = vld [vmem:[#allocation3 + $0x4] ss:$24 sps:$4 sm:$0xff]  }
 0x2b3   : > { %v9008_v56 = vpop.eup %9007  ;;  %9013 = vrcp.f32 %v3139_v1  ;;  %v3141_v60 = vsel %vm2949_vm5, 1.0, %v17020_v14  ;;  %17021 = vst [vmem:[#allocation38_spill] sm:$0xff] %v13517_v25  ;;  %vm13524_vm6 = vcmp.ge.s32.totalorder %v4218_v15, 3474676  ;;  %vm2948_vm7 = vcmp.eq.f32.partialorder %v17024_v10, 0.0  ;;  %v17026_v15 = vld [vmem:[#allocation114_spill] sm:$0xff]  ;;  %6497 = vmatprep.mubr.bf16.mxu0 %v8583_v34  ;;  %v13584_v34 = vpop.permute.xlu1 %3662 }
 0x2b4   : > { %v3837_v61 = vadd.f32 %v13506_v9, %v3482_v6  ;;  %v3486_v11 = vmul.f32 %v9008_v56, %v2751_v36  ;;  %9015 = vrcp.f32 %v3141_v60  ;;  %v1659_v1 = vunpack.c.l.bf16 %v1481_v7  ;;  %v13531_v6 = vpop.f32.mrb[74].mxu0  ;;  %v17027_v60 = vld [vmem:[#allocation135_spill] sm:$0xff]  ;;  %17040 = vst [vmem:[#allocation120_spill] sm:$0xff] %v13584_v34 }
 0x2b5   : > { %v3140_v13 = vsel %vm2948_vm7, 1.0, %v17024_v10  ;;  %17025 = vst [vmem:[#allocation27_spill] sm:$0xff] %v13531_v6  ;;  %v1658_v25 = vunpack.c.h.bf16 %v1480_v23  ;;  %vm2950_vm8 = vcmp.eq.f32.partialorder %v17026_v15, 0.0  ;;  %v2755_v14 = vadd.f32 %v17027_v60, %v1657_v2  ;;  %v13536_v35 = vpop.f32.mrb[75].mxu0 }
 0x2b6   : > { %v4221_v39 = vand.u32 8388607, %v3837_v61  ;;  %v3839_v36 = vadd.f32 %v13506_v9, %v3486_v11  ;;  %v9010_v56 = vpop.eup %9009  ;;  %9017 = vrcp.f32 %v3140_v13  ;;  %v1660_v48 = vunpack.c.h.bf16 %v1481_v7  ;;  %17028 = vst [vmem:[#allocation180_spill] sm:$0xff] %v13536_v35 }
 0x2b7   : > { %v3484_v5 = vmul.f32 %v9010_v56, %v2750_v19  ;;  %v13541_v11 = vsel %vm13524_vm6, 8388608, %v15984_v27  ;;  %v3142_v6 = vsel %vm2950_vm8, 1.0, %v17026_v15  ;;  %v17029_v23 = vand.u32 4286578688, %v13263_v29  ;;  %v17032_v19 = vld [vmem:[#allocation137_spill] sm:$0xff] }
 0x2b8   : > { %v4223_v16 = vand.u32 8388607, %v3839_v36  ;;  %vm4413_vm0 = vcmp.ge.s32.totalorder %v4221_v39, 3474676  ;;  %v2757_v2 = vadd.f32 %v17032_v19, %v1659_v1  ;;  %9019 = vrcp.f32 %v3142_v6  ;;  %v17033_v39 = vld [vmem:[#allocation145_spill] sm:$0xff]  ;;  %v17036_v1 = vld [vmem:[#allocation48_spill] sm:$0xff] }
 0x2b9   : > { %v4966_v13 = vadd.s32 %v17029_v23, %v13319_v45  ;;  %v13552_v7 = vadd.f32 %v13506_v9, %v3484_v5  ;;  %v4797_v60 = vand.u32 4286578688, %v3837_v61  ;;  %v2756_v35 = vadd.f32 %v17033_v39, %v1658_v25  ;;  %v8586_v23 = vld [vmem:[#allocation3 + $0xcc] ss:$24 sps:$4 sm:$0xff]   ;;  %v13564_v19 = vpop.f32.mrb[76].mxu0 }
 0x2ba   : > { %vm13547_vm9 = vcmp.ge.s32.totalorder %v4223_v16, 3474676  ;;  %v9012_v56 = vpop.eup %9011  ;;  %v17034_v15 = vand.u32 4286578688, %v13311_v41  ;;  %v17035_v45 = vand.u32 4286578688, %v13268_v24  ;;  %v4605_v5 = vsel %vm4413_vm0, 8388608, %v15984_v27  ;;  %17037 = vst [vmem:[#allocation32_spill] sm:$0xff] %v13564_v19  ;;  %6810 = vmatprep.mubr.bf16.mxu1 %v8586_v23 }
 0x2bb   : > { %v4799_v3 = vand.u32 4286578688, %v3839_v36  ;;  %v3488_v10 = vmul.f32 %v9012_v56, %v2752_v50  ;;  %v2758_v6 = vadd.f32 %v17036_v1, %v1660_v48  ;;  %v4607_v61 = vsel %vm13547_vm9, 8388608, %v15984_v27 }
 0x2bc   : > { %v4972_v29 = vadd.s32 %v17034_v15, %v13437_v33  ;;  %v4968_v16 = vadd.s32 %v17035_v45, %v13332_v42  ;;  %v5350_v41 = vmul.f32 %v4966_v13, %v16913_v52  ;;  %v17038_v24 = vand.u32 4286578688, %v13337_v58  ;;  %v17039_v58 = vld [vmem:[#allocation41_spill] sm:$0xff] }
 0x2bd   : > { %v9014_v25 = vpop.eup %9013  ;;  %v4222_v50 = vand.u32 8388607, %v13552_v7  ;;  %v13576_v48 = vadd.f32 %v13506_v9, %v3488_v10  ;;  %v5349_v36 = vmul.f32 %v13295_v62, %v16910_v63  ;;  %v5355_v43 = vmul.f32 %v13334_v49, %v16920_v12  ;;  %v17042_v62 = vld [vmem:[#allocation134_spill] sm:$0xff]  ;;  %v1486_v9 = vld [vmem:[%s9587_s0 + $0x2b8] sm:$0xff] }
 0x2be   : > { %v5356_v33 = vmul.f32 %v4972_v29, %v16923_v31  ;;  %v4974_v42 = vadd.s32 %v17038_v24, %v13453_v8  ;;  %v9016_v52 = vpop.eup %9015  ;;  %v3494_v15 = vmul.f32 %v9014_v25, %v2755_v14  ;;  %v5352_v13 = vmul.f32 %v4968_v16, %v16918_v28  ;;  %v17043_v28 = vld [vmem:[#allocation83_spill] sm:$0xff]  ;;  %v17052_v25 = vld [vmem:[#allocation192_spill] sm:$0xff] }
 0x2bf   : > { %v13586_v56 = vadd.s32 %v4797_v60, %v4605_v5  ;;  %v4224_v10 = vand.u32 8388607, %v13576_v48  ;;  %v3498_v39 = vmul.f32 %v9016_v52, %v2757_v2  ;;  %v5475_v29 = vpack.c.bf16 %v5355_v43, %v5349_v36  ;;  %v13600_v5 = vpop.f32.mrb[77].mxu0 }
 0x2c0   : > { %v5476_v31 = vpack.c.bf16 %v5356_v33, %v5350_v41  ;;  %v5358_v8 = vmul.f32 %v4974_v42, %v17039_v58  ;;  %v9018_v45 = vpop.eup %9017  ;;  %v3843_v63 = vadd.f32 %v13584_v34, %v3494_v15  ;;  %v5351_v49 = vmul.f32 %v13316_v47, %v17042_v62  ;;  %17044 = vst [vmem:[#allocation159_spill] sm:$0xff] %v13600_v5  ;;  %v17054_v58 = vld [vmem:[#allocation22_spill] sm:$0xff] }
 0x2c1   : > { %v5357_v14 = vmul.f32 %v13363_v32, %v17043_v28  ;;  %v13596_v16 = vadd.s32 %v4799_v3, %v4607_v61  ;;  %v3845_v23 = vadd.f32 %v13584_v34, %v3498_v39  ;;  %v3496_v2 = vmul.f32 %v9018_v45, %v2756_v35  ;;  %v17048_v32 = vld [vmem:[#allocation64_spill] sm:$0xff]  ;;  %v13610_v61 = vpop.f32.mrb[78].mxu0 }
 0x2c2   : > { %6487 = vmatprep.subr.bf16.mxu0 %v5476_v31  ;;  %v13590_v12 = vpack.c.bf16 %v5358_v8, %v5352_v13  ;;  %vm13602_vm10 = vcmp.ge.s32.totalorder %v4222_v50, 3474676  ;;  %v4227_v41 = vand.u32 8388607, %v3843_v63  ;;  %v849_v3 = vunpack.c.3.s8 %v17048_v32  ;;  %17049 = vst [vmem:[#allocation82_spill] sm:$0xff] %v13610_v61  ;;  %v9020_v33 = vpop.eup %9019  ;;  %v17053_v31 = vld [vmem:[#allocation158_spill] sm:$0xff]  ;;  %v13645_v32 = vpop.permute.xlu0 %1204 }
 0x2c3   : > { %6488 = vmatpush1.bf16.xpose.msra.mxu0 %v5475_v29  ;;  %v13607_v47 = vpack.c.bf16 %v5357_v14, %v5351_v49  ;;  %vm13612_vm11 = vcmp.ge.s32.totalorder %v4224_v10, 3474676  ;;  %v4229_v35 = vand.u32 8388607, %v3845_v23  ;;  %v13617_v42 = vadd.f32 %v13584_v34, %v3496_v2  ;;  %v17055_v45 = vld [vmem:[#allocation20_spill] sm:$0xff]  ;;  %v17059_v2 = vld [vmem:[#allocation13_spill] sm:$0xff] }
 0x2c4   : > { %17041 = vst [vmem:[#allocation25_spill] sm:$0xff] %v13590_v12  ;;  %8243 = vmatprep.subr.bf16.mxu1 %v13590_v12  ;;  %v850_v50 = vunpack.c.3.s8 %v17052_v25  ;;  %vm4419_vm12 = vcmp.ge.s32.totalorder %v4227_v41, 3474676  ;;  %v4803_v36 = vand.u32 4286578688, %v3843_v63  ;;  %v4805_v43 = vand.u32 4286578688, %v3845_v23  ;;  %v1484_v25 = vld [vmem:[%s9587_s0 + $0x2a8] sm:$0xff] }
 0x2c5   : > { %17047 = vst [vmem:[#allocation65_spill] sm:$0xff] %v13607_v47  ;;  %v3500_v52 = vmul.f32 %v9020_v33, %v2758_v6  ;;  %8259 = vmatpush1.bf16.xpose.msra.mxu1 %v13607_v47  ;;  %vm4421_vm13 = vcmp.ge.s32.totalorder %v4229_v35, 3474676  ;;  %v4228_v15 = vand.u32 8388607, %v13617_v42  ;;  %v851_v13 = vunpack.c.3.s8 %v17053_v31  ;;  %v13630_v6 = vpop.f32.mrb[79].mxu0 }
 0x2c6   : > { %v852_v8 = vunpack.c.3.s8 %v17054_v58  ;;  %v4611_v10 = vsel %vm4419_vm12, 8388608, %v15984_v27  ;;  %v4613_v39 = vsel %vm4421_vm13, 8388608, %v15984_v27  ;;  %v853_v63 = vunpack.c.3.s8 %v17055_v45  ;;  %17056 = vst [vmem:[#allocation124_spill] sm:$0xff] %v13630_v6  ;;  %v1483_v35 = vld [vmem:[%s9587_s0 + $0x2a0] sm:$0xff]  ;;  %v13657_v24 = vpop.f32.mrb[80].mxu0  ;;  %v17065_v12 = vld [vmem:[#allocation86_spill] sm:$0xff] }
 0x2c7   : > { %v13627_v29 = vadd.f32 %v13584_v34, %v3500_v52  ;;  %vm4420_vm14 = vcmp.ge.s32.totalorder %v4228_v15, 3474676  ;;  %v854_v62 = vunpack.c.3.s8 %v13071_v55  ;;  %v1041_v49 = vcvt.s32.f32 %v849_v3  ;;  %17057 = vst [vmem:[#allocation74_spill] sm:$0xff] %v13657_v24  ;;  %v17063_v34 = vld [vmem:[#allocation15_spill] sm:$0xff]  ;;  %v17067_v24 = vld [vmem:[#allocation184_spill] sm:$0xff]  ;;  %v17068_v61 = vld [vmem:[#allocation185_spill] sm:$0xff] }
 0x2c8   : > { %v1042_v28 = vcvt.s32.f32 %v850_v50  ;;  %v13636_v14 = vsel %vm13602_vm10, 8388608, %v15984_v27  ;;  %v13641_v23 = vsel %vm13612_vm11, 8388608, %v15984_v27  ;;  %v13647_v33 = vadd.s32 %v4803_v36, %v4611_v10 }
 0x2c9   : > { %v4230_v41 = vand.u32 8388607, %v13627_v29  ;;  %v13649_v55 = vadd.s32 %v4805_v43, %v4613_v39  ;;  %v13652_v3 = vsel %vm4420_vm14, 8388608, %v15984_v27  ;;  %v1043_v52 = vcvt.s32.f32 %v851_v13  ;;  %v17058_v39 = vld [vmem:[#allocation170_spill] sm:$0xff] }
 0x2ca   : > { %v1044_v15 = vcvt.s32.f32 %v852_v8  ;;  %v1045_v31 = vcvt.s32.f32 %v853_v63  ;;  %v13660_v58 = vcvt.s32.f32 %v854_v62  ;;  %v13663_v36 = vsub.f32 %v1041_v49, %v13645_v32  ;;  %v17060_v62 = vld [vmem:[#allocation102_spill] sm:$0xff] }
 0x2cb   : > { %vm4422_vm15 = vcmp.ge.s32.totalorder %v4230_v41, 3474676  ;;  %v13666_v43 = vsub.f32 %v1042_v28, %v13645_v32  ;;  %v1663_v10 = vunpack.c.l.bf16 %v1483_v35  ;;  %vm2953_vm1 = vcmp.eq.f32.partialorder %v17058_v39, 0.0  ;;  %v13673_v41 = vpop.f32.mrb[81].mxu0 }
 0x2cc   : > { %v1665_v45 = vunpack.c.l.bf16 %v1484_v25  ;;  %vm2955_vm2 = vcmp.eq.f32.partialorder %v17059_v2, 0.0  ;;  %v3145_v13 = vsel %vm2953_vm1, 1.0, %v17058_v39  ;;  %v1664_v63 = vunpack.c.h.bf16 %v1483_v35  ;;  %17061 = vst [vmem:[#allocation119_spill] sm:$0xff] %v13673_v41  ;;  %v13690_v47 = vpop.f32.mrb[82].mxu0 }
 0x2cd   : > { %v3147_v8 = vsel %vm2955_vm2, 1.0, %v17059_v2  ;;  %vm2954_vm3 = vcmp.eq.f32.partialorder %v17060_v62, 0.0  ;;  %v13676_v49 = vsel %vm4422_vm15, 8388608, %v15984_v27  ;;  %v13679_v28 = vsub.f32 %v1043_v52, %v13645_v32  ;;  %17064 = vst [vmem:[#allocation174_spill] sm:$0xff] %v13690_v47  ;;  %v17070_v47 = vld [vmem:[#allocation55_spill] sm:$0xff] }
 0x2ce   : > { %v13682_v50 = vsub.f32 %v1044_v15, %v13645_v32  ;;  %v3146_v1 = vsel %vm2954_vm3, 1.0, %v17060_v62  ;;  %v13686_v60 = vsub.f32 %v1045_v31, %v13645_v32  ;;  %9021 = vrcp.f32 %v3145_v13  ;;  %v17066_v15 = vld [vmem:[#allocation127_spill] sm:$0xff] }
 0x2cf   : > { %v1666_v35 = vunpack.c.h.bf16 %v1484_v25  ;;  %vm2956_vm4 = vcmp.eq.f32.partialorder %v17063_v34, 0.0  ;;  %v2761_v41 = vadd.f32 %v17065_v12, %v1663_v10  ;;  %9023 = vrcp.f32 %v3147_v8  ;;  %v1487_v25 = vld [vmem:[%s9587_s0 + $0x2c0] sm:$0xff]  ;;  %v17071_v12 = vld [vmem:[#allocation110_spill] sm:$0xff] }
 0x2d0   : > { %17062 = vst [vmem:[#allocation78_spill] sm:$0xff] %v13686_v60  ;;  %v3148_v52 = vsel %vm2956_vm4, 1.0, %v17063_v34  ;;  %vm2959_vm5 = vcmp.eq.f32.partialorder %v17066_v15, 0.0  ;;  %v2763_v6 = vadd.f32 %v17067_v24, %v1665_v45  ;;  %v2762_v5 = vadd.f32 %v17068_v61, %v1664_v63  ;;  %v17069_v60 = vld [vmem:[#allocation181_spill] sm:$0xff]  ;;  %v13706_v45 = vpop.f32.mrb[83].mxu0 }
 0x2d1   : > { %9025 = vrcp.f32 %v3146_v1  ;;  %v3151_v31 = vsel %vm2959_vm5, 1.0, %v17066_v15  ;;  %v1669_v13 = vunpack.c.l.bf16 %v1486_v9  ;;  %vm2961_vm6 = vcmp.eq.f32.partialorder %v17069_v60, 0.0  ;;  %v17072_v61 = vld [vmem:[#allocation189_spill] sm:$0xff]  ;;  %17073 = vst [vmem:[#allocation198_spill] sm:$0xff] %v13706_v45 }
 0x2d2   : > { %9027 = vrcp.f32 %v3151_v31  ;;  %vm2960_vm7 = vcmp.eq.f32.partialorder %v17070_v47, 0.0  ;;  %v2764_v10 = vadd.f32 %v17071_v12, %v1666_v35  ;;  %v3153_v8 = vsel %vm2961_vm6, 1.0, %v17069_v60 }
 0x2d3   : > { %9029 = vrcp.f32 %v3148_v52  ;;  %v3152_v19 = vsel %vm2960_vm7, 1.0, %v17070_v47  ;;  %v1671_v24 = vunpack.c.l.bf16 %v1487_v25  ;;  %vm2962_vm8 = vcmp.eq.f32.partialorder %v17072_v61, 0.0 }
 0x2d4   : > { %9031 = vrcp.f32 %v3153_v8  ;;  %v4210_v1 = vand.u32 8388607, %v13469_v4  ;;  %v1670_v63 = vunpack.c.h.bf16 %v1486_v9  ;;  %v3154_v31 = vsel %vm2962_vm8, 1.0, %v17072_v61 }
 0x2d5   : > { %9033 = vrcp.f32 %v3152_v19  ;;  %v4786_v2 = vand.u32 4286578688, %v13469_v4  ;;  %v17074_v35 = vand.u32 4286578688, %v13479_v38  ;;  %v4212_v12 = vand.u32 8388607, %v13491_v0  ;;  %v13721_v4 = vpop.f32.mrb[84].mxu0 }
 0x2d6   : > { %9035 = vrcp.f32 %v3154_v31  ;;  %vm4402_vm0 = vcmp.ge.s32.totalorder %v4210_v1, 3474676  ;;  %v4788_v60 = vand.u32 4286578688, %v13491_v0  ;;  %v17075_v9 = vand.u32 4286578688, %v13487_v20  ;;  %17077 = vst [vmem:[#allocation161_spill] sm:$0xff] %v13721_v4  ;;  %v17081_v4 = vld [vmem:[#allocation130_spill] sm:$0xff] }
 0x2d7   : > { %v4984_v52 = vadd.s32 %v17074_v35, %v13522_v22  ;;  %v4594_v8 = vsel %vm4402_vm0, 8388608, %v15984_v27  ;;  %v17076_v45 = vand.u32 8388607, %v13456_v40  ;;  %vm4404_vm10 = vcmp.ge.s32.totalorder %v4212_v12, 3474676  ;;  %v17078_v35 = vld [vmem:[#allocation16_spill] sm:$0xff]  ;;  %v13731_v12 = vpop.permute.xlu0 %3666 }
 0x2d8   : > { %v4986_v19 = vadd.s32 %v17075_v9, %v13541_v11  ;;  %v4978_v1 = vadd.s32 %v4786_v2, %v4594_v8  ;;  %v9022_v22 = vpop.eup %9021  ;;  %v2767_v39 = vadd.f32 %v17078_v35, %v1669_v13  ;;  %v1672_v34 = vunpack.c.h.bf16 %v1487_v25  ;;  %17080 = vst [vmem:[#allocation183_spill] sm:$0xff] %v13731_v12 }
 0x2d9   : > { %vm4401_vm9 = vcmp.ge.s32.totalorder %v17076_v45, 3474676  ;;  %v5368_v31 = vmul.f32 %v4984_v52, %v16981_v59  ;;  %v4596_v0 = vsel %vm4404_vm10, 8388608, %v15984_v27  ;;  %v4785_v20 = vand.u32 4286578688, %v13456_v40  ;;  %v9024_v11 = vpop.eup %9023  ;;  %v17079_v59 = vld [vmem:[#allocation58_spill] sm:$0xff] }
 0x2da   : > { %v4593_v38 = vsel %vm4401_vm9, 8388608, %v15984_v27  ;;  %v3506_v9 = vmul.f32 %v9022_v22, %v2761_v41  ;;  %v5362_v45 = vmul.f32 %v4978_v1, %v16967_v37  ;;  %v4980_v15 = vadd.s32 %v4788_v60, %v4596_v0  ;;  %v13743_v60 = vpop.f32.mrb[85].mxu0 }
 0x2db   : > { %v5370_v2 = vmul.f32 %v4986_v19, %v16983_v30  ;;  %v9026_v8 = vpop.eup %9025  ;;  %v2769_v52 = vadd.f32 %v17079_v59, %v1671_v24  ;;  %v2768_v62 = vadd.f32 %v17081_v4, %v1670_v63  ;;  %v4977_v13 = vadd.s32 %v4785_v20, %v4593_v38  ;;  %v17085_v4 = vld [vmem:[#allocation178_spill] sm:$0xff]  ;;  %v17097_v30 = vld [vmem:[#allocation21_spill] sm:$0xff] }
 0x2dc   : > { %v5367_v25 = vmul.f32 %v13508_v46, %v16972_v54  ;;  %v9028_v35 = vpop.eup %9027  ;;  %v3510_v40 = vmul.f32 %v9024_v11, %v2763_v6  ;;  %v5482_v61 = vpack.c.bf16 %v5368_v31, %v5362_v45  ;;  %v5364_v41 = vmul.f32 %v4980_v15, %v16971_v18  ;;  %v13747_v46 = vpop.f32.mrb[86].mxu0  ;;  %v13765_v20 = vld [vmem:[%s9587_s0 + $0x2d0] sm:$0xff] }
 0x2dd   : > { %v17082_v37 = vand.u32 8388607, %v13461_v26  ;;  %v9030_v24 = vpop.eup %9029  ;;  %v3508_v19 = vmul.f32 %v9026_v8, %v2762_v5  ;;  %v3518_v63 = vmul.f32 %v9028_v35, %v2767_v39  ;;  %v2770_v1 = vadd.f32 %v17085_v4, %v1672_v34  ;;  %v13749_v18 = vpop.permute.xlu1 %3670 }
 0x2de   : > { %v5361_v54 = vmul.f32 %v4977_v13, %v16965_v51  ;;  %v9032_v6 = vpop.eup %9031  ;;  %17086 = vst [vmem:[#allocation138_spill] sm:$0xff] %v13749_v18  ;;  %v13753_v15 = vsub.f32 %v13660_v58, %v13645_v32  ;;  %v3512_v31 = vmul.f32 %v9030_v24, %v2764_v10  ;;  %v13756_v38 = vadd.f32 %v13731_v12, %v3506_v9  ;;  %v13777_v8 = vpop.f32.mrb[87].mxu0 }
 0x2df   : > { %vm13739_vm11 = vcmp.ge.s32.totalorder %v17082_v37, 3474676  ;;  %6489 = vmatprep.subr.bf16.mxu0 %v5482_v61  ;;  %v13758_v5 = vpack.c.bf16 %v5370_v2, %v5364_v41  ;;  %v9034_v39 = vpop.eup %9033  ;;  %v3855_v34 = vadd.f32 %v13749_v18, %v3518_v63  ;;  %v3522_v51 = vmul.f32 %v9032_v6, %v2769_v52  ;;  %v1490_v63 = vld [vmem:[%s9587_s0 + $0x2d8] sm:$0xff] }
 0x2e0   : > { %17087 = vst [vmem:[#allocation71_spill] sm:$0xff] %v13753_v15  ;;  %v5481_v22 = vpack.c.bf16 %v5367_v25, %v5361_v54  ;;  %v4595_v0 = vsel %vm13739_vm11, 8388608, %v15984_v27  ;;  %v9036_v32 = vpop.eup %9035  ;;  %v13768_v58 = vadd.f32 %v13731_v12, %v3510_v40  ;;  %v3520_v10 = vmul.f32 %v9034_v39, %v2768_v62  ;;  %v13789_v40 = vpop.f32.mrb[88].mxu0  ;;  %v17090_v54 = vld [vmem:[#allocation126_spill] sm:$0xff] }
 0x2e1   : > { %17088 = vst [vmem:[#allocation118_spill] sm:$0xff] %v13758_v5  ;;  %8244 = vmatprep.subr.bf16.mxu1 %v13758_v5  ;;  %v4787_v61 = vand.u32 4286578688, %v13461_v26  ;;  %vm2965_vm12 = vcmp.eq.f32.partialorder %v13265_v21, 0.0  ;;  %v4239_v11 = vand.u32 8388607, %v3855_v34  ;;  %v3857_v9 = vadd.f32 %v13749_v18, %v3522_v51 }
 0x2e2   : > { %v13775_v45 = vadd.f32 %v13731_v12, %v3508_v19  ;;  %v3524_v2 = vmul.f32 %v9036_v32, %v2770_v1  ;;  %6490 = vmatpush1.bf16.xpose.msra.mxu0 %v5481_v22  ;;  %v13780_v59 = vadd.f32 %v13749_v18, %v3520_v10  ;;  %v5369_v26 = vmul.f32 %v13510_v44, %v16980_v17  ;;  %v13809_v22 = vld [vmem:[%s9587_s0 + $0x2e8] sm:$0xff]  ;;  %v17092_v10 = vld [vmem:[#allocation100_spill] sm:$0xff] }
 0x2e3   : > { %v4979_v62 = vadd.s32 %v4787_v61, %v4595_v0  ;;  %v1675_v52 = vunpack.c.l.bf16 %v13765_v20  ;;  %vm4431_vm13 = vcmp.ge.s32.totalorder %v4239_v11, 3474676  ;;  %v4241_v13 = vand.u32 8388607, %v3857_v9  ;;  %v17091_v32 = vld [vmem:[#allocation121_spill] sm:$0xff] }
 0x2e4   : > { %v13786_v25 = vadd.f32 %v13749_v18, %v3524_v2  ;;  %v3157_v35 = vsel %vm2965_vm12, 1.0, %v13265_v21  ;;  %v4623_v41 = vsel %vm4431_vm13, 8388608, %v15984_v27  ;;  %v4815_v44 = vand.u32 4286578688, %v3855_v34  ;;  %v13818_v2 = vpop.f32.mrb[89].mxu0 }
 0x2e5   : > { %v5363_v17 = vmul.f32 %v4979_v62, %v16966_v57  ;;  %vm4433_vm14 = vcmp.ge.s32.totalorder %v4241_v13, 3474676  ;;  %v13796_v24 = vadd.f32 %v13731_v12, %v3512_v31  ;;  %v4240_v19 = vand.u32 8388607, %v13780_v59  ;;  %v13822_v13 = vpop.f32.mrb[90].mxu0 }
 0x2e6   : > { %v4817_v4 = vand.u32 4286578688, %v3857_v9  ;;  %v2773_v6 = vadd.f32 %v17090_v54, %v1675_v52  ;;  %9037 = vrcp.f32 %v3157_v35  ;;  %v13803_v39 = vadd.s32 %v4815_v44, %v4623_v41  ;;  %v17095_v54 = vld [vmem:[#allocation73_spill] sm:$0xff] }
 0x2e7   : > { %v13800_v1 = vpack.c.bf16 %v5369_v26, %v5363_v17  ;;  %v4242_v57 = vand.u32 8388607, %v13786_v25  ;;  %v4625_v31 = vsel %vm4433_vm14, 8388608, %v15984_v27  ;;  %v1677_v0 = vunpack.c.l.bf16 %v1490_v63  ;;  %v17093_v26 = vld [vmem:[#allocation28_spill] sm:$0xff]  ;;  %v17094_v17 = vld [vmem:[#allocation171_spill] sm:$0xff] }
 0x2e8   : > { %vm2967_vm15 = vcmp.eq.f32.partialorder %v17091_v32, 0.0  ;;  %vm2966_vm1 = vcmp.eq.f32.partialorder %v17092_v10, 0.0  ;;  %vm4432_vm2 = vcmp.ge.s32.totalorder %v4240_v19, 3474676  ;;  %v1676_v11 = vunpack.c.h.bf16 %v13765_v20 }
 0x2e9   : > { %17089 = vst [vmem:[#allocation133_spill] sm:$0xff] %v13800_v1  ;;  %8260 = vmatpush1.bf16.xpose.msra.mxu1 %v13800_v1  ;;  %v3159_v61 = vsel %vm2967_vm15, 1.0, %v17091_v32  ;;  %v3158_v9 = vsel %vm2966_vm1, 1.0, %v17092_v10  ;;  %v1678_v62 = vunpack.c.h.bf16 %v1490_v63  ;;  %vm2968_vm3 = vcmp.eq.f32.partialorder %v17093_v26, 0.0  ;;  %v13834_v63 = vld [vmem:[%s9587_s0 + $0x2f0] sm:$0xff] }
 0x2ea   : > { %9039 = vrcp.f32 %v3159_v61  ;;  %v1681_v52 = vunpack.c.l.bf16 %v13809_v22  ;;  %v13824_v35 = vadd.s32 %v4817_v4, %v4625_v31  ;;  %v3160_v41 = vsel %vm2968_vm3, 1.0, %v17093_v26  ;;  %v13839_v4 = vpop.f32.mrb[91].mxu0  ;;  %v17096_v31 = vld [vmem:[#allocation111_spill] sm:$0xff] }
 0x2eb   : > { %9041 = vrcp.f32 %v3158_v9  ;;  %vm2971_vm4 = vcmp.eq.f32.partialorder %v13663_v36, 0.0  ;;  %v13829_v20 = vsel %vm4432_vm2, 8388608, %v15984_v27  ;;  %v2775_v44 = vadd.f32 %v17094_v17, %v1677_v0 }
 0x2ec   : > { %9043 = vrcp.f32 %v3160_v41  ;;  %v3163_v19 = vsel %vm2971_vm4, 1.0, %v13663_v36  ;;  %v2774_v61 = vadd.f32 %v17095_v54, %v1676_v11  ;;  %vm2973_vm5 = vcmp.eq.f32.partialorder %v13679_v28, 0.0 }
 0x2ed   : > { %9045 = vrcp.f32 %v3163_v19  ;;  %vm2972_vm6 = vcmp.eq.f32.partialorder %v13666_v43, 0.0  ;;  %v2776_v9 = vadd.f32 %v17096_v31, %v1678_v62  ;;  %v2779_v37 = vadd.f32 %v17097_v30, %v1681_v52 }
 0x2ee   : > { %v3165_v0 = vsel %vm2973_vm5, 1.0, %v13679_v28  ;;  %v3164_v41 = vsel %vm2972_vm6, 1.0, %v13666_v43  ;;  %v1683_v17 = vunpack.c.l.bf16 %v13834_v63  ;;  %vm2974_vm7 = vcmp.eq.f32.partialorder %v13682_v50, 0.0 }
 0x2ef   : > { %9047 = vrcp.f32 %v3165_v0  ;;  %v17098_v11 = vand.u32 4286578688, %v13552_v7  ;;  %vm13850_vm8 = vcmp.ge.s32.totalorder %v4242_v57, 3474676  ;;  %v1682_v30 = vunpack.c.h.bf16 %v13809_v22  ;;  %v13859_v0 = vpop.f32.mrb[92].mxu0  ;;  %v17104_v22 = vld [vmem:[#allocation88_spill] sm:$0xff] }
 0x2f0   : > { %v9038_v54 = vpop.eup %9037  ;;  %9049 = vrcp.f32 %v3164_v41  ;;  %v3166_v62 = vsel %vm2974_vm7, 1.0, %v13682_v50  ;;  %v17101_v52 = vand.u32 4286578688, %v13617_v42  ;;  %v17105_v15 = vand.u32 4286578688, %v13627_v29  ;;  %v17106_v42 = vld [vmem:[#allocation140_spill] sm:$0xff] }
 0x2f1   : > { %v4990_v19 = vadd.s32 %v17098_v11, %v13636_v14  ;;  %v3530_v51 = vmul.f32 %v9038_v54, %v2773_v6  ;;  %9051 = vrcp.f32 %v3166_v62  ;;  %v17102_v14 = vand.u32 4286578688, %v13576_v48  ;;  %v13865_v11 = vpop.permute.xlu1 %3674  ;;  %v17110_v62 = vld [vmem:[#allocation175_spill] sm:$0xff] }
 0x2f2   : > { %v4996_v31 = vadd.s32 %v17101_v52, %v13652_v3  ;;  %17103 = vst [vmem:[#allocation34_spill] sm:$0xff] %v13865_v11  ;;  %v4998_v18 = vadd.s32 %v17105_v15, %v13676_v49  ;;  %v5373_v3 = vmul.f32 %v13586_v56, %v17106_v42  ;;  %v17107_v52 = vld [vmem:[#allocation89_spill] sm:$0xff]  ;;  %v17111_v49 = vld [vmem:[#allocation75_spill] sm:$0xff] }
 0x2f3   : > { %v5374_v7 = vmul.f32 %v4990_v19, %v17009_v53  ;;  %v4992_v57 = vadd.s32 %v17102_v14, %v13641_v23  ;;  %v5379_v6 = vmul.f32 %v13647_v33, %v17107_v52  ;;  %v3861_v53 = vadd.f32 %v13865_v11, %v3530_v51  ;;  %v17108_v19 = vld [vmem:[#allocation61_spill] sm:$0xff]  ;;  %v17109_v23 = vld [vmem:[#allocation107_spill] sm:$0xff] }
 0x2f4   : > { %v5380_v41 = vmul.f32 %v4996_v31, %v17104_v22  ;;  %v2781_v48 = vadd.f32 %v17108_v19, %v1683_v17  ;;  %v5375_v54 = vmul.f32 %v13596_v16, %v17109_v23  ;;  %v5381_v31 = vmul.f32 %v13649_v55, %v17110_v62  ;;  %v9040_v14 = vpop.eup %9039  ;;  %v17112_v22 = vld [vmem:[#allocation114_spill] sm:$0xff]  ;;  %v17114_v23 = vld [vmem:[#allocation57_spill] sm:$0xff] }
 0x2f5   : > { %v5376_v15 = vmul.f32 %v4992_v57, %v17111_v49  ;;  %v5382_v56 = vmul.f32 %v4998_v18, %v17112_v22  ;;  %v5487_v42 = vpack.c.bf16 %v5379_v6, %v5373_v3  ;;  %v9042_v12 = vpop.eup %9041  ;;  %v4245_v1 = vand.u32 8388607, %v3861_v53  ;;  %v13887_v17 = vld [vmem:[%s9587_s0 + $0x10] sm:$0xff]  ;;  %v17116_v57 = vld [vmem:[#allocation39_spill] sm:$0xff]  ;;  %v13895_v3 = vpop.f32.mrb[93].mxu0 }
 0x2f6   : > { %v5488_v29 = vpack.c.bf16 %v5380_v41, %v5374_v7  ;;  %v3534_v33 = vmul.f32 %v9040_v14, %v2775_v44  ;;  %v1684_v51 = vunpack.c.h.bf16 %v13834_v63  ;;  %v13884_v52 = vpack.c.bf16 %v5381_v31, %v5375_v54  ;;  %v9044_v16 = vpop.eup %9043  ;;  %v13908_v31 = vpop.permute.xlu0 %3678  ;;  %v17119_v14 = vld [vmem:[#allocation195_spill] sm:$0xff] }
 0x2f7   : > { %v3532_v19 = vmul.f32 %v9042_v12, %v2774_v61  ;;  %v2780_v55 = vadd.f32 %v17114_v23, %v1682_v30  ;;  %v13890_v7 = vpack.c.bf16 %v5382_v56, %v5376_v15  ;;  %vm2789_vm0 = vcmp.eq.f32.partialorder %v17116_v57, 0.0  ;;  %v9046_v18 = vpop.eup %9045  ;;  %v13902_v30 = vpop.f32.mrb[94].mxu0  ;;  %17118 = vst [vmem:[#allocation154_spill] sm:$0xff] %v13908_v31 }
 0x2f8   : > { %17113 = vst [vmem:[#allocation31_spill] sm:$0xff] %v13884_v52  ;;  %6491 = vmatprep.subr.bf16.mxu0 %v5488_v29  ;;  %vm4437_vm9 = vcmp.ge.s32.totalorder %v4245_v1, 3474676  ;;  %v3863_v41 = vadd.f32 %v13865_v11, %v3534_v33  ;;  %v3536_v44 = vmul.f32 %v9044_v16, %v2776_v9  ;;  %v2981_v63 = vsel %vm2789_vm0, 1.0, %v17116_v57  ;;  %17117 = vst [vmem:[#allocation33_spill] sm:$0xff] %v13902_v30 }
 0x2f9   : > { %17115 = vst [vmem:[#allocation72_spill] sm:$0xff] %v13890_v7  ;;  %6492 = vmatpush1.bf16.xpose.msra.mxu0 %v5487_v42  ;;  %v13898_v6 = vadd.f32 %v13865_v11, %v3532_v19  ;;  %v3542_v12 = vmul.f32 %v9046_v18, %v2779_v37  ;;  %8245 = vmatprep.subr.bf16.mxu1 %v13890_v7  ;;  %v1499_v61 = vunpack.c.l.bf16 %v13887_v17  ;;  %9053 = vrcp.f32 %v2981_v63  ;;  %v9048_v1 = vpop.eup %9047  ;;  %v17131_v7 = vld [vmem:[#allocation46_spill] sm:$0xff] }
 0x2fa   : > { %v4629_v54 = vsel %vm4437_vm9, 8388608, %v15984_v27  ;;  %v4247_v9 = vand.u32 8388607, %v3863_v41  ;;  %v13906_v62 = vadd.f32 %v13865_v11, %v3536_v44  ;;  %v2782_v29 = vadd.f32 %v17119_v14, %v1684_v51  ;;  %8261 = vmatpush1.bf16.xpose.msra.mxu1 %v13884_v52  ;;  %v9050_v37 = vpop.eup %9049  ;;  %v17128_v52 = vld [vmem:[#allocation45_spill] sm:$0xff] }
 0x2fb   : > { %v4821_v49 = vand.u32 4286578688, %v3861_v53  ;;  %v4246_v15 = vand.u32 8388607, %v13898_v6  ;;  %v3867_v22 = vadd.f32 %v13908_v31, %v3542_v12  ;;  %v3546_v56 = vmul.f32 %v9048_v1, %v2781_v48  ;;  %v9052_v42 = vpop.eup %9051  ;;  %v17120_v53 = vld [vmem:[#allocation84_spill] sm:$0xff]  ;;  %v13930_v1 = vpop.f32.mrb[95].mxu0 }
 0x2fc   : > { %v13917_v33 = vsel %vm13850_vm8, 8388608, %v15984_v27  ;;  %vm4439_vm10 = vcmp.ge.s32.totalorder %v4247_v9, 3474676  ;;  %v4248_v16 = vand.u32 8388607, %v13906_v62  ;;  %v3544_v19 = vmul.f32 %v9050_v37, %v2780_v55  ;;  %17123 = vst [vmem:[#allocation135_spill] sm:$0xff] %v13930_v1 }
 0x2fd   : > { %v13920_v51 = vadd.s32 %v4821_v49, %v4629_v54  ;;  %v4823_v23 = vand.u32 4286578688, %v3863_v41  ;;  %v4251_v18 = vand.u32 8388607, %v3867_v22  ;;  %v2597_v44 = vadd.f32 %v17120_v53, %v1499_v61 }
 0x2fe   : > { %v4631_v63 = vsel %vm4439_vm10, 8388608, %v15984_v27  ;;  %vm13924_vm11 = vcmp.ge.s32.totalorder %v4246_v15, 3474676  ;;  %v3869_v12 = vadd.f32 %v13908_v31, %v3546_v56  ;;  %vm4440_vm12 = vcmp.ge.s32.totalorder %v4248_v16, 3474676  ;;  %v1404_v16 = vld [vmem:[%s9587_s0 + $0x28] sm:$0xff] }
 0x2ff   : > { %vm4443_vm13 = vcmp.ge.s32.totalorder %v4251_v18, 3474676  ;;  %v13933_v55 = vadd.f32 %v13908_v31, %v3544_v19  ;;  %v3548_v41 = vmul.f32 %v9052_v42, %v2782_v29  ;;  %v4827_v9 = vand.u32 4286578688, %v3867_v22  ;;  %v13945_v18 = vpop.f32.mrb[96].mxu0  ;;  %v17125_v42 = vld [vmem:[#allocation40_spill] sm:$0xff] }
 0x300   : > { %v4635_v54 = vsel %vm4443_vm13, 8388608, %v15984_v27  ;;  %v4253_v14 = vand.u32 8388607, %v3869_v12  ;;  %v13937_v37 = vadd.s32 %v4823_v23, %v4631_v63  ;;  %v1500_v56 = vunpack.c.h.bf16 %v13887_v17  ;;  %17124 = vst [vmem:[#allocation137_spill] sm:$0xff] %v13945_v18  ;;  %v13961_v34 = vpop.f32.mrb[97].mxu0 }
 0x301   : > { %v4252_v49 = vand.u32 8388607, %v13933_v55  ;;  %v13941_v15 = vadd.f32 %v13908_v31, %v3548_v41  ;;  %v13950_v29 = vsel %vm13924_vm11, 8388608, %v15984_v27  ;;  %v13953_v22 = vsel %vm4440_vm12, 8388608, %v15984_v27  ;;  %17126 = vst [vmem:[#allocation145_spill] sm:$0xff] %v13961_v34 }
 0x302   : > { %vm4445_vm14 = vcmp.ge.s32.totalorder %v4253_v14, 3474676  ;;  %vm2790_vm15 = vcmp.eq.f32.partialorder %v17125_v42, 0.0  ;;  %v13956_v23 = vadd.s32 %v4827_v9, %v4635_v54  ;;  %v4829_v17 = vand.u32 4286578688, %v3869_v12  ;;  %v17127_v14 = vld [vmem:[#allocation203_spill] sm:$0xff]  ;;  %v17129_v9 = vld [vmem:[#allocation105_spill] sm:$0xff] }
 0x303   : > { %v9054_v19 = vpop.eup %9053  ;;  %v4637_v53 = vsel %vm4445_vm14, 8388608, %v15984_v27  ;;  %vm4444_vm1 = vcmp.ge.s32.totalorder %v4252_v49, 3474676  ;;  %v2982_v48 = vsel %vm2790_vm15, 1.0, %v17125_v42  ;;  %v1505_v61 = vunpack.c.l.bf16 %v1404_v16  ;;  %v13973_v49 = vpop.f32.mrb[98].mxu0 }
 0x304   : > { %v3178_v41 = vmul.f32 %v9054_v19, %v2597_v44  ;;  %v4254_v31 = vand.u32 8388607, %v13941_v15  ;;  %v2598_v11 = vadd.f32 %v17127_v14, %v1500_v56  ;;  %9055 = vrcp.f32 %v2982_v48  ;;  %17130 = vst [vmem:[#allocation48_spill] sm:$0xff] %v13973_v49 }
 0x305   : > { %vm2795_vm2 = vcmp.eq.f32.partialorder %v17128_v52, 0.0  ;;  %v13966_v54 = vadd.s32 %v4829_v17, %v4637_v53  ;;  %v13976_v19 = vsel %vm4444_vm1, 8388608, %v15984_v27  ;;  %vm2796_vm3 = vcmp.eq.f32.partialorder %v17131_v7, 0.0  ;;  %v17132_v17 = vld [vmem:[#allocation167_spill] sm:$0xff] }
 0x306   : > { %v13970_v63 = vadd.f32 %v17129_v9, %v3178_v41  ;;  %v2987_v44 = vsel %vm2795_vm2, 1.0, %v17128_v52  ;;  %v4234_v56 = vand.u32 8388607, %v13775_v45  ;;  %v2603_v48 = vadd.f32 %v17132_v17, %v1505_v61  ;;  %v13997_v17 = vpop.f32.mrb[99].mxu0 }
 0x307   : > { %9057 = vrcp.f32 %v2987_v44  ;;  %v2988_v14 = vsel %vm2796_vm3, 1.0, %v17131_v7  ;;  %v4810_v41 = vand.u32 4286578688, %v13775_v45  ;;  %vm13984_vm4 = vcmp.ge.s32.totalorder %v4254_v31, 3474676  ;;  %17137 = vst [vmem:[#allocation41_spill] sm:$0xff] %v13997_v17 }
 0x308   : > { %v4069_v53 = vand.u32 8388607, %v13970_v63  ;;  %9059 = vrcp.f32 %v2988_v14  ;;  %vm4426_vm5 = vcmp.ge.s32.totalorder %v4234_v56, 3474676  ;;  %v17135_v44 = vand.u32 4286578688, %v13780_v59 }
 0x309   : > { %v4236_v49 = vand.u32 8388607, %v13796_v24  ;;  %v4645_v34 = vand.u32 4286578688, %v13970_v63  ;;  %v1506_v18 = vunpack.c.h.bf16 %v1404_v16  ;;  %v4618_v61 = vsel %vm4426_vm5, 8388608, %v15984_v27  ;;  %v17140_v63 = vld [vmem:[#allocation189_spill] sm:$0xff] }
 0x30a   : > { %v5008_v5 = vadd.s32 %v17135_v44, %v13829_v20  ;;  %v17136_v45 = vand.u32 4286578688, %v13786_v25  ;;  %v5002_v1 = vadd.s32 %v4810_v41, %v4618_v61  ;;  %v4812_v59 = vand.u32 4286578688, %v13796_v24  ;;  %v14009_v25 = vpop.f32.mrb[100].mxu0  ;;  %v17145_v61 = vld [vmem:[#allocation127_spill] sm:$0xff] }
 0x30b   : > { %vm4428_vm6 = vcmp.ge.s32.totalorder %v4236_v49, 3474676  ;;  %vm14001_vm7 = vcmp.ge.s32.totalorder %v4069_v53, 3474676  ;;  %v17141_v44 = vand.u32 8388607, %v13756_v38 }
 0x30c   : > { %v5010_v31 = vadd.s32 %v17136_v45, %v13917_v33  ;;  %v5392_v56 = vmul.f32 %v5008_v5, %v17070_v47  ;;  %v4620_v16 = vsel %vm4428_vm6, 8388608, %v15984_v27  ;;  %17142 = vst [vmem:[#allocation134_spill] sm:$0xff] %v14009_v25  ;;  %v17143_v33 = vld [vmem:[#allocation102_spill] sm:$0xff]  ;;  %v4809_v24 = vand.u32 4286578688, %v13756_v38  ;;  %v17144_v49 = vld [vmem:[#allocation179_spill] sm:$0xff] }
 0x30d   : > { %vm4425_vm8 = vcmp.ge.s32.totalorder %v17141_v44, 3474676  ;;  %v5386_v41 = vmul.f32 %v5002_v1, %v17143_v33  ;;  %v5004_v47 = vadd.s32 %v4812_v59, %v4620_v16  ;;  %v2604_v53 = vadd.f32 %v17144_v49, %v1506_v18  ;;  %v17147_v25 = vld [vmem:[#allocation15_spill] sm:$0xff]  ;;  %v1407_v16 = vld [vmem:[%s9587_s0 + $0x40] sm:$0xff] }
 0x30e   : > { %v5394_v14 = vmul.f32 %v5010_v31, %v17140_v63  ;;  %v4617_v5 = vsel %vm4425_vm8, 8388608, %v15984_v27  ;;  %v5391_v45 = vmul.f32 %v13803_v39, %v17145_v61  ;;  %v17146_v31 = vand.u32 8388607, %v13768_v58  ;;  %v9056_v44 = vpop.eup %9055  ;;  %v17148_v39 = vld [vmem:[#allocation95_spill] sm:$0xff] }
 0x30f   : > { %v4811_v63 = vand.u32 4286578688, %v13768_v58  ;;  %v5494_v17 = vpack.c.bf16 %v5392_v56, %v5386_v41  ;;  %v5388_v30 = vmul.f32 %v5004_v47, %v17147_v25  ;;  %v5001_v1 = vadd.s32 %v4809_v24, %v4617_v5  ;;  %v17149_v56 = vld [vmem:[#allocation170_spill] sm:$0xff]  ;;  %v17150_v25 = vld [vmem:[#allocation181_spill] sm:$0xff] }
 0x310   : > { %vm4427_vm0 = vcmp.ge.s32.totalorder %v17146_v31, 3474676  ;;  %v4453_v38 = vsel %vm14001_vm7, 8388608, %v15984_v27  ;;  %v3180_v18 = vmul.f32 %v9056_v44, %v2598_v11  ;;  %vm2801_vm9 = vcmp.eq.f32.partialorder %v17148_v39, 0.0  ;;  %v14036_v31 = vpop.f32.mrb[101].mxu0  ;;  %v17152_v44 = vld [vmem:[#allocation96_spill] sm:$0xff] }
 0x311   : > { %v4619_v59 = vsel %vm4427_vm0, 8388608, %v15984_v27  ;;  %v9058_v49 = vpop.eup %9057  ;;  %6493 = vmatprep.subr.bf16.mxu0 %v5494_v17  ;;  %v14027_v58 = vpack.c.bf16 %v5394_v14, %v5388_v30  ;;  %v5385_v41 = vmul.f32 %v5001_v1, %v17149_v56  ;;  %v5393_v47 = vmul.f32 %v13824_v35, %v17150_v25  ;;  %v17151_v17 = vld [vmem:[#allocation13_spill] sm:$0xff]  ;;  %v14042_v35 = vld [vmem:[%s9587_s0 + $0x58] sm:$0xff]  ;;  %v17153_v1 = vld [vmem:[#allocation104_spill] sm:$0xff] }
 0x312   : > { %v5003_v33 = vadd.s32 %v4811_v63, %v4619_v59  ;;  %v2993_v5 = vsel %vm2801_vm9, 1.0, %v17148_v39  ;;  %v14034_v24 = vadd.f32 %v17129_v9, %v3180_v18  ;;  %v3190_v20 = vmul.f32 %v9058_v49, %v2603_v48  ;;  %v9060_v63 = vpop.eup %9059  ;;  %v14049_v18 = vpop.f32.mrb[102].mxu0  ;;  %v17154_v56 = vld [vmem:[#allocation98_spill] sm:$0xff] }
 0x313   : > { %v1511_v11 = vunpack.c.l.bf16 %v1407_v16  ;;  %v1512_v61 = vunpack.c.h.bf16 %v1407_v16  ;;  %8246 = vmatprep.subr.bf16.mxu1 %v14027_v58  ;;  %v5493_v30 = vpack.c.bf16 %v5391_v45, %v5385_v41  ;;  %9061 = vrcp.f32 %v2993_v5 }
 0x314   : > { %v5387_v14 = vmul.f32 %v5003_v33, %v17151_v17  ;;  %vm2802_vm10 = vcmp.eq.f32.partialorder %v17152_v44, 0.0  ;;  %v4638_v9 = vsel %vm13984_vm4, 8388608, %v15984_v27  ;;  %v4070_v48 = vand.u32 8388607, %v14034_v24 }
 0x315   : > { %v3691_v59 = vadd.f32 %v17153_v1, %v3190_v20  ;;  %v3192_v16 = vmul.f32 %v9060_v63, %v2604_v53  ;;  %v14051_v49 = vadd.s32 %v4645_v34, %v4453_v38  ;;  %6494 = vmatpush1.bf16.xpose.msra.mxu0 %v5493_v30  ;;  %v2994_v33 = vsel %vm2802_vm10, 1.0, %v17152_v44  ;;  %v17155_v53 = vld [vmem:[#allocation92_spill] sm:$0xff]  ;;  %v17156_v34 = vld [vmem:[#allocation93_spill] sm:$0xff]  ;;  %v14065_v20 = vpop.f32.mrb[103].mxu0 }
 0x316   : > { %v14053_v45 = vpack.c.bf16 %v5393_v47, %v5387_v14  ;;  %vm2807_vm11 = vcmp.eq.f32.partialorder %v17154_v56, 0.0  ;;  %vm4262_vm12 = vcmp.ge.s32.totalorder %v4070_v48, 3474676  ;;  %v1517_v25 = vunpack.c.l.bf16 %v14042_v35  ;;  %v17157_v48 = vld [vmem:[#allocation99_spill] sm:$0xff] }
 0x317   : > { %v4075_v41 = vand.u32 8388607, %v3691_v59  ;;  %v14058_v12 = vadd.f32 %v17153_v1, %v3192_v16  ;;  %v2609_v5 = vadd.f32 %v17155_v53, %v1511_v11  ;;  %v2610_v38 = vadd.f32 %v17156_v34, %v1512_v61  ;;  %v17159_v16 = vld [vmem:[#allocation148_spill] sm:$0xff] }
 0x318   : > { %8262 = vmatpush1.bf16.xpose.msra.mxu1 %v14053_v45  ;;  %9063 = vrcp.f32 %v2994_v33  ;;  %v2999_v47 = vsel %vm2807_vm11, 1.0, %v17154_v56  ;;  %v14070_v17 = vsel %vm4262_vm12, 8388608, %v15984_v27  ;;  %v4651_v14 = vand.u32 4286578688, %v3691_v59 }
 0x319   : > { %vm4267_vm13 = vcmp.ge.s32.totalorder %v4075_v41, 3474676  ;;  %v4076_v30 = vand.u32 8388607, %v14058_v12  ;;  %9065 = vrcp.f32 %v2999_v47  ;;  %vm2808_vm14 = vcmp.eq.f32.partialorder %v17157_v48, 0.0 }
 0x31a   : > { %v17158_v11 = vand.u32 4286578688, %v13898_v6  ;;  %v2615_v33 = vadd.f32 %v17159_v16, %v1517_v25  ;;  %v3000_v53 = vsel %vm2808_vm14, 1.0, %v17157_v48  ;;  %v17160_v41 = vand.u32 4286578688, %v13933_v55 }
 0x31b   : > { %v4459_v47 = vsel %vm4267_vm13, 8388608, %v15984_v27  ;;  %vm14083_vm15 = vcmp.ge.s32.totalorder %v4076_v30, 3474676  ;;  %v1518_v6 = vunpack.c.h.bf16 %v14042_v35  ;;  %9067 = vrcp.f32 %v3000_v53 }
 0x31c   : > { %v5014_v61 = vadd.s32 %v17158_v11, %v13950_v29  ;;  %v5020_v34 = vadd.s32 %v17160_v41, %v13976_v19  ;;  %v14088_v29 = vpop.f32.mrb[104].mxu0  ;;  %v17163_v55 = vand.u32 4286578688, %v13906_v62  ;;  %v17164_v19 = vand.u32 4286578688, %v13941_v15 }
 0x31d   : > { %v9062_v30 = vpop.eup %9061  ;;  %v5397_v1 = vmul.f32 %v13920_v51, %v13265_v21  ;;  %v5403_v35 = vmul.f32 %v13956_v23, %v13663_v36  ;;  %v5399_v53 = vmul.f32 %v13937_v37, %v17091_v32  ;;  %v17166_v36 = vld [vmem:[#allocation115_spill] sm:$0xff]  ;;  %v17167_v23 = vld [vmem:[#allocation113_spill] sm:$0xff] }
 0x31e   : > { %v5398_v25 = vmul.f32 %v5014_v61, %v17092_v10  ;;  %v5404_v11 = vmul.f32 %v5020_v34, %v13666_v43  ;;  %v5016_v16 = vadd.s32 %v17163_v55, %v13953_v22  ;;  %v5022_v41 = vadd.s32 %v17164_v19, %v4638_v9  ;;  %v1413_v10 = vld [vmem:[%s9587_s0 + $0x70] sm:$0xff]  ;;  %v17169_v34 = vld [vmem:[#allocation17_spill] sm:$0xff] }
 0x31f   : > { %v5405_v43 = vmul.f32 %v13966_v54, %v13679_v28  ;;  %v3202_v62 = vmul.f32 %v9062_v30, %v2609_v5  ;;  %v14108_v61 = vadd.s32 %v4651_v14, %v4459_v47  ;;  %v5499_v21 = vpack.c.bf16 %v5403_v35, %v5397_v1  ;;  %v14118_v5 = vld [vmem:[%s9587_s0 + $0x88] sm:$0xff]  ;;  %v17168_v1 = vld [vmem:[#allocation116_spill] sm:$0xff] }
 0x320   : > { %v5500_v22 = vpack.c.bf16 %v5404_v11, %v5398_v25  ;;  %v5400_v15 = vmul.f32 %v5016_v16, %v17093_v26  ;;  %v5406_v9 = vmul.f32 %v5022_v41, %v13682_v50  ;;  %vm2813_vm1 = vcmp.eq.f32.partialorder %v17166_v36, 0.0  ;;  %v14120_v26 = vpop.f32.mrb[105].mxu0  ;;  %v17170_v16 = vld [vmem:[#allocation144_spill] sm:$0xff]  ;;  %v17171_v41 = vld [vmem:[#allocation42_spill] sm:$0xff] }
 0x321   : > { %v14110_v51 = vpack.c.bf16 %v5405_v43, %v5399_v53  ;;  %v3697_v32 = vadd.f32 %v17167_v23, %v3202_v62  ;;  %v1523_v28 = vunpack.c.l.bf16 %v1413_v10  ;;  %v3005_v54 = vsel %vm2813_vm1, 1.0, %v17166_v36  ;;  %v14127_v47 = vpop.f32.mrb[106].mxu0 }
 0x322   : > { %6495 = vmatprep.subr.bf16.mxu0 %v5500_v22  ;;  %v14114_v37 = vpack.c.bf16 %v5406_v9, %v5400_v15  ;;  %v9064_v50 = vpop.eup %9063  ;;  %v4460_v14 = vsel %vm14083_vm15, 8388608, %v15984_v27  ;;  %9069 = vrcp.f32 %v3005_v54  ;;  %vm2814_vm2 = vcmp.eq.f32.partialorder %v17168_v1, 0.0  ;;  %v8581_v22 = vld [vmem:[#allocation3] ss:$24 sps:$4 sm:$0xff]   ;;  %v8587_v54 = vld [vmem:[#allocation3 + $0x34] ss:$24 sps:$4 sm:$0xff]  }
 0x323   : > { %17165 = vst [vmem:[#allocation83_spill] sm:$0xff] %v14110_v51  ;;  %6496 = vmatpush1.bf16.xpose.msra.mxu0 %v5499_v21  ;;  %vm2819_vm3 = vcmp.eq.f32.partialorder %v17169_v34, 0.0  ;;  %v9066_v25 = vpop.eup %9065  ;;  %v4081_v11 = vand.u32 8388607, %v3697_v32  ;;  %v3204_v55 = vmul.f32 %v9064_v50, %v2610_v38  ;;  %v2616_v19 = vadd.f32 %v17170_v16, %v1518_v6  ;;  %v17172_v38 = vld [vmem:[#allocation52_spill] sm:$0xff]  ;;  %v17174_v21 = vld [vmem:[#allocation18_spill] sm:$0xff] }
 0x324   : > { %8247 = vmatprep.subr.bf16.mxu1 %v14114_v37  ;;  %6738 = vmatprep.subr.bf16.mxu0 %v17171_v41  ;;  %v1524_v30 = vunpack.c.h.bf16 %v1413_v10  ;;  %v3214_v59 = vmul.f32 %v9066_v25, %v2615_v33  ;;  %v3006_v35 = vsel %vm2814_vm2, 1.0, %v17168_v1  ;;  %v1529_v53 = vunpack.c.l.bf16 %v14118_v5  ;;  %v17173_v33 = vld [vmem:[#allocation37_spill] sm:$0xff]  ;;  %v17175_v16 = vld [vmem:[#allocation38_spill] sm:$0xff] }
 0x325   : > { %8263 = vmatpush1.bf16.xpose.msra.mxu1 %v14110_v51  ;;  %v3011_v43 = vsel %vm2819_vm3, 1.0, %v17169_v34  ;;  %vm4273_vm4 = vcmp.ge.s32.totalorder %v4081_v11, 3474676  ;;  %v14137_v62 = vadd.f32 %v17167_v23, %v3204_v55  ;;  %v2621_v6 = vadd.f32 %v17172_v38, %v1523_v28  ;;  %v9068_v15 = vpop.eup %9067  ;;  %v8584_v55 = vld [vmem:[#allocation3 + $0xc8] ss:$24 sps:$4 sm:$0xff]   ;;  %v17176_v28 = vld [vmem:[#allocation27_spill] sm:$0xff] }
 0x326   : > { %9071 = vrcp.f32 %v3006_v35  ;;  %v4465_v10 = vsel %vm4273_vm4, 8388608, %v15984_v27  ;;  %v3703_v9 = vadd.f32 %v17173_v33, %v3214_v59  ;;  %vm2820_vm5 = vcmp.eq.f32.partialorder %v17174_v21, 0.0  ;;  %v8589_v51 = vld [vmem:[#allocation3 + $0xfc] ss:$24 sps:$4 sm:$0xff]   ;;  %v14148_v59 = vpop.f32.mrb[107].mxu0 }
 0x327   : > { %9073 = vrcp.f32 %v3011_v43  ;;  %v4657_v50 = vand.u32 4286578688, %v3697_v32  ;;  %v4082_v25 = vand.u32 8388607, %v14137_v62  ;;  %v3216_v11 = vmul.f32 %v9068_v15, %v2616_v19 }
 0x328   : > { %v2622_v23 = vadd.f32 %v17175_v16, %v1524_v30  ;;  %v4087_v41 = vand.u32 8388607, %v3703_v9  ;;  %v2627_v35 = vadd.f32 %v17176_v28, %v1529_v53  ;;  %v1530_v38 = vunpack.c.h.bf16 %v14118_v5  ;;  %v17184_v16 = vld [vmem:[#allocation180_spill] sm:$0xff]  ;;  %v8591_v28 = vld [vmem:[#allocation3 + $0x30] ss:$24 sps:$4 sm:$0xff]  }
 0x329   : > { %v3012_v63 = vsel %vm2820_vm5, 1.0, %v17174_v21  ;;  %v14150_v43 = vadd.s32 %v4657_v50, %v4465_v10  ;;  %v14153_v32 = vadd.f32 %v17173_v33, %v3216_v11  ;;  %v17177_v19 = vand.u32 4286578688, %v14034_v24  ;;  %v17181_v10 = vld [vmem:[#allocation101_spill] sm:$0xff]  ;;  %v17183_v11 = vld [vmem:[#allocation90_spill] sm:$0xff] }
 0x32a   : > { %9075 = vrcp.f32 %v3012_v63  ;;  %6498 = vmatmul.mubr.bf16.vlgmr.msra.gmra.mrb[128].mxu0 %v8581_v22  ;;  %vm14158_vm6 = vcmp.ge.s32.totalorder %v4082_v25, 3474676  ;;  %vm4279_vm7 = vcmp.ge.s32.totalorder %v4087_v41, 3474676  ;;  %v17180_v5 = vand.u32 4286578688, %v14058_v12  ;;  %v14167_v63 = vpop.f32.mrb[108].mxu0 }
 0x32b   : > { %v4838_v30 = vadd.s32 %v17177_v19, %v14070_v17  ;;  %6739 = vmatpush1.bf16.xpose.msra.mxu0 %v17181_v10  ;;  %v5221_v33 = vmul.f32 %v14051_v49, %v17116_v57  ;;  %6507 = vmatprep.mubr.bf16.mxu0 %v8587_v54  ;;  %17182 = vst [vmem:[#allocation64_spill] sm:$0xff] %v14167_v63  ;;  %v4663_v24 = vand.u32 4286578688, %v3703_v9  ;;  %v4088_v17 = vand.u32 8388607, %v14153_v32  ;;  %v1419_v25 = vld [vmem:[%s9587_s0 + $0xa0] sm:$0xff] }
 0x32c   : > { %v4844_v15 = vadd.s32 %v17180_v5, %v4460_v14  ;;  %6811 = vmatmul.mubr.bf16.vlgmr.msra.gmra.mrb[64].mxu1 %v8584_v55  ;;  %6740 = vmatprep.subr.bf16.mxu0 %v17183_v11  ;;  %v9070_v12 = vpop.eup %9069  ;;  %v4471_v14 = vsel %vm4279_vm7, 8388608, %v15984_v27  ;;  %v2628_v41 = vadd.f32 %v17184_v16, %v1530_v38  ;;  %v5227_v49 = vmul.f32 %v14108_v61, %v17128_v52  ;;  %v17185_v55 = vld [vmem:[#allocation23_spill] sm:$0xff]  ;;  %v17190_v10 = vld [vmem:[#allocation24_spill] sm:$0xff] }
 0x32d   : > { %v5222_v50 = vmul.f32 %v4838_v30, %v17125_v42  ;;  %6820 = vmatprep.mubr.bf16.mxu1 %v8589_v51  ;;  %v14182_v9 = vsel %vm14158_vm6, 8388608, %v15984_v27  ;;  %v3226_v54 = vmul.f32 %v9070_v12, %v2621_v6  ;;  %vm2825_vm8 = vcmp.eq.f32.partialorder %v17185_v55, 0.0  ;;  %v8593_v61 = vld [vmem:[#allocation3 + $0x64] ss:$24 sps:$4 sm:$0xff]   ;;  %v14190_v51 = vpop.f32.mrb[109].mxu0 }
 0x32e   : > { %v5228_v57 = vmul.f32 %v4844_v15, %v17131_v7  ;;  %vm14186_vm0 = vcmp.ge.s32.totalorder %v4088_v17, 3474676  ;;  %v5413_v19 = vpack.c.bf16 %v5227_v49, %v5221_v33  ;;  %v1535_v52 = vunpack.c.l.bf16 %v1419_v25  ;;  %17188 = vst [vmem:[#allocation192_spill] sm:$0xff] %v14190_v51  ;;  %v17189_v5 = vld [vmem:[#allocation123_spill] sm:$0xff]  ;;  %v14199_v49 = vpop.f32.mrb[110].mxu0 }
 0x32f   : > { %v14192_v53 = vadd.s32 %v4663_v24, %v4471_v14  ;;  %v3709_v15 = vadd.f32 %v17189_v5, %v3226_v54  ;;  %v3017_v6 = vsel %vm2825_vm8, 1.0, %v17185_v55  ;;  %vm2826_vm9 = vcmp.eq.f32.partialorder %v17190_v10, 0.0  ;;  %v1422_v11 = vld [vmem:[%s9587_s0 + $0xb8] sm:$0xff]  ;;  %17191 = vst [vmem:[#allocation158_spill] sm:$0xff] %v14199_v49  ;;  %v14210_v22 = vpop.f32.mrb[111].mxu0 }
 0x330   : > { %v5414_v7 = vpack.c.bf16 %v5228_v57, %v5222_v50  ;;  %v9072_v30 = vpop.eup %9071  ;;  %v8592_v17 = vld [vmem:[#allocation3 + $0xf8] ss:$24 sps:$4 sm:$0xff]   ;;  %9077 = vrcp.f32 %v3017_v6  ;;  %v1536_v33 = vunpack.c.h.bf16 %v1419_v25  ;;  %v3018_v50 = vsel %vm2826_vm9, 1.0, %v17190_v10  ;;  %v8595_v57 = vld [vmem:[#allocation3 + $0x12c] ss:$24 sps:$4 sm:$0xff]   ;;  %17195 = vst [vmem:[#allocation22_spill] sm:$0xff] %v14210_v22 }
 0x331   : > { %v9074_v12 = vpop.eup %9073  ;;  %v3228_v16 = vmul.f32 %v9072_v30, %v2622_v23  ;;  %v4472_v24 = vsel %vm14186_vm0, 8388608, %v15984_v27  ;;  %v4093_v14 = vand.u32 8388607, %v3709_v15  ;;  %9079 = vrcp.f32 %v3018_v50  ;;  %v17192_v23 = vld [vmem:[#allocation32_spill] sm:$0xff]  ;;  %v17193_v30 = vld [vmem:[#allocation59_spill] sm:$0xff] }
 0x332   : > { %7011 = vmatprep.subr.bf16.mxu1 %v5414_v7  ;;  %v3238_v54 = vmul.f32 %v9074_v12, %v2627_v35  ;;  %6508 = vmatmul.mubr.bf16.gmra.mrb[132].mxu0 %v8591_v28  ;;  %v2633_v7 = vadd.f32 %v17192_v23, %v1535_v52  ;;  %v1541_v25 = vunpack.c.l.bf16 %v1422_v11  ;;  %vm2831_vm10 = vcmp.eq.f32.partialorder %v17193_v30, 0.0  ;;  %v17194_v6 = vld [vmem:[#allocation91_spill] sm:$0xff]  ;;  %v17197_v28 = vld [vmem:[#allocation60_spill] sm:$0xff] }
 0x333   : > { %7012 = vmatpush1.bf16.xpose.msra.mxu1 %v5413_v19  ;;  %v14205_v42 = vadd.f32 %v17189_v5, %v3228_v16  ;;  %6741 = vmatpush1.bf16.xpose.msra.mxu0 %v17194_v6  ;;  %vm4285_vm11 = vcmp.ge.s32.totalorder %v4093_v14, 3474676  ;;  %v17196_v49 = vld [vmem:[#allocation131_spill] sm:$0xff]  ;;  %v3023_v19 = vsel %vm2831_vm10, 1.0, %v17193_v30  ;;  %vm2832_vm12 = vcmp.eq.f32.partialorder %v17197_v28, 0.0  ;;  %v17198_v5 = vld [vmem:[#allocation97_spill] sm:$0xff] }
 0x334   : > { %6517 = vmatprep.mubr.bf16.mxu0 %v8593_v61  ;;  %v9076_v38 = vpop.eup %9075  ;;  %v3715_v35 = vadd.f32 %v17196_v49, %v3238_v54  ;;  %6821 = vmatmul.mubr.bf16.gmra.mrb[68].mxu1 %v8592_v17  ;;  %v4669_v52 = vand.u32 4286578688, %v3709_v15  ;;  %v17199_v50 = vld [vmem:[#allocation159_spill] sm:$0xff]  ;;  %v4477_v61 = vsel %vm4285_vm11, 8388608, %v15984_v27  ;;  %9081 = vrcp.f32 %v3023_v19  ;;  %v17200_v17 = vld [vmem:[#allocation82_spill] sm:$0xff] }
 0x335   : > { %6742 = vmatprep.subr.bf16.mxu0 %v17198_v5  ;;  %v4094_v12 = vand.u32 8388607, %v14205_v42  ;;  %v3240_v16 = vmul.f32 %v9076_v38, %v2628_v41  ;;  %v2634_v23 = vadd.f32 %v17199_v50, %v1536_v33  ;;  %6830 = vmatprep.mubr.bf16.mxu1 %v8595_v57  ;;  %v1542_v14 = vunpack.c.h.bf16 %v1422_v11  ;;  %v8597_v54 = vld [vmem:[#allocation3 + $0x60] ss:$24 sps:$4 sm:$0xff]   ;;  %v8599_v15 = vld [vmem:[#allocation3 + $0x94] ss:$24 sps:$4 sm:$0xff]  }
 0x336   : > { %v4099_v6 = vand.u32 8388607, %v3715_v35  ;;  %v2639_v5 = vadd.f32 %v17200_v17, %v1541_v25  ;;  %v3024_v41 = vsel %vm2832_vm12, 1.0, %v17197_v28  ;;  %v14227_v33 = vpop.f32.mrb[112].mxu0  ;;  %v8598_v38 = vld [vmem:[#allocation3 + $0x128] ss:$24 sps:$4 sm:$0xff]   ;;  %v14240_v19 = vadd.s32 %v4669_v52, %v4477_v61 }
 0x337   : > { %v14221_v51 = vadd.f32 %v17196_v49, %v3240_v16  ;;  %17201 = vst [vmem:[#allocation20_spill] sm:$0xff] %v14227_v33  ;;  %vm14229_vm13 = vcmp.ge.s32.totalorder %v4094_v12, 3474676  ;;  %9083 = vrcp.f32 %v3024_v41  ;;  %v17206_v49 = vand.u32 4286578688, %v14137_v62  ;;  %v8601_v22 = vld [vmem:[#allocation3 + $0x15c] ss:$24 sps:$4 sm:$0xff]  }
 0x338   : > { %vm14233_vm14 = vcmp.ge.s32.totalorder %v4099_v6, 3474676  ;;  %v4675_v16 = vand.u32 4286578688, %v3715_v35  ;;  %v17207_v12 = vand.u32 4286578688, %v14153_v32  ;;  %v17208_v33 = vld [vmem:[#allocation124_spill] sm:$0xff]  ;;  %v5233_v41 = vmul.f32 %v14150_v43, %v17148_v39  ;;  %v17210_v39 = vld [vmem:[#allocation87_spill] sm:$0xff] }
 0x339   : > { %v4850_v25 = vadd.s32 %v17206_v49, %v14182_v9  ;;  %v4100_v50 = vand.u32 8388607, %v14221_v51  ;;  %v2640_v6 = vadd.f32 %v17208_v33, %v1542_v14  ;;  %v5239_v62 = vmul.f32 %v14192_v53, %v17154_v56  ;;  %v1425_v9 = vld [vmem:[%s9587_s0 + $0xd0] sm:$0xff]  ;;  %v14269_v33 = vpop.f32.mrb[113].mxu0  ;;  %v1428_v49 = vld [vmem:[%s9587_s0 + $0xe8] sm:$0xff] }
 0x33a   : > { %v4856_v17 = vadd.s32 %v17207_v12, %v4472_v24  ;;  %6518 = vmatmul.mubr.bf16.gmra.mrb[136].mxu0 %v8597_v54  ;;  %v9078_v52 = vpop.eup %9077  ;;  %v14255_v35 = vsel %vm14229_vm13, 8388608, %v15984_v27  ;;  %v4483_v32 = vsel %vm14233_vm14, 8388608, %v15984_v27  ;;  %v17209_v24 = vld [vmem:[#allocation76_spill] sm:$0xff]  ;;  %17214 = vst [vmem:[#allocation86_spill] sm:$0xff] %v14269_v33  ;;  %v1547_v11 = vunpack.c.l.bf16 %v1425_v9 }
 0x33b   : > { %v5234_v63 = vmul.f32 %v4850_v25, %v17152_v44  ;;  %vm2837_vm15 = vcmp.eq.f32.partialorder %v17209_v24, 0.0  ;;  %6743 = vmatpush1.bf16.xpose.msra.mxu0 %v17210_v39  ;;  %6527 = vmatprep.mubr.bf16.mxu0 %v8599_v15  ;;  %v9080_v56 = vpop.eup %9079  ;;  %vm14263_vm1 = vcmp.ge.s32.totalorder %v4100_v50, 3474676  ;;  %v3250_v53 = vmul.f32 %v9078_v52, %v2633_v7  ;;  %v17213_v54 = vld [vmem:[#allocation156_spill] sm:$0xff]  ;;  %v17215_v50 = vld [vmem:[#allocation143_spill] sm:$0xff]  ;;  %v17216_v7 = vld [vmem:[#allocation77_spill] sm:$0xff] }
 0x33c   : > { %v5240_v44 = vmul.f32 %v4856_v17, %v17157_v48  ;;  %v5419_v61 = vpack.c.bf16 %v5239_v62, %v5233_v41  ;;  %v3029_v14 = vsel %vm2837_vm15, 1.0, %v17209_v24  ;;  %6831 = vmatmul.mubr.bf16.gmra.mrb[72].mxu1 %v8598_v38  ;;  %6744 = vmatprep.subr.bf16.mxu0 %v17213_v54  ;;  %v3252_v48 = vmul.f32 %v9080_v56, %v2634_v23  ;;  %v8603_v17 = vld [vmem:[#allocation3 + $0x90] ss:$24 sps:$4 sm:$0xff]   ;;  %v14275_v41 = vpop.f32.mrb[114].mxu0  ;;  %v8607_v54 = vld [vmem:[#allocation3 + $0x18c] ss:$24 sps:$4 sm:$0xff]  }
 0x33d   : > { %9085 = vrcp.f32 %v3029_v14  ;;  %6840 = vmatprep.mubr.bf16.mxu1 %v8601_v22  ;;  %v4867_v15 = vadd.s32 %v4675_v16, %v4483_v32  ;;  %v4676_v25 = vand.u32 4286578688, %v14221_v51  ;;  %v3721_v12 = vadd.f32 %v17215_v50, %v3250_v53  ;;  %17217 = vst [vmem:[#allocation184_spill] sm:$0xff] %v14275_v41  ;;  %v17218_v62 = vld [vmem:[#allocation29_spill] sm:$0xff]  ;;  %v8605_v22 = vld [vmem:[#allocation3 + $0xc4] ss:$24 sps:$4 sm:$0xff]   ;;  %v17219_v53 = vld [vmem:[#allocation74_spill] sm:$0xff] }
 0x33e   : > { %v5420_v57 = vpack.c.bf16 %v5240_v44, %v5234_v63  ;;  %vm2838_vm2 = vcmp.eq.f32.partialorder %v17216_v7, 0.0  ;;  %v14278_v38 = vadd.f32 %v17215_v50, %v3252_v48  ;;  %v1548_v23 = vunpack.c.h.bf16 %v1425_v9  ;;  %v9082_v16 = vpop.eup %9081  ;;  %v8604_v44 = vld [vmem:[#allocation3 + $0x158] ss:$24 sps:$4 sm:$0xff]  }
 0x33f   : > { %v3030_v63 = vsel %vm2838_vm2, 1.0, %v17216_v7  ;;  %vm2843_vm3 = vcmp.eq.f32.partialorder %v17218_v62, 0.0  ;;  %v4484_v51 = vsel %vm14263_vm1, 8388608, %v15984_v27  ;;  %v4105_v52 = vand.u32 8388607, %v3721_v12  ;;  %v17220_v50 = vld [vmem:[#allocation30_spill] sm:$0xff] }
 0x340   : > { %7013 = vmatprep.subr.bf16.mxu1 %v5420_v57  ;;  %9087 = vrcp.f32 %v3030_v63  ;;  %v1553_v32 = vunpack.c.l.bf16 %v1428_v49  ;;  %v4106_v39 = vand.u32 8388607, %v14278_v38  ;;  %v3262_v56 = vmul.f32 %v9082_v16, %v2639_v5  ;;  %v17221_v63 = vld [vmem:[#allocation157_spill] sm:$0xff]  ;;  %v17222_v5 = vld [vmem:[#allocation119_spill] sm:$0xff] }
 0x341   : > { %7014 = vmatpush1.bf16.xpose.msra.mxu1 %v5419_v61  ;;  %v2645_v9 = vadd.f32 %v17219_v53, %v1547_v11  ;;  %v1554_v14 = vunpack.c.h.bf16 %v1428_v49  ;;  %v9084_v48 = vpop.eup %9083  ;;  %vm4297_vm4 = vcmp.ge.s32.totalorder %v4105_v52, 3474676  ;;  %v4681_v57 = vand.u32 4286578688, %v3721_v12  ;;  %v17223_v11 = vld [vmem:[#allocation186_spill] sm:$0xff]  ;;  %v14295_v49 = vpop.f32.mrb[115].mxu0  ;;  %v17226_v61 = vld [vmem:[#allocation187_spill] sm:$0xff] }
 0x342   : > { %v3035_v43 = vsel %vm2843_vm3, 1.0, %v17218_v62  ;;  %vm2844_vm5 = vcmp.eq.f32.partialorder %v17220_v50, 0.0  ;;  %6528 = vmatmul.mubr.bf16.gmra.mrb[140].mxu0 %v8603_v17  ;;  %v3727_v41 = vadd.f32 %v17221_v63, %v3262_v56  ;;  %v3264_v33 = vmul.f32 %v9084_v48, %v2640_v6  ;;  %17224 = vst [vmem:[#allocation185_spill] sm:$0xff] %v14295_v49  ;;  %v17225_v52 = vld [vmem:[#allocation174_spill] sm:$0xff]  ;;  %v17233_v6 = vld [vmem:[#allocation35_spill] sm:$0xff] }
 0x343   : > { %v2646_v16 = vadd.f32 %v17222_v5, %v1548_v23  ;;  %6745 = vmatpush1.bf16.xpose.msra.mxu0 %v17223_v11  ;;  %6537 = vmatprep.mubr.bf16.mxu0 %v8605_v22  ;;  %v4489_v12 = vsel %vm4297_vm4, 8388608, %v15984_v27  ;;  %v14299_v53 = vadd.f32 %v17225_v52, %v1553_v32  ;;  %9089 = vrcp.f32 %v3035_v43  ;;  %v8611_v5 = vld [vmem:[#allocation3 + $0xf4] ss:$24 sps:$4 sm:$0xff]  }
 0x344   : > { %v3036_v17 = vsel %vm2844_vm5, 1.0, %v17220_v50  ;;  %6841 = vmatmul.mubr.bf16.gmra.mrb[76].mxu1 %v8604_v44  ;;  %6746 = vmatprep.subr.bf16.mxu0 %v17226_v61  ;;  %vm14303_vm6 = vcmp.ge.s32.totalorder %v4106_v39, 3474676  ;;  %v4111_v23 = vand.u32 8388607, %v3727_v41  ;;  %v14308_v22 = vadd.f32 %v17221_v63, %v3264_v33  ;;  %v1431_v39 = vld [vmem:[%s9587_s0 + $0x100] sm:$0xff] }
 0x345   : > { %9091 = vrcp.f32 %v3036_v17  ;;  %6850 = vmatprep.mubr.bf16.mxu1 %v8607_v54  ;;  %v17229_v32 = vand.u32 4286578688, %v14205_v42  ;;  %v4868_v48 = vadd.s32 %v4676_v25, %v4484_v51  ;;  %v5245_v44 = vmul.f32 %v14240_v19, %v17166_v36  ;;  %v8609_v61 = vld [vmem:[#allocation3 + $0xc0] ss:$24 sps:$4 sm:$0xff]   ;;  %v17230_v54 = vld [vmem:[#allocation198_spill] sm:$0xff]  ;;  %v14321_v17 = vpop.f32.mrb[116].mxu0 }
 0x346   : > { %v5251_v43 = vmul.f32 %v4867_v15, %v17169_v34  ;;  %v14317_v52 = vadd.s32 %v4681_v57, %v4489_v12  ;;  %vm4303_vm7 = vcmp.ge.s32.totalorder %v4111_v23, 3474676  ;;  %v4112_v33 = vand.u32 8388607, %v14308_v22  ;;  %17231 = vst [vmem:[#allocation55_spill] sm:$0xff] %v14321_v17  ;;  %v17232_v23 = vld [vmem:[#allocation129_spill] sm:$0xff] }
 0x347   : > { %v4862_v56 = vadd.s32 %v17229_v32, %v14255_v35  ;;  %v9086_v11 = vpop.eup %9085  ;;  %v2652_v63 = vadd.f32 %v17230_v54, %v1554_v14  ;;  %v14326_v42 = vsel %vm14303_vm6, 8388608, %v15984_v27  ;;  %v5252_v19 = vmul.f32 %v4868_v48, %v17174_v21  ;;  %v8610_v35 = vld [vmem:[#allocation3 + $0x188] ss:$24 sps:$4 sm:$0xff]   ;;  %v8619_v17 = vld [vmem:[#allocation3 + $0x1ec] ss:$24 sps:$4 sm:$0xff]  }
 0x348   : > { %v3274_v36 = vmul.f32 %v9086_v11, %v2645_v9  ;;  %v4687_v15 = vand.u32 4286578688, %v3727_v41  ;;  %v5425_v51 = vpack.c.bf16 %v5251_v43, %v5245_v44  ;;  %v1559_v57 = vunpack.c.l.bf16 %v1431_v39  ;;  %v8613_v9 = vld [vmem:[#allocation3 + $0x1bc] ss:$24 sps:$4 sm:$0xff]   ;;  %v14334_v11 = vpop.f32.mrb[117].mxu0  ;;  %v17238_v48 = vld [vmem:[#allocation128_spill] sm:$0xff] }
 0x349   : > { %v5246_v34 = vmul.f32 %v4862_v56, %v17168_v1  ;;  %v4495_v14 = vsel %vm4303_vm7, 8388608, %v15984_v27  ;;  %vm2849_vm8 = vcmp.eq.f32.partialorder %v17233_v6, 0.0  ;;  %17234 = vst [vmem:[#allocation110_spill] sm:$0xff] %v14334_v11  ;;  %vm14336_vm0 = vcmp.ge.s32.totalorder %v4112_v33, 3474676  ;;  %v17237_v56 = vld [vmem:[#allocation36_spill] sm:$0xff] }
 0x34a   : > { %v9088_v12 = vpop.eup %9087  ;;  %v3733_v32 = vadd.f32 %v17232_v23, %v3274_v36  ;;  %6538 = vmatmul.mubr.bf16.gmra.mrb[144].mxu0 %v8609_v61  ;;  %v3041_v41 = vsel %vm2849_vm8, 1.0, %v17233_v6  ;;  %vm2850_vm9 = vcmp.eq.f32.partialorder %v17237_v56, 0.0  ;;  %v1560_v43 = vunpack.c.h.bf16 %v1431_v39  ;;  %v14344_v33 = vpop.f32.mrb[118].mxu0  ;;  %v17244_v25 = vld [vmem:[#allocation176_spill] sm:$0xff] }
 0x34b   : > { %v5426_v54 = vpack.c.bf16 %v5252_v19, %v5246_v34  ;;  %v3276_v21 = vmul.f32 %v9088_v12, %v2646_v16  ;;  %6747 = vmatpush1.bf16.xpose.msra.mxu0 %v17238_v48  ;;  %6547 = vmatprep.mubr.bf16.mxu0 %v8611_v5  ;;  %9093 = vrcp.f32 %v3041_v41  ;;  %v3042_v61 = vsel %vm2850_vm9, 1.0, %v17237_v56  ;;  %17239 = vst [vmem:[#allocation16_spill] sm:$0xff] %v14344_v33  ;;  %v17240_v34 = vld [vmem:[#allocation161_spill] sm:$0xff]  ;;  %v1434_v12 = vld [vmem:[%s9587_s0 + $0x118] sm:$0xff] }
 0x34c   : > { %v4117_v44 = vand.u32 8388607, %v3733_v32  ;;  %6851 = vmatmul.mubr.bf16.gmra.mrb[80].mxu1 %v8610_v35  ;;  %v4879_v36 = vadd.s32 %v4687_v15, %v4495_v14  ;;  %v2657_v19 = vadd.f32 %v17240_v34, %v1559_v57  ;;  %9095 = vrcp.f32 %v3042_v61  ;;  %v17241_v48 = vld [vmem:[#allocation19_spill] sm:$0xff]  ;;  %v8615_v5 = vld [vmem:[#allocation3 + $0xf0] ss:$24 sps:$4 sm:$0xff]   ;;  %v14360_v61 = vpop.f32.mrb[119].mxu0 }
 0x34d   : > { %7015 = vmatprep.subr.bf16.mxu1 %v5426_v54  ;;  %v14347_v16 = vadd.f32 %v17232_v23, %v3276_v21  ;;  %6748 = vmatprep.subr.bf16.mxu0 %v17241_v48  ;;  %v8617_v54 = vld [vmem:[#allocation3 + $0x124] ss:$24 sps:$4 sm:$0xff]   ;;  %v9090_v41 = vpop.eup %9089  ;;  %v4496_v39 = vsel %vm14336_vm0, 8388608, %v15984_v27  ;;  %v4693_v35 = vand.u32 4286578688, %v3733_v32  ;;  %v17242_v15 = vld [vmem:[#allocation141_spill] sm:$0xff]  ;;  %v17243_v21 = vld [vmem:[#allocation142_spill] sm:$0xff]  ;;  %v2658_v1 = vadd.f32 %v13743_v60, %v1560_v43 }
 0x34e   : > { %7016 = vmatpush1.bf16.xpose.msra.mxu1 %v5425_v51  ;;  %vm4309_vm10 = vcmp.ge.s32.totalorder %v4117_v44, 3474676  ;;  %vm2855_vm11 = vcmp.eq.f32.partialorder %v17242_v15, 0.0  ;;  %6860 = vmatprep.mubr.bf16.mxu1 %v8613_v9  ;;  %v3286_v23 = vmul.f32 %v9090_v41, %v14299_v53  ;;  %vm2856_vm12 = vcmp.eq.f32.partialorder %v17243_v21, 0.0  ;;  %v8616_v44 = vld [vmem:[#allocation3 + $0x1b8] ss:$24 sps:$4 sm:$0xff]  }
 0x34f   : > { %v9092_v14 = vpop.eup %9091  ;;  %v4501_v51 = vsel %vm4309_vm10, 8388608, %v15984_v27  ;;  %v4118_v57 = vand.u32 8388607, %v14347_v16  ;;  %v1565_v48 = vunpack.c.l.bf16 %v1434_v12  ;;  %v3047_v32 = vsel %vm2855_vm11, 1.0, %v17242_v15  ;;  %v8622_v41 = vld [vmem:[#allocation3 + $0x1e8] ss:$24 sps:$4 sm:$0xff]  }
 0x350   : > { %v3288_v34 = vmul.f32 %v9092_v14, %v2652_v63  ;;  %v4694_v9 = vand.u32 4286578688, %v14347_v16  ;;  %v3739_v33 = vadd.f32 %v17244_v25, %v3286_v23  ;;  %9097 = vrcp.f32 %v3047_v32 }
 0x351   : > { %v1566_v11 = vunpack.c.h.bf16 %v1434_v12  ;;  %v14366_v49 = vadd.s32 %v4693_v35, %v4501_v51  ;;  %v3048_v63 = vsel %vm2856_vm12, 1.0, %v17243_v21  ;;  %v17245_v60 = vand.u32 4286578688, %v14278_v38  ;;  %v17249_v51 = vld [vmem:[#allocation56_spill] sm:$0xff] }
 0x352   : > { %v14369_v53 = vadd.f32 %v17244_v25, %v3288_v34  ;;  %6548 = vmatmul.mubr.bf16.gmra.mrb[148].mxu0 %v8615_v5  ;;  %vm14375_vm13 = vcmp.ge.s32.totalorder %v4118_v57, 3474676  ;;  %v4123_v14 = vand.u32 8388607, %v3739_v33  ;;  %9099 = vrcp.f32 %v3048_v63  ;;  %v14382_v25 = vpop.f32.mrb[120].mxu0  ;;  %v1437_v57 = vld [vmem:[%s9587_s0 + $0x130] sm:$0xff] }
 0x353   : > { %v4874_v43 = vadd.s32 %v17245_v60, %v14326_v42  ;;  %v17248_v12 = vand.u32 4286578688, %v14308_v22  ;;  %6749 = vmatpush1.bf16.xpose.msra.mxu0 %v17249_v51  ;;  %6557 = vmatprep.mubr.bf16.mxu0 %v8617_v54  ;;  %v2663_v38 = vadd.f32 %v13747_v46, %v1565_v48  ;;  %v5257_v5 = vmul.f32 %v14317_v52, %v17185_v55  ;;  %v17250_v34 = vld [vmem:[#allocation44_spill] sm:$0xff]  ;;  %v17251_v52 = vld [vmem:[#allocation149_spill] sm:$0xff]  ;;  %v17255_v51 = vld [vmem:[#allocation150_spill] sm:$0xff] }
 0x354   : > { %v4124_v23 = vand.u32 8388607, %v14369_v53  ;;  %6861 = vmatmul.mubr.bf16.gmra.mrb[84].mxu1 %v8616_v44  ;;  %6750 = vmatprep.subr.bf16.mxu0 %v17250_v34  ;;  %vm4315_vm14 = vcmp.ge.s32.totalorder %v4123_v14, 3474676  ;;  %v2664_v22 = vadd.f32 %v13777_v8, %v1566_v11  ;;  %v14397_v46 = vsel %vm14375_vm13, 8388608, %v15984_v27  ;;  %v14410_v14 = vpop.f32.mrb[121].mxu0 }
 0x355   : > { %v4880_v35 = vadd.s32 %v17248_v12, %v4496_v39  ;;  %v5258_v42 = vmul.f32 %v4874_v43, %v17190_v10  ;;  %v5263_v39 = vmul.f32 %v4879_v36, %v17193_v30  ;;  %6870 = vmatprep.mubr.bf16.mxu1 %v8619_v17  ;;  %v9094_v32 = vpop.eup %9093  ;;  %v4699_v55 = vand.u32 4286578688, %v3739_v33  ;;  %v8621_v48 = vld [vmem:[#allocation3 + $0x120] ss:$24 sps:$4 sm:$0xff]   ;;  %v14403_v30 = vld [vmem:[%s9587_s0 + $0x148] sm:$0xff]  ;;  %v17254_v12 = vld [vmem:[#allocation106_spill] sm:$0xff]  ;;  %v14414_v34 = vpop.f32.mrb[122].mxu0 }
 0x356   : > { %vm2861_vm15 = vcmp.eq.f32.partialorder %v17251_v52, 0.0  ;;  %v9096_v44 = vpop.eup %9095  ;;  %v4507_v8 = vsel %vm4315_vm14, 8388608, %v15984_v27  ;;  %v3298_v11 = vmul.f32 %v9094_v32, %v2657_v19  ;;  %v1571_v63 = vunpack.c.l.bf16 %v1437_v57  ;;  %v8623_v17 = vld [vmem:[#allocation3 + $0x154] ss:$24 sps:$4 sm:$0xff]  }
 0x357   : > { %v5264_v54 = vmul.f32 %v4880_v35, %v17197_v28  ;;  %vm14405_vm1 = vcmp.ge.s32.totalorder %v4124_v23, 3474676  ;;  %v3300_v60 = vmul.f32 %v9096_v44, %v2658_v1  ;;  %v5431_v33 = vpack.c.bf16 %v5263_v39, %v5257_v5  ;;  %v17256_v5 = vld [vmem:[#allocation53_spill] sm:$0xff] }
 0x358   : > { %v3053_v43 = vsel %vm2861_vm15, 1.0, %v17251_v52  ;;  %v3745_v35 = vadd.f32 %v17254_v12, %v3298_v11  ;;  %v1572_v19 = vunpack.c.h.bf16 %v1437_v57  ;;  %vm2862_vm2 = vcmp.eq.f32.partialorder %v17255_v51, 0.0  ;;  %v17257_v11 = vld [vmem:[#allocation182_spill] sm:$0xff] }
 0x359   : > { %v5432_v28 = vpack.c.bf16 %v5264_v54, %v5258_v42  ;;  %9101 = vrcp.f32 %v3053_v43  ;;  %v8625_v42 = vld [vmem:[#allocation3 + $0x21c] ss:$24 sps:$4 sm:$0xff]   ;;  %v4891_v23 = vadd.s32 %v4699_v55, %v4507_v8  ;;  %v14417_v54 = vadd.f32 %v17254_v12, %v3300_v60 }
 0x35a   : > { %v3054_v1 = vsel %vm2862_vm2, 1.0, %v17255_v51  ;;  %vm2867_vm3 = vcmp.eq.f32.partialorder %v17256_v5, 0.0  ;;  %6558 = vmatmul.mubr.bf16.gmra.mrb[152].mxu0 %v8621_v48  ;;  %v9098_v39 = vpop.eup %9097  ;;  %v4129_v32 = vand.u32 8388607, %v3745_v35  ;;  %v1577_v57 = vunpack.c.l.bf16 %v14403_v30  ;;  %v17258_v48 = vld [vmem:[#allocation80_spill] sm:$0xff]  ;;  %v17259_v12 = vld [vmem:[#allocation54_spill] sm:$0xff] }
 0x35b   : > { %7017 = vmatprep.subr.bf16.mxu1 %v5432_v28  ;;  %9103 = vrcp.f32 %v3054_v1  ;;  %v3059_v44 = vsel %vm2867_vm3, 1.0, %v17256_v5  ;;  %6751 = vmatpush1.bf16.xpose.msra.mxu0 %v17257_v11  ;;  %v4508_v55 = vsel %vm14405_vm1, 8388608, %v15984_v27  ;;  %v4130_v8 = vand.u32 8388607, %v14417_v54  ;;  %v17260_v1 = vld [vmem:[#allocation79_spill] sm:$0xff] }
 0x35c   : > { %7018 = vmatpush1.bf16.xpose.msra.mxu1 %v5431_v33  ;;  %6567 = vmatprep.mubr.bf16.mxu0 %v8623_v17  ;;  %v3310_v28 = vmul.f32 %v9098_v39, %v2663_v38  ;;  %v2669_v60 = vadd.f32 %v13789_v40, %v1571_v63  ;;  %v9100_v33 = vpop.eup %9099  ;;  %vm4321_vm4 = vcmp.ge.s32.totalorder %v4129_v32, 3474676  ;;  %v2670_v43 = vadd.f32 %v13818_v2, %v1572_v19  ;;  %v14432_v17 = vpop.f32.mrb[123].mxu0  ;;  %v8627_v40 = vld [vmem:[#allocation3 + $0x150] ss:$24 sps:$4 sm:$0xff]  }
 0x35d   : > { %6871 = vmatmul.mubr.bf16.gmra.mrb[88].mxu1 %v8622_v41  ;;  %6752 = vmatprep.subr.bf16.mxu0 %v17258_v48  ;;  %9105 = vrcp.f32 %v3059_v44  ;;  %vm2868_vm5 = vcmp.eq.f32.partialorder %v17259_v12, 0.0  ;;  %v4705_v36 = vand.u32 4286578688, %v3745_v35  ;;  %v3312_v10 = vmul.f32 %v9100_v33, %v2664_v22  ;;  %v8629_v39 = vld [vmem:[#allocation3 + $0x184] ss:$24 sps:$4 sm:$0xff]   ;;  %v14456_v33 = vpop.f32.mrb[124].mxu0  ;;  %v17277_v41 = vld [vmem:[#allocation33_spill] sm:$0xff] }
 0x35e   : > { %6880 = vmatprep.mubr.bf16.mxu1 %v8625_v42  ;;  %v3751_v11 = vadd.f32 %v17260_v1, %v3310_v28  ;;  %v1578_v38 = vunpack.c.h.bf16 %v14403_v30  ;;  %v4513_v63 = vsel %vm4321_vm4, 8388608, %v15984_v27  ;;  %v2675_v2 = vadd.f32 %v13822_v13, %v1577_v57  ;;  %v8628_v30 = vld [vmem:[#allocation3 + $0x218] ss:$24 sps:$4 sm:$0xff]   ;;  %v1443_v28 = vld [vmem:[%s9587_s0 + $0x160] sm:$0xff] }
 0x35f   : > { %v3060_v19 = vsel %vm2868_vm5, 1.0, %v17259_v12  ;;  %vm14440_vm6 = vcmp.ge.s32.totalorder %v4130_v8, 3474676  ;;  %v14445_v22 = vadd.f32 %v17260_v1, %v3312_v10  ;;  %v4886_v32 = vadd.s32 %v4694_v9, %v14397_v46  ;;  %v8631_v48 = vld [vmem:[#allocation3 + $0x24c] ss:$24 sps:$4 sm:$0xff]   ;;  %v17264_v46 = vld [vmem:[#allocation63_spill] sm:$0xff] }
 0x360   : > { %v4135_v35 = vand.u32 8388607, %v3751_v11  ;;  %9107 = vrcp.f32 %v3060_v19  ;;  %v17263_v44 = vand.u32 4286578688, %v14369_v53  ;;  %v5269_v57 = vmul.f32 %v14366_v49, %v17209_v24  ;;  %v17268_v19 = vld [vmem:[#allocation69_spill] sm:$0xff]  ;;  %v1446_v42 = vld [vmem:[%s9587_s0 + $0x178] sm:$0xff] }
 0x361   : > { %v5275_v8 = vmul.f32 %v4891_v23, %v17218_v62  ;;  %v14458_v10 = vadd.s32 %v4705_v36, %v4513_v63  ;;  %v4136_v1 = vand.u32 8388607, %v14445_v22  ;;  %v2676_v16 = vadd.f32 %v13839_v4, %v1578_v38  ;;  %v17265_v38 = vld [vmem:[#allocation168_spill] sm:$0xff] }
 0x362   : > { %v4892_v13 = vadd.s32 %v17263_v44, %v4508_v55  ;;  %vm4327_vm7 = vcmp.ge.s32.totalorder %v4135_v35, 3474676  ;;  %6568 = vmatmul.mubr.bf16.gmra.mrb[156].mxu0 %v8627_v40  ;;  %v14465_v53 = vsel %vm14440_vm6, 8388608, %v15984_v27  ;;  %v5270_v24 = vmul.f32 %v4886_v32, %v17216_v7  ;;  %v14481_v44 = vpop.f32.mrb[125].mxu0 }
 0x363   : > { %v9102_v9 = vpop.eup %9101  ;;  %v5437_v49 = vpack.c.bf16 %v5275_v8, %v5269_v57  ;;  %6753 = vmatpush1.bf16.xpose.msra.mxu0 %v17264_v46  ;;  %6577 = vmatprep.mubr.bf16.mxu0 %v8629_v39  ;;  %v4519_v23 = vsel %vm4327_vm7, 8388608, %v15984_v27  ;;  %v4711_v55 = vand.u32 4286578688, %v3751_v11  ;;  %v1583_v36 = vunpack.c.l.bf16 %v1443_v28  ;;  %v17269_v39 = vld [vmem:[#allocation51_spill] sm:$0xff]  ;;  %v17270_v11 = vld [vmem:[#allocation70_spill] sm:$0xff]  ;;  %17271 = vst [vmem:[#allocation58_spill] sm:$0xff] %v14481_v44 }
 0x364   : > { %v5276_v62 = vmul.f32 %v4892_v13, %v17220_v50  ;;  %v3322_v4 = vmul.f32 %v9102_v9, %v2669_v60  ;;  %6754 = vmatprep.subr.bf16.mxu0 %v17265_v38  ;;  %vm14472_vm8 = vcmp.ge.s32.totalorder %v4136_v1, 3474676  ;;  %vm2873_vm0 = vcmp.eq.f32.partialorder %v17268_v19, 0.0  ;;  %v8635_v1 = vld [vmem:[#allocation3 + $0x1b4] ss:$24 sps:$4 sm:$0xff]  }
 0x365   : > { %6881 = vmatmul.mubr.bf16.gmra.mrb[92].mxu1 %v8628_v30  ;;  %v9104_v40 = vpop.eup %9103  ;;  %v1584_v50 = vunpack.c.h.bf16 %v1443_v28  ;;  %v3065_v60 = vsel %vm2873_vm0, 1.0, %v17268_v19  ;;  %vm2874_vm9 = vcmp.eq.f32.partialorder %v17270_v11, 0.0  ;;  %v8633_v30 = vld [vmem:[#allocation3 + $0x180] ss:$24 sps:$4 sm:$0xff]   ;;  %v4903_v57 = vadd.s32 %v4711_v55, %v4519_v23 }
 0x366   : > { %v5438_v7 = vpack.c.bf16 %v5276_v62, %v5270_v24  ;;  %6890 = vmatprep.mubr.bf16.mxu1 %v8631_v48  ;;  %v3757_v35 = vadd.f32 %v17269_v39, %v3322_v4  ;;  %v3324_v32 = vmul.f32 %v9104_v40, %v2670_v43  ;;  %v4712_v8 = vand.u32 4286578688, %v14445_v22  ;;  %v14485_v48 = vpop.f32.mrb[126].mxu0  ;;  %v8634_v46 = vld [vmem:[#allocation3 + $0x248] ss:$24 sps:$4 sm:$0xff]   ;;  %v8637_v4 = vld [vmem:[#allocation3 + $0x27c] ss:$24 sps:$4 sm:$0xff]  }
 0x367   : > { %v9106_v13 = vpop.eup %9105  ;;  %9109 = vrcp.f32 %v3065_v60  ;;  %v3066_v28 = vsel %vm2874_vm9, 1.0, %v17270_v11  ;;  %17272 = vst [vmem:[#allocation130_spill] sm:$0xff] %v14485_v48  ;;  %v1589_v62 = vunpack.c.l.bf16 %v1446_v42  ;;  %v4520_v23 = vsel %vm14472_vm8, 8388608, %v15984_v27  ;;  %v17273_v55 = vld [vmem:[#allocation164_spill] sm:$0xff]  ;;  %v14495_v38 = vpop.f32.mrb[127].mxu0 }
 0x368   : > { %7019 = vmatprep.subr.bf16.mxu1 %v5438_v7  ;;  %v4141_v9 = vand.u32 8388607, %v3757_v35  ;;  %v14488_v43 = vadd.f32 %v17269_v39, %v3324_v32  ;;  %v3334_v24 = vmul.f32 %v9106_v13, %v2675_v2  ;;  %v2681_v22 = vadd.f32 %v13859_v0, %v1583_v36  ;;  %17274 = vst [vmem:[#allocation178_spill] sm:$0xff] %v14495_v38  ;;  %v17275_v2 = vld [vmem:[#allocation43_spill] sm:$0xff]  ;;  %v17276_v36 = vld [vmem:[#allocation169_spill] sm:$0xff]  ;;  %v17300_v48 = vld [vmem:[#allocation48_spill] sm:$0xff] }
 0x369   : > { %7020 = vmatpush1.bf16.xpose.msra.mxu1 %v5437_v49  ;;  %9111 = vrcp.f32 %v3066_v28  ;;  %vm2879_vm10 = vcmp.eq.f32.partialorder %v17273_v55, 0.0  ;;  %v2682_v39 = vadd.f32 %v13895_v3, %v1584_v50  ;;  %v4717_v32 = vand.u32 4286578688, %v3757_v35  ;;  %v17281_v50 = vld [vmem:[#allocation165_spill] sm:$0xff] }
 0x36a   : > { %v9108_v40 = vpop.eup %9107  ;;  %vm4333_vm11 = vcmp.ge.s32.totalorder %v4141_v9, 3474676  ;;  %v4142_v7 = vand.u32 8388607, %v14488_v43  ;;  %v3763_v49 = vadd.f32 %v17275_v2, %v3334_v24  ;;  %6578 = vmatmul.mubr.bf16.gmra.mrb[160].mxu0 %v8633_v30  ;;  %v3071_v60 = vsel %vm2879_vm10, 1.0, %v17273_v55  ;;  %v17278_v24 = vld [vmem:[#allocation151_spill] sm:$0xff] }
 0x36b   : > { %v3336_v63 = vmul.f32 %v9108_v40, %v2676_v16  ;;  %v1590_v0 = vunpack.c.h.bf16 %v1446_v42  ;;  %6755 = vmatpush1.bf16.xpose.msra.mxu0 %v17276_v36  ;;  %6587 = vmatprep.mubr.bf16.mxu0 %v8635_v1  ;;  %v4525_v13 = vsel %vm4333_vm11, 8388608, %v15984_v27  ;;  %v4718_v28 = vand.u32 4286578688, %v14488_v43  ;;  %v8646_v3 = vld [vmem:[#allocation3 + $0x2a8] ss:$24 sps:$4 sm:$0xff]  }
 0x36c   : > { %v4147_v9 = vand.u32 8388607, %v3763_v49  ;;  %v14505_v38 = vadd.f32 %v17277_v41, %v1589_v62  ;;  %6756 = vmatprep.subr.bf16.mxu0 %v17278_v24  ;;  %vm14508_vm12 = vcmp.ge.s32.totalorder %v4142_v7, 3474676  ;;  %9113 = vrcp.f32 %v3071_v60  ;;  %v8639_v62 = vld [vmem:[#allocation3 + $0x1b0] ss:$24 sps:$4 sm:$0xff]  }
 0x36d   : > { %6891 = vmatmul.mubr.bf16.gmra.mrb[96].mxu1 %v8634_v46  ;;  %v14513_v16 = vadd.f32 %v17275_v2, %v3336_v63  ;;  %vm2880_vm13 = vcmp.eq.f32.partialorder %v17281_v50, 0.0  ;;  %v17284_v35 = vand.u32 4286578688, %v14417_v54  ;;  %v4904_v1 = vadd.s32 %v4712_v8, %v4520_v23  ;;  %v17285_v7 = vld [vmem:[#allocation135_spill] sm:$0xff]  ;;  %v8643_v24 = vld [vmem:[#allocation3 + $0x2ac] ss:$24 sps:$4 sm:$0xff]  }
 0x36e   : > { %6900 = vmatprep.mubr.bf16.mxu1 %v8637_v4  ;;  %vm14516_vm14 = vcmp.ge.s32.totalorder %v4147_v9, 3474676  ;;  %v3072_v41 = vsel %vm2880_vm13, 1.0, %v17281_v50  ;;  %v14524_v46 = vadd.s32 %v4717_v32, %v4525_v13  ;;  %v14528_v2 = vadd.f32 %v17285_v7, %v1590_v0  ;;  %v8641_v4 = vld [vmem:[#allocation3 + $0x1e4] ss:$24 sps:$4 sm:$0xff]  }
 0x36f   : > { %v4898_v30 = vadd.s32 %v17284_v35, %v14465_v53  ;;  %v4148_v40 = vand.u32 8388607, %v14513_v16  ;;  %9115 = vrcp.f32 %v3072_v41  ;;  %v4723_v63 = vand.u32 4286578688, %v3763_v49  ;;  %v1449_v53 = vld [vmem:[%s9587_s0 + $0x190] sm:$0xff]  ;;  %v17286_v13 = vld [vmem:[#allocation172_spill] sm:$0xff] }
 0x370   : > { %v5288_v36 = vmul.f32 %v4904_v1, %v17243_v21  ;;  %v5281_v54 = vmul.f32 %v14458_v10, %v17233_v6  ;;  %v8640_v8 = vld [vmem:[#allocation3 + $0x278] ss:$24 sps:$4 sm:$0xff]   ;;  %v4526_v32 = vsel %vm14508_vm12, 8388608, %v15984_v27  ;;  %v4531_v0 = vsel %vm14516_vm14, 8388608, %v15984_v27  ;;  %v1452_v10 = vld [vmem:[%s9587_s0 + $0x1a8] sm:$0xff] }
 0x371   : > { %v5282_v60 = vmul.f32 %v4898_v30, %v17237_v56  ;;  %v9110_v23 = vpop.eup %9109  ;;  %v5287_v49 = vmul.f32 %v4903_v57, %v17242_v15  ;;  %vm2885_vm15 = vcmp.eq.f32.partialorder %v17286_v13, 0.0  ;;  %v4724_v56 = vand.u32 4286578688, %v14513_v16  ;;  %v17289_v15 = vld [vmem:[#allocation146_spill] sm:$0xff]  ;;  %v17291_v1 = vld [vmem:[#allocation173_spill] sm:$0xff] }
 0x372   : > { %v3346_v21 = vmul.f32 %v9110_v23, %v2681_v22  ;;  %v3077_v6 = vsel %vm2885_vm15, 1.0, %v17286_v13  ;;  %6588 = vmatmul.mubr.bf16.gmra.mrb[164].mxu0 %v8639_v62  ;;  %vm14546_vm1 = vcmp.ge.s32.totalorder %v4148_v40, 3474676  ;;  %v1595_v35 = vunpack.c.l.bf16 %v1449_v53  ;;  %v17290_v57 = vld [vmem:[#allocation94_spill] sm:$0xff] }
 0x373   : > { %v5444_v9 = vpack.c.bf16 %v5288_v36, %v5282_v60  ;;  %v9112_v41 = vpop.eup %9111  ;;  %v5443_v42 = vpack.c.bf16 %v5287_v49, %v5281_v54  ;;  %9117 = vrcp.f32 %v3077_v6  ;;  %6757 = vmatpush1.bf16.xpose.msra.mxu0 %v17289_v15  ;;  %6597 = vmatprep.mubr.bf16.mxu0 %v8641_v4  ;;  %v1596_v30 = vunpack.c.h.bf16 %v1449_v53  ;;  %v17292_v60 = vld [vmem:[#allocation103_spill] sm:$0xff]  ;;  %v8651_v6 = vld [vmem:[#allocation3 + $0x210] ss:$24 sps:$4 sm:$0xff]  }
 0x374   : > { %v14552_v16 = vadd.f32 %v17290_v57, %v3346_v21  ;;  %v3348_v22 = vmul.f32 %v9112_v41, %v2682_v39  ;;  %vm2886_vm2 = vcmp.eq.f32.partialorder %v17291_v1, 0.0  ;;  %v4915_v62 = vadd.s32 %v4723_v63, %v4531_v0  ;;  %v17293_v36 = vld [vmem:[#allocation67_spill] sm:$0xff]  ;;  %v17295_v21 = vld [vmem:[#allocation122_spill] sm:$0xff]  ;;  %v17298_v41 = vld [vmem:[#allocation145_spill] sm:$0xff] }
 0x375   : > { %7021 = vmatprep.subr.bf16.mxu1 %v5444_v9  ;;  %6901 = vmatmul.mubr.bf16.gmra.mrb[100].mxu1 %v8640_v8  ;;  %v3078_v40 = vsel %vm2886_vm2, 1.0, %v17291_v1  ;;  %v1601_v7 = vunpack.c.l.bf16 %v1452_v10  ;;  %vm2891_vm3 = vcmp.eq.f32.partialorder %v17292_v60, 0.0  ;;  %v1602_v39 = vunpack.c.h.bf16 %v1452_v10  ;;  %v8645_v53 = vld [vmem:[#allocation3 + $0x1e0] ss:$24 sps:$4 sm:$0xff]   ;;  %v17294_v8 = vld [vmem:[#allocation137_spill] sm:$0xff] }
 0x376   : > { %7022 = vmatpush1.bf16.xpose.msra.mxu1 %v5443_v42  ;;  %6758 = vmatprep.subr.bf16.mxu0 %v17293_v36  ;;  %v4153_v4 = vand.u32 8388607, %v14552_v16  ;;  %v14560_v54 = vadd.f32 %v17290_v57, %v3348_v22  ;;  %9119 = vrcp.f32 %v3078_v40  ;;  %v9114_v23 = vpop.eup %9113  ;;  %v4532_v63 = vsel %vm14546_vm1, 8388608, %v15984_v27  ;;  %v8647_v9 = vld [vmem:[#allocation3 + $0x214] ss:$24 sps:$4 sm:$0xff]  }
 0x377   : > { %6910 = vmatprep.mubr.bf16.mxu1 %v8643_v24  ;;  %v2693_v0 = vadd.f32 %v17294_v8, %v1595_v35  ;;  %v3083_v49 = vsel %vm2891_vm3, 1.0, %v17292_v60  ;;  %vm2892_vm4 = vcmp.eq.f32.partialorder %v17295_v21, 0.0  ;;  %v3358_v24 = vmul.f32 %v9114_v23, %v14505_v38  ;;  %v8649_v40 = vld [vmem:[#allocation3 + $0x2dc] ss:$24 sps:$4 sm:$0xff]   ;;  %v17301_v38 = vld [vmem:[#allocation41_spill] sm:$0xff] }
 0x378   : > { %vm14568_vm5 = vcmp.ge.s32.totalorder %v4153_v4, 3474676  ;;  %v4154_v10 = vand.u32 8388607, %v14560_v54  ;;  %v2694_v42 = vadd.f32 %v17298_v41, %v1596_v30  ;;  %v4729_v35 = vand.u32 4286578688, %v14552_v16  ;;  %v17299_v36 = vld [vmem:[#allocation166_spill] sm:$0xff] }
 0x379   : > { %v9116_v15 = vpop.eup %9115  ;;  %9121 = vrcp.f32 %v3083_v49  ;;  %v3084_v57 = vsel %vm2892_vm4, 1.0, %v17295_v21  ;;  %v4910_v22 = vadd.s32 %v4718_v28, %v4526_v32  ;;  %v3775_v4 = vadd.f32 %v17299_v36, %v3358_v24  ;;  %v14586_v30 = vld [vmem:[%s9587_s0 + $0x1c0] sm:$0xff]  ;;  %v17302_v32 = vld [vmem:[#allocation81_spill] sm:$0xff] }
 0x37a   : > { %v3360_v8 = vmul.f32 %v9116_v15, %v14528_v2  ;;  %v2699_v44 = vadd.f32 %v17300_v48, %v1601_v7  ;;  %v14583_v23 = vadd.f32 %v17301_v38, %v1602_v39  ;;  %6598 = vmatmul.mubr.bf16.gmra.mrb[168].mxu0 %v8645_v53  ;;  %v4537_v16 = vsel %vm14568_vm5, 8388608, %v15984_v27  ;;  %v17305_v53 = vld [vmem:[#allocation25_spill] sm:$0xff]  ;;  %v8653_v41 = vld [vmem:[#allocation3 + $0x244] ss:$24 sps:$4 sm:$0xff]   ;;  %v17308_v38 = vld [vmem:[#allocation134_spill] sm:$0xff] }
 0x37b   : > { %9123 = vrcp.f32 %v3084_v57  ;;  %v4916_v43 = vadd.s32 %v4724_v56, %v4532_v63  ;;  %v5294_v28 = vmul.f32 %v4910_v22, %v17255_v51  ;;  %6759 = vmatpush1.bf16.xpose.msra.mxu0 %v17302_v32  ;;  %6607 = vmatprep.mubr.bf16.mxu0 %v8647_v9  ;;  %vm14593_vm6 = vcmp.ge.s32.totalorder %v4154_v10, 3474676  ;;  %v17306_v9 = vld [vmem:[#allocation152_spill] sm:$0xff]  ;;  %v17311_v2 = vld [vmem:[#allocation153_spill] sm:$0xff] }
 0x37c   : > { %v4159_v48 = vand.u32 8388607, %v3775_v4  ;;  %v14598_v7 = vadd.f32 %v17299_v36, %v3360_v8  ;;  %v5293_v39 = vmul.f32 %v14524_v46, %v17251_v52  ;;  %6760 = vmatprep.subr.bf16.mxu0 %v17305_v53  ;;  %v5299_v63 = vmul.f32 %v4915_v62, %v17256_v5  ;;  %v17307_v22 = vld [vmem:[#allocation188_spill] sm:$0xff] }
 0x37d   : > { %6911 = vmatmul.mubr.bf16.gmra.mrb[104].mxu1 %v8646_v3  ;;  %v9118_v56 = vpop.eup %9117  ;;  %v5300_v51 = vmul.f32 %v4916_v43, %v17259_v12  ;;  %v1607_v49 = vunpack.c.l.bf16 %v14586_v30  ;;  %vm2897_vm7 = vcmp.eq.f32.partialorder %v17306_v9, 0.0  ;;  %v4730_v10 = vand.u32 4286578688, %v14560_v54  ;;  %v17312_v53 = vld [vmem:[#allocation136_spill] sm:$0xff] }
 0x37e   : > { %6920 = vmatprep.mubr.bf16.mxu1 %v8649_v40  ;;  %vm4351_vm8 = vcmp.ge.s32.totalorder %v4159_v48, 3474676  ;;  %v4160_v52 = vand.u32 8388607, %v14598_v7  ;;  %v3370_v46 = vmul.f32 %v9118_v56, %v2693_v0  ;;  %v14609_v24 = vadd.s32 %v4729_v35, %v4537_v16  ;;  %v14620_v0 = vld [vmem:[%s9587_s0 + $0x1d8] sm:$0xff]  ;;  %v17313_v56 = vld [vmem:[#allocation65_spill] sm:$0xff] }
 0x37f   : > { %v4538_v12 = vsel %vm14593_vm6, 8388608, %v15984_v27  ;;  %v5450_v5 = vpack.c.bf16 %v5300_v51, %v5294_v28  ;;  %v5449_v62 = vpack.c.bf16 %v5299_v63, %v5293_v39  ;;  %v4735_v15 = vand.u32 4286578688, %v3775_v4  ;;  %v8652_v35 = vld [vmem:[#allocation3 + $0x2d8] ss:$24 sps:$4 sm:$0xff]   ;;  %v8655_v4 = vld [vmem:[#allocation3 + $0x30c] ss:$24 sps:$4 sm:$0xff]  }
 0x380   : > { %v9120_v3 = vpop.eup %9119  ;;  %v4736_v57 = vand.u32 4286578688, %v14598_v7  ;;  %v3781_v40 = vadd.f32 %v17307_v22, %v3370_v46  ;;  %v3089_v54 = vsel %vm2897_vm7, 1.0, %v17306_v9  ;;  %v4543_v36 = vsel %vm4351_vm8, 8388608, %v15984_v27  ;;  %v8658_v43 = vld [vmem:[#allocation3 + $0x308] ss:$24 sps:$4 sm:$0xff]  }
 0x381   : > { %v3372_v8 = vmul.f32 %v9120_v3, %v2694_v42  ;;  %7023 = vmatprep.subr.bf16.mxu1 %v5450_v5  ;;  %v14624_v16 = vadd.f32 %v17308_v38, %v1607_v49  ;;  %9125 = vrcp.f32 %v3089_v54  ;;  %vm14626_vm0 = vcmp.ge.s32.totalorder %v4160_v52, 3474676  ;;  %v17316_v49 = vld [vmem:[#allocation118_spill] sm:$0xff]  ;;  %v17329_v38 = vld [vmem:[#allocation191_spill] sm:$0xff] }
 0x382   : > { %v4165_v28 = vand.u32 8388607, %v3781_v40  ;;  %7024 = vmatpush1.bf16.xpose.msra.mxu1 %v5449_v62  ;;  %v1608_v32 = vunpack.c.h.bf16 %v14586_v30  ;;  %vm2898_vm9 = vcmp.eq.f32.partialorder %v17311_v2, 0.0  ;;  %6608 = vmatmul.mubr.bf16.gmra.mrb[172].mxu0 %v8651_v6  ;;  %v1613_v39 = vunpack.c.l.bf16 %v14620_v0 }
 0x383   : > { %v9122_v48 = vpop.eup %9121  ;;  %v14633_v42 = vadd.f32 %v17307_v22, %v3372_v8  ;;  %v3090_v7 = vsel %vm2898_vm9, 1.0, %v17311_v2  ;;  %vm2903_vm10 = vcmp.eq.f32.partialorder %v17312_v53, 0.0  ;;  %6761 = vmatpush1.bf16.xpose.msra.mxu0 %v17313_v56  ;;  %6617 = vmatprep.mubr.bf16.mxu0 %v8653_v41  ;;  %v4927_v51 = vadd.s32 %v4735_v15, %v4543_v36  ;;  %v17317_v41 = vld [vmem:[#allocation109_spill] sm:$0xff]  ;;  %v8657_v22 = vld [vmem:[#allocation3 + $0x240] ss:$24 sps:$4 sm:$0xff]  }
 0x384   : > { %vm14639_vm11 = vcmp.ge.s32.totalorder %v4165_v28, 3474676  ;;  %v3382_v30 = vmul.f32 %v9122_v48, %v2699_v44  ;;  %9127 = vrcp.f32 %v3090_v7  ;;  %6762 = vmatprep.subr.bf16.mxu0 %v17316_v49  ;;  %v4544_v52 = vsel %vm14626_vm0, 8388608, %v15984_v27  ;;  %v8659_v8 = vld [vmem:[#allocation3 + $0x274] ss:$24 sps:$4 sm:$0xff]  }
 0x385   : > { %6921 = vmatmul.mubr.bf16.gmra.mrb[108].mxu1 %v8652_v35  ;;  %v9124_v6 = vpop.eup %9123  ;;  %v4741_v46 = vand.u32 4286578688, %v3781_v40  ;;  %v4166_v5 = vand.u32 8388607, %v14633_v42  ;;  %v3095_v62 = vsel %vm2903_vm10, 1.0, %v17312_v53  ;;  %v2706_v44 = vadd.f32 %v14036_v31, %v1608_v32  ;;  %v17318_v40 = vld [vmem:[#allocation194_spill] sm:$0xff]  ;;  %v17323_v49 = vld [vmem:[#allocation133_spill] sm:$0xff] }
 0x386   : > { %6930 = vmatprep.mubr.bf16.mxu1 %v8655_v4  ;;  %v3787_v3 = vadd.f32 %v17317_v41, %v3382_v30  ;;  %v3384_v15 = vmul.f32 %v9124_v6, %v14583_v23  ;;  %9129 = vrcp.f32 %v3095_v62  ;;  %v4549_v54 = vsel %vm14639_vm11, 8388608, %v15984_v27  ;;  %v1461_v30 = vld [vmem:[%s9587_s0 + $0x1f0] sm:$0xff]  ;;  %v17324_v62 = vld [vmem:[#allocation72_spill] sm:$0xff] }
 0x387   : > { %v2711_v35 = vadd.f32 %v14049_v18, %v1613_v39  ;;  %vm2904_vm12 = vcmp.eq.f32.partialorder %v17318_v40, 0.0  ;;  %v4922_v36 = vadd.s32 %v4730_v10, %v4538_v12  ;;  %vm14657_vm13 = vcmp.ge.s32.totalorder %v4166_v5, 3474676  ;;  %v8661_v12 = vld [vmem:[#allocation3 + $0x33c] ss:$24 sps:$4 sm:$0xff]  }
 0x388   : > { %v4171_v4 = vand.u32 8388607, %v3787_v3  ;;  %v14662_v23 = vadd.f32 %v17317_v41, %v3384_v15  ;;  %v1614_v31 = vunpack.c.h.bf16 %v14620_v0  ;;  %v4742_v28 = vand.u32 4286578688, %v14633_v42 }
 0x389   : > { %v3096_v18 = vsel %vm2904_vm12, 1.0, %v17318_v40  ;;  %v4928_v32 = vadd.s32 %v4736_v57, %v4544_v52  ;;  %v5306_v10 = vmul.f32 %v4922_v36, %v17270_v11  ;;  %v14668_v48 = vadd.s32 %v4741_v46, %v4549_v54  ;;  %v8663_v54 = vld [vmem:[#allocation3 + $0x270] ss:$24 sps:$4 sm:$0xff]  }
 0x38a   : > { %vm14670_vm14 = vcmp.ge.s32.totalorder %v4171_v4, 3474676  ;;  %v4172_v39 = vand.u32 8388607, %v14662_v23  ;;  %9131 = vrcp.f32 %v3096_v18  ;;  %6618 = vmatmul.mubr.bf16.gmra.mrb[176].mxu0 %v8657_v22  ;;  %v14678_v56 = vsel %vm14657_vm13, 8388608, %v15984_v27 }
 0x38b   : > { %v9126_v0 = vpop.eup %9125  ;;  %v5312_v57 = vmul.f32 %v4928_v32, %v17281_v50  ;;  %v5305_v11 = vmul.f32 %v14609_v24, %v17268_v19  ;;  %v5311_v63 = vmul.f32 %v4927_v51, %v17273_v55  ;;  %6763 = vmatpush1.bf16.xpose.msra.mxu0 %v17323_v49  ;;  %6627 = vmatprep.mubr.bf16.mxu0 %v8659_v8  ;;  %v4747_v6 = vand.u32 4286578688, %v3787_v3  ;;  %v17325_v24 = vld [vmem:[#allocation190_spill] sm:$0xff]  ;;  %v14695_v51 = vld [vmem:[%s9587_s0 + $0x208] sm:$0xff]  ;;  %v8665_v4 = vld [vmem:[#allocation3 + $0x2a4] ss:$24 sps:$4 sm:$0xff]  }
 0x38c   : > { %v4748_v52 = vand.u32 4286578688, %v14662_v23  ;;  %v3394_v46 = vmul.f32 %v9126_v0, %v14624_v16  ;;  %v2712_v5 = vadd.f32 %v14065_v20, %v1614_v31  ;;  %6764 = vmatprep.subr.bf16.mxu0 %v17324_v62  ;;  %v4555_v19 = vsel %vm14670_vm14, 8388608, %v15984_v27  ;;  %v17328_v20 = vld [vmem:[#allocation12_spill] sm:$0xff]  ;;  %v17332_v49 = vld [vmem:[#allocation62_spill] sm:$0xff]  ;;  %v17333_v62 = vld [vmem:[#allocation31_spill] sm:$0xff] }
 0x38d   : > { %6931 = vmatmul.mubr.bf16.gmra.mrb[112].mxu1 %v8658_v43  ;;  %v5456_v50 = vpack.c.bf16 %v5312_v57, %v5306_v10  ;;  %v5455_v55 = vpack.c.bf16 %v5311_v63, %v5305_v11  ;;  %vm2909_vm15 = vcmp.eq.f32.partialorder %v17325_v24, 0.0  ;;  %vm14697_vm1 = vcmp.ge.s32.totalorder %v4172_v39, 3474676  ;;  %v8664_v10 = vld [vmem:[#allocation3 + $0x338] ss:$24 sps:$4 sm:$0xff]   ;;  %v17331_v11 = vld [vmem:[#allocation112_spill] sm:$0xff] }
 0x38e   : > { %6940 = vmatprep.mubr.bf16.mxu1 %v8661_v12  ;;  %v9128_v41 = vpop.eup %9127  ;;  %v3793_v16 = vadd.f32 %v17328_v20, %v3394_v46  ;;  %v1619_v15 = vunpack.c.l.bf16 %v1461_v30  ;;  %v3101_v22 = vsel %vm2909_vm15, 1.0, %v17325_v24  ;;  %v1620_v8 = vunpack.c.h.bf16 %v1461_v30  ;;  %v8667_v39 = vld [vmem:[#allocation3 + $0x36c] ss:$24 sps:$4 sm:$0xff]   ;;  %v17330_v57 = vld [vmem:[#allocation50_spill] sm:$0xff] }
 0x38f   : > { %v3396_v36 = vmul.f32 %v9128_v41, %v2706_v44  ;;  %7025 = vmatprep.subr.bf16.mxu1 %v5456_v50  ;;  %9133 = vrcp.f32 %v3101_v22  ;;  %vm2910_vm2 = vcmp.eq.f32.partialorder %v17329_v38, 0.0  ;;  %v4939_v31 = vadd.s32 %v4747_v6, %v4555_v19  ;;  %v8669_v22 = vld [vmem:[#allocation3 + $0x2a0] ss:$24 sps:$4 sm:$0xff]  }
 0x390   : > { %v9130_v23 = vpop.eup %9129  ;;  %v4177_v43 = vand.u32 8388607, %v3793_v16  ;;  %7026 = vmatpush1.bf16.xpose.msra.mxu1 %v5455_v55  ;;  %v3102_v18 = vsel %vm2910_vm2, 1.0, %v17329_v38  ;;  %v1625_v32 = vunpack.c.l.bf16 %v14695_v51  ;;  %v4556_v12 = vsel %vm14697_vm1, 8388608, %v15984_v27 }
 0x391   : > { %v14710_v44 = vadd.f32 %v17328_v20, %v3396_v36  ;;  %v3406_v7 = vmul.f32 %v9130_v23, %v2711_v35  ;;  %9135 = vrcp.f32 %v3102_v18  ;;  %v2717_v0 = vadd.f32 %v14088_v29, %v1619_v15 }
 0x392   : > { %vm4369_vm3 = vcmp.ge.s32.totalorder %v4177_v43, 3474676  ;;  %vm2915_vm4 = vcmp.eq.f32.partialorder %v17330_v57, 0.0  ;;  %vm2916_vm5 = vcmp.eq.f32.partialorder %v17331_v11, 0.0  ;;  %6628 = vmatmul.mubr.bf16.gmra.mrb[180].mxu0 %v8663_v54  ;;  %v4753_v30 = vand.u32 4286578688, %v3793_v16 }
 0x393   : > { %v4561_v63 = vsel %vm4369_vm3, 8388608, %v15984_v27  ;;  %v3799_v6 = vadd.f32 %v17332_v49, %v3406_v7  ;;  %v2718_v46 = vadd.f32 %v14120_v26, %v1620_v8  ;;  %6765 = vmatpush1.bf16.xpose.msra.mxu0 %v17333_v62  ;;  %6637 = vmatprep.mubr.bf16.mxu0 %v8665_v4  ;;  %v4178_v19 = vand.u32 8388607, %v14710_v44  ;;  %v17340_v62 = vld [vmem:[#allocation125_spill] sm:$0xff]  ;;  %v8676_v54 = vld [vmem:[#allocation3 + $0x398] ss:$24 sps:$4 sm:$0xff]  }
 0x394   : > { %v9132_v35 = vpop.eup %9131  ;;  %v14721_v29 = vadd.f32 %v14127_v47, %v1625_v32  ;;  %v3107_v50 = vsel %vm2915_vm4, 1.0, %v17330_v57  ;;  %v3108_v55 = vsel %vm2916_vm5, 1.0, %v17331_v11  ;;  %6766 = vmatprep.subr.bf16.mxu0 %v14027_v58  ;;  %v4754_v41 = vand.u32 4286578688, %v14710_v44 }
 0x395   : > { %6941 = vmatmul.mubr.bf16.gmra.mrb[116].mxu1 %v8664_v10  ;;  %v4183_v3 = vand.u32 8388607, %v3799_v6  ;;  %v3408_v26 = vmul.f32 %v9132_v35, %v2712_v5  ;;  %v1626_v20 = vunpack.c.h.bf16 %v14695_v51  ;;  %v14728_v16 = vadd.s32 %v4753_v30, %v4561_v63  ;;  %v8671_v51 = vld [vmem:[#allocation3 + $0x2d4] ss:$24 sps:$4 sm:$0xff]  }
 0x396   : > { %6950 = vmatprep.mubr.bf16.mxu1 %v8667_v39  ;;  %9137 = vrcp.f32 %v3107_v50  ;;  %v4934_v47 = vadd.s32 %v4742_v28, %v14678_v56  ;;  %v4940_v15 = vadd.s32 %v4748_v52, %v4556_v12  ;;  %v5317_v5 = vmul.f32 %v14668_v48, %v17286_v13  ;;  %v1467_v56 = vld [vmem:[%s9587_s0 + $0x220] sm:$0xff]  ;;  %v17336_v10 = vld [vmem:[#allocation177_spill] sm:$0xff] }
 0x397   : > { %vm4375_vm6 = vcmp.ge.s32.totalorder %v4183_v3, 3474676  ;;  %v14734_v58 = vadd.f32 %v17332_v49, %v3408_v26  ;;  %9139 = vrcp.f32 %v3108_v55  ;;  %vm14738_vm7 = vcmp.ge.s32.totalorder %v4178_v19, 3474676  ;;  %v8670_v52 = vld [vmem:[#allocation3 + $0x368] ss:$24 sps:$4 sm:$0xff]  }
 0x398   : > { %v5318_v36 = vmul.f32 %v4934_v47, %v17291_v1  ;;  %v5324_v42 = vmul.f32 %v4940_v15, %v17295_v21  ;;  %v5323_v28 = vmul.f32 %v4939_v31, %v17292_v60  ;;  %v4567_v4 = vsel %vm4375_vm6, 8388608, %v15984_v27  ;;  %v8673_v1 = vld [vmem:[#allocation3 + $0x39c] ss:$24 sps:$4 sm:$0xff]   ;;  %v17339_v39 = vld [vmem:[#allocation85_spill] sm:$0xff]  ;;  %v17342_v26 = vld [vmem:[#allocation64_spill] sm:$0xff] }
 0x399   : > { %v9134_v8 = vpop.eup %9133  ;;  %v4759_v23 = vand.u32 4286578688, %v3799_v6  ;;  %v4184_v13 = vand.u32 8388607, %v14734_v58  ;;  %v2724_v48 = vadd.f32 %v14148_v59, %v1626_v20  ;;  %vm2921_vm8 = vcmp.eq.f32.partialorder %v17336_v10, 0.0  ;;  %v1470_v59 = vld [vmem:[%s9587_s0 + $0x238] sm:$0xff]  ;;  %v17341_v35 = vld [vmem:[#allocation117_spill] sm:$0xff] }
 0x39a   : > { %v3418_v43 = vmul.f32 %v9134_v8, %v2717_v0  ;;  %v5462_v18 = vpack.c.bf16 %v5324_v42, %v5318_v36  ;;  %v5461_v32 = vpack.c.bf16 %v5323_v28, %v5317_v5  ;;  %6638 = vmatmul.mubr.bf16.gmra.mrb[184].mxu0 %v8669_v22  ;;  %v4562_v60 = vsel %vm14738_vm7, 8388608, %v15984_v27  ;;  %v8675_v55 = vld [vmem:[#allocation3 + $0x2d0] ss:$24 sps:$4 sm:$0xff]   ;;  %v8677_v15 = vld [vmem:[#allocation3 + $0x304] ss:$24 sps:$4 sm:$0xff]  }
 0x39b   : > { %v9136_v21 = vpop.eup %9135  ;;  %vm14753_vm0 = vcmp.ge.s32.totalorder %v4184_v13, 3474676  ;;  %v1631_v12 = vunpack.c.l.bf16 %v1467_v56  ;;  %v3113_v7 = vsel %vm2921_vm8, 1.0, %v17336_v10  ;;  %6767 = vmatpush1.bf16.xpose.msra.mxu0 %v14053_v45  ;;  %6647 = vmatprep.mubr.bf16.mxu0 %v8671_v51  ;;  %v1632_v30 = vunpack.c.h.bf16 %v1467_v56  ;;  %v17345_v5 = vld [vmem:[#allocation192_spill] sm:$0xff]  ;;  %v17347_v13 = vld [vmem:[#allocation158_spill] sm:$0xff]  ;;  %v17349_v31 = vld [vmem:[#allocation83_spill] sm:$0xff] }
 0x39c   : > { %v3805_v0 = vadd.f32 %v17339_v39, %v3418_v43  ;;  %v3420_v63 = vmul.f32 %v9136_v21, %v2718_v46  ;;  %7027 = vmatprep.subr.bf16.mxu1 %v5462_v18  ;;  %9141 = vrcp.f32 %v3113_v7  ;;  %v4951_v49 = vadd.s32 %v4759_v23, %v4567_v4  ;;  %6768 = vmatprep.subr.bf16.mxu0 %v14114_v37  ;;  %v8679_v8 = vld [vmem:[#allocation3 + $0x3cc] ss:$24 sps:$4 sm:$0xff]  }
 0x39d   : > { %6951 = vmatmul.mubr.bf16.gmra.mrb[120].mxu1 %v8670_v52  ;;  %v4760_v6 = vand.u32 4286578688, %v14734_v58  ;;  %vm2922_vm9 = vcmp.eq.f32.partialorder %v17340_v62, 0.0  ;;  %vm2927_vm10 = vcmp.eq.f32.partialorder %v17341_v35, 0.0  ;;  %v1637_v50 = vunpack.c.l.bf16 %v1470_v59  ;;  %v17346_v52 = vld [vmem:[#allocation26_spill] sm:$0xff] }
 0x39e   : > { %7028 = vmatpush1.bf16.xpose.msra.mxu1 %v5461_v32  ;;  %v4189_v19 = vand.u32 8388607, %v3805_v0  ;;  %v14766_v45 = vadd.f32 %v17339_v39, %v3420_v63  ;;  %v3114_v46 = vsel %vm2922_vm9, 1.0, %v17340_v62  ;;  %6960 = vmatprep.mubr.bf16.mxu1 %v8673_v1  ;;  %v4568_v3 = vsel %vm14753_vm0, 8388608, %v15984_v27  ;;  %v17348_v1 = vld [vmem:[#allocation132_spill] sm:$0xff]  ;;  %v1473_v39 = vld [vmem:[%s9587_s0 + $0x250] sm:$0xff] }
 0x39f   : > { %v2729_v20 = vadd.f32 %v17342_v26, %v1631_v12  ;;  %9143 = vrcp.f32 %v3114_v46  ;;  %v3119_v47 = vsel %vm2927_vm10, 1.0, %v17341_v35  ;;  %v4765_v58 = vand.u32 4286578688, %v3805_v0 }
 0x3a0   : > { %v9138_v37 = vpop.eup %9137  ;;  %vm14774_vm11 = vcmp.ge.s32.totalorder %v4189_v19, 3474676  ;;  %v2730_v51 = vadd.f32 %v17345_v5, %v1632_v30  ;;  %9145 = vrcp.f32 %v3119_v47  ;;  %v4190_v42 = vand.u32 8388607, %v14766_v45  ;;  %v1476_v5 = vld [vmem:[%s9587_s0 + $0x268] sm:$0xff] }
 0x3a1   : > { %v9140_v36 = vpop.eup %9139  ;;  %v3430_v28 = vmul.f32 %v9138_v37, %v14721_v29  ;;  %v1638_v56 = vunpack.c.h.bf16 %v1470_v59  ;;  %vm2928_vm12 = vcmp.eq.f32.partialorder %v17346_v52, 0.0  ;;  %v4766_v4 = vand.u32 4286578688, %v14766_v45  ;;  %v1479_v45 = vld [vmem:[%s9587_s0 + $0x280] sm:$0xff] }
 0x3a2   : > { %v3432_v23 = vmul.f32 %v9140_v36, %v2724_v48  ;;  %v2735_v43 = vadd.f32 %v17347_v13, %v1637_v50  ;;  %v3120_v18 = vsel %vm2928_vm12, 1.0, %v17346_v52  ;;  %6648 = vmatmul.mubr.bf16.gmra.mrb[188].mxu0 %v8675_v55  ;;  %v4573_v32 = vsel %vm14774_vm11, 8388608, %v15984_v27  ;;  %v17353_v50 = vld [vmem:[#allocation147_spill] sm:$0xff]  ;;  %v8683_v55 = vld [vmem:[#allocation3 + $0x334] ss:$24 sps:$4 sm:$0xff]  }
 0x3a3   : > { %v3811_v21 = vadd.f32 %v17348_v1, %v3430_v28  ;;  %9147 = vrcp.f32 %v3120_v18  ;;  %v4946_v29 = vadd.s32 %v4754_v41, %v4562_v60  ;;  %6769 = vmatpush1.bf16.xpose.msra.mxu0 %v17349_v31  ;;  %6657 = vmatprep.mubr.bf16.mxu0 %v8677_v15  ;;  %v4952_v12 = vadd.s32 %v4760_v6, %v4568_v3  ;;  %v17352_v41 = vld [vmem:[#allocation22_spill] sm:$0xff]  ;;  %v8682_v15 = vld [vmem:[#allocation3 + $0x3c8] ss:$24 sps:$4 sm:$0xff]  }
 0x3a4   : > { %v14793_v48 = vadd.f32 %v17348_v1, %v3432_v23  ;;  %v5329_v7 = vmul.f32 %v14728_v16, %v17306_v9  ;;  %v5335_v59 = vmul.f32 %v4951_v49, %v17312_v53  ;;  %vm14799_vm13 = vcmp.ge.s32.totalorder %v4190_v42, 3474676  ;;  %v8681_v16 = vld [vmem:[#allocation3 + $0x300] ss:$24 sps:$4 sm:$0xff]  }
 0x3a5   : > { %6961 = vmatmul.mubr.bf16.gmra.mrb[124].mxu1 %v8676_v54  ;;  %v4195_v44 = vand.u32 8388607, %v3811_v21  ;;  %v2736_v60 = vadd.f32 %v17352_v41, %v1638_v56  ;;  %v5330_v63 = vmul.f32 %v4946_v29, %v17311_v2  ;;  %v14805_v19 = vadd.s32 %v4765_v58, %v4573_v32  ;;  %v17354_v58 = vld [vmem:[#allocation155_spill] sm:$0xff]  ;;  %v17358_v18 = vld [vmem:[#allocation20_spill] sm:$0xff] }
 0x3a6   : > { %6970 = vmatprep.mubr.bf16.mxu1 %v8679_v8  ;;  %v9142_v30 = vpop.eup %9141  ;;  %v4196_v6 = vand.u32 8388607, %v14793_v48  ;;  %v5336_v9 = vmul.f32 %v4952_v12, %v17318_v40  ;;  %v5467_v53 = vpack.c.bf16 %v5335_v59, %v5329_v7  ;;  %v1643_v46 = vunpack.c.l.bf16 %v1473_v39  ;;  %v8685_v54 = vld [vmem:[#allocation3 + $0x3fc] ss:$24 sps:$4 sm:$0xff]   ;;  %v17357_v8 = vld [vmem:[#allocation49_spill] sm:$0xff]  ;;  %v17360_v7 = vld [vmem:[#allocation160_spill] sm:$0xff] }
 0x3a7   : > { %vm4387_vm14 = vcmp.ge.s32.totalorder %v4195_v44, 3474676  ;;  %v3442_v49 = vmul.f32 %v9142_v30, %v2729_v20  ;;  %vm2933_vm15 = vcmp.eq.f32.partialorder %v17353_v50, 0.0  ;;  %v4574_v2 = vsel %vm14799_vm13, 8388608, %v15984_v27  ;;  %v17361_v44 = vld [vmem:[#allocation86_spill] sm:$0xff] }
 0x3a8   : > { %v4771_v3 = vand.u32 4286578688, %v3811_v21  ;;  %v5468_v26 = vpack.c.bf16 %v5336_v9, %v5330_v63  ;;  %v3125_v47 = vsel %vm2933_vm15, 1.0, %v17353_v50  ;;  %v4579_v40 = vsel %vm4387_vm14, 8388608, %v15984_v27  ;;  %v8687_v63 = vld [vmem:[#allocation3 + $0x330] ss:$24 sps:$4 sm:$0xff]  }
 0x3a9   : > { %v9144_v37 = vpop.eup %9143  ;;  %v4772_v22 = vand.u32 4286578688, %v14793_v48  ;;  %v3817_v20 = vadd.f32 %v17354_v58, %v3442_v49  ;;  %9149 = vrcp.f32 %v3125_v47  ;;  %vm14818_vm1 = vcmp.ge.s32.totalorder %v4196_v6, 3474676  ;;  %v8697_v49 = vld [vmem:[#allocation3 + $0x45c] ss:$24 sps:$4 sm:$0xff]  }
 0x3aa   : > { %v9146_v36 = vpop.eup %9145  ;;  %v3444_v28 = vmul.f32 %v9144_v37, %v2730_v51  ;;  %7029 = vmatprep.subr.bf16.mxu1 %v5468_v26  ;;  %v1644_v56 = vunpack.c.h.bf16 %v1473_v39  ;;  %vm2934_vm2 = vcmp.eq.f32.partialorder %v17357_v8, 0.0  ;;  %6658 = vmatmul.mubr.bf16.gmra.mrb[192].mxu0 %v8681_v16  ;;  %v2741_v32 = vadd.f32 %v17358_v18, %v1643_v46  ;;  %v8689_v16 = vld [vmem:[#allocation3 + $0x364] ss:$24 sps:$4 sm:$0xff]  }
 0x3ab   : > { %v4201_v23 = vand.u32 8388607, %v3817_v20  ;;  %v3454_v13 = vmul.f32 %v9146_v36, %v2735_v43  ;;  %7030 = vmatpush1.bf16.xpose.msra.mxu1 %v5467_v53  ;;  %v3126_v1 = vsel %vm2934_vm2, 1.0, %v17357_v8  ;;  %6667 = vmatprep.mubr.bf16.mxu0 %v8683_v55  ;;  %v4963_v21 = vadd.s32 %v4771_v3, %v4579_v40  ;;  %v17359_v43 = vld [vmem:[#allocation66_spill] sm:$0xff]  ;;  %v17364_v55 = vld [vmem:[#allocation184_spill] sm:$0xff] }
 0x3ac   : > { %v14826_v29 = vadd.f32 %v17354_v58, %v3444_v28  ;;  %9151 = vrcp.f32 %v3126_v1  ;;  %v1649_v31 = vunpack.c.l.bf16 %v1476_v5  ;;  %v4580_v48 = vsel %vm14818_vm1, 8388608, %v15984_v27  ;;  %v8691_v40 = vld [vmem:[#allocation3 + $0x42c] ss:$24 sps:$4 sm:$0xff]  }
 0x3ad   : > { %6971 = vmatmul.mubr.bf16.gmra.mrb[128].mxu1 %v8682_v15  ;;  %v9148_v51 = vpop.eup %9147  ;;  %vm4393_vm3 = vcmp.ge.s32.totalorder %v4201_v23, 3474676  ;;  %v3823_v12 = vadd.f32 %v17359_v43, %v3454_v13  ;;  %vm2939_vm4 = vcmp.eq.f32.partialorder %v17360_v7, 0.0  ;;  %v4777_v59 = vand.u32 4286578688, %v3817_v20  ;;  %v17367_v15 = vld [vmem:[#allocation14_spill] sm:$0xff]  ;;  %v17368_v28 = vld [vmem:[#allocation185_spill] sm:$0xff] }
 0x3ae   : > { %6980 = vmatprep.mubr.bf16.mxu1 %v8685_v54  ;;  %v4202_v39 = vand.u32 8388607, %v14826_v29  ;;  %v3456_v0 = vmul.f32 %v9148_v51, %v2736_v60  ;;  %v2742_v41 = vadd.f32 %v17361_v44, %v1644_v56  ;;  %v4585_v30 = vsel %vm4393_vm3, 8388608, %v15984_v27  ;;  %v8688_v60 = vld [vmem:[#allocation3 + $0x3f8] ss:$24 sps:$4 sm:$0xff]   ;;  %v17371_v51 = vld [vmem:[#allocation108_spill] sm:$0xff] }
 0x3af   : > { %v4207_v6 = vand.u32 8388607, %v3823_v12  ;;  %v3131_v9 = vsel %vm2939_vm4, 1.0, %v17360_v7  ;;  %v1650_v53 = vunpack.c.h.bf16 %v1476_v5  ;;  %v2747_v3 = vadd.f32 %v17364_v55, %v1649_v31  ;;  %v17375_v55 = vld [vmem:[#allocation55_spill] sm:$0xff] }
 0x3b0   : > { %vm14837_vm5 = vcmp.ge.s32.totalorder %v4202_v39, 3474676  ;;  %v14842_v46 = vadd.f32 %v17359_v43, %v3456_v0  ;;  %9153 = vrcp.f32 %v3131_v9  ;;  %v4778_v26 = vand.u32 4286578688, %v14826_v29 }
 0x3b1   : > { %vm14846_vm6 = vcmp.ge.s32.totalorder %v4207_v6, 3474676  ;;  %vm2940_vm7 = vcmp.eq.f32.partialorder %v17367_v15, 0.0  ;;  %v4958_v37 = vadd.s32 %v4766_v4, %v4574_v2  ;;  %v14853_v58 = vadd.s32 %v4777_v59, %v4585_v30  ;;  %v1482_v30 = vld [vmem:[%s9587_s0 + $0x298] sm:$0xff]  ;;  %v8694_v6 = vld [vmem:[#allocation3 + $0x428] ss:$24 sps:$4 sm:$0xff]  }
 0x3b2   : > { %v4783_v20 = vand.u32 4286578688, %v3823_v12  ;;  %v4208_v5 = vand.u32 8388607, %v14842_v46  ;;  %v3132_v54 = vsel %vm2940_vm7, 1.0, %v17367_v15  ;;  %6668 = vmatmul.mubr.bf16.gmra.mrb[196].mxu0 %v8687_v63  ;;  %v4586_v42 = vsel %vm14837_vm5, 8388608, %v15984_v27  ;;  %v17373_v63 = vld [vmem:[#allocation139_spill] sm:$0xff] }
 0x3b3   : > { %v9150_v36 = vpop.eup %9149  ;;  %v2748_v56 = vadd.f32 %v17368_v28, %v1650_v53  ;;  %9155 = vrcp.f32 %v3132_v54  ;;  %v4964_v23 = vadd.s32 %v4772_v22, %v4580_v48  ;;  %6677 = vmatprep.mubr.bf16.mxu0 %v8689_v16  ;;  %v4591_v4 = vsel %vm14846_vm6, 8388608, %v15984_v27  ;;  %v17374_v16 = vld [vmem:[#allocation68_spill] sm:$0xff] }
 0x3b4   : > { %v3466_v2 = vmul.f32 %v9150_v36, %v2741_v32  ;;  %v5341_v13 = vmul.f32 %v14805_v19, %v17325_v24  ;;  %v5347_v18 = vmul.f32 %v4963_v21, %v17330_v57  ;;  %vm14868_vm8 = vcmp.ge.s32.totalorder %v4208_v5, 3474676  ;;  %v17372_v32 = vld [vmem:[#allocation163_spill] sm:$0xff]  ;;  %v17376_v36 = vld [vmem:[#allocation110_spill] sm:$0xff] }
 0x3b5   : > { %6981 = vmatmul.mubr.bf16.gmra.mrb[132].mxu1 %v8688_v60  ;;  %v5342_v31 = vmul.f32 %v4958_v37, %v17329_v38  ;;  %v5348_v22 = vmul.f32 %v4964_v23, %v17331_v11  ;;  %vm2945_vm0 = vcmp.eq.f32.partialorder %v17371_v51, 0.0  ;;  %v1655_v24 = vunpack.c.l.bf16 %v1479_v45  ;;  %v8693_v19 = vld [vmem:[#allocation3 + $0x360] ss:$24 sps:$4 sm:$0xff]   ;;  %v8695_v38 = vld [vmem:[#allocation3 + $0x394] ss:$24 sps:$4 sm:$0xff]  }
 0x3b6   : > { %6990 = vmatprep.mubr.bf16.mxu1 %v8691_v40  ;;  %v9152_v48 = vpop.eup %9151  ;;  %v3829_v43 = vadd.f32 %v17372_v32, %v3466_v2  ;;  %v5473_v12 = vpack.c.bf16 %v5347_v18, %v5341_v13  ;;  %v3137_v57 = vsel %vm2945_vm0, 1.0, %v17371_v51  ;;  %v4784_v21 = vand.u32 4286578688, %v14842_v46  ;;  %v17377_v2 = vld [vmem:[#allocation197_spill] sm:$0xff]  ;;  %v17378_v18 = vld [vmem:[#allocation162_spill] sm:$0xff] }
 0x3b7   : > { %v3468_v59 = vmul.f32 %v9152_v48, %v2742_v41  ;;  %v5474_v39 = vpack.c.bf16 %v5348_v22, %v5342_v31  ;;  %9157 = vrcp.f32 %v3137_v57  ;;  %v4975_v0 = vadd.s32 %v4783_v20, %v4591_v4 }
 0x3b8   : > { %v4213_v11 = vand.u32 8388607, %v3829_v43  ;;  %v1656_v44 = vunpack.c.h.bf16 %v1479_v45  ;;  %vm2946_vm9 = vcmp.eq.f32.partialorder %v17373_v63, 0.0  ;;  %v4592_v9 = vsel %vm14868_vm8, 8388608, %v15984_v27 }
 0x3b9   : > { %v14884_v53 = vadd.f32 %v17372_v32, %v3468_v59  ;;  %7031 = vmatprep.subr.bf16.mxu1 %v5474_v39  ;;  %v3138_v41 = vsel %vm2946_vm9, 1.0, %v17373_v63  ;;  %vm2951_vm10 = vcmp.eq.f32.partialorder %v17374_v16, 0.0  ;;  %v2753_v60 = vadd.f32 %v17375_v55, %v1655_v24  ;;  %v8699_v32 = vld [vmem:[#allocation3 + $0x390] ss:$24 sps:$4 sm:$0xff]   ;;  %v17381_v24 = vld [vmem:[#allocation16_spill] sm:$0xff] }
 0x3ba   : > { %v9154_v46 = vpop.eup %9153  ;;  %vm4405_vm11 = vcmp.ge.s32.totalorder %v4213_v11, 3474676  ;;  %7032 = vmatpush1.bf16.xpose.msra.mxu1 %v5473_v12  ;;  %9159 = vrcp.f32 %v3138_v41  ;;  %v3143_v47 = vsel %vm2951_vm10, 1.0, %v17374_v16  ;;  %6678 = vmatmul.mubr.bf16.gmra.mrb[200].mxu0 %v8693_v19  ;;  %v1661_v5 = vunpack.c.l.bf16 %v1482_v30  ;;  %v8701_v19 = vld [vmem:[#allocation3 + $0x3c4] ss:$24 sps:$4 sm:$0xff]  }
 0x3bb   : > { %v4597_v37 = vsel %vm4405_vm11, 8388608, %v15984_v27  ;;  %v4214_v40 = vand.u32 8388607, %v14884_v53  ;;  %v3478_v20 = vmul.f32 %v9154_v46, %v2747_v3  ;;  %6687 = vmatprep.mubr.bf16.mxu0 %v8695_v38  ;;  %v4789_v54 = vand.u32 4286578688, %v3829_v43  ;;  %v8700_v59 = vld [vmem:[#allocation3 + $0x458] ss:$24 sps:$4 sm:$0xff]  }
 0x3bc   : > { %v2754_v28 = vadd.f32 %v17376_v36, %v1656_v44  ;;  %9161 = vrcp.f32 %v3143_v47  ;;  %v1662_v23 = vunpack.c.h.bf16 %v1482_v30  ;;  %v4790_v4 = vand.u32 4286578688, %v14884_v53  ;;  %v17382_v44 = vld [vmem:[#allocation196_spill] sm:$0xff]  ;;  %v8705_v30 = vld [vmem:[#allocation3 + $0x14] ss:$24 sps:$4 sm:$0xff]   ;;  %v17383_v46 = vld [vmem:[#allocation47_spill] sm:$0xff] }
 0x3bd   : > { %6991 = vmatmul.mubr.bf16.gmra.mrb[136].mxu1 %v8694_v6  ;;  %v9156_v45 = vpop.eup %9155  ;;  %v3835_v13 = vadd.f32 %v17377_v2, %v3478_v20  ;;  %vm2952_vm12 = vcmp.eq.f32.partialorder %v17378_v18, 0.0  ;;  %v4970_v1 = vadd.s32 %v4778_v26, %v4586_v42  ;;  %v14898_v3 = vadd.s32 %v4789_v54, %v4597_v37  ;;  %v17384_v20 = vld [vmem:[#allocation200_spill] sm:$0xff] }
 0x3be   : > { %7000 = vmatprep.mubr.bf16.mxu1 %v8697_v49  ;;  %v3480_v31 = vmul.f32 %v9156_v45, %v2748_v56  ;;  %v3144_v22 = vsel %vm2952_vm12, 1.0, %v17378_v18  ;;  %v4976_v48 = vadd.s32 %v4784_v21, %v4592_v9  ;;  %vm14901_vm13 = vcmp.ge.s32.totalorder %v4214_v40, 3474676  ;;  %v1485_v21 = vld [vmem:[%s9587_s0 + $0x2b0] sm:$0xff]  ;;  %v1488_v49 = vld [vmem:[%s9587_s0 + $0x2c8] sm:$0xff] }
 0x3bf   : > { %v4219_v12 = vand.u32 8388607, %v3835_v13  ;;  %v2759_v57 = vadd.f32 %v17381_v24, %v1661_v5  ;;  %9163 = vrcp.f32 %v3144_v22  ;;  %v2760_v26 = vadd.f32 %v14360_v61, %v1662_v23  ;;  %v8706_v5 = vld [vmem:[#allocation3 + $0x3c0] ss:$24 sps:$4 sm:$0xff]  }
 0x3c0   : > { %v14907_v29 = vadd.f32 %v17377_v2, %v3480_v31  ;;  %v5360_v42 = vmul.f32 %v4976_v48, %v17346_v52  ;;  %v5359_v56 = vmul.f32 %v4975_v0, %v17341_v35  ;;  %v5354_v38 = vmul.f32 %v4970_v1, %v17340_v62  ;;  %v17385_v1 = vld [vmem:[#allocation193_spill] sm:$0xff] }
 0x3c1   : > { %v9158_v39 = vpop.eup %9157  ;;  %vm4411_vm14 = vcmp.ge.s32.totalorder %v4219_v12, 3474676  ;;  %v5353_v11 = vmul.f32 %v14853_v58, %v17336_v10  ;;  %vm2957_vm15 = vcmp.eq.f32.partialorder %v17382_v44, 0.0  ;;  %v4598_v61 = vsel %vm14901_vm13, 8388608, %v15984_v27 }
 0x3c2   : > { %v4603_v52 = vsel %vm4411_vm14, 8388608, %v15984_v27  ;;  %v4220_v35 = vand.u32 8388607, %v14907_v29  ;;  %v3490_v0 = vmul.f32 %v9158_v39, %v2753_v60  ;;  %6688 = vmatmul.mubr.bf16.gmra.mrb[204].mxu0 %v8699_v32  ;;  %v4795_v6 = vand.u32 4286578688, %v3835_v13 }
 0x3c3   : > { %v5480_v9 = vpack.c.bf16 %v5360_v42, %v5354_v38  ;;  %v5479_v41 = vpack.c.bf16 %v5359_v56, %v5353_v11  ;;  %v1667_v62 = vunpack.c.l.bf16 %v1485_v21  ;;  %6697 = vmatprep.mubr.bf16.mxu0 %v8701_v19  ;;  %v4796_v58 = vand.u32 4286578688, %v14907_v29  ;;  %v17386_v19 = vld [vmem:[#allocation120_spill] sm:$0xff] }
 0x3c4   : > { %v9160_v10 = vpop.eup %9159  ;;  %v3841_v55 = vadd.f32 %v17383_v46, %v3490_v0  ;;  %v3149_v47 = vsel %vm2957_vm15, 1.0, %v17382_v44  ;;  %v1668_v37 = vunpack.c.h.bf16 %v1485_v21  ;;  %v4987_v40 = vadd.s32 %v4795_v6, %v4603_v52 }
 0x3c5   : > { %7001 = vmatmul.mubr.bf16.gmra.mrb[140].mxu1 %v8700_v59  ;;  %v3492_v60 = vmul.f32 %v9160_v10, %v2754_v28  ;;  %7033 = vmatprep.subr.bf16.mxu1 %v5480_v9  ;;  %9165 = vrcp.f32 %v3149_v47  ;;  %vm2958_vm1 = vcmp.eq.f32.partialorder %v17384_v20, 0.0  ;;  %vm4412_vm2 = vcmp.ge.s32.totalorder %v4220_v35, 3474676  ;;  %v8707_v28 = vld [vmem:[#allocation3 + $0x3f4] ss:$24 sps:$4 sm:$0xff]   ;;  %v17387_v59 = vld [vmem:[#allocation199_spill] sm:$0xff] }
 0x3c6   : > { %7043 = vmatprep.mubr.bf16.mxu1 %v8705_v30  ;;  %v9162_v54 = vpop.eup %9161  ;;  %v4225_v36 = vand.u32 8388607, %v3841_v55  ;;  %7034 = vmatpush1.bf16.xpose.msra.mxu1 %v5479_v41  ;;  %v3150_v23 = vsel %vm2958_vm1, 1.0, %v17384_v20  ;;  %v1673_v45 = vunpack.c.l.bf16 %v1488_v49  ;;  %vm2963_vm3 = vcmp.eq.f32.partialorder %v17385_v1, 0.0  ;;  %v8711_v9 = vld [vmem:[#allocation3 + $0x3f0] ss:$24 sps:$4 sm:$0xff]  }
 0x3c7   : > { %v14931_v2 = vadd.f32 %v17383_v46, %v3492_v60  ;;  %v3502_v13 = vmul.f32 %v9162_v54, %v2759_v57  ;;  %9167 = vrcp.f32 %v3150_v23  ;;  %v2765_v31 = vadd.f32 %v14382_v25, %v1667_v62  ;;  %v8713_v10 = vld [vmem:[#allocation3 + $0x424] ss:$24 sps:$4 sm:$0xff]   ;;  %v17394_v23 = vld [vmem:[#allocation202_spill] sm:$0xff] }
 0x3c8   : > { %vm4417_vm4 = vcmp.ge.s32.totalorder %v4225_v36, 3474676  ;;  %v2766_v22 = vadd.f32 %v14410_v14, %v1668_v37  ;;  %v3155_v48 = vsel %vm2963_vm3, 1.0, %v17385_v1  ;;  %v4604_v43 = vsel %vm4412_vm2, 8388608, %v15984_v27  ;;  %v14977_v54 = vld [vmem:[%s9587_s0 + $0x2f8] sm:$0xff]  ;;  %v17398_v30 = vld [vmem:[#allocation58_spill] sm:$0xff] }
 0x3c9   : > { %v9164_v32 = vpop.eup %9163  ;;  %v4609_v12 = vsel %vm4417_vm4, 8388608, %v15984_v27  ;;  %v4226_v24 = vand.u32 8388607, %v14931_v2  ;;  %v3847_v57 = vadd.f32 %v17386_v19, %v3502_v13  ;;  %v4801_v29 = vand.u32 4286578688, %v3841_v55  ;;  %v17390_v55 = vld [vmem:[#allocation201_spill] sm:$0xff] }
 0x3ca   : > { %v3504_v42 = vmul.f32 %v9164_v32, %v2760_v26  ;;  %9169 = vrcp.f32 %v3155_v48  ;;  %v1674_v56 = vunpack.c.h.bf16 %v1488_v49  ;;  %6698 = vmatmul.mubr.bf16.gmra.mrb[208].mxu0 %v8706_v5  ;;  %v4802_v25 = vand.u32 4286578688, %v14931_v2  ;;  %v1491_v49 = vld [vmem:[%s9587_s0 + $0x2e0] sm:$0xff]  ;;  %s7986_s0 = sshll.u32 %s9364_s27, 1  ;;  %s15467_s27 = scalar_lea.hbm %s15531_s7, %s8231_s30 }
 0x3cb   : > { %v4231_v21 = vand.u32 8388607, %v3847_v57  ;;  %v2771_v14 = vadd.f32 %v14414_v34, %v1673_v45  ;;  %vm2964_vm5 = vcmp.eq.f32.partialorder %v17387_v59, 0.0  ;;  %6707 = vmatprep.mubr.bf16.mxu0 %v8707_v28  ;;  %v14944_v39 = vadd.s32 %v4801_v29, %v4609_v12  ;;  %v17395_v45 = vld [vmem:[#allocation78_spill] sm:$0xff]  ;;  %p477_p8 = scmp.lt.s32.totalorder %s7986_s0, 3 }
 0x3cc   : > { %v14947_v38 = vadd.f32 %v17386_v19, %v3504_v42  ;;  %v3156_v11 = vsel %vm2964_vm5, 1.0, %v17387_v59  ;;  %v4982_v26 = vadd.s32 %v4790_v4, %v4598_v61  ;;  %vm14952_vm6 = vcmp.ge.s32.totalorder %v4226_v24, 3474676 }
 0x3cd   : > { %vm4423_vm7 = vcmp.ge.s32.totalorder %v4231_v21, 3474676  ;;  %9171 = vrcp.f32 %v3156_v11  ;;  %v4988_v34 = vadd.s32 %v4796_v58, %v4604_v43  ;;  %v4807_v35 = vand.u32 4286578688, %v3847_v57  ;;  %v8717_v57 = vld [vmem:[#allocation3 + $0x420] ss:$24 sps:$4 sm:$0xff]   ;;  %v17396_v21 = vld [vmem:[#allocation138_spill] sm:$0xff] }
 0x3ce   : > { %v4615_v52 = vsel %vm4423_vm7, 8388608, %v15984_v27  ;;  %v4232_v0 = vand.u32 8388607, %v14947_v38  ;;  %v2772_v6 = vadd.f32 %v14432_v17, %v1674_v56  ;;  %v5366_v53 = vmul.f32 %v4982_v26, %v17357_v8  ;;  %v17397_v11 = vld [vmem:[#allocation71_spill] sm:$0xff]  ;;  %s17502_s0 = smov (!%p477_p8, %s7986_s0), 3 }
 0x3cf   : > { %v9166_v41 = vpop.eup %9165  ;;  %v5372_v4 = vmul.f32 %v4988_v34, %v17367_v15  ;;  %v5365_v61 = vmul.f32 %v14898_v3, %v17353_v50  ;;  %v5371_v62 = vmul.f32 %v4987_v40, %v17360_v7  ;;  %v4610_v58 = vsel %vm14952_vm6, 8388608, %v15984_v27  ;;  %v17393_v3 = vld [vmem:[#allocation183_spill] sm:$0xff]  ;;  %s479_s21 = scalar_lea.vmem %s15530_s6, %s17502_s0  ;;  %s9290_s0 = sshll.u32 %s9381_s13, 4  ;;  %s9291_s0 = int_to_ptr.vmem [resolvable:$false] %s9290_s0 }
 0x3d0   : > { %v4808_v17 = vand.u32 4286578688, %v14947_v38  ;;  %v3514_v46 = vmul.f32 %v9166_v41, %v2765_v31  ;;  %vm2969_vm8 = vcmp.eq.f32.partialorder %v17390_v55, 0.0  ;;  %v4999_v47 = vadd.s32 %v4807_v35, %v4615_v52  ;;  %s9292_s11 = scalar_lea.vmem %s9291_s0, 24576  ;;  %p9293_p5 = scmp.lt.s32.totalorder %s15471_s16, %s9291_s0 }
 0x3d1   : > { %v9168_v8 = vpop.eup %9167  ;;  %vm14970_vm0 = vcmp.ge.s32.totalorder %v4232_v0, 3474676  ;;  %v5486_v50 = vpack.c.bf16 %v5372_v4, %v5366_v53  ;;  %v5485_v7 = vpack.c.bf16 %v5371_v62, %v5365_v61  ;;  %v1679_v60 = vunpack.c.l.bf16 %v1491_v49  ;;  %p9294_p9 = scmp.lt.s32.totalorder %s9292_s11, %s9286_s20 }
 0x3d2   : > { %v3853_v37 = vadd.f32 %v17393_v3, %v3514_v46  ;;  %v3516_v40 = vmul.f32 %v9168_v8, %v2766_v22  ;;  %v3161_v5 = vsel %vm2969_vm8, 1.0, %v17390_v55  ;;  %6708 = vmatmul.mubr.bf16.gmra.mrb[212].mxu0 %v8711_v9  ;;  %v1680_v36 = vunpack.c.h.bf16 %v1491_v49  ;;  %v17399_v9 = vld [vmem:[#allocation130_spill] sm:$0xff] }
 0x3d3   : > { %7035 = vmatprep.subr.bf16.mxu1 %v5486_v50  ;;  %9173 = vrcp.f32 %v3161_v5  ;;  %vm2970_vm9 = vcmp.eq.f32.partialorder %v17394_v23, 0.0  ;;  %vm2975_vm10 = vcmp.eq.f32.partialorder %v17395_v45, 0.0  ;;  %6717 = vmatprep.mubr.bf16.mxu0 %v8713_v10  ;;  %v4616_v28 = vsel %vm14970_vm0, 8388608, %v15984_v27  ;;  %v8727_v5 = vld [vmem:[#allocation3 + $0xc] ss:$24 sps:$4 sm:$0xff]   ;;  %p9295_p1 = por %p9294_p9, %p9293_p5 }
 0x3d4   : > { %v9170_v13 = vpop.eup %9169  ;;  %v4237_v31 = vand.u32 8388607, %v3853_v37  ;;  %v3854_v22 = vadd.f32 %v17393_v3, %v3516_v40  ;;  %7036 = vmatpush1.bf16.xpose.msra.mxu1 %v5485_v7  ;;  %v3162_v48 = vsel %vm2970_vm9, 1.0, %v17394_v23  ;;  %v1685_v43 = vunpack.c.l.bf16 %v14977_v54 }
 0x3d5   : > { %v3526_v32 = vmul.f32 %v9170_v13, %v2771_v14  ;;  %9175 = vrcp.f32 %v3162_v48  ;;  %v3167_v12 = vsel %vm2975_vm10, 1.0, %v17395_v45  ;;  %v2777_v19 = vadd.f32 %v14456_v33, %v1679_v60  ;;  %v8719_v14 = vld [vmem:[#allocation3 + $0x454] ss:$24 sps:$4 sm:$0xff]   ;;  %p9296_p2 = pnand %p9295_p1, %p9289_p0 }
 0x3d6   : > { %vm4429_vm11 = vcmp.ge.s32.totalorder %v4237_v31, 3474676  ;;  %v4238_v24 = vand.u32 8388607, %v3854_v22  ;;  %9177 = vrcp.f32 %v3167_v12  ;;  %v4813_v56 = vand.u32 4286578688, %v3853_v37  ;;  %v17401_v31 = vld [vmem:[#allocation178_spill] sm:$0xff] }
 0x3d7   : > { %v9172_v29 = vpop.eup %9171  ;;  %v4621_v42 = vsel %vm4429_vm11, 8388608, %v15984_v27  ;;  %v3859_v38 = vadd.f32 %v17396_v21, %v3526_v32  ;;  %vm2976_vm12 = vcmp.eq.f32.partialorder %v17397_v11, 0.0  ;;  %v2778_v34 = vadd.f32 %v17398_v30, %v1680_v36  ;;  %v17400_v36 = vld [vmem:[#allocation34_spill] sm:$0xff] }
 0x3d8   : > { %vm4430_vm13 = vcmp.ge.s32.totalorder %v4238_v24, 3474676  ;;  %v3528_v26 = vmul.f32 %v9172_v29, %v2772_v6  ;;  %v3168_v52 = vsel %vm2976_vm12, 1.0, %v17397_v11  ;;  %v5005_v35 = vadd.s32 %v4813_v56, %v4621_v42 }
 0x3d9   : > { %v4622_v33 = vsel %vm4430_vm13, 8388608, %v15984_v27  ;;  %v4243_v0 = vand.u32 8388607, %v3859_v38  ;;  %v2783_v41 = vadd.f32 %v17399_v9, %v1685_v43  ;;  %9179 = vrcp.f32 %v3168_v52 }
 0x3da   : > { %v3860_v53 = vadd.f32 %v17396_v21, %v3528_v26  ;;  %v4994_v4 = vadd.s32 %v4802_v25, %v4610_v58  ;;  %v5000_v61 = vadd.s32 %v4808_v17, %v4616_v28  ;;  %6718 = vmatmul.mubr.bf16.gmra.mrb[216].mxu0 %v8717_v57  ;;  %v4819_v6 = vand.u32 4286578688, %v3859_v38  ;;  %v8725_v26 = vld [vmem:[#allocation3 + $0x8] ss:$24 sps:$4 sm:$0xff]  }
 0x3db   : > { %vm4435_vm14 = vcmp.ge.s32.totalorder %v4243_v0, 3474676  ;;  %v5377_v62 = vmul.f32 %v14944_v39, %v17371_v51  ;;  %v5383_v49 = vmul.f32 %v4999_v47, %v17374_v16  ;;  %6727 = vmatprep.mubr.bf16.mxu0 %v8719_v14  ;;  %v4814_v10 = vand.u32 4286578688, %v3854_v22  ;;  %v8723_v39 = vld [vmem:[#allocation3 + $0x450] ss:$24 sps:$4 sm:$0xff]  }
 0x3dc   : > { %v4627_v46 = vsel %vm4435_vm14, 8388608, %v15984_v27  ;;  %v4244_v8 = vand.u32 8388607, %v3860_v53  ;;  %v1686_v15 = vunpack.c.h.bf16 %v14977_v54  ;;  %v5378_v2 = vmul.f32 %v4994_v4, %v17373_v63 }
 0x3dd   : > { %v9174_v50 = vpop.eup %9173  ;;  %v5011_v7 = vadd.s32 %v4819_v6, %v4627_v46  ;;  %v5384_v25 = vmul.f32 %v5000_v61, %v17378_v18  ;;  %v5491_v58 = vpack.c.bf16 %v5383_v49, %v5377_v62  ;;  %v4820_v17 = vand.u32 4286578688, %v3860_v53  ;;  %v8735_v49 = vld [vmem:[#allocation3 + $0x38] ss:$24 sps:$4 sm:$0xff]  }
 0x3de   : > { %vm4436_vm15 = vcmp.ge.s32.totalorder %v4244_v8, 3474676  ;;  %v3538_v3 = vmul.f32 %v9174_v50, %v2777_v19  ;;  %v5006_v51 = vadd.s32 %v4814_v10, %v4622_v33  ;;  %v5389_v40 = vmul.f32 %v5005_v35, %v17382_v44  ;;  %v8737_v8 = vld [vmem:[#allocation3 + $0x6c] ss:$24 sps:$4 sm:$0xff]   ;;  %v8741_v50 = vld [vmem:[#allocation3 + $0x68] ss:$24 sps:$4 sm:$0xff]  }
 0x3df   : > { %v9176_v16 = vpop.eup %9175  ;;  %v4628_v47 = vsel %vm4436_vm15, 8388608, %v15984_v27  ;;  %v5492_v37 = vpack.c.bf16 %v5384_v25, %v5378_v2  ;;  %v5395_v60 = vmul.f32 %v5011_v7, %v17385_v1  ;;  %v2784_v22 = vadd.f32 %v17401_v31, %v1686_v15  ;;  %v17402_v1 = vld [vmem:[#allocation154_spill] sm:$0xff]  ;;  %v8712_v2 = vld [vmem:[#allocation3 + $0x40] ss:$24 sps:$4 sm:$0xff]  }
 0x3e0   : > { %v9178_v54 = vpop.eup %9177  ;;  %v3865_v63 = vadd.f32 %v17400_v36, %v3538_v3  ;;  %v3540_v13 = vmul.f32 %v9176_v16, %v2778_v34  ;;  %v5012_v18 = vadd.s32 %v4820_v17, %v4628_v47  ;;  %v5390_v12 = vmul.f32 %v5006_v51, %v17384_v20  ;;  %v8731_v34 = vld [vmem:[#allocation3 + $0x3c] ss:$24 sps:$4 sm:$0xff]   ;;  %v8730_v3 = vld [vmem:[#allocation3 + $0xd0] ss:$24 sps:$4 sm:$0xff]   ;;  %v8736_v47 = vld [vmem:[#allocation3 + $0x100] ss:$24 sps:$4 sm:$0xff]  }
 0x3e1   : > { %v3550_v28 = vmul.f32 %v9178_v54, %v2783_v41  ;;  %7037 = vmatprep.subr.bf16.mxu1 %v5492_v37  ;;  %v5497_v48 = vpack.c.bf16 %v5395_v60, %v5389_v40  ;;  %v8743_v7 = vld [vmem:[#allocation3 + $0x9c] ss:$24 sps:$4 sm:$0xff]  }
 0x3e2   : > { %v4249_v32 = vand.u32 8388607, %v3865_v63  ;;  %v3866_v43 = vadd.f32 %v17400_v36, %v3540_v13  ;;  %7038 = vmatpush1.bf16.xpose.msra.mxu1 %v5491_v58  ;;  %v5396_v44 = vmul.f32 %v5012_v18, %v17387_v59  ;;  %6728 = vmatmul.mubr.bf16.gmra.mrb[220].mxu0 %v8723_v39  ;;  %v4825_v56 = vand.u32 4286578688, %v3865_v63  ;;  %v8715_v25 = vld [vmem:[#allocation3 + $0x74] ss:$24 sps:$4 sm:$0xff]  }
 0x3e3   : > { %v3871_v24 = vadd.f32 %v17402_v1, %v3550_v28  ;;  %6770 = vmatprep.mubr.bf16.mxu0 %v8727_v5  ;;  %v9180_v19 = vpop.eup %9179  ;;  %v8724_v58 = vld [vmem:[#allocation3 + $0xa0] ss:$24 sps:$4 sm:$0xff]   ;;  %v8728_v17 = vld [vmem:[#allocation3 + $0xd4] ss:$24 sps:$4 sm:$0xff]   ;;  %v8733_v51 = vld [vmem:[#allocation3 + $0x104] ss:$24 sps:$4 sm:$0xff]  }
 0x3e4   : > { %vm4441_vm1 = vcmp.ge.s32.totalorder %v4249_v32, 3474676  ;;  %v4250_v57 = vand.u32 8388607, %v3866_v43  ;;  %v5498_v29 = vpack.c.bf16 %v5396_v44, %v5390_v12  ;;  %v3552_v38 = vmul.f32 %v9180_v19, %v2784_v22  ;;  %v8739_v40 = vld [vmem:[#allocation3 + $0x134] ss:$24 sps:$4 sm:$0xff]  }
 0x3e5   : > { %v4633_v42 = vsel %vm4441_vm1, 8388608, %v15984_v27  ;;  %v4255_v21 = vand.u32 8388607, %v3871_v24  ;;  %v4831_v14 = vand.u32 4286578688, %v3871_v24  ;;  %v4826_v52 = vand.u32 4286578688, %v3866_v43 }
 0x3e6   : > { %vm4442_vm2 = vcmp.ge.s32.totalorder %v4250_v57, 3474676  ;;  %7039 = vmatprep.subr.bf16.mxu1 %v5498_v29  ;;  %v5017_v20 = vadd.s32 %v4825_v56, %v4633_v42  ;;  %v3872_v30 = vadd.f32 %v17402_v1, %v3552_v38  ;;  %v8742_v36 = vld [vmem:[#allocation3 + $0x130] ss:$24 sps:$4 sm:$0xff]   ;;  %v8745_v13 = vld [vmem:[#allocation3 + $0x164] ss:$24 sps:$4 sm:$0xff]  }
 0x3e7   : > { %v4634_v59 = vsel %vm4442_vm2, 8388608, %v15984_v27  ;;  %vm4447_vm3 = vcmp.ge.s32.totalorder %v4255_v21, 3474676  ;;  %v8748_v22 = vld [vmem:[#allocation3 + $0x160] ss:$24 sps:$4 sm:$0xff]  }
 0x3e8   : > { %v4639_v35 = vsel %vm4447_vm3, 8388608, %v15984_v27  ;;  %v4256_v0 = vand.u32 8388607, %v3872_v30  ;;  %v5018_v9 = vadd.s32 %v4826_v52, %v4634_v59  ;;  %v4832_v41 = vand.u32 4286578688, %v3872_v30  ;;  %v8749_v32 = vld [vmem:[#allocation3 + $0x194] ss:$24 sps:$4 sm:$0xff]  }
 0x3e9   : > { %v5023_v33 = vadd.s32 %v4831_v14, %v4639_v35  ;;  %v5401_v53 = vmul.f32 %v5017_v20, %v17390_v55  ;;  %v8703_v55 = vld [vmem:[#allocation3 + $0x10] ss:$24 sps:$4 sm:$0xff]   ;;  %v8752_v19 = vld [vmem:[#allocation3 + $0x1c4] ss:$24 sps:$4 sm:$0xff]   ;;  %v8754_v56 = vld [vmem:[#allocation3 + $0x1c0] ss:$24 sps:$4 sm:$0xff]  }
 0x3ea   : > { %7040 = vmatpush1.bf16.xpose.msra.mxu1 %v5497_v48  ;;  %6771 = vmatmul.mubr.bf16.vlgmr.msra.gmra.mrb[128].mxu0 %v8725_v26  ;;  %vm4448_vm4 = vcmp.ge.s32.totalorder %v4256_v0, 3474676  ;;  %v5402_v10 = vmul.f32 %v5018_v9, %v17394_v23  ;;  %v8718_v23 = vld [vmem:[#allocation3 + $0x70] ss:$24 sps:$4 sm:$0xff]   ;;  %v8755_v38 = vld [vmem:[#allocation3 + $0x1f4] ss:$24 sps:$4 sm:$0xff]  }
 0x3eb   : > { %v5407_v4 = vmul.f32 %v5023_v33, %v17395_v45  ;;  %6780 = vmatprep.mubr.bf16.mxu0 %v8731_v34  ;;  %v4640_v61 = vsel %vm4448_vm4, 8388608, %v15984_v27  ;;  %v8709_v45 = vld [vmem:[#allocation3 + $0x44] ss:$24 sps:$4 sm:$0xff]   ;;  %v8747_v27 = vld [vmem:[#allocation3 + $0x98] ss:$24 sps:$4 sm:$0xff]  }
 0x3ec   : > { %v5024_v6 = vadd.s32 %v4832_v41, %v4640_v61  ;;  %v8751_v1 = vld [vmem:[#allocation3 + $0x190] ss:$24 sps:$4 sm:$0xff]   ;;  %v8758_v34 = vld [vmem:[#allocation3 + $0x224] ss:$24 sps:$4 sm:$0xff]   ;;  %v8760_v0 = vld [vmem:[#allocation3 + $0x220] ss:$24 sps:$4 sm:$0xff]  }
 0x3ed   : > { %v5503_v62 = vpack.c.bf16 %v5407_v4, %v5401_v53  ;;  %v8757_v59 = vld [vmem:[#allocation3 + $0x1f0] ss:$24 sps:$4 sm:$0xff]   ;;  %v8761_v41 = vld [vmem:[#allocation3 + $0x254] ss:$24 sps:$4 sm:$0xff]  }
 0x3ee   : > { %v5408_v46 = vmul.f32 %v5024_v6, %v17397_v11  ;;  %v8721_v11 = vld [vmem:[#allocation3 + $0xa4] ss:$24 sps:$4 sm:$0xff]   ;;  %v8763_v6 = vld [vmem:[#allocation3 + $0x250] ss:$24 sps:$4 sm:$0xff]  }
 0x3f0   : > { %v5504_v15 = vpack.c.bf16 %v5408_v46, %v5402_v10 }
 0x3f2   : > { %6781 = vmatmul.mubr.bf16.gmra.mrb[132].mxu0 %v8735_v49  ;;  %7041 = vmatprep.subr.bf16.mxu1 %v5504_v15  ;;  %v8764_v49 = vld [vmem:[#allocation3 + $0x284] ss:$24 sps:$4 sm:$0xff]   ;;  %v8766_v15 = vld [vmem:[#allocation3 + $0x280] ss:$24 sps:$4 sm:$0xff]  }
 0x3f3   : > { %6790 = vmatprep.mubr.bf16.mxu0 %v8737_v8  ;;  %7042 = vmatpush1.bf16.xpose.msra.mxu1 %v5503_v62 }
 0x3fa   : > { %6791 = vmatmul.mubr.bf16.gmra.mrb[136].mxu0 %v8741_v50  ;;  %7044 = vmatmul.mubr.bf16.vlgmr.msra.gmra.mrb[144].mxu1 %v8703_v55  ;;  %v8767_v55 = vld [vmem:[#allocation3 + $0x2b4] ss:$24 sps:$4 sm:$0xff]  }
 0x3fb   : > { %6800 = vmatprep.mubr.bf16.mxu0 %v8743_v7  ;;  %7053 = vmatprep.mubr.bf16.mxu1 %v8709_v45 }
 0x402   : > { %6801 = vmatmul.mubr.bf16.gmra.mrb[140].mxu0 %v8747_v27  ;;  %7054 = vmatmul.mubr.bf16.gmra.mrb[148].mxu1 %v8712_v2  ;;  %v8769_v2 = vld [vmem:[#allocation3 + $0x2b0] ss:$24 sps:$4 sm:$0xff]  }
 0x403   : > { %7063 = vmatprep.mubr.bf16.mxu1 %v8715_v25 }
 0x40a   : > { %7064 = vmatmul.mubr.bf16.gmra.mrb[152].mxu1 %v8718_v23  ;;  %v8770_v23 = vld [vmem:[#allocation3 + $0x2e4] ss:$24 sps:$4 sm:$0xff]  }
 0x40b   : > { %7073 = vmatprep.mubr.bf16.mxu1 %v8721_v11 }
 0x412   : > { %7074 = vmatmul.mubr.bf16.gmra.mrb[156].mxu1 %v8724_v58 }
 0x413   : > { %7083 = vmatprep.mubr.bf16.mxu1 %v8728_v17 }
 0x41a   : > { %7084 = vmatmul.mubr.bf16.gmra.mrb[64].mxu1 %v8730_v3  ;;  %v8772_v3 = vld [vmem:[#allocation3 + $0x2e0] ss:$24 sps:$4 sm:$0xff]  }
 0x41b   : > { %7093 = vmatprep.mubr.bf16.mxu1 %v8733_v51 }
 0x41d   : > { %v15024_v39 = vpop.f32.mrb[144].mxu0 }
 0x41e   : > { %v15026_v16 = vpop.f32.mrb[145].mxu0 }
 0x41f   : > { %v15028_v37 = vpop.f32.mrb[146].mxu0 }
 0x420   : > { %v15030_v60 = vpop.f32.mrb[147].mxu0 }
 0x422   : > { %7094 = vmatmul.mubr.bf16.gmra.mrb[68].mxu1 %v8736_v47  ;;  %v8773_v47 = vld [vmem:[#allocation3 + $0x314] ss:$24 sps:$4 sm:$0xff]  }
 0x423   : > { %7103 = vmatprep.mubr.bf16.mxu1 %v8739_v40 }
 0x425   : > { %v15032_v5 = vpop.f32.mrb[148].mxu0 }
 0x426   : > { %v15034_v54 = vpop.f32.mrb[149].mxu0 }
 0x427   : > { %v15036_v63 = vpop.f32.mrb[150].mxu0 }
 0x428   : > { %v15038_v18 = vpop.f32.mrb[151].mxu0 }
 0x42a   : > { %7104 = vmatmul.mubr.bf16.gmra.mrb[72].mxu1 %v8742_v36 }
 0x42b   : > { %7113 = vmatprep.mubr.bf16.mxu1 %v8745_v13 }
 0x42d   : > { %v15040_v28 = vpop.f32.mrb[152].mxu0 }
 0x42e   : > { %v15042_v31 = vpop.f32.mrb[153].mxu0 }
 0x42f   : > { %v15044_v48 = vpop.f32.mrb[154].mxu0 }
 0x430   : > { %v15046_v43 = vpop.f32.mrb[155].mxu0 }
 0x432   : > { %7114 = vmatmul.mubr.bf16.gmra.mrb[76].mxu1 %v8748_v22  ;;  %v8775_v22 = vld [vmem:[#allocation3 + $0x310] ss:$24 sps:$4 sm:$0xff]  }
 0x433   : > { %7123 = vmatprep.mubr.bf16.mxu1 %v8749_v32 }
 0x435   : > { %v15048_v12 = vpop.f32.mrb[156].mxu0 }
 0x436   : > { %v15050_v44 = vpop.f32.mrb[157].mxu0 }
 0x437   : > { %v15052_v24 = vpop.f32.mrb[158].mxu0 }
 0x438   : > { %v15054_v57 = vpop.f32.mrb[159].mxu0 }
 0x43a   : > { %7124 = vmatmul.mubr.bf16.gmra.mrb[80].mxu1 %v8751_v1  ;;  %v8776_v1 = vld [vmem:[#allocation3 + $0x344] ss:$24 sps:$4 sm:$0xff]  }
 0x43b   : > { %7133 = vmatprep.mubr.bf16.mxu1 %v8752_v19 }
 0x43d   : > { %v15056_v29 = vpop.f32.mrb[160].mxu0 }
 0x43e   : > { %v15058_v42 = vpop.f32.mrb[161].mxu0 }
 0x43f   : > { %v15060_v21 = vpop.f32.mrb[162].mxu0 }
 0x440   : > { %v15062_v14 = vpop.f32.mrb[163].mxu0 }
 0x442   : > { %7134 = vmatmul.mubr.bf16.gmra.mrb[84].mxu1 %v8754_v56 }
 0x443   : > { %7143 = vmatprep.mubr.bf16.mxu1 %v8755_v38 }
 0x445   : > { %v15064_v26 = vpop.f32.mrb[164].mxu0 }
 0x446   : > { %v15066_v20 = vpop.f32.mrb[165].mxu0 }
 0x447   : > { %v15068_v30 = vpop.f32.mrb[166].mxu0 }
 0x448   : > { %v15070_v52 = vpop.f32.mrb[167].mxu0 }
 0x44a   : > { %7144 = vmatmul.mubr.bf16.gmra.mrb[88].mxu1 %v8757_v59  ;;  %v8778_v59 = vld [vmem:[#allocation3 + $0x340] ss:$24 sps:$4 sm:$0xff]  }
 0x44b   : > { %7153 = vmatprep.mubr.bf16.mxu1 %v8758_v34 }
 0x44d   : > { %v15072_v35 = vpop.f32.mrb[168].mxu0 }
 0x44e   : > { %v15074_v33 = vpop.f32.mrb[169].mxu0 }
 0x44f   : > { %v15076_v9 = vpop.f32.mrb[170].mxu0 }
 0x450   : > { %v15078_v53 = vpop.f32.mrb[171].mxu0 }
 0x452   : > { %7154 = vmatmul.mubr.bf16.gmra.mrb[92].mxu1 %v8760_v0  ;;  %v8779_v0 = vld [vmem:[#allocation3 + $0x374] ss:$24 sps:$4 sm:$0xff]  }
 0x453   : > { %7163 = vmatprep.mubr.bf16.mxu1 %v8761_v41 }
 0x455   : > { %v15080_v4 = vpop.f32.mrb[172].mxu0 }
 0x456   : > { %v15082_v61 = vpop.f32.mrb[173].mxu0 }
 0x457   : > { %v15084_v62 = vpop.f32.mrb[174].mxu0 }
 0x458   : > { %v15086_v10 = vpop.f32.mrb[175].mxu0 }
 0x45a   : > { %7164 = vmatmul.mubr.bf16.gmra.mrb[96].mxu1 %v8763_v6 }
 0x45b   : > { %7173 = vmatprep.mubr.bf16.mxu1 %v8764_v49 }
 0x45d   : > { %v15088_v46 = vpop.f32.mrb[176].mxu0 }
 0x45e   : > { %v15090_v8 = vpop.f32.mrb[177].mxu0 }
 0x45f   : > { %v15092_v50 = vpop.f32.mrb[178].mxu0 }
 0x460   : > { %v15094_v7 = vpop.f32.mrb[179].mxu0 }
 0x462   : > { %7174 = vmatmul.mubr.bf16.gmra.mrb[100].mxu1 %v8766_v15  ;;  %v8781_v15 = vld [vmem:[#allocation3 + $0x370] ss:$24 sps:$4 sm:$0xff]  }
 0x463   : > { %7183 = vmatprep.mubr.bf16.mxu1 %v8767_v55 }
 0x465   : > { %v15096_v45 = vpop.f32.mrb[180].mxu0 }
 0x466   : > { %v15098_v27 = vpop.f32.mrb[181].mxu0 }
 0x467   : > { %v15100_v25 = vpop.f32.mrb[182].mxu0 }
 0x468   : > { %17403 = vst [vmem:[#allocation126_spill] sm:$0xff] %v15100_v25  ;;  %v15102_v11 = vpop.f32.mrb[183].mxu0 }
 0x469   : > { %17404 = vst [vmem:[#allocation121_spill] sm:$0xff] %v15102_v11 }
 0x46a   : > { %7184 = vmatmul.mubr.bf16.gmra.mrb[104].mxu1 %v8769_v2  ;;  %v8782_v2 = vld [vmem:[#allocation3 + $0x3a4] ss:$24 sps:$4 sm:$0xff]  }
 0x46b   : > { %7193 = vmatprep.mubr.bf16.mxu1 %v8770_v23 }
 0x46d   : > { %v15104_v58 = vpop.f32.mrb[184].mxu0 }
 0x46e   : > { %17405 = vst [vmem:[#allocation100_spill] sm:$0xff] %v15104_v58  ;;  %v15106_v17 = vpop.f32.mrb[185].mxu0 }
 0x46f   : > { %17406 = vst [vmem:[#allocation28_spill] sm:$0xff] %v15106_v17  ;;  %v15108_v51 = vpop.f32.mrb[186].mxu0 }
 0x470   : > { %17407 = vst [vmem:[#allocation171_spill] sm:$0xff] %v15108_v51  ;;  %v15110_v40 = vpop.f32.mrb[187].mxu0 }
 0x471   : > { %17408 = vst [vmem:[#allocation73_spill] sm:$0xff] %v15110_v40 }
 0x472   : > { %7194 = vmatmul.mubr.bf16.gmra.mrb[108].mxu1 %v8772_v3 }
 0x473   : > { %7203 = vmatprep.mubr.bf16.mxu1 %v8773_v47 }
 0x475   : > { %v15112_v36 = vpop.f32.mrb[188].mxu0 }
 0x476   : > { %17409 = vst [vmem:[#allocation111_spill] sm:$0xff] %v15112_v36  ;;  %v15114_v13 = vpop.f32.mrb[189].mxu0 }
 0x477   : > { %17410 = vst [vmem:[#allocation21_spill] sm:$0xff] %v15114_v13  ;;  %v15116_v32 = vpop.f32.mrb[190].mxu0 }
 0x478   : > { %17411 = vst [vmem:[#allocation88_spill] sm:$0xff] %v15116_v32  ;;  %v15118_v19 = vpop.f32.mrb[191].mxu0 }
 0x479   : > { %17412 = vst [vmem:[#allocation140_spill] sm:$0xff] %v15118_v19 }
 0x47a   : > { %7204 = vmatmul.mubr.bf16.gmra.mrb[112].mxu1 %v8775_v22  ;;  %v8784_v22 = vld [vmem:[#allocation3 + $0x3a0] ss:$24 sps:$4 sm:$0xff]  }
 0x47b   : > { %7213 = vmatprep.mubr.bf16.mxu1 %v8776_v1 }
 0x47d   : > { %v15120_v56 = vpop.f32.mrb[192].mxu0 }
 0x47e   : > { %17413 = vst [vmem:[#allocation89_spill] sm:$0xff] %v15120_v56  ;;  %v15122_v38 = vpop.f32.mrb[193].mxu0 }
 0x47f   : > { %17414 = vst [vmem:[#allocation61_spill] sm:$0xff] %v15122_v38  ;;  %v15124_v34 = vpop.f32.mrb[194].mxu0 }
 0x480   : > { %17415 = vst [vmem:[#allocation107_spill] sm:$0xff] %v15124_v34  ;;  %v15126_v41 = vpop.f32.mrb[195].mxu0 }
 0x481   : > { %17416 = vst [vmem:[#allocation175_spill] sm:$0xff] %v15126_v41 }
 0x482   : > { %7214 = vmatmul.mubr.bf16.gmra.mrb[116].mxu1 %v8778_v59  ;;  %v8785_v59 = vld [vmem:[#allocation3 + $0x3d4] ss:$24 sps:$4 sm:$0xff]  }
 0x483   : > { %7223 = vmatprep.mubr.bf16.mxu1 %v8779_v0 }
 0x485   : > { %v15128_v6 = vpop.f32.mrb[196].mxu0 }
 0x486   : > { %17417 = vst [vmem:[#allocation75_spill] sm:$0xff] %v15128_v6  ;;  %v15130_v49 = vpop.f32.mrb[197].mxu0  ;;  %v8787_v6 = vld [vmem:[#allocation3 + $0x3d0] ss:$24 sps:$4 sm:$0xff]  }
 0x487   : > { %17418 = vst [vmem:[#allocation114_spill] sm:$0xff] %v15130_v49  ;;  %v15132_v55 = vpop.f32.mrb[198].mxu0 }
 0x488   : > { %17419 = vst [vmem:[#allocation57_spill] sm:$0xff] %v15132_v55  ;;  %v15134_v23 = vpop.f32.mrb[199].mxu0 }
 0x489   : > { %17420 = vst [vmem:[#allocation39_spill] sm:$0xff] %v15134_v23 }
 0x48a   : > { %7224 = vmatmul.mubr.bf16.gmra.mrb[120].mxu1 %v8781_v15  ;;  %v8788_v15 = vld [vmem:[#allocation3 + $0x404] ss:$24 sps:$4 sm:$0xff]  }
 0x48b   : > { %7233 = vmatprep.mubr.bf16.mxu1 %v8782_v2 }
 0x48d   : > { %v15136_v3 = vpop.f32.mrb[200].mxu0 }
 0x48e   : > { %17421 = vst [vmem:[#allocation195_spill] sm:$0xff] %v15136_v3  ;;  %v15138_v47 = vpop.f32.mrb[201].mxu0  ;;  %v8790_v3 = vld [vmem:[#allocation3 + $0x400] ss:$24 sps:$4 sm:$0xff]  }
 0x48f   : > { %17422 = vst [vmem:[#allocation84_spill] sm:$0xff] %v15138_v47  ;;  %v15140_v1 = vpop.f32.mrb[202].mxu0 }
 0x490   : > { %17423 = vst [vmem:[#allocation40_spill] sm:$0xff] %v15140_v1  ;;  %v15142_v0 = vpop.f32.mrb[203].mxu0 }
 0x491   : > { %17424 = vst [vmem:[#allocation203_spill] sm:$0xff] %v15142_v0 }
 0x492   : > { %7234 = vmatmul.mubr.bf16.gmra.mrb[124].mxu1 %v8784_v22  ;;  %v8791_v22 = vld [vmem:[#allocation3 + $0x434] ss:$24 sps:$4 sm:$0xff]  }
 0x493   : > { %7243 = vmatprep.mubr.bf16.mxu1 %v8785_v59 }
 0x495   : > { %v15144_v49 = vpop.f32.mrb[204].mxu0 }
 0x496   : > { %17425 = vst [vmem:[#allocation45_spill] sm:$0xff] %v15144_v49  ;;  %v15146_v55 = vpop.f32.mrb[205].mxu0  ;;  %v8793_v49 = vld [vmem:[#allocation3 + $0x430] ss:$24 sps:$4 sm:$0xff]  }
 0x497   : > { %17426 = vst [vmem:[#allocation105_spill] sm:$0xff] %v15146_v55  ;;  %v15148_v23 = vpop.f32.mrb[206].mxu0 }
 0x498   : > { %17427 = vst [vmem:[#allocation46_spill] sm:$0xff] %v15148_v23  ;;  %v15150_v2 = vpop.f32.mrb[207].mxu0 }
 0x499   : > { %17428 = vst [vmem:[#allocation167_spill] sm:$0xff] %v15150_v2 }
 0x49a   : > { %7244 = vmatmul.mubr.bf16.gmra.mrb[128].mxu1 %v8787_v6 }
 0x49b   : > { %7253 = vmatprep.mubr.bf16.mxu1 %v8788_v15  ;;  %v8794_v15 = vld [vmem:[#allocation3 + $0x464] ss:$24 sps:$4 sm:$0xff]  }
 0x49d   : > { %v15152_v47 = vpop.f32.mrb[208].mxu0 }
 0x49e   : > { %17429 = vst [vmem:[#allocation189_spill] sm:$0xff] %v15152_v47  ;;  %v15154_v1 = vpop.f32.mrb[209].mxu0 }
 0x49f   : > { %17430 = vst [vmem:[#allocation102_spill] sm:$0xff] %v15154_v1  ;;  %v15156_v0 = vpop.f32.mrb[210].mxu0 }
 0x4a0   : > { %17431 = vst [vmem:[#allocation179_spill] sm:$0xff] %v15156_v0  ;;  %v15158_v59 = vpop.f32.mrb[211].mxu0 }
 0x4a1   : > { %17432 = vst [vmem:[#allocation127_spill] sm:$0xff] %v15158_v59  ;;  %v8796_v59 = vld [vmem:[#allocation3 + $0x460] ss:$24 sps:$4 sm:$0xff]  }
 0x4a2   : > { %7254 = vmatmul.mubr.bf16.gmra.mrb[132].mxu1 %v8790_v3 }
 0x4a3   : > { %7263 = vmatprep.mubr.bf16.mxu1 %v8791_v22 }
 0x4a5   : > { %v15160_v55 = vpop.f32.mrb[212].mxu0 }
 0x4a6   : > { %17433 = vst [vmem:[#allocation15_spill] sm:$0xff] %v15160_v55  ;;  %v15162_v23 = vpop.f32.mrb[213].mxu0 }
 0x4a7   : > { %17434 = vst [vmem:[#allocation95_spill] sm:$0xff] %v15162_v23  ;;  %v15164_v6 = vpop.f32.mrb[214].mxu0 }
 0x4a8   : > { %17435 = vst [vmem:[#allocation170_spill] sm:$0xff] %v15164_v6  ;;  %v15166_v47 = vpop.f32.mrb[215].mxu0 }
 0x4a9   : > { %17436 = vst [vmem:[#allocation181_spill] sm:$0xff] %v15166_v47  ;;  %v7577_v47 = vlaneseq }
 0x4aa   : > { %7264 = vmatmul.mubr.bf16.gmra.mrb[136].mxu1 %v8793_v49 }
 0x4ab   : > { %7273 = vmatprep.mubr.bf16.mxu1 %v8794_v15 }
 0x4ad   : > { %v15168_v1 = vpop.f32.mrb[216].mxu0 }
 0x4ae   : > { %17437 = vst [vmem:[#allocation13_spill] sm:$0xff] %v15168_v1  ;;  %v15170_v0 = vpop.f32.mrb[217].mxu0 }
 0x4af   : > { %17438 = vst [vmem:[#allocation96_spill] sm:$0xff] %v15170_v0  ;;  %v15172_v3 = vpop.f32.mrb[218].mxu0 }
 0x4b0   : > { %17439 = vst [vmem:[#allocation104_spill] sm:$0xff] %v15172_v3  ;;  %v15174_v22 = vpop.f32.mrb[219].mxu0  ;;  %v7578_v3 = vshrl.u32 %v7577_v47, 7 }
 0x4b1   : > { %17440 = vst [vmem:[#allocation98_spill] sm:$0xff] %v15174_v22 }
 0x4b2   : > { %7274 = vmatmul.mubr.bf16.gmra.mrb[140].mxu1 %v8796_v59 }
 0x4b5   : > { %v15176_v23 = vpop.f32.mrb[220].mxu0 }
 0x4b6   : > { %17441 = vst [vmem:[#allocation92_spill] sm:$0xff] %v15176_v23  ;;  %v15178_v55 = vpop.f32.mrb[221].mxu0  ;;  %v7575_v23 = vld [vmem:[%s479_s21] sm:$0x3] }
 0x4b7   : > { %17442 = vst [vmem:[#allocation93_spill] sm:$0xff] %v15178_v55  ;;  %v15180_v6 = vpop.f32.mrb[222].mxu0 }
 0x4b8   : > { %17443 = vst [vmem:[#allocation99_spill] sm:$0xff] %v15180_v6  ;;  %v15182_v2 = vpop.f32.mrb[223].mxu0  ;;  %v7579_v6 = vsub.s32 0, %v7578_v3 }
 0x4b9   : > { %17444 = vst [vmem:[#allocation148_spill] sm:$0xff] %v15182_v2  ;;  %v7583_v2 = vsub.s32 1, %v7578_v3 }
 0x4ba   : > { %v15188_v34 = vrot.slane %v7575_v23, %v7579_v6 }
 0x4bb   : > { %v15190_v19 = vrot.slane %v7575_v23, %v7583_v2 }
 0x4bd   : > { %v6772_v49 = vpop.f32.mrb[128].mxu0 }
 0x4be   : > { %v6774_v15 = vpop.f32.mrb[129].mxu0 }
 0x4bf   : > { %v6776_v1 = vpop.f32.mrb[130].mxu0 }
 0x4c0   : > { %v6778_v0 = vpop.f32.mrb[131].mxu0 }
 0x4c5   : > { %v6782_v41 = vpop.f32.mrb[132].mxu0 }
 0x4c6   : > { %v6784_v22 = vpop.f32.mrb[133].mxu0 }
 0x4c7   : > { %v6786_v59 = vpop.f32.mrb[134].mxu0 }
 0x4c8   : > { %v6788_v55 = vpop.f32.mrb[135].mxu0 }
 0x4cd   : > { %v6792_v38 = vpop.f32.mrb[136].mxu0  ;;  %v7045_v56 = vpop.f32.mrb[144].mxu1 }
 0x4ce   : > { %v6794_v32 = vpop.f32.mrb[137].mxu0  ;;  %v7047_v47 = vpop.f32.mrb[145].mxu1  ;;  %v8264_v13 = vadd.f32 %v7045_v56, %v6772_v49 }
 0x4cf   : > { %v6796_v36 = vpop.f32.mrb[138].mxu0  ;;  %v7049_v40 = vpop.f32.mrb[146].mxu1  ;;  %v8265_v51 = vadd.f32 %v7047_v47, %v6774_v15 }
 0x4d0   : > { %v6798_v17 = vpop.f32.mrb[139].mxu0  ;;  %v7051_v58 = vpop.f32.mrb[147].mxu1  ;;  %v7587_v11 = vadd.f32 %v8264_v13, %v15188_v34  ;;  %v8266_v25 = vadd.f32 %v7049_v40, %v6776_v1 }
 0x4d1   : > { %v7588_v3 = vadd.f32 %v8265_v51, %v15190_v19  ;;  %v8267_v6 = vadd.f32 %v7051_v58, %v6778_v0 }
 0x4d2   : > { %7683 = vst [vmem:[%s15196_s18] sm:$0xff] %v7587_v11  ;;  %v7589_v56 = vadd.f32 %v8266_v25, %v15188_v34 }
 0x4d3   : > { %7684 = vst [vmem:[%s15196_s18 + $0x8] sm:$0xff] %v7588_v3  ;;  %v7590_v23 = vadd.f32 %v8267_v6, %v15190_v19 }
 0x4d4   : > { %7685 = vst [vmem:[%s15196_s18 + $0x10] sm:$0xff] %v7589_v56 }
 0x4d5   : > { %v6802_v13 = vpop.f32.mrb[140].mxu0  ;;  %v7055_v40 = vpop.f32.mrb[148].mxu1  ;;  %7686 = vst [vmem:[%s15196_s18 + $0x18] sm:$0xff] %v7590_v23 }
 0x4d6   : > { %v6804_v58 = vpop.f32.mrb[141].mxu0  ;;  %v7057_v51 = vpop.f32.mrb[149].mxu1  ;;  %v8268_v1 = vadd.f32 %v7055_v40, %v6782_v41 }
 0x4d7   : > { %v6806_v0 = vpop.f32.mrb[142].mxu0  ;;  %v7059_v2 = vpop.f32.mrb[150].mxu1  ;;  %v8269_v49 = vadd.f32 %v7057_v51, %v6784_v22 }
 0x4d8   : > { %v6808_v11 = vpop.f32.mrb[143].mxu0  ;;  %v7061_v15 = vpop.f32.mrb[151].mxu1  ;;  %v7591_v25 = vadd.f32 %v8268_v1, %v15188_v34  ;;  %v8270_v47 = vadd.f32 %v7059_v2, %v6786_v59 }
 0x4d9   : > { %v7592_v3 = vadd.f32 %v8269_v49, %v15190_v19  ;;  %v8271_v6 = vadd.f32 %v7061_v15, %v6788_v55 }
 0x4da   : > { %7687 = vst [vmem:[%s15196_s18 + $0x20] sm:$0xff] %v7591_v25  ;;  %v7593_v56 = vadd.f32 %v8270_v47, %v15188_v34 }
 0x4db   : > { %7688 = vst [vmem:[%s15196_s18 + $0x28] sm:$0xff] %v7592_v3  ;;  %v7594_v41 = vadd.f32 %v8271_v6, %v15190_v19 }
 0x4dc   : > { %7689 = vst [vmem:[%s15196_s18 + $0x30] sm:$0xff] %v7593_v56 }
 0x4dd   : > { %v7065_v23 = vpop.f32.mrb[152].mxu1  ;;  %7690 = vst [vmem:[%s15196_s18 + $0x38] sm:$0xff] %v7594_v41 }
 0x4de   : > { %v7067_v22 = vpop.f32.mrb[153].mxu1  ;;  %v8272_v40 = vadd.f32 %v7065_v23, %v6792_v38 }
 0x4df   : > { %v7069_v51 = vpop.f32.mrb[154].mxu1  ;;  %v8273_v59 = vadd.f32 %v7067_v22, %v6794_v32 }
 0x4e0   : > { %v7071_v1 = vpop.f32.mrb[155].mxu1  ;;  %v7595_v55 = vadd.f32 %v8272_v40, %v15188_v34  ;;  %v8274_v2 = vadd.f32 %v7069_v51, %v6796_v36 }
 0x4e1   : > { %v7596_v49 = vadd.f32 %v8273_v59, %v15190_v19  ;;  %v8275_v15 = vadd.f32 %v7071_v1, %v6798_v17 }
 0x4e2   : > { %7691 = vst [vmem:[%s15196_s18 + $0x40] sm:$0xff] %v7595_v55  ;;  %v7597_v25 = vadd.f32 %v8274_v2, %v15188_v34 }
 0x4e3   : > { %7692 = vst [vmem:[%s15196_s18 + $0x48] sm:$0xff] %v7596_v49  ;;  %v7598_v47 = vadd.f32 %v8275_v15, %v15190_v19 }
 0x4e4   : > { %7693 = vst [vmem:[%s15196_s18 + $0x50] sm:$0xff] %v7597_v25 }
 0x4e5   : > { %v7075_v38 = vpop.f32.mrb[156].mxu1  ;;  %7694 = vst [vmem:[%s15196_s18 + $0x58] sm:$0xff] %v7598_v47 }
 0x4e6   : > { %v7077_v32 = vpop.f32.mrb[157].mxu1  ;;  %v8276_v3 = vadd.f32 %v7075_v38, %v6802_v13 }
 0x4e7   : > { %v7079_v6 = vpop.f32.mrb[158].mxu1  ;;  %v8277_v36 = vadd.f32 %v7077_v32, %v6804_v58 }
 0x4e8   : > { %v7081_v56 = vpop.f32.mrb[159].mxu1  ;;  %v7599_v17 = vadd.f32 %v8276_v3, %v15188_v34  ;;  %v8278_v41 = vadd.f32 %v7079_v6, %v6806_v0 }
 0x4e9   : > { %v7600_v23 = vadd.f32 %v8277_v36, %v15190_v19  ;;  %v8279_v22 = vadd.f32 %v7081_v56, %v6808_v11 }
 0x4ea   : > { %7695 = vst [vmem:[%s15196_s18 + $0x60] sm:$0xff] %v7599_v17  ;;  %v7601_v40 = vadd.f32 %v8278_v41, %v15188_v34 }
 0x4eb   : > { %7696 = vst [vmem:[%s15196_s18 + $0x68] sm:$0xff] %v7600_v23  ;;  %v7602_v51 = vadd.f32 %v8279_v22, %v15190_v19 }
 0x4ec   : > { %7697 = vst [vmem:[%s15196_s18 + $0x70] sm:$0xff] %v7601_v40 }
 0x4ed   : > { %v7085_v13 = vpop.f32.mrb[64].mxu1  ;;  %7698 = vst [vmem:[%s15196_s18 + $0x78] sm:$0xff] %v7602_v51 }
 0x4ee   : > { %v8280_v58 = vadd.f32 %v7085_v13, %v15024_v39  ;;  %v7087_v59 = vpop.f32.mrb[65].mxu1 }
 0x4ef   : > { %v8281_v0 = vadd.f32 %v7087_v59, %v15026_v16  ;;  %v7089_v1 = vpop.f32.mrb[66].mxu1 }
 0x4f0   : > { %v7603_v11 = vadd.f32 %v8280_v58, %v15188_v34  ;;  %v8282_v55 = vadd.f32 %v7089_v1, %v15028_v37  ;;  %v7091_v2 = vpop.f32.mrb[67].mxu1 }
 0x4f1   : > { %v7604_v49 = vadd.f32 %v8281_v0, %v15190_v19  ;;  %v8283_v15 = vadd.f32 %v7091_v2, %v15030_v60 }
 0x4f2   : > { %7699 = vst [vmem:[%s15196_s18 + $0x80] sm:$0xff] %v7603_v11  ;;  %v7605_v25 = vadd.f32 %v8282_v55, %v15188_v34 }
 0x4f3   : > { %7700 = vst [vmem:[%s15196_s18 + $0x88] sm:$0xff] %v7604_v49  ;;  %v7606_v39 = vadd.f32 %v8283_v15, %v15190_v19 }
 0x4f4   : > { %7701 = vst [vmem:[%s15196_s18 + $0x90] sm:$0xff] %v7605_v25 }
 0x4f5   : > { %7702 = vst [vmem:[%s15196_s18 + $0x98] sm:$0xff] %v7606_v39  ;;  %v7095_v16 = vpop.f32.mrb[68].mxu1 }
 0x4f6   : > { %v8284_v37 = vadd.f32 %v7095_v16, %v15032_v5  ;;  %v7097_v47 = vpop.f32.mrb[69].mxu1 }
 0x4f7   : > { %v8285_v38 = vadd.f32 %v7097_v47, %v15034_v54  ;;  %v7099_v32 = vpop.f32.mrb[70].mxu1 }
 0x4f8   : > { %v7607_v60 = vadd.f32 %v8284_v37, %v15188_v34  ;;  %v8286_v3 = vadd.f32 %v7099_v32, %v15036_v63  ;;  %v7101_v6 = vpop.f32.mrb[71].mxu1 }
 0x4f9   : > { %v7608_v36 = vadd.f32 %v8285_v38, %v15190_v19  ;;  %v8287_v56 = vadd.f32 %v7101_v6, %v15038_v18 }
 0x4fa   : > { %7703 = vst [vmem:[%s15196_s18 + $0xa0] sm:$0xff] %v7607_v60  ;;  %v7609_v17 = vadd.f32 %v8286_v3, %v15188_v34 }
 0x4fb   : > { %7704 = vst [vmem:[%s15196_s18 + $0xa8] sm:$0xff] %v7608_v36  ;;  %v7610_v5 = vadd.f32 %v8287_v56, %v15190_v19 }
 0x4fc   : > { %7705 = vst [vmem:[%s15196_s18 + $0xb0] sm:$0xff] %v7609_v17 }
 0x4fd   : > { %7706 = vst [vmem:[%s15196_s18 + $0xb8] sm:$0xff] %v7610_v5  ;;  %v7105_v54 = vpop.f32.mrb[72].mxu1 }
 0x4fe   : > { %v8288_v63 = vadd.f32 %v7105_v54, %v15040_v28  ;;  %v7107_v41 = vpop.f32.mrb[73].mxu1 }
 0x4ff   : > { %v8289_v23 = vadd.f32 %v7107_v41, %v15042_v31  ;;  %v7109_v22 = vpop.f32.mrb[74].mxu1 }
 0x500   : > { %v7611_v18 = vadd.f32 %v8288_v63, %v15188_v34  ;;  %v8290_v40 = vadd.f32 %v7109_v22, %v15044_v48  ;;  %v7111_v51 = vpop.f32.mrb[75].mxu1 }
 0x501   : > { %v7612_v13 = vadd.f32 %v8289_v23, %v15190_v19  ;;  %v8291_v58 = vadd.f32 %v7111_v51, %v15046_v43 }
 0x502   : > { %7707 = vst [vmem:[%s15196_s18 + $0xc0] sm:$0xff] %v7611_v18  ;;  %v7613_v59 = vadd.f32 %v8290_v40, %v15188_v34 }
 0x503   : > { %7708 = vst [vmem:[%s15196_s18 + $0xc8] sm:$0xff] %v7612_v13  ;;  %v7614_v28 = vadd.f32 %v8291_v58, %v15190_v19 }
 0x504   : > { %7709 = vst [vmem:[%s15196_s18 + $0xd0] sm:$0xff] %v7613_v59 }
 0x505   : > { %7710 = vst [vmem:[%s15196_s18 + $0xd8] sm:$0xff] %v7614_v28  ;;  %v7115_v31 = vpop.f32.mrb[76].mxu1 }
 0x506   : > { %v8292_v48 = vadd.f32 %v7115_v31, %v15048_v12  ;;  %v7117_v0 = vpop.f32.mrb[77].mxu1 }
 0x507   : > { %v8293_v1 = vadd.f32 %v7117_v0, %v15050_v44  ;;  %v7119_v11 = vpop.f32.mrb[78].mxu1 }
 0x508   : > { %v7615_v43 = vadd.f32 %v8292_v48, %v15188_v34  ;;  %v8294_v55 = vadd.f32 %v7119_v11, %v15052_v24  ;;  %v7121_v2 = vpop.f32.mrb[79].mxu1 }
 0x509   : > { %v7616_v49 = vadd.f32 %v8293_v1, %v15190_v19  ;;  %v8295_v15 = vadd.f32 %v7121_v2, %v15054_v57 }
 0x50a   : > { %7711 = vst [vmem:[%s15196_s18 + $0xe0] sm:$0xff] %v7615_v43  ;;  %v7617_v25 = vadd.f32 %v8294_v55, %v15188_v34 }
 0x50b   : > { %7712 = vst [vmem:[%s15196_s18 + $0xe8] sm:$0xff] %v7616_v49  ;;  %v7618_v12 = vadd.f32 %v8295_v15, %v15190_v19 }
 0x50c   : > { %7713 = vst [vmem:[%s15196_s18 + $0xf0] sm:$0xff] %v7617_v25 }
 0x50d   : > { %7714 = vst [vmem:[%s15196_s18 + $0xf8] sm:$0xff] %v7618_v12  ;;  %v7125_v44 = vpop.f32.mrb[80].mxu1 }
 0x50e   : > { %v8296_v24 = vadd.f32 %v7125_v44, %v15056_v29  ;;  %v7127_v39 = vpop.f32.mrb[81].mxu1 }
 0x50f   : > { %v8297_v16 = vadd.f32 %v7127_v39, %v15058_v42  ;;  %v7129_v37 = vpop.f32.mrb[82].mxu1 }
 0x510   : > { %v7619_v57 = vadd.f32 %v8296_v24, %v15188_v34  ;;  %v8298_v47 = vadd.f32 %v7129_v37, %v15060_v21  ;;  %v7131_v38 = vpop.f32.mrb[83].mxu1 }
 0x511   : > { %v7620_v32 = vadd.f32 %v8297_v16, %v15190_v19  ;;  %v8299_v60 = vadd.f32 %v7131_v38, %v15062_v14 }
 0x512   : > { %7715 = vst [vmem:[%s15196_s18 + $0x100] sm:$0xff] %v7619_v57  ;;  %v7621_v3 = vadd.f32 %v8298_v47, %v15188_v34  ;;  %v17446_v47 = vld [vmem:[#allocation126_spill] sm:$0xff] }
 0x513   : > { %7716 = vst [vmem:[%s15196_s18 + $0x108] sm:$0xff] %v7620_v32  ;;  %v7622_v29 = vadd.f32 %v8299_v60, %v15190_v19 }
 0x514   : > { %7717 = vst [vmem:[%s15196_s18 + $0x110] sm:$0xff] %v7621_v3  ;;  %v17447_v3 = vld [vmem:[#allocation121_spill] sm:$0xff] }
 0x515   : > { %7718 = vst [vmem:[%s15196_s18 + $0x118] sm:$0xff] %v7622_v29  ;;  %v7135_v42 = vpop.f32.mrb[84].mxu1 }
 0x516   : > { %v8300_v21 = vadd.f32 %v7135_v42, %v15064_v26  ;;  %v7137_v6 = vpop.f32.mrb[85].mxu1 }
 0x517   : > { %v8301_v36 = vadd.f32 %v7137_v6, %v15066_v20  ;;  %v7139_v56 = vpop.f32.mrb[86].mxu1 }
 0x518   : > { %v7623_v14 = vadd.f32 %v8300_v21, %v15188_v34  ;;  %v8302_v17 = vadd.f32 %v7139_v56, %v15068_v30  ;;  %v7141_v5 = vpop.f32.mrb[87].mxu1  ;;  %v17448_v21 = vld [vmem:[#allocation100_spill] sm:$0xff] }
 0x519   : > { %v7624_v54 = vadd.f32 %v8301_v36, %v15190_v19  ;;  %v8303_v63 = vadd.f32 %v7141_v5, %v15070_v52  ;;  %v17449_v56 = vld [vmem:[#allocation28_spill] sm:$0xff] }
 0x51a   : > { %7719 = vst [vmem:[%s15196_s18 + $0x120] sm:$0xff] %v7623_v14  ;;  %v7625_v41 = vadd.f32 %v8302_v17, %v15188_v34 }
 0x51b   : > { %7720 = vst [vmem:[%s15196_s18 + $0x128] sm:$0xff] %v7624_v54  ;;  %v7626_v26 = vadd.f32 %v8303_v63, %v15190_v19  ;;  %v17450_v54 = vld [vmem:[#allocation171_spill] sm:$0xff] }
 0x51c   : > { %7721 = vst [vmem:[%s15196_s18 + $0x130] sm:$0xff] %v7625_v41 }
 0x51d   : > { %7722 = vst [vmem:[%s15196_s18 + $0x138] sm:$0xff] %v7626_v26  ;;  %v7145_v20 = vpop.f32.mrb[88].mxu1 }
 0x51e   : > { %v8304_v30 = vadd.f32 %v7145_v20, %v15072_v35  ;;  %v7147_v23 = vpop.f32.mrb[89].mxu1  ;;  %v17451_v20 = vld [vmem:[#allocation73_spill] sm:$0xff] }
 0x51f   : > { %v8305_v22 = vadd.f32 %v7147_v23, %v15074_v33  ;;  %v7149_v18 = vpop.f32.mrb[90].mxu1 }
 0x520   : > { %v7627_v52 = vadd.f32 %v8304_v30, %v15188_v34  ;;  %v8306_v40 = vadd.f32 %v7149_v18, %v15076_v9  ;;  %v7151_v51 = vpop.f32.mrb[91].mxu1 }
 0x521   : > { %v7628_v13 = vadd.f32 %v8305_v22, %v15190_v19  ;;  %v8307_v58 = vadd.f32 %v7151_v51, %v15078_v53 }
 0x522   : > { %7723 = vst [vmem:[%s15196_s18 + $0x140] sm:$0xff] %v7627_v52  ;;  %v7629_v59 = vadd.f32 %v8306_v40, %v15188_v34  ;;  %v17452_v52 = vld [vmem:[#allocation111_spill] sm:$0xff] }
 0x523   : > { %7724 = vst [vmem:[%s15196_s18 + $0x148] sm:$0xff] %v7628_v13  ;;  %v7630_v35 = vadd.f32 %v8307_v58, %v15190_v19  ;;  %v17453_v13 = vld [vmem:[#allocation21_spill] sm:$0xff] }
 0x524   : > { %7725 = vst [vmem:[%s15196_s18 + $0x150] sm:$0xff] %v7629_v59 }
 0x525   : > { %7726 = vst [vmem:[%s15196_s18 + $0x158] sm:$0xff] %v7630_v35  ;;  %v7155_v33 = vpop.f32.mrb[92].mxu1 }
 0x526   : > { %v8308_v9 = vadd.f32 %v7155_v33, %v15080_v4  ;;  %v7157_v28 = vpop.f32.mrb[93].mxu1  ;;  %v17454_v33 = vld [vmem:[#allocation88_spill] sm:$0xff] }
 0x527   : > { %v8309_v31 = vadd.f32 %v7157_v28, %v15082_v61  ;;  %v7159_v48 = vpop.f32.mrb[94].mxu1 }
 0x528   : > { %v7631_v53 = vadd.f32 %v8308_v9, %v15188_v34  ;;  %v8310_v0 = vadd.f32 %v7159_v48, %v15084_v62  ;;  %v7161_v1 = vpop.f32.mrb[95].mxu1  ;;  %v17455_v48 = vld [vmem:[#allocation140_spill] sm:$0xff] }
 0x529   : > { %v7632_v11 = vadd.f32 %v8309_v31, %v15190_v19  ;;  %v8311_v43 = vadd.f32 %v7161_v1, %v15086_v10 }
 0x52a   : > { %7727 = vst [vmem:[%s15196_s18 + $0x160] sm:$0xff] %v7631_v53  ;;  %v7633_v55 = vadd.f32 %v8310_v0, %v15188_v34 }
 0x52b   : > { %7728 = vst [vmem:[%s15196_s18 + $0x168] sm:$0xff] %v7632_v11  ;;  %v7634_v4 = vadd.f32 %v8311_v43, %v15190_v19  ;;  %v17456_v43 = vld [vmem:[#allocation89_spill] sm:$0xff] }
 0x52c   : > { %7729 = vst [vmem:[%s15196_s18 + $0x170] sm:$0xff] %v7633_v55 }
 0x52d   : > { %7730 = vst [vmem:[%s15196_s18 + $0x178] sm:$0xff] %v7634_v4  ;;  %v7165_v61 = vpop.f32.mrb[96].mxu1 }
 0x52e   : > { %v8312_v62 = vadd.f32 %v7165_v61, %v15088_v46  ;;  %v7167_v2 = vpop.f32.mrb[97].mxu1  ;;  %v17457_v61 = vld [vmem:[#allocation61_spill] sm:$0xff] }
 0x52f   : > { %v8313_v49 = vadd.f32 %v7167_v2, %v15090_v8  ;;  %v7169_v15 = vpop.f32.mrb[98].mxu1 }
 0x530   : > { %v7635_v10 = vadd.f32 %v8312_v62, %v15188_v34  ;;  %v8314_v25 = vadd.f32 %v7169_v15, %v15092_v50  ;;  %v7171_v12 = vpop.f32.mrb[99].mxu1  ;;  %v17458_v15 = vld [vmem:[#allocation107_spill] sm:$0xff] }
 0x531   : > { %v7636_v44 = vadd.f32 %v8313_v49, %v15190_v19  ;;  %v8315_v24 = vadd.f32 %v7171_v12, %v15094_v7 }
 0x532   : > { %7731 = vst [vmem:[%s15196_s18 + $0x180] sm:$0xff] %v7635_v10  ;;  %v7637_v39 = vadd.f32 %v8314_v25, %v15188_v34 }
 0x533   : > { %7732 = vst [vmem:[%s15196_s18 + $0x188] sm:$0xff] %v7636_v44  ;;  %v7638_v46 = vadd.f32 %v8315_v24, %v15190_v19  ;;  %v17459_v44 = vld [vmem:[#allocation175_spill] sm:$0xff] }
 0x534   : > { %7733 = vst [vmem:[%s15196_s18 + $0x190] sm:$0xff] %v7637_v39 }
 0x535   : > { %7734 = vst [vmem:[%s15196_s18 + $0x198] sm:$0xff] %v7638_v46  ;;  %v7175_v8 = vpop.f32.mrb[100].mxu1 }
 0x536   : > { %v8316_v50 = vadd.f32 %v7175_v8, %v15096_v45  ;;  %v7177_v16 = vpop.f32.mrb[101].mxu1 }
 0x537   : > { %v8317_v37 = vadd.f32 %v7177_v16, %v15098_v27  ;;  %v7179_v57 = vpop.f32.mrb[102].mxu1 }
 0x538   : > { %v7639_v7 = vadd.f32 %v8316_v50, %v15188_v34  ;;  %v8318_v38 = vadd.f32 %v7179_v57, %v17446_v47  ;;  %v7181_v32 = vpop.f32.mrb[103].mxu1  ;;  %v17460_v50 = vld [vmem:[#allocation75_spill] sm:$0xff]  ;;  %v17461_v57 = vld [vmem:[#allocation114_spill] sm:$0xff] }
 0x539   : > { %v7640_v60 = vadd.f32 %v8317_v37, %v15190_v19  ;;  %v8319_v29 = vadd.f32 %v7181_v32, %v17447_v3  ;;  %v17462_v32 = vld [vmem:[#allocation57_spill] sm:$0xff] }
 0x53a   : > { %7735 = vst [vmem:[%s15196_s18 + $0x1a0] sm:$0xff] %v7639_v7  ;;  %v7641_v42 = vadd.f32 %v8318_v38, %v15188_v34 }
 0x53b   : > { %7736 = vst [vmem:[%s15196_s18 + $0x1a8] sm:$0xff] %v7640_v60  ;;  %v7642_v45 = vadd.f32 %v8319_v29, %v15190_v19 }
 0x53c   : > { %7737 = vst [vmem:[%s15196_s18 + $0x1b0] sm:$0xff] %v7641_v42  ;;  %v17463_v42 = vld [vmem:[#allocation39_spill] sm:$0xff] }
 0x53d   : > { %7738 = vst [vmem:[%s15196_s18 + $0x1b8] sm:$0xff] %v7642_v45  ;;  %v7185_v27 = vpop.f32.mrb[104].mxu1 }
 0x53e   : > { %v8320_v6 = vadd.f32 %v7185_v27, %v17448_v21  ;;  %v7187_v36 = vpop.f32.mrb[105].mxu1 }
 0x53f   : > { %v8321_v14 = vadd.f32 %v7187_v36, %v17449_v56  ;;  %v7189_v17 = vpop.f32.mrb[106].mxu1  ;;  %v17464_v36 = vld [vmem:[#allocation195_spill] sm:$0xff] }
 0x540   : > { %v7643_v5 = vadd.f32 %v8320_v6, %v15188_v34  ;;  %v8322_v63 = vadd.f32 %v7189_v17, %v17450_v54  ;;  %v7191_v41 = vpop.f32.mrb[107].mxu1  ;;  %v17465_v17 = vld [vmem:[#allocation84_spill] sm:$0xff] }
 0x541   : > { %v7644_v26 = vadd.f32 %v8321_v14, %v15190_v19  ;;  %v8323_v30 = vadd.f32 %v7191_v41, %v17451_v20  ;;  %v17466_v41 = vld [vmem:[#allocation40_spill] sm:$0xff] }
 0x542   : > { %7739 = vst [vmem:[%s15196_s18 + $0x1c0] sm:$0xff] %v7643_v5  ;;  %v7645_v23 = vadd.f32 %v8322_v63, %v15188_v34 }
 0x543   : > { %7740 = vst [vmem:[%s15196_s18 + $0x1c8] sm:$0xff] %v7644_v26  ;;  %v7646_v22 = vadd.f32 %v8323_v30, %v15190_v19 }
 0x544   : > { %7741 = vst [vmem:[%s15196_s18 + $0x1d0] sm:$0xff] %v7645_v23  ;;  %v17467_v23 = vld [vmem:[#allocation203_spill] sm:$0xff] }
 0x545   : > { %7742 = vst [vmem:[%s15196_s18 + $0x1d8] sm:$0xff] %v7646_v22  ;;  %v7195_v18 = vpop.f32.mrb[108].mxu1 }
 0x546   : > { %v8324_v40 = vadd.f32 %v7195_v18, %v17452_v52  ;;  %v7197_v51 = vpop.f32.mrb[109].mxu1 }
 0x547   : > { %v8325_v58 = vadd.f32 %v7197_v51, %v17453_v13  ;;  %v7199_v59 = vpop.f32.mrb[110].mxu1  ;;  %v17468_v51 = vld [vmem:[#allocation45_spill] sm:$0xff] }
 0x548   : > { %v7647_v35 = vadd.f32 %v8324_v40, %v15188_v34  ;;  %v8326_v9 = vadd.f32 %v7199_v59, %v17454_v33  ;;  %v7201_v28 = vpop.f32.mrb[111].mxu1  ;;  %v17469_v59 = vld [vmem:[#allocation105_spill] sm:$0xff] }
 0x549   : > { %v7648_v31 = vadd.f32 %v8325_v58, %v15190_v19  ;;  %v8327_v53 = vadd.f32 %v7201_v28, %v17455_v48  ;;  %v17470_v28 = vld [vmem:[#allocation46_spill] sm:$0xff] }
 0x54a   : > { %7743 = vst [vmem:[%s15196_s18 + $0x1e0] sm:$0xff] %v7647_v35  ;;  %v7649_v0 = vadd.f32 %v8326_v9, %v15188_v34 }
 0x54b   : > { %7744 = vst [vmem:[%s15196_s18 + $0x1e8] sm:$0xff] %v7648_v31  ;;  %v7650_v1 = vadd.f32 %v8327_v53, %v15190_v19 }
 0x54c   : > { %7745 = vst [vmem:[%s15196_s18 + $0x1f0] sm:$0xff] %v7649_v0  ;;  %v17471_v0 = vld [vmem:[#allocation167_spill] sm:$0xff] }
 0x54d   : > { %7746 = vst [vmem:[%s15196_s18 + $0x1f8] sm:$0xff] %v7650_v1  ;;  %v7205_v11 = vpop.f32.mrb[112].mxu1 }
 0x54e   : > { %v8328_v55 = vadd.f32 %v7205_v11, %v17456_v43  ;;  %v7207_v4 = vpop.f32.mrb[113].mxu1 }
 0x54f   : > { %v8329_v62 = vadd.f32 %v7207_v4, %v17457_v61  ;;  %v7209_v2 = vpop.f32.mrb[114].mxu1  ;;  %v17472_v4 = vld [vmem:[#allocation189_spill] sm:$0xff] }
 0x550   : > { %v7651_v49 = vadd.f32 %v8328_v55, %v15188_v34  ;;  %v8330_v10 = vadd.f32 %v7209_v2, %v17458_v15  ;;  %v7211_v25 = vpop.f32.mrb[115].mxu1  ;;  %v17473_v2 = vld [vmem:[#allocation102_spill] sm:$0xff] }
 0x551   : > { %v7652_v12 = vadd.f32 %v8329_v62, %v15190_v19  ;;  %v8331_v24 = vadd.f32 %v7211_v25, %v17459_v44  ;;  %v17474_v25 = vld [vmem:[#allocation179_spill] sm:$0xff] }
 0x552   : > { %7747 = vst [vmem:[%s15196_s18 + $0x200] sm:$0xff] %v7651_v49  ;;  %v7653_v39 = vadd.f32 %v8330_v10, %v15188_v34 }
 0x553   : > { %7748 = vst [vmem:[%s15196_s18 + $0x208] sm:$0xff] %v7652_v12  ;;  %v7654_v46 = vadd.f32 %v8331_v24, %v15190_v19 }
 0x554   : > { %7749 = vst [vmem:[%s15196_s18 + $0x210] sm:$0xff] %v7653_v39  ;;  %v17475_v39 = vld [vmem:[#allocation127_spill] sm:$0xff] }
 0x555   : > { %7750 = vst [vmem:[%s15196_s18 + $0x218] sm:$0xff] %v7654_v46  ;;  %v7215_v8 = vpop.f32.mrb[116].mxu1 }
 0x556   : > { %v8332_v16 = vadd.f32 %v7215_v8, %v17460_v50  ;;  %v7217_v37 = vpop.f32.mrb[117].mxu1 }
 0x557   : > { %v8333_v7 = vadd.f32 %v7217_v37, %v17461_v57  ;;  %v7219_v47 = vpop.f32.mrb[118].mxu1  ;;  %v17476_v37 = vld [vmem:[#allocation15_spill] sm:$0xff] }
 0x558   : > { %v7655_v38 = vadd.f32 %v8332_v16, %v15188_v34  ;;  %v8334_v60 = vadd.f32 %v7219_v47, %v17462_v32  ;;  %v7221_v3 = vpop.f32.mrb[119].mxu1  ;;  %v17477_v47 = vld [vmem:[#allocation95_spill] sm:$0xff] }
 0x559   : > { %v7656_v29 = vadd.f32 %v8333_v7, %v15190_v19  ;;  %v8335_v45 = vadd.f32 %v7221_v3, %v17463_v42  ;;  %v17478_v3 = vld [vmem:[#allocation170_spill] sm:$0xff] }
 0x55a   : > { %7751 = vst [vmem:[%s15196_s18 + $0x220] sm:$0xff] %v7655_v38  ;;  %v7657_v27 = vadd.f32 %v8334_v60, %v15188_v34 }
 0x55b   : > { %7752 = vst [vmem:[%s15196_s18 + $0x228] sm:$0xff] %v7656_v29  ;;  %v7658_v21 = vadd.f32 %v8335_v45, %v15190_v19 }
 0x55c   : > { %7753 = vst [vmem:[%s15196_s18 + $0x230] sm:$0xff] %v7657_v27  ;;  %v17479_v27 = vld [vmem:[#allocation181_spill] sm:$0xff] }
 0x55d   : > { %7754 = vst [vmem:[%s15196_s18 + $0x238] sm:$0xff] %v7658_v21  ;;  %v7225_v6 = vpop.f32.mrb[120].mxu1 }
 0x55e   : > { %v8336_v56 = vadd.f32 %v7225_v6, %v17464_v36  ;;  %v7227_v14 = vpop.f32.mrb[121].mxu1 }
 0x55f   : > { %v8337_v5 = vadd.f32 %v7227_v14, %v17465_v17  ;;  %v7229_v54 = vpop.f32.mrb[122].mxu1  ;;  %v17480_v14 = vld [vmem:[#allocation13_spill] sm:$0xff] }
 0x560   : > { %v7659_v63 = vadd.f32 %v8336_v56, %v15188_v34  ;;  %v8338_v26 = vadd.f32 %v7229_v54, %v17466_v41  ;;  %v7231_v20 = vpop.f32.mrb[123].mxu1  ;;  %v17481_v54 = vld [vmem:[#allocation96_spill] sm:$0xff] }
 0x561   : > { %v7660_v30 = vadd.f32 %v8337_v5, %v15190_v19  ;;  %v8339_v22 = vadd.f32 %v7231_v20, %v17467_v23  ;;  %v17482_v20 = vld [vmem:[#allocation104_spill] sm:$0xff] }
 0x562   : > { %7755 = vst [vmem:[%s15196_s18 + $0x240] sm:$0xff] %v7659_v63  ;;  %v7661_v18 = vadd.f32 %v8338_v26, %v15188_v34 }
 0x563   : > { %7756 = vst [vmem:[%s15196_s18 + $0x248] sm:$0xff] %v7660_v30  ;;  %v7662_v52 = vadd.f32 %v8339_v22, %v15190_v19 }
 0x564   : > { %7757 = vst [vmem:[%s15196_s18 + $0x250] sm:$0xff] %v7661_v18  ;;  %v17483_v18 = vld [vmem:[#allocation98_spill] sm:$0xff] }
 0x565   : > { %7758 = vst [vmem:[%s15196_s18 + $0x258] sm:$0xff] %v7662_v52  ;;  %v7235_v40 = vpop.f32.mrb[124].mxu1 }
 0x566   : > { %v8340_v13 = vadd.f32 %v7235_v40, %v17468_v51  ;;  %v7237_v58 = vpop.f32.mrb[125].mxu1 }
 0x567   : > { %v8341_v35 = vadd.f32 %v7237_v58, %v17469_v59  ;;  %v7239_v33 = vpop.f32.mrb[126].mxu1  ;;  %v17484_v58 = vld [vmem:[#allocation92_spill] sm:$0xff] }
 0x568   : > { %v7663_v9 = vadd.f32 %v8340_v13, %v15188_v34  ;;  %v8342_v31 = vadd.f32 %v7239_v33, %v17470_v28  ;;  %v7241_v48 = vpop.f32.mrb[127].mxu1  ;;  %v17485_v33 = vld [vmem:[#allocation93_spill] sm:$0xff] }
 0x569   : > { %v7664_v53 = vadd.f32 %v8341_v35, %v15190_v19  ;;  %v8343_v1 = vadd.f32 %v7241_v48, %v17471_v0  ;;  %v17486_v48 = vld [vmem:[#allocation99_spill] sm:$0xff] }
 0x56a   : > { %7759 = vst [vmem:[%s15196_s18 + $0x260] sm:$0xff] %v7663_v9  ;;  %v7665_v11 = vadd.f32 %v8342_v31, %v15188_v34 }
 0x56b   : > { %7760 = vst [vmem:[%s15196_s18 + $0x268] sm:$0xff] %v7664_v53  ;;  %v7666_v43 = vadd.f32 %v8343_v1, %v15190_v19 }
 0x56c   : > { %7761 = vst [vmem:[%s15196_s18 + $0x270] sm:$0xff] %v7665_v11  ;;  %v17487_v11 = vld [vmem:[#allocation148_spill] sm:$0xff] }
 0x56d   : > { %7762 = vst [vmem:[%s15196_s18 + $0x278] sm:$0xff] %v7666_v43  ;;  %v7245_v55 = vpop.f32.mrb[128].mxu1 }
 0x56e   : > { %v8344_v61 = vadd.f32 %v7245_v55, %v17472_v4  ;;  %v7247_v62 = vpop.f32.mrb[129].mxu1 }
 0x56f   : > { %v8345_v49 = vadd.f32 %v7247_v62, %v17473_v2  ;;  %v7249_v15 = vpop.f32.mrb[130].mxu1 }
 0x570   : > { %v7667_v10 = vadd.f32 %v8344_v61, %v15188_v34  ;;  %v8346_v12 = vadd.f32 %v7249_v15, %v17474_v25  ;;  %v7251_v44 = vpop.f32.mrb[131].mxu1 }
 0x571   : > { %v7668_v24 = vadd.f32 %v8345_v49, %v15190_v19  ;;  %v8347_v46 = vadd.f32 %v7251_v44, %v17475_v39 }
 0x572   : > { %7763 = vst [vmem:[%s15196_s18 + $0x280] sm:$0xff] %v7667_v10  ;;  %v7669_v8 = vadd.f32 %v8346_v12, %v15188_v34 }
 0x573   : > { %7764 = vst [vmem:[%s15196_s18 + $0x288] sm:$0xff] %v7668_v24  ;;  %v7670_v50 = vadd.f32 %v8347_v46, %v15190_v19 }
 0x574   : > { %7765 = vst [vmem:[%s15196_s18 + $0x290] sm:$0xff] %v7669_v8 }
 0x575   : > { %7766 = vst [vmem:[%s15196_s18 + $0x298] sm:$0xff] %v7670_v50  ;;  %v7255_v16 = vpop.f32.mrb[132].mxu1 }
 0x576   : > { %v8348_v57 = vadd.f32 %v7255_v16, %v17476_v37  ;;  %v7257_v7 = vpop.f32.mrb[133].mxu1 }
 0x577   : > { %v8349_v38 = vadd.f32 %v7257_v7, %v17477_v47  ;;  %v7259_v32 = vpop.f32.mrb[134].mxu1 }
 0x578   : > { %v7671_v60 = vadd.f32 %v8348_v57, %v15188_v34  ;;  %v8350_v29 = vadd.f32 %v7259_v32, %v17478_v3  ;;  %v7261_v42 = vpop.f32.mrb[135].mxu1 }
 0x579   : > { %v7672_v45 = vadd.f32 %v8349_v38, %v15190_v19  ;;  %v8351_v21 = vadd.f32 %v7261_v42, %v17479_v27 }
 0x57a   : > { %7767 = vst [vmem:[%s15196_s18 + $0x2a0] sm:$0xff] %v7671_v60  ;;  %v7673_v6 = vadd.f32 %v8350_v29, %v15188_v34 }
 0x57b   : > { %7768 = vst [vmem:[%s15196_s18 + $0x2a8] sm:$0xff] %v7672_v45  ;;  %v7674_v36 = vadd.f32 %v8351_v21, %v15190_v19 }
 0x57c   : > { %7769 = vst [vmem:[%s15196_s18 + $0x2b0] sm:$0xff] %v7673_v6 }
 0x57d   : > { %7770 = vst [vmem:[%s15196_s18 + $0x2b8] sm:$0xff] %v7674_v36  ;;  %v7265_v56 = vpop.f32.mrb[136].mxu1 }
 0x57e   : > { %v8352_v17 = vadd.f32 %v7265_v56, %v17480_v14  ;;  %v7267_v5 = vpop.f32.mrb[137].mxu1 }
 0x57f   : > { %v8353_v63 = vadd.f32 %v7267_v5, %v17481_v54  ;;  %v7269_v41 = vpop.f32.mrb[138].mxu1 }
 0x580   : > { %v7675_v26 = vadd.f32 %v8352_v17, %v15188_v34  ;;  %v8354_v30 = vadd.f32 %v7269_v41, %v17482_v20  ;;  %v7271_v23 = vpop.f32.mrb[139].mxu1 }
 0x581   : > { %v7676_v22 = vadd.f32 %v8353_v63, %v15190_v19  ;;  %v8355_v52 = vadd.f32 %v7271_v23, %v17483_v18 }
 0x582   : > { %7771 = vst [vmem:[%s15196_s18 + $0x2c0] sm:$0xff] %v7675_v26  ;;  %v7677_v40 = vadd.f32 %v8354_v30, %v15188_v34 }
 0x583   : > { %7772 = vst [vmem:[%s15196_s18 + $0x2c8] sm:$0xff] %v7676_v22  ;;  %v7678_v51 = vadd.f32 %v8355_v52, %v15190_v19 }
 0x584   : > { %7773 = vst [vmem:[%s15196_s18 + $0x2d0] sm:$0xff] %v7677_v40 }
 0x585   : > { %7774 = vst [vmem:[%s15196_s18 + $0x2d8] sm:$0xff] %v7678_v51  ;;  %v7275_v13 = vpop.f32.mrb[140].mxu1 }
 0x586   : > { %v8356_v59 = vadd.f32 %v7275_v13, %v17484_v58  ;;  %v7277_v35 = vpop.f32.mrb[141].mxu1 }
 0x587   : > { %v8357_v9 = vadd.f32 %v7277_v35, %v17485_v33  ;;  %v7279_v28 = vpop.f32.mrb[142].mxu1 }
 0x588   : > { %v7679_v31 = vadd.f32 %v8356_v59, %v15188_v34  ;;  %v8358_v53 = vadd.f32 %v7279_v28, %v17486_v48  ;;  %v7281_v0 = vpop.f32.mrb[143].mxu1 }
 0x589   : > { %v7680_v1 = vadd.f32 %v8357_v9, %v15190_v19  ;;  %v8359_v43 = vadd.f32 %v7281_v0, %v17487_v11 }
 0x58a   : > { %7775 = vst [vmem:[%s15196_s18 + $0x2e0] sm:$0xff] %v7679_v31  ;;  %v7681_v55 = vadd.f32 %v8358_v53, %v15188_v34 }
 0x58b   : > { %7776 = vst [vmem:[%s15196_s18 + $0x2e8] sm:$0xff] %v7680_v1  ;;  %v7682_v4 = vadd.f32 %v8359_v43, %v15190_v19 }
 0x58c   : > { %7777 = vst [vmem:[%s15196_s18 + $0x2f0] sm:$0xff] %v7681_v55 }
 0x58d   : > { %7778 = vst [vmem:[%s15196_s18 + $0x2f8] sm:$0xff] %v7682_v4 }
 0x58e   : > { %9299 = shalt.err (!%p9296_p2)
}
 0x58f   : > { %s9300_s19 = scalar_lea.hbm %s15467_s27, 12288  ;;  %s9304_s18 = scalar_lea.hbm %s15531_s7, 24576 }
 0x590   : > { %p9301_p3 = scmp.ne.s32.totalorder %s15467_s27, %s9300_s19  ;;  %p9305_p4 = scmp.lt.u32.totalorder %s15467_s27, %s15531_s7 }
 0x591   : > { %p9306_p6 = scmp.lt.u32.totalorder %s9304_s18, %s9300_s19  ;;  %p9308_p12 = scmp.lt.u32.totalorder %s9300_s19, %s15467_s27 }
 0x592   : > { %p9302_p7 = pnand %p9301_p3, %p9520_p10 }
 0x593   : > { %p9307_p8 = por %p9306_p6, %p9305_p4 }
 0x594   : > { %p9303_p11 = pneg %p9302_p7 }
 0x595   : > { %p9309_p13 = por %p9308_p12, %p9307_p8 }
 0x597   : > { %p9310_p0 = pnand %p9309_p13, %p9303_p11 }
 0x599   : > { %9313 = shalt.err (!%p9310_p0)
}
 0x59a   : > { %s9382_s23 = smov 256   ;;  %s9383_s20 = smov 512  }
 0x59b   : > { %s9384_s13 = smov 16  }
 0x59c   : > { %8466 = dma.vmem_to_hbm [thread:$0]  (%p9520_p10), %s15471_s16, 12288, %s15467_s27, %s7780_s9, %s9382_s23, %s9383_s20, %s9384_s13  }
 0x59d PF: > { %s7811_s0 = sand.u32 1, %s9352_s24   ;;  %p17488_p5 = scmp.ne.s32.totalorder %s15947_s12, 0 }
 0x59e   : > { %p17489_p9 = scmp.ge.s32.totalorder %s9372_s29, 2  ;;  %s7812_s11 = scalar_lea.sflag [#allocation5], %s7811_s0 }
 0x5a0   : > { %p8477_p1 = pnand %p17489_p9, %p17488_p5 }
 0x5a2   : > { %9347 = dma.done.wait (!%p8477_p1), %s7812_s11, 12288  }
 0x5a3   : > { %9349 = vsyncadd (!%p8477_p1), %s7812_s11, 4294955008  ;;  %s24_s29 = sadd.s32 1, %s9372_s29   ;;  %s17490_s24 = smov %s9356_s25 }
 0x5a4   : > { %p21_p2 = scmp.ge.s32.totalorder %s24_s29, 4   ;;  %s17491_s25 = smov %s9360_s26 }
 0x5a5   : > { %s17492_s26 = smov %s9529_s8  ;;  %s17493_s27 = smov %s9368_s28 }
 0x5a6   : > { %s17494_s28 = smov %s17496_s17  ;;  %23 = sbr.rel (!%p21_p2) target bundleno = 9 (0x9), region = 122 }
 0x5ad   :  { %7817 = vsyncpa [#allocation4], 1 }
 0x5ae   :  { %7819 = vsyncpa [#allocation4 + $0x1], 1 }
 0x5af   :  { %7820 = vsyncpa [#allocation7], 1 }
 0x5b0   :  { %7822 = vsyncpa [#allocation7 + $0x1], 1 }
 0x5b1   :  { %7823 = vsyncpa [#allocation5], 1 }
 0x5b2   :  { %7825 = vsyncpa [#allocation5 + $0x1], 1 }

</bundles_post_ra>
